<compile_context>
chip_gen: v6e
topology: v6e:2x2x1
jax: 0.10.0
libtpu: 0.0.40
codegen_flags: <defaults>
</compile_context>

<pallas_src>
import jax
import jax.numpy as jnp
from jax.experimental import pallas as pl
from jax.experimental.pallas import tpu as pltpu


# Per-direction parameter names, in the order they are passed to the kernel.
#   whcat = [Whh^T | Whist^T]       (H, 4H+F)   -- fused h-projection
#   wmcat = [Wih_mask^T | Wc_mask^T] (F, 4H+F)  -- fused mask-projection
PKEYS = ('wgh', 'bgh', 'wgx', 'bgx', 'whcat', 'bhist', 'wfeat', 'bfeat',
         'wc1', 'wmcat', 'bcomb', 'wih1', 'blstm')
NP = len(PKEYS)


# ----------------------------------------------------------------------------
# Fused BRITS kernel: both RITS directions + combine, one invocation.
# ----------------------------------------------------------------------------
def brits_kernel(*refs):
    x_ref, m_ref, df_ref, db_ref = refs[0:4]
    pf = dict(zip(PKEYS, refs[4:4 + NP]))            # forward-direction params
    pb = dict(zip(PKEYS, refs[4 + NP:4 + 2 * NP]))   # backward-direction params
    o0 = 4 + 2 * NP
    (imp_ref, rec_ref, frec_ref, brec_ref, hf_ref, hb_ref,
     cons_ref, rloss_ref) = refs[o0:o0 + 8]
    (ghf_sc, ghb_sc, alf_sc, alb_sc, gpf_sc, gpb_sc,
     mx_sc, omm_sc, wl_sc, fimp_sc, bimp_sc) = refs[o0 + 8:o0 + 19]

    T, B, F = x_ref.shape
    H = ghf_sc.shape[2]
    G = 4 * H

    X = x_ref[...]                     # (T, B, F)
    M = m_ref[...]
    Mf = M.reshape(T * B, F)
    Df = df_ref[...].reshape(T * B, F)     # forward deltas
    Db = db_ref[...].reshape(T * B, F)     # backward deltas (forward-time aligned)

    # ---- hoisted, non-recurrent per-step quantities (batched matmuls) ------
    def hoist(Dflat, P, gh_sc, al_sc, gp_sc):
        # TemporalDecay (hidden): gamma_h = exp(-relu(d @ Wgh^T + b))
        gh = jnp.exp(-jnp.maximum(
            jnp.dot(Dflat, P['wgh'][...], preferred_element_type=jnp.float32)
            + P['bgh'][...], 0.0))
        gh_sc[...] = gh.reshape(T, B, H)
        # TemporalDecay (features, diag=True): only diag(W) contributes
        gx = jnp.exp(-jnp.maximum(Dflat * P['wgx'][...] + P['bgx'][...], 0.0))
        # fused mask projection: [LSTM-gate mask part | combining-weight mask part]
        mcat = jnp.dot(Mf, P['wmcat'][...], preferred_element_type=jnp.float32)
        gp_sc[...] = (mcat[:, :G] + P['blstm'][...]).reshape(T, B, G)
        # combining weight: sigmoid(Linear(cat([gamma_x, m]))) — non-recurrent
        al = jax.nn.sigmoid(
            jnp.dot(gx, P['wc1'][...], preferred_element_type=jnp.float32)
            + mcat[:, G:] + P['bcomb'][...])
        al_sc[...] = al.reshape(T, B, F)

    hoist(Df, pf, ghf_sc, alf_sc, gpf_sc)
    hoist(Db, pb, ghb_sc, alb_sc, gpb_sc)

    # shared (both directions use the same X / mask at a given original time)
    mx_sc[...] = M * X                    # m * x
    omm_sc[...] = 1.0 - M                 # (1 - m)
    msum = jnp.sum(jnp.sum(M, axis=2, keepdims=True), axis=1,
                   keepdims=True) + 1e-12                 # (T, 1, 1)
    wl_sc[...] = M * (1.0 / msum)         # per-step masked-MAE weight

    # hoisted bias broadcasts for the in-loop regressions
    bh_f = jnp.broadcast_to(pf['bhist'][...], (B, F))
    bf_f = jnp.broadcast_to(pf['bfeat'][...], (B, F))
    bh_b = jnp.broadcast_to(pb['bhist'][...], (B, F))
    bf_b = jnp.broadcast_to(pb['bfeat'][...], (B, F))

    # ---- recurrent part: only h/c-dependent work stays in the loop ---------
    def rits_step(tt, h, c, P, bh, bf, gh_sc, al_sc, gp_sc, rec_out, imp_out):
        x = x_ref[tt]                     # (B, F)
        mx = mx_sc[tt]
        omm = omm_sc[tt]
        wl = wl_sc[tt]

        h = h * gh_sc[tt]                 # decayed hidden state
        # fused h-projection: columns [:G] -> LSTM gates, [G:] -> hist_reg
        hcat = jnp.dot(h, P['whcat'][...],
                       preferred_element_type=jnp.float32)   # (B, 4H+F)
        x_h = hcat[:, G:] + bh
        x_c = mx + omm * x_h
        # feature regression on complemented input
        z_h = jnp.dot(x_c, P['wfeat'][...],
                      preferred_element_type=jnp.float32) + bf
        a = al_sc[tt]
        c_h = x_h + a * (z_h - x_h)       # alpha*z_h + (1-alpha)*x_h
        c_c = mx + omm * c_h

        rec_out[tt] = c_h
        imp_out[tt] = c_c                 # = m*x + (1-m)*recon

        # deferred masked-MAE accumulation (reduced to scalar after the loop)
        lt = (jnp.abs(x_h - x) + jnp.abs(z_h - x) + jnp.abs(c_h - x)) * wl

        # LSTM cell on cat([c_c, m]); m-part already hoisted into gp_sc
        gates = (jnp.dot(c_c, P['wih1'][...],
                         preferred_element_type=jnp.float32)
                 + hcat[:, :G] + gp_sc[tt])                   # (B, 4H)
        i_g = jax.nn.sigmoid(gates[:, 0:H])
        f_g = jax.nn.sigmoid(gates[:, H:2 * H])
        g_g = jnp.tanh(gates[:, 2 * H:3 * H])
        o_g = jax.nn.sigmoid(gates[:, 3 * H:4 * H])
        c_new = f_g * c + i_g * g_g
        h_new = o_g * jnp.tanh(c_new)
        return h_new, c_new, lt

    def body(t, carry):
        h_f, c_f, h_b, c_b, lacc = carry
        tb = T - 1 - t                    # backward chain reads reversed time
        h_f, c_f, lt_f = rits_step(t, h_f, c_f, pf, bh_f, bf_f,
                                   ghf_sc, alf_sc, gpf_sc, frec_ref, fimp_sc)
        h_b, c_b, lt_b = rits_step(tb, h_b, c_b, pb, bh_b, bf_b,
                                   ghb_sc, alb_sc, gpb_sc, brec_ref, bimp_sc)
        return h_f, c_f, h_b, c_b, lacc + lt_f + lt_b

    zero_h = jnp.zeros((B, H), jnp.float32)
    zero_l = jnp.zeros((B, F), jnp.float32)
    h_f, c_f, h_b, c_b, lacc = jax.lax.fori_loop(
        0, T, body, (zero_h, zero_h, zero_h, zero_h, zero_l), unroll=True)

    # ---- finalize: losses and bidirectional combine ------------------------
    hf_ref[...] = h_f
    hb_ref[...] = h_b
    # f_loss + b_loss, each averaged over (n_steps * 3)
    rloss_ref[...] = jnp.sum(lacc, keepdims=True) / (T * 3.0)

    fimp = fimp_sc[...]
    bimp = bimp_sc[...]
    imp_ref[...] = (fimp + bimp) * 0.5
    rec_ref[...] = (frec_ref[...] + brec_ref[...]) * 0.5
    diff = jnp.abs(fimp - bimp)
    cons_ref[...] = (jnp.sum(jnp.sum(diff, axis=0), keepdims=True)
                     / float(T * B * F)) * 0.1


# ----------------------------------------------------------------------------
# Wrapper
# ----------------------------------------------------------------------------
def _full_spec(shape):
    n = len(shape)
    return pl.BlockSpec(shape, lambda i, _n=n: (0,) * _n)


@jax.jit
def run_brits(X_btf, M_btf, Df_btf, Db_btf, params_f, params_b):
    """X/M/forward-deltas in the PyTorch (B, T, F) convention.
    Db_btf are the backward-direction deltas in *backward* time order
    (i.e. inputs['backward']['deltas'] from the PyTorch module)."""
    to_tbf = lambda a: jnp.transpose(a, (1, 0, 2))
    X, M, Df = to_tbf(X_btf), to_tbf(M_btf), to_tbf(Df_btf)
    # Align backward deltas to forward (original) time order so the kernel can
    # index them with T-1-t exactly like the (shared) X / mask arrays.
    Db = jnp.flip(to_tbf(Db_btf), axis=0)
    T, B, F = X.shape
    H = params_f['wgh'].shape[1]

    args = [X, M, Df, Db]
    for p in (params_f, params_b):
        args += [p[k] for k in PKEYS]

    out_shapes = (
        jax.ShapeDtypeStruct((T, B, F), jnp.float32),   # imputed_data (combined)
        jax.ShapeDtypeStruct((T, B, F), jnp.float32),   # reconstruction (combined)
        jax.ShapeDtypeStruct((T, B, F), jnp.float32),   # f_reconstruction
        jax.ShapeDtypeStruct((T, B, F), jnp.float32),   # b_reconstruction
        jax.ShapeDtypeStruct((B, H), jnp.float32),      # f hidden state
        jax.ShapeDtypeStruct((B, H), jnp.float32),      # b hidden state
        jax.ShapeDtypeStruct((1, 1), jnp.float32),      # consistency loss
        jax.ShapeDtypeStruct((1, 1), jnp.float32),      # reconstruction loss
    )
    scratch_shapes = [
        pltpu.VMEM((T, B, H), jnp.float32),      # gamma_h forward
        pltpu.VMEM((T, B, H), jnp.float32),      # gamma_h backward
        pltpu.VMEM((T, B, F), jnp.float32),      # alpha forward
        pltpu.VMEM((T, B, F), jnp.float32),      # alpha backward
        pltpu.VMEM((T, B, 4 * H), jnp.float32),  # hoisted gate terms forward
        pltpu.VMEM((T, B, 4 * H), jnp.float32),  # hoisted gate terms backward
        pltpu.VMEM((T, B, F), jnp.float32),      # m * x
        pltpu.VMEM((T, B, F), jnp.float32),      # 1 - m
        pltpu.VMEM((T, B, F), jnp.float32),      # masked-MAE weights
        pltpu.VMEM((T, B, F), jnp.float32),      # forward imputed
        pltpu.VMEM((T, B, F), jnp.float32),      # backward imputed
    ]

    (imp, rec, frec, brec, hf, hb, cons, rloss) = pl.pallas_call(
        brits_kernel,
        out_shape=out_shapes,
        grid=(1,),
        in_specs=[_full_spec(a.shape) for a in args],
        out_specs=tuple(_full_spec(s.shape) for s in out_shapes),
        scratch_shapes=scratch_shapes,
        compiler_params=pltpu.CompilerParams(dimension_semantics=("arbitrary",)),
    )(*args)

    to_btf = lambda a: jnp.transpose(a, (1, 0, 2))
    consistency_loss = cons[0, 0]
    reconstruction_loss = rloss[0, 0]
    return {
        'imputed_data': to_btf(imp),
        'consistency_loss': consistency_loss,
        'reconstruction_loss': reconstruction_loss,
        'loss': consistency_loss + reconstruction_loss,
        'reconstruction': to_btf(rec),
        'f_reconstruction': to_btf(frec),
        'b_reconstruction': to_btf(brec),
        # Extras (not part of Model.forward's dict).  BackboneBRITS._reverse
        # flips the backward hidden state along its (hidden) dim 1; mirrored.
        'f_hidden_states': hf,
        'b_hidden_states': jnp.flip(hb, axis=1),
    }


# ----------------------------------------------------------------------------
# Deterministic parameter construction (mirrors the PyTorch module __init__)
# ----------------------------------------------------------------------------
def init_rits_params(key, n_features, hidden):
    F, H = n_features, hidden
    ks = jax.random.split(key, 14)
    u = lambda k, shape, s: jax.random.uniform(k, shape, jnp.float32, -s, s)
    sH, sF, s2F = H ** -0.5, F ** -0.5, (2 * F) ** -0.5
    return dict(
        Wgh=u(ks[0], (H, F), sH),    bgh=u(ks[1], (H,), sH),     # temp_decay_h
        Wgx=u(ks[2], (F, F), sF),    bgx=u(ks[3], (F,), sF),     # temp_decay_x (diag)
        Whist=u(ks[4], (F, H), sH),  bhist=u(ks[5], (F,), sH),   # hist_reg Linear(H,F)
        Wfeat=u(ks[6], (F, F), sF),  bfeat=u(ks[7], (F,), sF),   # feat_reg
        Wcomb=u(ks[8], (F, 2 * F), s2F), bcomb=u(ks[9], (F,), s2F),  # combining_weight
        Wih=u(ks[10], (4 * H, 2 * F), sH), Whh=u(ks[11], (4 * H, H), sH),  # LSTMCell
        bih=u(ks[12], (4 * H,), sH), bhh=u(ks[13], (4 * H,), sH),
    )


def kernel_params(p, F, H):
    """Rearrange the PyTorch-shaped parameters into the fused kernel layout."""
    off_diag = 1.0 - jnp.eye(F, dtype=jnp.float32)
    wih = p['Wih']                                    # (4H, 2F), inputs = [x, m]
    wih1 = wih[:, :F].T                               # (F, 4H)  data part
    wih2 = wih[:, F:].T                               # (F, 4H)  mask part
    wc1 = p['Wcomb'][:, :F].T                         # (F, F)   gamma_x part
    wc2 = p['Wcomb'][:, F:].T                         # (F, F)   mask part
    return dict(
        wgh=p['Wgh'].T,                          bgh=p['bgh'][None, :],
        wgx=jnp.diagonal(p['Wgx'])[None, :],     bgx=p['bgx'][None, :],
        # gate part first so the [:, :4H] slice is lane-tile aligned in-kernel
        whcat=jnp.concatenate([p['Whh'].T, p['Whist'].T], axis=1),  # (H, 4H+F)
        bhist=p['bhist'][None, :],
        wfeat=(p['Wfeat'] * off_diag).T,         bfeat=p['bfeat'][None, :],
        wc1=wc1,                                 bcomb=p['bcomb'][None, :],
        wmcat=jnp.concatenate([wih2, wc2], axis=1),                 # (F, 4H+F)
        wih1=wih1,
        blstm=(p['bih'] + p['bhh'])[None, :],
    )


# ----------------------------------------------------------------------------
# Main
# ----------------------------------------------------------------------------
if __name__ == "__main__":
    key = jax.random.PRNGKey(0)
    B, T, F, H = 8, 8, 16, 32          # batch, n_steps, n_features, rnn_hidden

    k_data, k_pf, k_pb = jax.random.split(key, 3)
    kx, km, kd = jax.random.split(k_data, 3)
    X_full = jax.random.normal(kx, (B, T, F), jnp.float32)
    missing_mask = (jax.random.uniform(km, (B, T, F)) < 0.8).astype(jnp.float32)
    X = X_full * missing_mask          # BRITS convention: missing values are 0
    deltas_f = jax.random.uniform(kd, (B, T, F), jnp.float32, 0.0, 2.0)
    # Backward-direction deltas, in backward time order (like the module's
    # inputs['backward']['deltas']); synthetic here = flipped forward deltas.
    deltas_b = jnp.flip(deltas_f, axis=1)

    pf = kernel_params(init_rits_params(k_pf, F, H), F, H)   # rits_f params
    pb = kernel_params(init_rits_params(k_pb, F, H), F, H)   # rits_b params

    results = run_brits(X, missing_mask, deltas_f, deltas_b, pf, pb)

    # TODO(synk): the host-side NaN assertions in _check_inputs are validation
    # glue with no in-kernel equivalent; omitted.
    results = jax.block_until_ready(results)
    assert bool(jnp.isfinite(results['loss'])), "non-finite loss"
    assert results['imputed_data'].shape == (B, T, F)
    assert results['f_reconstruction'].shape == (B, T, F)
    print("KERNEL_OK")
</pallas_src>

<mosaic_0001>
module attributes {stable_mosaic.version = 11 : i64} {
  func.func @brits_kernel(%arg0: i32, %arg1: memref<8x8x16xf32, #tpu.memory_space<vmem>>, %arg2: memref<8x8x16xf32, #tpu.memory_space<vmem>>, %arg3: memref<8x8x16xf32, #tpu.memory_space<vmem>>, %arg4: memref<8x8x16xf32, #tpu.memory_space<vmem>>, %arg5: memref<16x32xf32, #tpu.memory_space<vmem>>, %arg6: memref<1x32xf32, #tpu.memory_space<vmem>>, %arg7: memref<1x16xf32, #tpu.memory_space<vmem>>, %arg8: memref<1x16xf32, #tpu.memory_space<vmem>>, %arg9: memref<32x144xf32, #tpu.memory_space<vmem>>, %arg10: memref<1x16xf32, #tpu.memory_space<vmem>>, %arg11: memref<16x16xf32, #tpu.memory_space<vmem>>, %arg12: memref<1x16xf32, #tpu.memory_space<vmem>>, %arg13: memref<16x16xf32, #tpu.memory_space<vmem>>, %arg14: memref<16x144xf32, #tpu.memory_space<vmem>>, %arg15: memref<1x16xf32, #tpu.memory_space<vmem>>, %arg16: memref<16x128xf32, #tpu.memory_space<vmem>>, %arg17: memref<1x128xf32, #tpu.memory_space<vmem>>, %arg18: memref<16x32xf32, #tpu.memory_space<vmem>>, %arg19: memref<1x32xf32, #tpu.memory_space<vmem>>, %arg20: memref<1x16xf32, #tpu.memory_space<vmem>>, %arg21: memref<1x16xf32, #tpu.memory_space<vmem>>, %arg22: memref<32x144xf32, #tpu.memory_space<vmem>>, %arg23: memref<1x16xf32, #tpu.memory_space<vmem>>, %arg24: memref<16x16xf32, #tpu.memory_space<vmem>>, %arg25: memref<1x16xf32, #tpu.memory_space<vmem>>, %arg26: memref<16x16xf32, #tpu.memory_space<vmem>>, %arg27: memref<16x144xf32, #tpu.memory_space<vmem>>, %arg28: memref<1x16xf32, #tpu.memory_space<vmem>>, %arg29: memref<16x128xf32, #tpu.memory_space<vmem>>, %arg30: memref<1x128xf32, #tpu.memory_space<vmem>>, %arg31: memref<8x8x16xf32, #tpu.memory_space<vmem>>, %arg32: memref<8x8x16xf32, #tpu.memory_space<vmem>>, %arg33: memref<8x8x16xf32, #tpu.memory_space<vmem>>, %arg34: memref<8x8x16xf32, #tpu.memory_space<vmem>>, %arg35: memref<8x32xf32, #tpu.memory_space<vmem>>, %arg36: memref<8x32xf32, #tpu.memory_space<vmem>>, %arg37: memref<1x1xf32, #tpu.memory_space<vmem>>, %arg38: memref<1x1xf32, #tpu.memory_space<vmem>>, %arg39: memref<8x8x32xf32, #tpu.memory_space<vmem>>, %arg40: memref<8x8x32xf32, #tpu.memory_space<vmem>>, %arg41: memref<8x8x16xf32, #tpu.memory_space<vmem>>, %arg42: memref<8x8x16xf32, #tpu.memory_space<vmem>>, %arg43: memref<8x8x128xf32, #tpu.memory_space<vmem>>, %arg44: memref<8x8x128xf32, #tpu.memory_space<vmem>>, %arg45: memref<8x8x16xf32, #tpu.memory_space<vmem>>, %arg46: memref<8x8x16xf32, #tpu.memory_space<vmem>>, %arg47: memref<8x8x16xf32, #tpu.memory_space<vmem>>, %arg48: memref<8x8x16xf32, #tpu.memory_space<vmem>>, %arg49: memref<8x8x16xf32, #tpu.memory_space<vmem>>) attributes {dimension_semantics = [#tpu.dimension_semantics<arbitrary>], iteration_bounds = array<i64: 1>, scalar_prefetch = 0 : i64, scratch_operands = 11 : i64, tpu.core_type = #tpu.core_type<tc>, window_params = [{pipeline_mode = #tpu.pipeline_mode<synchronous>, transform_indices = @transform_0, window_bounds = array<i64: 8, 8, 16>}, {pipeline_mode = #tpu.pipeline_mode<synchronous>, transform_indices = @transform_1, window_bounds = array<i64: 8, 8, 16>}, {pipeline_mode = #tpu.pipeline_mode<synchronous>, transform_indices = @transform_2, window_bounds = array<i64: 8, 8, 16>}, {pipeline_mode = #tpu.pipeline_mode<synchronous>, transform_indices = @transform_3, window_bounds = array<i64: 8, 8, 16>}, {pipeline_mode = #tpu.pipeline_mode<synchronous>, transform_indices = @transform_4, window_bounds = array<i64: 16, 32>}, {pipeline_mode = #tpu.pipeline_mode<synchronous>, transform_indices = @transform_5, window_bounds = array<i64: 1, 32>}, {pipeline_mode = #tpu.pipeline_mode<synchronous>, transform_indices = @transform_6, window_bounds = array<i64: 1, 16>}, {pipeline_mode = #tpu.pipeline_mode<synchronous>, transform_indices = @transform_7, window_bounds = array<i64: 1, 16>}, {pipeline_mode = #tpu.pipeline_mode<synchronous>, transform_indices = @transform_8, window_bounds = array<i64: 32, 144>}, {pipeline_mode = #tpu.pipeline_mode<synchronous>, transform_indices = @transform_9, window_bounds = array<i64: 1, 16>}, {pipeline_mode = #tpu.pipeline_mode<synchronous>, transform_indices = @transform_10, window_bounds = array<i64: 16, 16>}, {pipeline_mode = #tpu.pipeline_mode<synchronous>, transform_indices = @transform_11, window_bounds = array<i64: 1, 16>}, {pipeline_mode = #tpu.pipeline_mode<synchronous>, transform_indices = @transform_12, window_bounds = array<i64: 16, 16>}, {pipeline_mode = #tpu.pipeline_mode<synchronous>, transform_indices = @transform_13, window_bounds = array<i64: 16, 144>}, {pipeline_mode = #tpu.pipeline_mode<synchronous>, transform_indices = @transform_14, window_bounds = array<i64: 1, 16>}, {pipeline_mode = #tpu.pipeline_mode<synchronous>, transform_indices = @transform_15, window_bounds = array<i64: 16, 128>}, {pipeline_mode = #tpu.pipeline_mode<synchronous>, transform_indices = @transform_16, window_bounds = array<i64: 1, 128>}, {pipeline_mode = #tpu.pipeline_mode<synchronous>, transform_indices = @transform_17, window_bounds = array<i64: 16, 32>}, {pipeline_mode = #tpu.pipeline_mode<synchronous>, transform_indices = @transform_18, window_bounds = array<i64: 1, 32>}, {pipeline_mode = #tpu.pipeline_mode<synchronous>, transform_indices = @transform_19, window_bounds = array<i64: 1, 16>}, {pipeline_mode = #tpu.pipeline_mode<synchronous>, transform_indices = @transform_20, window_bounds = array<i64: 1, 16>}, {pipeline_mode = #tpu.pipeline_mode<synchronous>, transform_indices = @transform_21, window_bounds = array<i64: 32, 144>}, {pipeline_mode = #tpu.pipeline_mode<synchronous>, transform_indices = @transform_22, window_bounds = array<i64: 1, 16>}, {pipeline_mode = #tpu.pipeline_mode<synchronous>, transform_indices = @transform_23, window_bounds = array<i64: 16, 16>}, {pipeline_mode = #tpu.pipeline_mode<synchronous>, transform_indices = @transform_24, window_bounds = array<i64: 1, 16>}, {pipeline_mode = #tpu.pipeline_mode<synchronous>, transform_indices = @transform_25, window_bounds = array<i64: 16, 16>}, {pipeline_mode = #tpu.pipeline_mode<synchronous>, transform_indices = @transform_26, window_bounds = array<i64: 16, 144>}, {pipeline_mode = #tpu.pipeline_mode<synchronous>, transform_indices = @transform_27, window_bounds = array<i64: 1, 16>}, {pipeline_mode = #tpu.pipeline_mode<synchronous>, transform_indices = @transform_28, window_bounds = array<i64: 16, 128>}, {pipeline_mode = #tpu.pipeline_mode<synchronous>, transform_indices = @transform_29, window_bounds = array<i64: 1, 128>}, {pipeline_mode = #tpu.pipeline_mode<synchronous>, transform_indices = @transform_30, window_bounds = array<i64: 8, 8, 16>}, {pipeline_mode = #tpu.pipeline_mode<synchronous>, transform_indices = @transform_31, window_bounds = array<i64: 8, 8, 16>}, {pipeline_mode = #tpu.pipeline_mode<synchronous>, transform_indices = @transform_32, window_bounds = array<i64: 8, 8, 16>}, {pipeline_mode = #tpu.pipeline_mode<synchronous>, transform_indices = @transform_33, window_bounds = array<i64: 8, 8, 16>}, {pipeline_mode = #tpu.pipeline_mode<synchronous>, transform_indices = @transform_34, window_bounds = array<i64: 8, 32>}, {pipeline_mode = #tpu.pipeline_mode<synchronous>, transform_indices = @transform_35, window_bounds = array<i64: 8, 32>}, {pipeline_mode = #tpu.pipeline_mode<synchronous>, transform_indices = @transform_36, window_bounds = array<i64: 1, 1>}, {pipeline_mode = #tpu.pipeline_mode<synchronous>, transform_indices = @transform_37, window_bounds = array<i64: 1, 1>}]} {
    %c0 = arith.constant 0 : index
    %c0_0 = arith.constant 0 : index
    %c0_1 = arith.constant 0 : index
    %0 = vector.load %arg1[%c0, %c0_0, %c0_1] : memref<8x8x16xf32, #tpu.memory_space<vmem>>, vector<8x8x16xf32>
    %c0_2 = arith.constant 0 : index
    %c0_3 = arith.constant 0 : index
    %c0_4 = arith.constant 0 : index
    %1 = vector.load %arg2[%c0_2, %c0_3, %c0_4] : memref<8x8x16xf32, #tpu.memory_space<vmem>>, vector<8x8x16xf32>
    %2 = vector.shape_cast %1 : vector<8x8x16xf32> to vector<64x16xf32>
    %c0_5 = arith.constant 0 : index
    %c0_6 = arith.constant 0 : index
    %c0_7 = arith.constant 0 : index
    %3 = vector.load %arg3[%c0_5, %c0_6, %c0_7] : memref<8x8x16xf32, #tpu.memory_space<vmem>>, vector<8x8x16xf32>
    %4 = vector.shape_cast %3 : vector<8x8x16xf32> to vector<64x16xf32>
    %c0_8 = arith.constant 0 : index
    %c0_9 = arith.constant 0 : index
    %c0_10 = arith.constant 0 : index
    %5 = vector.load %arg4[%c0_8, %c0_9, %c0_10] : memref<8x8x16xf32, #tpu.memory_space<vmem>>, vector<8x8x16xf32>
    %6 = vector.shape_cast %5 : vector<8x8x16xf32> to vector<64x16xf32>
    %c0_11 = arith.constant 0 : index
    %c0_12 = arith.constant 0 : index
    %7 = vector.load %arg5[%c0_11, %c0_12] : memref<16x32xf32, #tpu.memory_space<vmem>>, vector<16x32xf32>
    %cst = arith.constant dense<0.000000e+00> : vector<64x32xf32>
    %8 = tpu.matmul %4, %7, %cst {dimension_numbers = #tpu.dot_dimension_numbers<[1], [0], [0], [1], [0, 0, 1, 1], [], []>} : vector<64x16xf32>, vector<16x32xf32>, vector<64x32xf32> -> vector<64x32xf32>
    %c0_13 = arith.constant 0 : index
    %c0_14 = arith.constant 0 : index
    %9 = vector.load %arg6[%c0_13, %c0_14] : memref<1x32xf32, #tpu.memory_space<vmem>>, vector<1x32xf32>
    %10 = vector.broadcast %9 : vector<1x32xf32> to vector<64x32xf32>
    %11 = arith.addf %8, %10 : vector<64x32xf32>
    %cst_15 = arith.constant 0.000000e+00 : f32
    %12 = vector.broadcast %cst_15 : f32 to vector<64x32xf32>
    %13 = arith.maximumf %11, %12 : vector<64x32xf32>
    %cst_16 = arith.constant 0.000000e+00 : f32
    %14 = vector.broadcast %cst_16 : f32 to vector<64x32xf32>
    %15 = arith.subf %14, %13 : vector<64x32xf32>
    %16 = math.exp %15 : vector<64x32xf32>
    %17 = vector.shape_cast %16 : vector<64x32xf32> to vector<8x8x32xf32>
    %c0_17 = arith.constant 0 : index
    %c0_18 = arith.constant 0 : index
    %c0_19 = arith.constant 0 : index
    %18 = vector.load %arg39[%c0_17, %c0_18, %c0_19] : memref<8x8x32xf32, #tpu.memory_space<vmem>>, vector<8x8x32xf32>
    tpu.vector_store %arg39[%c0_17, %c0_18, %c0_19], %17 {strides = array<i32>} : memref<8x8x32xf32, #tpu.memory_space<vmem>>, vector<8x8x32xf32>,
    %c0_20 = arith.constant 0 : index
    %c0_21 = arith.constant 0 : index
    %19 = vector.load %arg7[%c0_20, %c0_21] : memref<1x16xf32, #tpu.memory_space<vmem>>, vector<1x16xf32>
    %20 = vector.broadcast %19 : vector<1x16xf32> to vector<64x16xf32>
    %21 = arith.mulf %4, %20 : vector<64x16xf32>
    %c0_22 = arith.constant 0 : index
    %c0_23 = arith.constant 0 : index
    %22 = vector.load %arg8[%c0_22, %c0_23] : memref<1x16xf32, #tpu.memory_space<vmem>>, vector<1x16xf32>
    %23 = vector.broadcast %22 : vector<1x16xf32> to vector<64x16xf32>
    %24 = arith.addf %21, %23 : vector<64x16xf32>
    %cst_24 = arith.constant 0.000000e+00 : f32
    %25 = vector.broadcast %cst_24 : f32 to vector<64x16xf32>
    %26 = arith.maximumf %24, %25 : vector<64x16xf32>
    %cst_25 = arith.constant 0.000000e+00 : f32
    %27 = vector.broadcast %cst_25 : f32 to vector<64x16xf32>
    %28 = arith.subf %27, %26 : vector<64x16xf32>
    %29 = math.exp %28 : vector<64x16xf32>
    %c0_26 = arith.constant 0 : index
    %c0_27 = arith.constant 0 : index
    %30 = vector.load %arg14[%c0_26, %c0_27] : memref<16x144xf32, #tpu.memory_space<vmem>>, vector<16x144xf32>
    %cst_28 = arith.constant dense<0.000000e+00> : vector<64x144xf32>
    %31 = tpu.matmul %2, %30, %cst_28 {dimension_numbers = #tpu.dot_dimension_numbers<[1], [0], [0], [1], [0, 0, 1, 1], [], []>} : vector<64x16xf32>, vector<16x144xf32>, vector<64x144xf32> -> vector<64x144xf32>
    %32 = vector.extract_strided_slice %31 {offsets = [0, 0], sizes = [64, 128], strides = [1, 1]} : vector<64x144xf32> to vector<64x128xf32>
    %c0_29 = arith.constant 0 : index
    %c0_30 = arith.constant 0 : index
    %33 = vector.load %arg17[%c0_29, %c0_30] : memref<1x128xf32, #tpu.memory_space<vmem>>, vector<1x128xf32>
    %34 = vector.broadcast %33 : vector<1x128xf32> to vector<64x128xf32>
    %35 = arith.addf %32, %34 : vector<64x128xf32>
    %36 = vector.shape_cast %35 : vector<64x128xf32> to vector<8x8x128xf32>
    %c0_31 = arith.constant 0 : index
    %c0_32 = arith.constant 0 : index
    %c0_33 = arith.constant 0 : index
    %37 = vector.load %arg43[%c0_31, %c0_32, %c0_33] : memref<8x8x128xf32, #tpu.memory_space<vmem>>, vector<8x8x128xf32>
    tpu.vector_store %arg43[%c0_31, %c0_32, %c0_33], %36 {strides = array<i32>} : memref<8x8x128xf32, #tpu.memory_space<vmem>>, vector<8x8x128xf32>,
    %c0_34 = arith.constant 0 : index
    %c0_35 = arith.constant 0 : index
    %38 = vector.load %arg13[%c0_34, %c0_35] : memref<16x16xf32, #tpu.memory_space<vmem>>, vector<16x16xf32>
    %cst_36 = arith.constant dense<0.000000e+00> : vector<64x16xf32>
    %39 = tpu.matmul %29, %38, %cst_36 {dimension_numbers = #tpu.dot_dimension_numbers<[1], [0], [0], [1], [0, 0, 1, 1], [], []>} : vector<64x16xf32>, vector<16x16xf32>, vector<64x16xf32> -> vector<64x16xf32>
    %40 = vector.extract_strided_slice %31 {offsets = [0, 128], sizes = [64, 16], strides = [1, 1]} : vector<64x144xf32> to vector<64x16xf32>
    %41 = arith.addf %39, %40 : vector<64x16xf32>
    %c0_37 = arith.constant 0 : index
    %c0_38 = arith.constant 0 : index
    %42 = vector.load %arg15[%c0_37, %c0_38] : memref<1x16xf32, #tpu.memory_space<vmem>>, vector<1x16xf32>
    %43 = vector.broadcast %42 : vector<1x16xf32> to vector<64x16xf32>
    %44 = arith.addf %41, %43 : vector<64x16xf32>
    %45 = arith.negf %44 : vector<64x16xf32>
    %46 = math.exp %45 : vector<64x16xf32>
    %cst_39 = arith.constant 1.000000e+00 : f32
    %47 = vector.broadcast %cst_39 : f32 to vector<64x16xf32>
    %48 = arith.addf %47, %46 : vector<64x16xf32>
    %49 = arith.divf %47, %48 : vector<64x16xf32>
    %50 = vector.shape_cast %49 : vector<64x16xf32> to vector<8x8x16xf32>
    %c0_40 = arith.constant 0 : index
    %c0_41 = arith.constant 0 : index
    %c0_42 = arith.constant 0 : index
    %51 = vector.load %arg41[%c0_40, %c0_41, %c0_42] : memref<8x8x16xf32, #tpu.memory_space<vmem>>, vector<8x8x16xf32>
    tpu.vector_store %arg41[%c0_40, %c0_41, %c0_42], %50 {strides = array<i32>} : memref<8x8x16xf32, #tpu.memory_space<vmem>>, vector<8x8x16xf32>,
    %c0_43 = arith.constant 0 : index
    %c0_44 = arith.constant 0 : index
    %52 = vector.load %arg18[%c0_43, %c0_44] : memref<16x32xf32, #tpu.memory_space<vmem>>, vector<16x32xf32>
    %cst_45 = arith.constant dense<0.000000e+00> : vector<64x32xf32>
    %53 = tpu.matmul %6, %52, %cst_45 {dimension_numbers = #tpu.dot_dimension_numbers<[1], [0], [0], [1], [0, 0, 1, 1], [], []>} : vector<64x16xf32>, vector<16x32xf32>, vector<64x32xf32> -> vector<64x32xf32>
    %c0_46 = arith.constant 0 : index
    %c0_47 = arith.constant 0 : index
    %54 = vector.load %arg19[%c0_46, %c0_47] : memref<1x32xf32, #tpu.memory_space<vmem>>, vector<1x32xf32>
    %55 = vector.broadcast %54 : vector<1x32xf32> to vector<64x32xf32>
    %56 = arith.addf %53, %55 : vector<64x32xf32>
    %cst_48 = arith.constant 0.000000e+00 : f32
    %57 = vector.broadcast %cst_48 : f32 to vector<64x32xf32>
    %58 = arith.maximumf %56, %57 : vector<64x32xf32>
    %cst_49 = arith.constant 0.000000e+00 : f32
    %59 = vector.broadcast %cst_49 : f32 to vector<64x32xf32>
    %60 = arith.subf %59, %58 : vector<64x32xf32>
    %61 = math.exp %60 : vector<64x32xf32>
    %62 = vector.shape_cast %61 : vector<64x32xf32> to vector<8x8x32xf32>
    %c0_50 = arith.constant 0 : index
    %c0_51 = arith.constant 0 : index
    %c0_52 = arith.constant 0 : index
    %63 = vector.load %arg40[%c0_50, %c0_51, %c0_52] : memref<8x8x32xf32, #tpu.memory_space<vmem>>, vector<8x8x32xf32>
    tpu.vector_store %arg40[%c0_50, %c0_51, %c0_52], %62 {strides = array<i32>} : memref<8x8x32xf32, #tpu.memory_space<vmem>>, vector<8x8x32xf32>,
    %c0_53 = arith.constant 0 : index
    %c0_54 = arith.constant 0 : index
    %64 = vector.load %arg20[%c0_53, %c0_54] : memref<1x16xf32, #tpu.memory_space<vmem>>, vector<1x16xf32>
    %65 = vector.broadcast %64 : vector<1x16xf32> to vector<64x16xf32>
    %66 = arith.mulf %6, %65 : vector<64x16xf32>
    %c0_55 = arith.constant 0 : index
    %c0_56 = arith.constant 0 : index
    %67 = vector.load %arg21[%c0_55, %c0_56] : memref<1x16xf32, #tpu.memory_space<vmem>>, vector<1x16xf32>
    %68 = vector.broadcast %67 : vector<1x16xf32> to vector<64x16xf32>
    %69 = arith.addf %66, %68 : vector<64x16xf32>
    %cst_57 = arith.constant 0.000000e+00 : f32
    %70 = vector.broadcast %cst_57 : f32 to vector<64x16xf32>
    %71 = arith.maximumf %69, %70 : vector<64x16xf32>
    %cst_58 = arith.constant 0.000000e+00 : f32
    %72 = vector.broadcast %cst_58 : f32 to vector<64x16xf32>
    %73 = arith.subf %72, %71 : vector<64x16xf32>
    %74 = math.exp %73 : vector<64x16xf32>
    %c0_59 = arith.constant 0 : index
    %c0_60 = arith.constant 0 : index
    %75 = vector.load %arg27[%c0_59, %c0_60] : memref<16x144xf32, #tpu.memory_space<vmem>>, vector<16x144xf32>
    %cst_61 = arith.constant dense<0.000000e+00> : vector<64x144xf32>
    %76 = tpu.matmul %2, %75, %cst_61 {dimension_numbers = #tpu.dot_dimension_numbers<[1], [0], [0], [1], [0, 0, 1, 1], [], []>} : vector<64x16xf32>, vector<16x144xf32>, vector<64x144xf32> -> vector<64x144xf32>
    %77 = vector.extract_strided_slice %76 {offsets = [0, 0], sizes = [64, 128], strides = [1, 1]} : vector<64x144xf32> to vector<64x128xf32>
    %c0_62 = arith.constant 0 : index
    %c0_63 = arith.constant 0 : index
    %78 = vector.load %arg30[%c0_62, %c0_63] : memref<1x128xf32, #tpu.memory_space<vmem>>, vector<1x128xf32>
    %79 = vector.broadcast %78 : vector<1x128xf32> to vector<64x128xf32>
    %80 = arith.addf %77, %79 : vector<64x128xf32>
    %81 = vector.shape_cast %80 : vector<64x128xf32> to vector<8x8x128xf32>
    %c0_64 = arith.constant 0 : index
    %c0_65 = arith.constant 0 : index
    %c0_66 = arith.constant 0 : index
    %82 = vector.load %arg44[%c0_64, %c0_65, %c0_66] : memref<8x8x128xf32, #tpu.memory_space<vmem>>, vector<8x8x128xf32>
    tpu.vector_store %arg44[%c0_64, %c0_65, %c0_66], %81 {strides = array<i32>} : memref<8x8x128xf32, #tpu.memory_space<vmem>>, vector<8x8x128xf32>,
    %c0_67 = arith.constant 0 : index
    %c0_68 = arith.constant 0 : index
    %83 = vector.load %arg26[%c0_67, %c0_68] : memref<16x16xf32, #tpu.memory_space<vmem>>, vector<16x16xf32>
    %cst_69 = arith.constant dense<0.000000e+00> : vector<64x16xf32>
    %84 = tpu.matmul %74, %83, %cst_69 {dimension_numbers = #tpu.dot_dimension_numbers<[1], [0], [0], [1], [0, 0, 1, 1], [], []>} : vector<64x16xf32>, vector<16x16xf32>, vector<64x16xf32> -> vector<64x16xf32>
    %85 = vector.extract_strided_slice %76 {offsets = [0, 128], sizes = [64, 16], strides = [1, 1]} : vector<64x144xf32> to vector<64x16xf32>
    %86 = arith.addf %84, %85 : vector<64x16xf32>
    %c0_70 = arith.constant 0 : index
    %c0_71 = arith.constant 0 : index
    %87 = vector.load %arg28[%c0_70, %c0_71] : memref<1x16xf32, #tpu.memory_space<vmem>>, vector<1x16xf32>
    %88 = vector.broadcast %87 : vector<1x16xf32> to vector<64x16xf32>
    %89 = arith.addf %86, %88 : vector<64x16xf32>
    %90 = arith.negf %89 : vector<64x16xf32>
    %91 = math.exp %90 : vector<64x16xf32>
    %cst_72 = arith.constant 1.000000e+00 : f32
    %92 = vector.broadcast %cst_72 : f32 to vector<64x16xf32>
    %93 = arith.addf %92, %91 : vector<64x16xf32>
    %94 = arith.divf %92, %93 : vector<64x16xf32>
    %95 = vector.shape_cast %94 : vector<64x16xf32> to vector<8x8x16xf32>
    %c0_73 = arith.constant 0 : index
    %c0_74 = arith.constant 0 : index
    %c0_75 = arith.constant 0 : index
    %96 = vector.load %arg42[%c0_73, %c0_74, %c0_75] : memref<8x8x16xf32, #tpu.memory_space<vmem>>, vector<8x8x16xf32>
    tpu.vector_store %arg42[%c0_73, %c0_74, %c0_75], %95 {strides = array<i32>} : memref<8x8x16xf32, #tpu.memory_space<vmem>>, vector<8x8x16xf32>,
    %97 = arith.mulf %1, %0 : vector<8x8x16xf32>
    %c0_76 = arith.constant 0 : index
    %c0_77 = arith.constant 0 : index
    %c0_78 = arith.constant 0 : index
    %98 = vector.load %arg45[%c0_76, %c0_77, %c0_78] : memref<8x8x16xf32, #tpu.memory_space<vmem>>, vector<8x8x16xf32>
    tpu.vector_store %arg45[%c0_76, %c0_77, %c0_78], %97 {strides = array<i32>} : memref<8x8x16xf32, #tpu.memory_space<vmem>>, vector<8x8x16xf32>,
    %cst_79 = arith.constant 1.000000e+00 : f32
    %99 = vector.broadcast %cst_79 : f32 to vector<8x8x16xf32>
    %100 = arith.subf %99, %1 : vector<8x8x16xf32>
    %c0_80 = arith.constant 0 : index
    %c0_81 = arith.constant 0 : index
    %c0_82 = arith.constant 0 : index
    %101 = vector.load %arg46[%c0_80, %c0_81, %c0_82] : memref<8x8x16xf32, #tpu.memory_space<vmem>>, vector<8x8x16xf32>
    tpu.vector_store %arg46[%c0_80, %c0_81, %c0_82], %100 {strides = array<i32>} : memref<8x8x16xf32, #tpu.memory_space<vmem>>, vector<8x8x16xf32>,
    %cst_83 = arith.constant dense<0.000000e+00> : vector<8x8xf32>
    %102 = vector.multi_reduction <add>, %1, %cst_83 [2] : vector<8x8x16xf32> to vector<8x8xf32>
    %103 = vector.shape_cast %102 : vector<8x8xf32> to vector<8x8x1xf32>
    %cst_84 = arith.constant dense<0.000000e+00> : vector<8x1xf32>
    %104 = vector.multi_reduction <add>, %103, %cst_84 [1] : vector<8x8x1xf32> to vector<8x1xf32>
    %105 = vector.shape_cast %104 : vector<8x1xf32> to vector<8x1x1xf32>
    %cst_85 = arith.constant 9.99999996E-13 : f32
    %106 = vector.broadcast %cst_85 : f32 to vector<8x1x1xf32>
    %107 = arith.addf %105, %106 : vector<8x1x1xf32>
    %cst_86 = arith.constant 1.000000e+00 : f32
    %108 = vector.broadcast %cst_86 : f32 to vector<8x1x1xf32>
    %109 = arith.divf %108, %107 : vector<8x1x1xf32>
    %110 = vector.broadcast %109 : vector<8x1x1xf32> to vector<8x8x16xf32>
    %111 = arith.mulf %1, %110 : vector<8x8x16xf32>
    %c0_87 = arith.constant 0 : index
    %c0_88 = arith.constant 0 : index
    %c0_89 = arith.constant 0 : index
    %112 = vector.load %arg47[%c0_87, %c0_88, %c0_89] : memref<8x8x16xf32, #tpu.memory_space<vmem>>, vector<8x8x16xf32>
    tpu.vector_store %arg47[%c0_87, %c0_88, %c0_89], %111 {strides = array<i32>} : memref<8x8x16xf32, #tpu.memory_space<vmem>>, vector<8x8x16xf32>,
    %c0_90 = arith.constant 0 : index
    %c0_91 = arith.constant 0 : index
    %113 = vector.load %arg10[%c0_90, %c0_91] : memref<1x16xf32, #tpu.memory_space<vmem>>, vector<1x16xf32>
    %114 = vector.shape_cast %113 : vector<1x16xf32> to vector<1x16xf32>
    %115 = vector.broadcast %114 : vector<1x16xf32> to vector<8x16xf32>
    %c0_92 = arith.constant 0 : index
    %c0_93 = arith.constant 0 : index
    %116 = vector.load %arg12[%c0_92, %c0_93] : memref<1x16xf32, #tpu.memory_space<vmem>>, vector<1x16xf32>
    %117 = vector.shape_cast %116 : vector<1x16xf32> to vector<1x16xf32>
    %118 = vector.broadcast %117 : vector<1x16xf32> to vector<8x16xf32>
    %c0_94 = arith.constant 0 : index
    %c0_95 = arith.constant 0 : index
    %119 = vector.load %arg23[%c0_94, %c0_95] : memref<1x16xf32, #tpu.memory_space<vmem>>, vector<1x16xf32>
    %120 = vector.shape_cast %119 : vector<1x16xf32> to vector<1x16xf32>
    %121 = vector.broadcast %120 : vector<1x16xf32> to vector<8x16xf32>
    %c0_96 = arith.constant 0 : index
    %c0_97 = arith.constant 0 : index
    %122 = vector.load %arg25[%c0_96, %c0_97] : memref<1x16xf32, #tpu.memory_space<vmem>>, vector<1x16xf32>
    %123 = vector.shape_cast %122 : vector<1x16xf32> to vector<1x16xf32>
    %124 = vector.broadcast %123 : vector<1x16xf32> to vector<8x16xf32>
    %cst_98 = arith.constant 0.000000e+00 : f32
    %125 = vector.broadcast %cst_98 : f32 to vector<8x32xf32>
    %cst_99 = arith.constant 0.000000e+00 : f32
    %126 = vector.broadcast %cst_99 : f32 to vector<8x16xf32>
    %c0_i32 = arith.constant 0 : i32
    %c7_i32 = arith.constant 7 : i32
    %127 = arith.subi %c7_i32, %c0_i32 : i32
    %128 = arith.index_cast %c0_i32 : i32 to index
    %c0_100 = arith.constant 0 : index
    %c0_101 = arith.constant 0 : index
    %129 = vector.load %arg1[%128, %c0_100, %c0_101] : memref<8x8x16xf32, #tpu.memory_space<vmem>>, vector<1x8x16xf32>
    %130 = vector.shape_cast %129 : vector<1x8x16xf32> to vector<8x16xf32>
    %131 = arith.index_cast %c0_i32 : i32 to index
    %c0_102 = arith.constant 0 : index
    %c0_103 = arith.constant 0 : index
    %132 = vector.load %arg45[%131, %c0_102, %c0_103] : memref<8x8x16xf32, #tpu.memory_space<vmem>>, vector<1x8x16xf32>
    %133 = vector.shape_cast %132 : vector<1x8x16xf32> to vector<8x16xf32>
    %134 = arith.index_cast %c0_i32 : i32 to index
    %c0_104 = arith.constant 0 : index
    %c0_105 = arith.constant 0 : index
    %135 = vector.load %arg46[%134, %c0_104, %c0_105] : memref<8x8x16xf32, #tpu.memory_space<vmem>>, vector<1x8x16xf32>
    %136 = vector.shape_cast %135 : vector<1x8x16xf32> to vector<8x16xf32>
    %137 = arith.index_cast %c0_i32 : i32 to index
    %c0_106 = arith.constant 0 : index
    %c0_107 = arith.constant 0 : index
    %138 = vector.load %arg47[%137, %c0_106, %c0_107] : memref<8x8x16xf32, #tpu.memory_space<vmem>>, vector<1x8x16xf32>
    %139 = vector.shape_cast %138 : vector<1x8x16xf32> to vector<8x16xf32>
    %140 = arith.index_cast %c0_i32 : i32 to index
    %c0_108 = arith.constant 0 : index
    %c0_109 = arith.constant 0 : index
    %141 = vector.load %arg39[%140, %c0_108, %c0_109] : memref<8x8x32xf32, #tpu.memory_space<vmem>>, vector<1x8x32xf32>
    %142 = vector.shape_cast %141 : vector<1x8x32xf32> to vector<8x32xf32>
    %143 = arith.mulf %125, %142 : vector<8x32xf32>
    %c0_110 = arith.constant 0 : index
    %c0_111 = arith.constant 0 : index
    %144 = vector.load %arg9[%c0_110, %c0_111] : memref<32x144xf32, #tpu.memory_space<vmem>>, vector<32x144xf32>
    %cst_112 = arith.constant dense<0.000000e+00> : vector<8x144xf32>
    %145 = tpu.matmul %143, %144, %cst_112 {dimension_numbers = #tpu.dot_dimension_numbers<[1], [0], [0], [1], [0, 0, 1, 1], [], []>} : vector<8x32xf32>, vector<32x144xf32>, vector<8x144xf32> -> vector<8x144xf32>
    %146 = vector.extract_strided_slice %145 {offsets = [0, 128], sizes = [8, 16], strides = [1, 1]} : vector<8x144xf32> to vector<8x16xf32>
    %147 = arith.addf %146, %115 : vector<8x16xf32>
    %148 = arith.mulf %136, %147 : vector<8x16xf32>
    %149 = arith.addf %133, %148 : vector<8x16xf32>
    %c0_113 = arith.constant 0 : index
    %c0_114 = arith.constant 0 : index
    %150 = vector.load %arg11[%c0_113, %c0_114] : memref<16x16xf32, #tpu.memory_space<vmem>>, vector<16x16xf32>
    %cst_115 = arith.constant dense<0.000000e+00> : vector<8x16xf32>
    %151 = tpu.matmul %149, %150, %cst_115 {dimension_numbers = #tpu.dot_dimension_numbers<[1], [0], [0], [1], [0, 0, 1, 1], [], []>} : vector<8x16xf32>, vector<16x16xf32>, vector<8x16xf32> -> vector<8x16xf32>
    %152 = arith.addf %151, %118 : vector<8x16xf32>
    %153 = arith.index_cast %c0_i32 : i32 to index
    %c0_116 = arith.constant 0 : index
    %c0_117 = arith.constant 0 : index
    %154 = vector.load %arg41[%153, %c0_116, %c0_117] : memref<8x8x16xf32, #tpu.memory_space<vmem>>, vector<1x8x16xf32>
    %155 = vector.shape_cast %154 : vector<1x8x16xf32> to vector<8x16xf32>
    %156 = arith.subf %152, %147 : vector<8x16xf32>
    %157 = arith.mulf %155, %156 : vector<8x16xf32>
    %158 = arith.addf %147, %157 : vector<8x16xf32>
    %159 = arith.mulf %136, %158 : vector<8x16xf32>
    %160 = arith.addf %133, %159 : vector<8x16xf32>
    %161 = arith.index_cast %c0_i32 : i32 to index
    %c0_118 = arith.constant 0 : index
    %c0_119 = arith.constant 0 : index
    %162 = vector.load %arg33[%161, %c0_118, %c0_119] : memref<8x8x16xf32, #tpu.memory_space<vmem>>, vector<1x8x16xf32>
    %163 = vector.shape_cast %162 : vector<1x8x16xf32> to vector<8x16xf32>
    %164 = vector.shape_cast %158 : vector<8x16xf32> to vector<1x8x16xf32>
    tpu.vector_store %arg33[%161, %c0_118, %c0_119], %164 {strides = array<i32>} : memref<8x8x16xf32, #tpu.memory_space<vmem>>, vector<1x8x16xf32>,
    %165 = arith.index_cast %c0_i32 : i32 to index
    %c0_120 = arith.constant 0 : index
    %c0_121 = arith.constant 0 : index
    %166 = vector.load %arg48[%165, %c0_120, %c0_121] : memref<8x8x16xf32, #tpu.memory_space<vmem>>, vector<1x8x16xf32>
    %167 = vector.shape_cast %166 : vector<1x8x16xf32> to vector<8x16xf32>
    %168 = vector.shape_cast %160 : vector<8x16xf32> to vector<1x8x16xf32>
    tpu.vector_store %arg48[%165, %c0_120, %c0_121], %168 {strides = array<i32>} : memref<8x8x16xf32, #tpu.memory_space<vmem>>, vector<1x8x16xf32>,
    %169 = arith.subf %147, %130 : vector<8x16xf32>
    %170 = math.absf %169 : vector<8x16xf32>
    %171 = arith.subf %152, %130 : vector<8x16xf32>
    %172 = math.absf %171 : vector<8x16xf32>
    %173 = arith.addf %170, %172 : vector<8x16xf32>
    %174 = arith.subf %158, %130 : vector<8x16xf32>
    %175 = math.absf %174 : vector<8x16xf32>
    %176 = arith.addf %173, %175 : vector<8x16xf32>
    %177 = arith.mulf %176, %139 : vector<8x16xf32>
    %c0_122 = arith.constant 0 : index
    %c0_123 = arith.constant 0 : index
    %178 = vector.load %arg16[%c0_122, %c0_123] : memref<16x128xf32, #tpu.memory_space<vmem>>, vector<16x128xf32>
    %cst_124 = arith.constant dense<0.000000e+00> : vector<8x128xf32>
    %179 = tpu.matmul %160, %178, %cst_124 {dimension_numbers = #tpu.dot_dimension_numbers<[1], [0], [0], [1], [0, 0, 1, 1], [], []>} : vector<8x16xf32>, vector<16x128xf32>, vector<8x128xf32> -> vector<8x128xf32>
    %180 = vector.extract_strided_slice %145 {offsets = [0, 0], sizes = [8, 128], strides = [1, 1]} : vector<8x144xf32> to vector<8x128xf32>
    %181 = arith.addf %179, %180 : vector<8x128xf32>
    %182 = arith.index_cast %c0_i32 : i32 to index
    %c0_125 = arith.constant 0 : index
    %c0_126 = arith.constant 0 : index
    %183 = vector.load %arg43[%182, %c0_125, %c0_126] : memref<8x8x128xf32, #tpu.memory_space<vmem>>, vector<1x8x128xf32>
    %184 = vector.shape_cast %183 : vector<1x8x128xf32> to vector<8x128xf32>
    %185 = arith.addf %181, %184 : vector<8x128xf32>
    %186 = vector.extract_strided_slice %185 {offsets = [0, 0], sizes = [8, 32], strides = [1, 1]} : vector<8x128xf32> to vector<8x32xf32>
    %187 = arith.negf %186 : vector<8x32xf32>
    %188 = math.exp %187 : vector<8x32xf32>
    %cst_127 = arith.constant 1.000000e+00 : f32
    %189 = vector.broadcast %cst_127 : f32 to vector<8x32xf32>
    %190 = arith.addf %189, %188 : vector<8x32xf32>
    %191 = arith.divf %189, %190 : vector<8x32xf32>
    %192 = vector.extract_strided_slice %185 {offsets = [0, 32], sizes = [8, 32], strides = [1, 1]} : vector<8x128xf32> to vector<8x32xf32>
    %193 = arith.negf %192 : vector<8x32xf32>
    %194 = math.exp %193 : vector<8x32xf32>
    %cst_128 = arith.constant 1.000000e+00 : f32
    %195 = vector.broadcast %cst_128 : f32 to vector<8x32xf32>
    %196 = arith.addf %195, %194 : vector<8x32xf32>
    %197 = arith.divf %195, %196 : vector<8x32xf32>
    %198 = vector.extract_strided_slice %185 {offsets = [0, 64], sizes = [8, 32], strides = [1, 1]} : vector<8x128xf32> to vector<8x32xf32>
    %199 = math.tanh %198 : vector<8x32xf32>
    %200 = vector.extract_strided_slice %185 {offsets = [0, 96], sizes = [8, 32], strides = [1, 1]} : vector<8x128xf32> to vector<8x32xf32>
    %201 = arith.negf %200 : vector<8x32xf32>
    %202 = math.exp %201 : vector<8x32xf32>
    %cst_129 = arith.constant 1.000000e+00 : f32
    %203 = vector.broadcast %cst_129 : f32 to vector<8x32xf32>
    %204 = arith.addf %203, %202 : vector<8x32xf32>
    %205 = arith.divf %203, %204 : vector<8x32xf32>
    %206 = arith.mulf %197, %125 : vector<8x32xf32>
    %207 = arith.mulf %191, %199 : vector<8x32xf32>
    %208 = arith.addf %206, %207 : vector<8x32xf32>
    %209 = math.tanh %208 : vector<8x32xf32>
    %210 = arith.mulf %205, %209 : vector<8x32xf32>
    %211 = arith.index_cast %127 : i32 to index
    %c0_130 = arith.constant 0 : index
    %c0_131 = arith.constant 0 : index
    %212 = vector.load %arg1[%211, %c0_130, %c0_131] : memref<8x8x16xf32, #tpu.memory_space<vmem>>, vector<1x8x16xf32>
    %213 = vector.shape_cast %212 : vector<1x8x16xf32> to vector<8x16xf32>
    %214 = arith.index_cast %127 : i32 to index
    %c0_132 = arith.constant 0 : index
    %c0_133 = arith.constant 0 : index
    %215 = vector.load %arg45[%214, %c0_132, %c0_133] : memref<8x8x16xf32, #tpu.memory_space<vmem>>, vector<1x8x16xf32>
    %216 = vector.shape_cast %215 : vector<1x8x16xf32> to vector<8x16xf32>
    %217 = arith.index_cast %127 : i32 to index
    %c0_134 = arith.constant 0 : index
    %c0_135 = arith.constant 0 : index
    %218 = vector.load %arg46[%217, %c0_134, %c0_135] : memref<8x8x16xf32, #tpu.memory_space<vmem>>, vector<1x8x16xf32>
    %219 = vector.shape_cast %218 : vector<1x8x16xf32> to vector<8x16xf32>
    %220 = arith.index_cast %127 : i32 to index
    %c0_136 = arith.constant 0 : index
    %c0_137 = arith.constant 0 : index
    %221 = vector.load %arg47[%220, %c0_136, %c0_137] : memref<8x8x16xf32, #tpu.memory_space<vmem>>, vector<1x8x16xf32>
    %222 = vector.shape_cast %221 : vector<1x8x16xf32> to vector<8x16xf32>
    %223 = arith.index_cast %127 : i32 to index
    %c0_138 = arith.constant 0 : index
    %c0_139 = arith.constant 0 : index
    %224 = vector.load %arg40[%223, %c0_138, %c0_139] : memref<8x8x32xf32, #tpu.memory_space<vmem>>, vector<1x8x32xf32>
    %225 = vector.shape_cast %224 : vector<1x8x32xf32> to vector<8x32xf32>
    %226 = arith.mulf %125, %225 : vector<8x32xf32>
    %c0_140 = arith.constant 0 : index
    %c0_141 = arith.constant 0 : index
    %227 = vector.load %arg22[%c0_140, %c0_141] : memref<32x144xf32, #tpu.memory_space<vmem>>, vector<32x144xf32>
    %cst_142 = arith.constant dense<0.000000e+00> : vector<8x144xf32>
    %228 = tpu.matmul %226, %227, %cst_142 {dimension_numbers = #tpu.dot_dimension_numbers<[1], [0], [0], [1], [0, 0, 1, 1], [], []>} : vector<8x32xf32>, vector<32x144xf32>, vector<8x144xf32> -> vector<8x144xf32>
    %229 = vector.extract_strided_slice %228 {offsets = [0, 128], sizes = [8, 16], strides = [1, 1]} : vector<8x144xf32> to vector<8x16xf32>
    %230 = arith.addf %229, %121 : vector<8x16xf32>
    %231 = arith.mulf %219, %230 : vector<8x16xf32>
    %232 = arith.addf %216, %231 : vector<8x16xf32>
    %c0_143 = arith.constant 0 : index
    %c0_144 = arith.constant 0 : index
    %233 = vector.load %arg24[%c0_143, %c0_144] : memref<16x16xf32, #tpu.memory_space<vmem>>, vector<16x16xf32>
    %cst_145 = arith.constant dense<0.000000e+00> : vector<8x16xf32>
    %234 = tpu.matmul %232, %233, %cst_145 {dimension_numbers = #tpu.dot_dimension_numbers<[1], [0], [0], [1], [0, 0, 1, 1], [], []>} : vector<8x16xf32>, vector<16x16xf32>, vector<8x16xf32> -> vector<8x16xf32>
    %235 = arith.addf %234, %124 : vector<8x16xf32>
    %236 = arith.index_cast %127 : i32 to index
    %c0_146 = arith.constant 0 : index
    %c0_147 = arith.constant 0 : index
    %237 = vector.load %arg42[%236, %c0_146, %c0_147] : memref<8x8x16xf32, #tpu.memory_space<vmem>>, vector<1x8x16xf32>
    %238 = vector.shape_cast %237 : vector<1x8x16xf32> to vector<8x16xf32>
    %239 = arith.subf %235, %230 : vector<8x16xf32>
    %240 = arith.mulf %238, %239 : vector<8x16xf32>
    %241 = arith.addf %230, %240 : vector<8x16xf32>
    %242 = arith.mulf %219, %241 : vector<8x16xf32>
    %243 = arith.addf %216, %242 : vector<8x16xf32>
    %244 = arith.index_cast %127 : i32 to index
    %c0_148 = arith.constant 0 : index
    %c0_149 = arith.constant 0 : index
    %245 = vector.load %arg34[%244, %c0_148, %c0_149] : memref<8x8x16xf32, #tpu.memory_space<vmem>>, vector<1x8x16xf32>
    %246 = vector.shape_cast %245 : vector<1x8x16xf32> to vector<8x16xf32>
    %247 = vector.shape_cast %241 : vector<8x16xf32> to vector<1x8x16xf32>
    tpu.vector_store %arg34[%244, %c0_148, %c0_149], %247 {strides = array<i32>} : memref<8x8x16xf32, #tpu.memory_space<vmem>>, vector<1x8x16xf32>,
    %248 = arith.index_cast %127 : i32 to index
    %c0_150 = arith.constant 0 : index
    %c0_151 = arith.constant 0 : index
    %249 = vector.load %arg49[%248, %c0_150, %c0_151] : memref<8x8x16xf32, #tpu.memory_space<vmem>>, vector<1x8x16xf32>
    %250 = vector.shape_cast %249 : vector<1x8x16xf32> to vector<8x16xf32>
    %251 = vector.shape_cast %243 : vector<8x16xf32> to vector<1x8x16xf32>
    tpu.vector_store %arg49[%248, %c0_150, %c0_151], %251 {strides = array<i32>} : memref<8x8x16xf32, #tpu.memory_space<vmem>>, vector<1x8x16xf32>,
    %252 = arith.subf %230, %213 : vector<8x16xf32>
    %253 = math.absf %252 : vector<8x16xf32>
    %254 = arith.subf %235, %213 : vector<8x16xf32>
    %255 = math.absf %254 : vector<8x16xf32>
    %256 = arith.addf %253, %255 : vector<8x16xf32>
    %257 = arith.subf %241, %213 : vector<8x16xf32>
    %258 = math.absf %257 : vector<8x16xf32>
    %259 = arith.addf %256, %258 : vector<8x16xf32>
    %260 = arith.mulf %259, %222 : vector<8x16xf32>
    %c0_152 = arith.constant 0 : index
    %c0_153 = arith.constant 0 : index
    %261 = vector.load %arg29[%c0_152, %c0_153] : memref<16x128xf32, #tpu.memory_space<vmem>>, vector<16x128xf32>
    %cst_154 = arith.constant dense<0.000000e+00> : vector<8x128xf32>
    %262 = tpu.matmul %243, %261, %cst_154 {dimension_numbers = #tpu.dot_dimension_numbers<[1], [0], [0], [1], [0, 0, 1, 1], [], []>} : vector<8x16xf32>, vector<16x128xf32>, vector<8x128xf32> -> vector<8x128xf32>
    %263 = vector.extract_strided_slice %228 {offsets = [0, 0], sizes = [8, 128], strides = [1, 1]} : vector<8x144xf32> to vector<8x128xf32>
    %264 = arith.addf %262, %263 : vector<8x128xf32>
    %265 = arith.index_cast %127 : i32 to index
    %c0_155 = arith.constant 0 : index
    %c0_156 = arith.constant 0 : index
    %266 = vector.load %arg44[%265, %c0_155, %c0_156] : memref<8x8x128xf32, #tpu.memory_space<vmem>>, vector<1x8x128xf32>
    %267 = vector.shape_cast %266 : vector<1x8x128xf32> to vector<8x128xf32>
    %268 = arith.addf %264, %267 : vector<8x128xf32>
    %269 = vector.extract_strided_slice %268 {offsets = [0, 0], sizes = [8, 32], strides = [1, 1]} : vector<8x128xf32> to vector<8x32xf32>
    %270 = arith.negf %269 : vector<8x32xf32>
    %271 = math.exp %270 : vector<8x32xf32>
    %cst_157 = arith.constant 1.000000e+00 : f32
    %272 = vector.broadcast %cst_157 : f32 to vector<8x32xf32>
    %273 = arith.addf %272, %271 : vector<8x32xf32>
    %274 = arith.divf %272, %273 : vector<8x32xf32>
    %275 = vector.extract_strided_slice %268 {offsets = [0, 32], sizes = [8, 32], strides = [1, 1]} : vector<8x128xf32> to vector<8x32xf32>
    %276 = arith.negf %275 : vector<8x32xf32>
    %277 = math.exp %276 : vector<8x32xf32>
    %cst_158 = arith.constant 1.000000e+00 : f32
    %278 = vector.broadcast %cst_158 : f32 to vector<8x32xf32>
    %279 = arith.addf %278, %277 : vector<8x32xf32>
    %280 = arith.divf %278, %279 : vector<8x32xf32>
    %281 = vector.extract_strided_slice %268 {offsets = [0, 64], sizes = [8, 32], strides = [1, 1]} : vector<8x128xf32> to vector<8x32xf32>
    %282 = math.tanh %281 : vector<8x32xf32>
    %283 = vector.extract_strided_slice %268 {offsets = [0, 96], sizes = [8, 32], strides = [1, 1]} : vector<8x128xf32> to vector<8x32xf32>
    %284 = arith.negf %283 : vector<8x32xf32>
    %285 = math.exp %284 : vector<8x32xf32>
    %cst_159 = arith.constant 1.000000e+00 : f32
    %286 = vector.broadcast %cst_159 : f32 to vector<8x32xf32>
    %287 = arith.addf %286, %285 : vector<8x32xf32>
    %288 = arith.divf %286, %287 : vector<8x32xf32>
    %289 = arith.mulf %280, %125 : vector<8x32xf32>
    %290 = arith.mulf %274, %282 : vector<8x32xf32>
    %291 = arith.addf %289, %290 : vector<8x32xf32>
    %292 = math.tanh %291 : vector<8x32xf32>
    %293 = arith.mulf %288, %292 : vector<8x32xf32>
    %294 = arith.addf %126, %177 : vector<8x16xf32>
    %295 = arith.addf %294, %260 : vector<8x16xf32>
    %c1_i32 = arith.constant 1 : i32
    %c7_i32_160 = arith.constant 7 : i32
    %296 = arith.subi %c7_i32_160, %c1_i32 : i32
    %297 = arith.index_cast %c1_i32 : i32 to index
    %c0_161 = arith.constant 0 : index
    %c0_162 = arith.constant 0 : index
    %298 = vector.load %arg1[%297, %c0_161, %c0_162] : memref<8x8x16xf32, #tpu.memory_space<vmem>>, vector<1x8x16xf32>
    %299 = vector.shape_cast %298 : vector<1x8x16xf32> to vector<8x16xf32>
    %300 = arith.index_cast %c1_i32 : i32 to index
    %c0_163 = arith.constant 0 : index
    %c0_164 = arith.constant 0 : index
    %301 = vector.load %arg45[%300, %c0_163, %c0_164] : memref<8x8x16xf32, #tpu.memory_space<vmem>>, vector<1x8x16xf32>
    %302 = vector.shape_cast %301 : vector<1x8x16xf32> to vector<8x16xf32>
    %303 = arith.index_cast %c1_i32 : i32 to index
    %c0_165 = arith.constant 0 : index
    %c0_166 = arith.constant 0 : index
    %304 = vector.load %arg46[%303, %c0_165, %c0_166] : memref<8x8x16xf32, #tpu.memory_space<vmem>>, vector<1x8x16xf32>
    %305 = vector.shape_cast %304 : vector<1x8x16xf32> to vector<8x16xf32>
    %306 = arith.index_cast %c1_i32 : i32 to index
    %c0_167 = arith.constant 0 : index
    %c0_168 = arith.constant 0 : index
    %307 = vector.load %arg47[%306, %c0_167, %c0_168] : memref<8x8x16xf32, #tpu.memory_space<vmem>>, vector<1x8x16xf32>
    %308 = vector.shape_cast %307 : vector<1x8x16xf32> to vector<8x16xf32>
    %309 = arith.index_cast %c1_i32 : i32 to index
    %c0_169 = arith.constant 0 : index
    %c0_170 = arith.constant 0 : index
    %310 = vector.load %arg39[%309, %c0_169, %c0_170] : memref<8x8x32xf32, #tpu.memory_space<vmem>>, vector<1x8x32xf32>
    %311 = vector.shape_cast %310 : vector<1x8x32xf32> to vector<8x32xf32>
    %312 = arith.mulf %210, %311 : vector<8x32xf32>
    %c0_171 = arith.constant 0 : index
    %c0_172 = arith.constant 0 : index
    %313 = vector.load %arg9[%c0_171, %c0_172] : memref<32x144xf32, #tpu.memory_space<vmem>>, vector<32x144xf32>
    %cst_173 = arith.constant dense<0.000000e+00> : vector<8x144xf32>
    %314 = tpu.matmul %312, %313, %cst_173 {dimension_numbers = #tpu.dot_dimension_numbers<[1], [0], [0], [1], [0, 0, 1, 1], [], []>} : vector<8x32xf32>, vector<32x144xf32>, vector<8x144xf32> -> vector<8x144xf32>
    %315 = vector.extract_strided_slice %314 {offsets = [0, 128], sizes = [8, 16], strides = [1, 1]} : vector<8x144xf32> to vector<8x16xf32>
    %316 = arith.addf %315, %115 : vector<8x16xf32>
    %317 = arith.mulf %305, %316 : vector<8x16xf32>
    %318 = arith.addf %302, %317 : vector<8x16xf32>
    %c0_174 = arith.constant 0 : index
    %c0_175 = arith.constant 0 : index
    %319 = vector.load %arg11[%c0_174, %c0_175] : memref<16x16xf32, #tpu.memory_space<vmem>>, vector<16x16xf32>
    %cst_176 = arith.constant dense<0.000000e+00> : vector<8x16xf32>
    %320 = tpu.matmul %318, %319, %cst_176 {dimension_numbers = #tpu.dot_dimension_numbers<[1], [0], [0], [1], [0, 0, 1, 1], [], []>} : vector<8x16xf32>, vector<16x16xf32>, vector<8x16xf32> -> vector<8x16xf32>
    %321 = arith.addf %320, %118 : vector<8x16xf32>
    %322 = arith.index_cast %c1_i32 : i32 to index
    %c0_177 = arith.constant 0 : index
    %c0_178 = arith.constant 0 : index
    %323 = vector.load %arg41[%322, %c0_177, %c0_178] : memref<8x8x16xf32, #tpu.memory_space<vmem>>, vector<1x8x16xf32>
    %324 = vector.shape_cast %323 : vector<1x8x16xf32> to vector<8x16xf32>
    %325 = arith.subf %321, %316 : vector<8x16xf32>
    %326 = arith.mulf %324, %325 : vector<8x16xf32>
    %327 = arith.addf %316, %326 : vector<8x16xf32>
    %328 = arith.mulf %305, %327 : vector<8x16xf32>
    %329 = arith.addf %302, %328 : vector<8x16xf32>
    %330 = arith.index_cast %c1_i32 : i32 to index
    %c0_179 = arith.constant 0 : index
    %c0_180 = arith.constant 0 : index
    %331 = vector.load %arg33[%330, %c0_179, %c0_180] : memref<8x8x16xf32, #tpu.memory_space<vmem>>, vector<1x8x16xf32>
    %332 = vector.shape_cast %331 : vector<1x8x16xf32> to vector<8x16xf32>
    %333 = vector.shape_cast %327 : vector<8x16xf32> to vector<1x8x16xf32>
    tpu.vector_store %arg33[%330, %c0_179, %c0_180], %333 {strides = array<i32>} : memref<8x8x16xf32, #tpu.memory_space<vmem>>, vector<1x8x16xf32>,
    %334 = arith.index_cast %c1_i32 : i32 to index
    %c0_181 = arith.constant 0 : index
    %c0_182 = arith.constant 0 : index
    %335 = vector.load %arg48[%334, %c0_181, %c0_182] : memref<8x8x16xf32, #tpu.memory_space<vmem>>, vector<1x8x16xf32>
    %336 = vector.shape_cast %335 : vector<1x8x16xf32> to vector<8x16xf32>
    %337 = vector.shape_cast %329 : vector<8x16xf32> to vector<1x8x16xf32>
    tpu.vector_store %arg48[%334, %c0_181, %c0_182], %337 {strides = array<i32>} : memref<8x8x16xf32, #tpu.memory_space<vmem>>, vector<1x8x16xf32>,
    %338 = arith.subf %316, %299 : vector<8x16xf32>
    %339 = math.absf %338 : vector<8x16xf32>
    %340 = arith.subf %321, %299 : vector<8x16xf32>
    %341 = math.absf %340 : vector<8x16xf32>
    %342 = arith.addf %339, %341 : vector<8x16xf32>
    %343 = arith.subf %327, %299 : vector<8x16xf32>
    %344 = math.absf %343 : vector<8x16xf32>
    %345 = arith.addf %342, %344 : vector<8x16xf32>
    %346 = arith.mulf %345, %308 : vector<8x16xf32>
    %c0_183 = arith.constant 0 : index
    %c0_184 = arith.constant 0 : index
    %347 = vector.load %arg16[%c0_183, %c0_184] : memref<16x128xf32, #tpu.memory_space<vmem>>, vector<16x128xf32>
    %cst_185 = arith.constant dense<0.000000e+00> : vector<8x128xf32>
    %348 = tpu.matmul %329, %347, %cst_185 {dimension_numbers = #tpu.dot_dimension_numbers<[1], [0], [0], [1], [0, 0, 1, 1], [], []>} : vector<8x16xf32>, vector<16x128xf32>, vector<8x128xf32> -> vector<8x128xf32>
    %349 = vector.extract_strided_slice %314 {offsets = [0, 0], sizes = [8, 128], strides = [1, 1]} : vector<8x144xf32> to vector<8x128xf32>
    %350 = arith.addf %348, %349 : vector<8x128xf32>
    %351 = arith.index_cast %c1_i32 : i32 to index
    %c0_186 = arith.constant 0 : index
    %c0_187 = arith.constant 0 : index
    %352 = vector.load %arg43[%351, %c0_186, %c0_187] : memref<8x8x128xf32, #tpu.memory_space<vmem>>, vector<1x8x128xf32>
    %353 = vector.shape_cast %352 : vector<1x8x128xf32> to vector<8x128xf32>
    %354 = arith.addf %350, %353 : vector<8x128xf32>
    %355 = vector.extract_strided_slice %354 {offsets = [0, 0], sizes = [8, 32], strides = [1, 1]} : vector<8x128xf32> to vector<8x32xf32>
    %356 = arith.negf %355 : vector<8x32xf32>
    %357 = math.exp %356 : vector<8x32xf32>
    %cst_188 = arith.constant 1.000000e+00 : f32
    %358 = vector.broadcast %cst_188 : f32 to vector<8x32xf32>
    %359 = arith.addf %358, %357 : vector<8x32xf32>
    %360 = arith.divf %358, %359 : vector<8x32xf32>
    %361 = vector.extract_strided_slice %354 {offsets = [0, 32], sizes = [8, 32], strides = [1, 1]} : vector<8x128xf32> to vector<8x32xf32>
    %362 = arith.negf %361 : vector<8x32xf32>
    %363 = math.exp %362 : vector<8x32xf32>
    %cst_189 = arith.constant 1.000000e+00 : f32
    %364 = vector.broadcast %cst_189 : f32 to vector<8x32xf32>
    %365 = arith.addf %364, %363 : vector<8x32xf32>
    %366 = arith.divf %364, %365 : vector<8x32xf32>
    %367 = vector.extract_strided_slice %354 {offsets = [0, 64], sizes = [8, 32], strides = [1, 1]} : vector<8x128xf32> to vector<8x32xf32>
    %368 = math.tanh %367 : vector<8x32xf32>
    %369 = vector.extract_strided_slice %354 {offsets = [0, 96], sizes = [8, 32], strides = [1, 1]} : vector<8x128xf32> to vector<8x32xf32>
    %370 = arith.negf %369 : vector<8x32xf32>
    %371 = math.exp %370 : vector<8x32xf32>
    %cst_190 = arith.constant 1.000000e+00 : f32
    %372 = vector.broadcast %cst_190 : f32 to vector<8x32xf32>
    %373 = arith.addf %372, %371 : vector<8x32xf32>
    %374 = arith.divf %372, %373 : vector<8x32xf32>
    %375 = arith.mulf %366, %208 : vector<8x32xf32>
    %376 = arith.mulf %360, %368 : vector<8x32xf32>
    %377 = arith.addf %375, %376 : vector<8x32xf32>
    %378 = math.tanh %377 : vector<8x32xf32>
    %379 = arith.mulf %374, %378 : vector<8x32xf32>
    %380 = arith.index_cast %296 : i32 to index
    %c0_191 = arith.constant 0 : index
    %c0_192 = arith.constant 0 : index
    %381 = vector.load %arg1[%380, %c0_191, %c0_192] : memref<8x8x16xf32, #tpu.memory_space<vmem>>, vector<1x8x16xf32>
    %382 = vector.shape_cast %381 : vector<1x8x16xf32> to vector<8x16xf32>
    %383 = arith.index_cast %296 : i32 to index
    %c0_193 = arith.constant 0 : index
    %c0_194 = arith.constant 0 : index
    %384 = vector.load %arg45[%383, %c0_193, %c0_194] : memref<8x8x16xf32, #tpu.memory_space<vmem>>, vector<1x8x16xf32>
    %385 = vector.shape_cast %384 : vector<1x8x16xf32> to vector<8x16xf32>
    %386 = arith.index_cast %296 : i32 to index
    %c0_195 = arith.constant 0 : index
    %c0_196 = arith.constant 0 : index
    %387 = vector.load %arg46[%386, %c0_195, %c0_196] : memref<8x8x16xf32, #tpu.memory_space<vmem>>, vector<1x8x16xf32>
    %388 = vector.shape_cast %387 : vector<1x8x16xf32> to vector<8x16xf32>
    %389 = arith.index_cast %296 : i32 to index
    %c0_197 = arith.constant 0 : index
    %c0_198 = arith.constant 0 : index
    %390 = vector.load %arg47[%389, %c0_197, %c0_198] : memref<8x8x16xf32, #tpu.memory_space<vmem>>, vector<1x8x16xf32>
    %391 = vector.shape_cast %390 : vector<1x8x16xf32> to vector<8x16xf32>
    %392 = arith.index_cast %296 : i32 to index
    %c0_199 = arith.constant 0 : index
    %c0_200 = arith.constant 0 : index
    %393 = vector.load %arg40[%392, %c0_199, %c0_200] : memref<8x8x32xf32, #tpu.memory_space<vmem>>, vector<1x8x32xf32>
    %394 = vector.shape_cast %393 : vector<1x8x32xf32> to vector<8x32xf32>
    %395 = arith.mulf %293, %394 : vector<8x32xf32>
    %c0_201 = arith.constant 0 : index
    %c0_202 = arith.constant 0 : index
    %396 = vector.load %arg22[%c0_201, %c0_202] : memref<32x144xf32, #tpu.memory_space<vmem>>, vector<32x144xf32>
    %cst_203 = arith.constant dense<0.000000e+00> : vector<8x144xf32>
    %397 = tpu.matmul %395, %396, %cst_203 {dimension_numbers = #tpu.dot_dimension_numbers<[1], [0], [0], [1], [0, 0, 1, 1], [], []>} : vector<8x32xf32>, vector<32x144xf32>, vector<8x144xf32> -> vector<8x144xf32>
    %398 = vector.extract_strided_slice %397 {offsets = [0, 128], sizes = [8, 16], strides = [1, 1]} : vector<8x144xf32> to vector<8x16xf32>
    %399 = arith.addf %398, %121 : vector<8x16xf32>
    %400 = arith.mulf %388, %399 : vector<8x16xf32>
    %401 = arith.addf %385, %400 : vector<8x16xf32>
    %c0_204 = arith.constant 0 : index
    %c0_205 = arith.constant 0 : index
    %402 = vector.load %arg24[%c0_204, %c0_205] : memref<16x16xf32, #tpu.memory_space<vmem>>, vector<16x16xf32>
    %cst_206 = arith.constant dense<0.000000e+00> : vector<8x16xf32>
    %403 = tpu.matmul %401, %402, %cst_206 {dimension_numbers = #tpu.dot_dimension_numbers<[1], [0], [0], [1], [0, 0, 1, 1], [], []>} : vector<8x16xf32>, vector<16x16xf32>, vector<8x16xf32> -> vector<8x16xf32>
    %404 = arith.addf %403, %124 : vector<8x16xf32>
    %405 = arith.index_cast %296 : i32 to index
    %c0_207 = arith.constant 0 : index
    %c0_208 = arith.constant 0 : index
    %406 = vector.load %arg42[%405, %c0_207, %c0_208] : memref<8x8x16xf32, #tpu.memory_space<vmem>>, vector<1x8x16xf32>
    %407 = vector.shape_cast %406 : vector<1x8x16xf32> to vector<8x16xf32>
    %408 = arith.subf %404, %399 : vector<8x16xf32>
    %409 = arith.mulf %407, %408 : vector<8x16xf32>
    %410 = arith.addf %399, %409 : vector<8x16xf32>
    %411 = arith.mulf %388, %410 : vector<8x16xf32>
    %412 = arith.addf %385, %411 : vector<8x16xf32>
    %413 = arith.index_cast %296 : i32 to index
    %c0_209 = arith.constant 0 : index
    %c0_210 = arith.constant 0 : index
    %414 = vector.load %arg34[%413, %c0_209, %c0_210] : memref<8x8x16xf32, #tpu.memory_space<vmem>>, vector<1x8x16xf32>
    %415 = vector.shape_cast %414 : vector<1x8x16xf32> to vector<8x16xf32>
    %416 = vector.shape_cast %410 : vector<8x16xf32> to vector<1x8x16xf32>
    tpu.vector_store %arg34[%413, %c0_209, %c0_210], %416 {strides = array<i32>} : memref<8x8x16xf32, #tpu.memory_space<vmem>>, vector<1x8x16xf32>,
    %417 = arith.index_cast %296 : i32 to index
    %c0_211 = arith.constant 0 : index
    %c0_212 = arith.constant 0 : index
    %418 = vector.load %arg49[%417, %c0_211, %c0_212] : memref<8x8x16xf32, #tpu.memory_space<vmem>>, vector<1x8x16xf32>
    %419 = vector.shape_cast %418 : vector<1x8x16xf32> to vector<8x16xf32>
    %420 = vector.shape_cast %412 : vector<8x16xf32> to vector<1x8x16xf32>
    tpu.vector_store %arg49[%417, %c0_211, %c0_212], %420 {strides = array<i32>} : memref<8x8x16xf32, #tpu.memory_space<vmem>>, vector<1x8x16xf32>,
    %421 = arith.subf %399, %382 : vector<8x16xf32>
    %422 = math.absf %421 : vector<8x16xf32>
    %423 = arith.subf %404, %382 : vector<8x16xf32>
    %424 = math.absf %423 : vector<8x16xf32>
    %425 = arith.addf %422, %424 : vector<8x16xf32>
    %426 = arith.subf %410, %382 : vector<8x16xf32>
    %427 = math.absf %426 : vector<8x16xf32>
    %428 = arith.addf %425, %427 : vector<8x16xf32>
    %429 = arith.mulf %428, %391 : vector<8x16xf32>
    %c0_213 = arith.constant 0 : index
    %c0_214 = arith.constant 0 : index
    %430 = vector.load %arg29[%c0_213, %c0_214] : memref<16x128xf32, #tpu.memory_space<vmem>>, vector<16x128xf32>
    %cst_215 = arith.constant dense<0.000000e+00> : vector<8x128xf32>
    %431 = tpu.matmul %412, %430, %cst_215 {dimension_numbers = #tpu.dot_dimension_numbers<[1], [0], [0], [1], [0, 0, 1, 1], [], []>} : vector<8x16xf32>, vector<16x128xf32>, vector<8x128xf32> -> vector<8x128xf32>
    %432 = vector.extract_strided_slice %397 {offsets = [0, 0], sizes = [8, 128], strides = [1, 1]} : vector<8x144xf32> to vector<8x128xf32>
    %433 = arith.addf %431, %432 : vector<8x128xf32>
    %434 = arith.index_cast %296 : i32 to index
    %c0_216 = arith.constant 0 : index
    %c0_217 = arith.constant 0 : index
    %435 = vector.load %arg44[%434, %c0_216, %c0_217] : memref<8x8x128xf32, #tpu.memory_space<vmem>>, vector<1x8x128xf32>
    %436 = vector.shape_cast %435 : vector<1x8x128xf32> to vector<8x128xf32>
    %437 = arith.addf %433, %436 : vector<8x128xf32>
    %438 = vector.extract_strided_slice %437 {offsets = [0, 0], sizes = [8, 32], strides = [1, 1]} : vector<8x128xf32> to vector<8x32xf32>
    %439 = arith.negf %438 : vector<8x32xf32>
    %440 = math.exp %439 : vector<8x32xf32>
    %cst_218 = arith.constant 1.000000e+00 : f32
    %441 = vector.broadcast %cst_218 : f32 to vector<8x32xf32>
    %442 = arith.addf %441, %440 : vector<8x32xf32>
    %443 = arith.divf %441, %442 : vector<8x32xf32>
    %444 = vector.extract_strided_slice %437 {offsets = [0, 32], sizes = [8, 32], strides = [1, 1]} : vector<8x128xf32> to vector<8x32xf32>
    %445 = arith.negf %444 : vector<8x32xf32>
    %446 = math.exp %445 : vector<8x32xf32>
    %cst_219 = arith.constant 1.000000e+00 : f32
    %447 = vector.broadcast %cst_219 : f32 to vector<8x32xf32>
    %448 = arith.addf %447, %446 : vector<8x32xf32>
    %449 = arith.divf %447, %448 : vector<8x32xf32>
    %450 = vector.extract_strided_slice %437 {offsets = [0, 64], sizes = [8, 32], strides = [1, 1]} : vector<8x128xf32> to vector<8x32xf32>
    %451 = math.tanh %450 : vector<8x32xf32>
    %452 = vector.extract_strided_slice %437 {offsets = [0, 96], sizes = [8, 32], strides = [1, 1]} : vector<8x128xf32> to vector<8x32xf32>
    %453 = arith.negf %452 : vector<8x32xf32>
    %454 = math.exp %453 : vector<8x32xf32>
    %cst_220 = arith.constant 1.000000e+00 : f32
    %455 = vector.broadcast %cst_220 : f32 to vector<8x32xf32>
    %456 = arith.addf %455, %454 : vector<8x32xf32>
    %457 = arith.divf %455, %456 : vector<8x32xf32>
    %458 = arith.mulf %449, %291 : vector<8x32xf32>
    %459 = arith.mulf %443, %451 : vector<8x32xf32>
    %460 = arith.addf %458, %459 : vector<8x32xf32>
    %461 = math.tanh %460 : vector<8x32xf32>
    %462 = arith.mulf %457, %461 : vector<8x32xf32>
    %463 = arith.addf %295, %346 : vector<8x16xf32>
    %464 = arith.addf %463, %429 : vector<8x16xf32>
    %c2_i32 = arith.constant 2 : i32
    %c7_i32_221 = arith.constant 7 : i32
    %465 = arith.subi %c7_i32_221, %c2_i32 : i32
    %466 = arith.index_cast %c2_i32 : i32 to index
    %c0_222 = arith.constant 0 : index
    %c0_223 = arith.constant 0 : index
    %467 = vector.load %arg1[%466, %c0_222, %c0_223] : memref<8x8x16xf32, #tpu.memory_space<vmem>>, vector<1x8x16xf32>
    %468 = vector.shape_cast %467 : vector<1x8x16xf32> to vector<8x16xf32>
    %469 = arith.index_cast %c2_i32 : i32 to index
    %c0_224 = arith.constant 0 : index
    %c0_225 = arith.constant 0 : index
    %470 = vector.load %arg45[%469, %c0_224, %c0_225] : memref<8x8x16xf32, #tpu.memory_space<vmem>>, vector<1x8x16xf32>
    %471 = vector.shape_cast %470 : vector<1x8x16xf32> to vector<8x16xf32>
    %472 = arith.index_cast %c2_i32 : i32 to index
    %c0_226 = arith.constant 0 : index
    %c0_227 = arith.constant 0 : index
    %473 = vector.load %arg46[%472, %c0_226, %c0_227] : memref<8x8x16xf32, #tpu.memory_space<vmem>>, vector<1x8x16xf32>
    %474 = vector.shape_cast %473 : vector<1x8x16xf32> to vector<8x16xf32>
    %475 = arith.index_cast %c2_i32 : i32 to index
    %c0_228 = arith.constant 0 : index
    %c0_229 = arith.constant 0 : index
    %476 = vector.load %arg47[%475, %c0_228, %c0_229] : memref<8x8x16xf32, #tpu.memory_space<vmem>>, vector<1x8x16xf32>
    %477 = vector.shape_cast %476 : vector<1x8x16xf32> to vector<8x16xf32>
    %478 = arith.index_cast %c2_i32 : i32 to index
    %c0_230 = arith.constant 0 : index
    %c0_231 = arith.constant 0 : index
    %479 = vector.load %arg39[%478, %c0_230, %c0_231] : memref<8x8x32xf32, #tpu.memory_space<vmem>>, vector<1x8x32xf32>
    %480 = vector.shape_cast %479 : vector<1x8x32xf32> to vector<8x32xf32>
    %481 = arith.mulf %379, %480 : vector<8x32xf32>
    %c0_232 = arith.constant 0 : index
    %c0_233 = arith.constant 0 : index
    %482 = vector.load %arg9[%c0_232, %c0_233] : memref<32x144xf32, #tpu.memory_space<vmem>>, vector<32x144xf32>
    %cst_234 = arith.constant dense<0.000000e+00> : vector<8x144xf32>
    %483 = tpu.matmul %481, %482, %cst_234 {dimension_numbers = #tpu.dot_dimension_numbers<[1], [0], [0], [1], [0, 0, 1, 1], [], []>} : vector<8x32xf32>, vector<32x144xf32>, vector<8x144xf32> -> vector<8x144xf32>
    %484 = vector.extract_strided_slice %483 {offsets = [0, 128], sizes = [8, 16], strides = [1, 1]} : vector<8x144xf32> to vector<8x16xf32>
    %485 = arith.addf %484, %115 : vector<8x16xf32>
    %486 = arith.mulf %474, %485 : vector<8x16xf32>
    %487 = arith.addf %471, %486 : vector<8x16xf32>
    %c0_235 = arith.constant 0 : index
    %c0_236 = arith.constant 0 : index
    %488 = vector.load %arg11[%c0_235, %c0_236] : memref<16x16xf32, #tpu.memory_space<vmem>>, vector<16x16xf32>
    %cst_237 = arith.constant dense<0.000000e+00> : vector<8x16xf32>
    %489 = tpu.matmul %487, %488, %cst_237 {dimension_numbers = #tpu.dot_dimension_numbers<[1], [0], [0], [1], [0, 0, 1, 1], [], []>} : vector<8x16xf32>, vector<16x16xf32>, vector<8x16xf32> -> vector<8x16xf32>
    %490 = arith.addf %489, %118 : vector<8x16xf32>
    %491 = arith.index_cast %c2_i32 : i32 to index
    %c0_238 = arith.constant 0 : index
    %c0_239 = arith.constant 0 : index
    %492 = vector.load %arg41[%491, %c0_238, %c0_239] : memref<8x8x16xf32, #tpu.memory_space<vmem>>, vector<1x8x16xf32>
    %493 = vector.shape_cast %492 : vector<1x8x16xf32> to vector<8x16xf32>
    %494 = arith.subf %490, %485 : vector<8x16xf32>
    %495 = arith.mulf %493, %494 : vector<8x16xf32>
    %496 = arith.addf %485, %495 : vector<8x16xf32>
    %497 = arith.mulf %474, %496 : vector<8x16xf32>
    %498 = arith.addf %471, %497 : vector<8x16xf32>
    %499 = arith.index_cast %c2_i32 : i32 to index
    %c0_240 = arith.constant 0 : index
    %c0_241 = arith.constant 0 : index
    %500 = vector.load %arg33[%499, %c0_240, %c0_241] : memref<8x8x16xf32, #tpu.memory_space<vmem>>, vector<1x8x16xf32>
    %501 = vector.shape_cast %500 : vector<1x8x16xf32> to vector<8x16xf32>
    %502 = vector.shape_cast %496 : vector<8x16xf32> to vector<1x8x16xf32>
    tpu.vector_store %arg33[%499, %c0_240, %c0_241], %502 {strides = array<i32>} : memref<8x8x16xf32, #tpu.memory_space<vmem>>, vector<1x8x16xf32>,
    %503 = arith.index_cast %c2_i32 : i32 to index
    %c0_242 = arith.constant 0 : index
    %c0_243 = arith.constant 0 : index
    %504 = vector.load %arg48[%503, %c0_242, %c0_243] : memref<8x8x16xf32, #tpu.memory_space<vmem>>, vector<1x8x16xf32>
    %505 = vector.shape_cast %504 : vector<1x8x16xf32> to vector<8x16xf32>
    %506 = vector.shape_cast %498 : vector<8x16xf32> to vector<1x8x16xf32>
    tpu.vector_store %arg48[%503, %c0_242, %c0_243], %506 {strides = array<i32>} : memref<8x8x16xf32, #tpu.memory_space<vmem>>, vector<1x8x16xf32>,
    %507 = arith.subf %485, %468 : vector<8x16xf32>
    %508 = math.absf %507 : vector<8x16xf32>
    %509 = arith.subf %490, %468 : vector<8x16xf32>
    %510 = math.absf %509 : vector<8x16xf32>
    %511 = arith.addf %508, %510 : vector<8x16xf32>
    %512 = arith.subf %496, %468 : vector<8x16xf32>
    %513 = math.absf %512 : vector<8x16xf32>
    %514 = arith.addf %511, %513 : vector<8x16xf32>
    %515 = arith.mulf %514, %477 : vector<8x16xf32>
    %c0_244 = arith.constant 0 : index
    %c0_245 = arith.constant 0 : index
    %516 = vector.load %arg16[%c0_244, %c0_245] : memref<16x128xf32, #tpu.memory_space<vmem>>, vector<16x128xf32>
    %cst_246 = arith.constant dense<0.000000e+00> : vector<8x128xf32>
    %517 = tpu.matmul %498, %516, %cst_246 {dimension_numbers = #tpu.dot_dimension_numbers<[1], [0], [0], [1], [0, 0, 1, 1], [], []>} : vector<8x16xf32>, vector<16x128xf32>, vector<8x128xf32> -> vector<8x128xf32>
    %518 = vector.extract_strided_slice %483 {offsets = [0, 0], sizes = [8, 128], strides = [1, 1]} : vector<8x144xf32> to vector<8x128xf32>
    %519 = arith.addf %517, %518 : vector<8x128xf32>
    %520 = arith.index_cast %c2_i32 : i32 to index
    %c0_247 = arith.constant 0 : index
    %c0_248 = arith.constant 0 : index
    %521 = vector.load %arg43[%520, %c0_247, %c0_248] : memref<8x8x128xf32, #tpu.memory_space<vmem>>, vector<1x8x128xf32>
    %522 = vector.shape_cast %521 : vector<1x8x128xf32> to vector<8x128xf32>
    %523 = arith.addf %519, %522 : vector<8x128xf32>
    %524 = vector.extract_strided_slice %523 {offsets = [0, 0], sizes = [8, 32], strides = [1, 1]} : vector<8x128xf32> to vector<8x32xf32>
    %525 = arith.negf %524 : vector<8x32xf32>
    %526 = math.exp %525 : vector<8x32xf32>
    %cst_249 = arith.constant 1.000000e+00 : f32
    %527 = vector.broadcast %cst_249 : f32 to vector<8x32xf32>
    %528 = arith.addf %527, %526 : vector<8x32xf32>
    %529 = arith.divf %527, %528 : vector<8x32xf32>
    %530 = vector.extract_strided_slice %523 {offsets = [0, 32], sizes = [8, 32], strides = [1, 1]} : vector<8x128xf32> to vector<8x32xf32>
    %531 = arith.negf %530 : vector<8x32xf32>
    %532 = math.exp %531 : vector<8x32xf32>
    %cst_250 = arith.constant 1.000000e+00 : f32
    %533 = vector.broadcast %cst_250 : f32 to vector<8x32xf32>
    %534 = arith.addf %533, %532 : vector<8x32xf32>
    %535 = arith.divf %533, %534 : vector<8x32xf32>
    %536 = vector.extract_strided_slice %523 {offsets = [0, 64], sizes = [8, 32], strides = [1, 1]} : vector<8x128xf32> to vector<8x32xf32>
    %537 = math.tanh %536 : vector<8x32xf32>
    %538 = vector.extract_strided_slice %523 {offsets = [0, 96], sizes = [8, 32], strides = [1, 1]} : vector<8x128xf32> to vector<8x32xf32>
    %539 = arith.negf %538 : vector<8x32xf32>
    %540 = math.exp %539 : vector<8x32xf32>
    %cst_251 = arith.constant 1.000000e+00 : f32
    %541 = vector.broadcast %cst_251 : f32 to vector<8x32xf32>
    %542 = arith.addf %541, %540 : vector<8x32xf32>
    %543 = arith.divf %541, %542 : vector<8x32xf32>
    %544 = arith.mulf %535, %377 : vector<8x32xf32>
    %545 = arith.mulf %529, %537 : vector<8x32xf32>
    %546 = arith.addf %544, %545 : vector<8x32xf32>
    %547 = math.tanh %546 : vector<8x32xf32>
    %548 = arith.mulf %543, %547 : vector<8x32xf32>
    %549 = arith.index_cast %465 : i32 to index
    %c0_252 = arith.constant 0 : index
    %c0_253 = arith.constant 0 : index
    %550 = vector.load %arg1[%549, %c0_252, %c0_253] : memref<8x8x16xf32, #tpu.memory_space<vmem>>, vector<1x8x16xf32>
    %551 = vector.shape_cast %550 : vector<1x8x16xf32> to vector<8x16xf32>
    %552 = arith.index_cast %465 : i32 to index
    %c0_254 = arith.constant 0 : index
    %c0_255 = arith.constant 0 : index
    %553 = vector.load %arg45[%552, %c0_254, %c0_255] : memref<8x8x16xf32, #tpu.memory_space<vmem>>, vector<1x8x16xf32>
    %554 = vector.shape_cast %553 : vector<1x8x16xf32> to vector<8x16xf32>
    %555 = arith.index_cast %465 : i32 to index
    %c0_256 = arith.constant 0 : index
    %c0_257 = arith.constant 0 : index
    %556 = vector.load %arg46[%555, %c0_256, %c0_257] : memref<8x8x16xf32, #tpu.memory_space<vmem>>, vector<1x8x16xf32>
    %557 = vector.shape_cast %556 : vector<1x8x16xf32> to vector<8x16xf32>
    %558 = arith.index_cast %465 : i32 to index
    %c0_258 = arith.constant 0 : index
    %c0_259 = arith.constant 0 : index
    %559 = vector.load %arg47[%558, %c0_258, %c0_259] : memref<8x8x16xf32, #tpu.memory_space<vmem>>, vector<1x8x16xf32>
    %560 = vector.shape_cast %559 : vector<1x8x16xf32> to vector<8x16xf32>
    %561 = arith.index_cast %465 : i32 to index
    %c0_260 = arith.constant 0 : index
    %c0_261 = arith.constant 0 : index
    %562 = vector.load %arg40[%561, %c0_260, %c0_261] : memref<8x8x32xf32, #tpu.memory_space<vmem>>, vector<1x8x32xf32>
    %563 = vector.shape_cast %562 : vector<1x8x32xf32> to vector<8x32xf32>
    %564 = arith.mulf %462, %563 : vector<8x32xf32>
    %c0_262 = arith.constant 0 : index
    %c0_263 = arith.constant 0 : index
    %565 = vector.load %arg22[%c0_262, %c0_263] : memref<32x144xf32, #tpu.memory_space<vmem>>, vector<32x144xf32>
    %cst_264 = arith.constant dense<0.000000e+00> : vector<8x144xf32>
    %566 = tpu.matmul %564, %565, %cst_264 {dimension_numbers = #tpu.dot_dimension_numbers<[1], [0], [0], [1], [0, 0, 1, 1], [], []>} : vector<8x32xf32>, vector<32x144xf32>, vector<8x144xf32> -> vector<8x144xf32>
    %567 = vector.extract_strided_slice %566 {offsets = [0, 128], sizes = [8, 16], strides = [1, 1]} : vector<8x144xf32> to vector<8x16xf32>
    %568 = arith.addf %567, %121 : vector<8x16xf32>
    %569 = arith.mulf %557, %568 : vector<8x16xf32>
    %570 = arith.addf %554, %569 : vector<8x16xf32>
    %c0_265 = arith.constant 0 : index
    %c0_266 = arith.constant 0 : index
    %571 = vector.load %arg24[%c0_265, %c0_266] : memref<16x16xf32, #tpu.memory_space<vmem>>, vector<16x16xf32>
    %cst_267 = arith.constant dense<0.000000e+00> : vector<8x16xf32>
    %572 = tpu.matmul %570, %571, %cst_267 {dimension_numbers = #tpu.dot_dimension_numbers<[1], [0], [0], [1], [0, 0, 1, 1], [], []>} : vector<8x16xf32>, vector<16x16xf32>, vector<8x16xf32> -> vector<8x16xf32>
    %573 = arith.addf %572, %124 : vector<8x16xf32>
    %574 = arith.index_cast %465 : i32 to index
    %c0_268 = arith.constant 0 : index
    %c0_269 = arith.constant 0 : index
    %575 = vector.load %arg42[%574, %c0_268, %c0_269] : memref<8x8x16xf32, #tpu.memory_space<vmem>>, vector<1x8x16xf32>
    %576 = vector.shape_cast %575 : vector<1x8x16xf32> to vector<8x16xf32>
    %577 = arith.subf %573, %568 : vector<8x16xf32>
    %578 = arith.mulf %576, %577 : vector<8x16xf32>
    %579 = arith.addf %568, %578 : vector<8x16xf32>
    %580 = arith.mulf %557, %579 : vector<8x16xf32>
    %581 = arith.addf %554, %580 : vector<8x16xf32>
    %582 = arith.index_cast %465 : i32 to index
    %c0_270 = arith.constant 0 : index
    %c0_271 = arith.constant 0 : index
    %583 = vector.load %arg34[%582, %c0_270, %c0_271] : memref<8x8x16xf32, #tpu.memory_space<vmem>>, vector<1x8x16xf32>
    %584 = vector.shape_cast %583 : vector<1x8x16xf32> to vector<8x16xf32>
    %585 = vector.shape_cast %579 : vector<8x16xf32> to vector<1x8x16xf32>
    tpu.vector_store %arg34[%582, %c0_270, %c0_271], %585 {strides = array<i32>} : memref<8x8x16xf32, #tpu.memory_space<vmem>>, vector<1x8x16xf32>,
    %586 = arith.index_cast %465 : i32 to index
    %c0_272 = arith.constant 0 : index
    %c0_273 = arith.constant 0 : index
    %587 = vector.load %arg49[%586, %c0_272, %c0_273] : memref<8x8x16xf32, #tpu.memory_space<vmem>>, vector<1x8x16xf32>
    %588 = vector.shape_cast %587 : vector<1x8x16xf32> to vector<8x16xf32>
    %589 = vector.shape_cast %581 : vector<8x16xf32> to vector<1x8x16xf32>
    tpu.vector_store %arg49[%586, %c0_272, %c0_273], %589 {strides = array<i32>} : memref<8x8x16xf32, #tpu.memory_space<vmem>>, vector<1x8x16xf32>,
    %590 = arith.subf %568, %551 : vector<8x16xf32>
    %591 = math.absf %590 : vector<8x16xf32>
    %592 = arith.subf %573, %551 : vector<8x16xf32>
    %593 = math.absf %592 : vector<8x16xf32>
    %594 = arith.addf %591, %593 : vector<8x16xf32>
    %595 = arith.subf %579, %551 : vector<8x16xf32>
    %596 = math.absf %595 : vector<8x16xf32>
    %597 = arith.addf %594, %596 : vector<8x16xf32>
    %598 = arith.mulf %597, %560 : vector<8x16xf32>
    %c0_274 = arith.constant 0 : index
    %c0_275 = arith.constant 0 : index
    %599 = vector.load %arg29[%c0_274, %c0_275] : memref<16x128xf32, #tpu.memory_space<vmem>>, vector<16x128xf32>
    %cst_276 = arith.constant dense<0.000000e+00> : vector<8x128xf32>
    %600 = tpu.matmul %581, %599, %cst_276 {dimension_numbers = #tpu.dot_dimension_numbers<[1], [0], [0], [1], [0, 0, 1, 1], [], []>} : vector<8x16xf32>, vector<16x128xf32>, vector<8x128xf32> -> vector<8x128xf32>
    %601 = vector.extract_strided_slice %566 {offsets = [0, 0], sizes = [8, 128], strides = [1, 1]} : vector<8x144xf32> to vector<8x128xf32>
    %602 = arith.addf %600, %601 : vector<8x128xf32>
    %603 = arith.index_cast %465 : i32 to index
    %c0_277 = arith.constant 0 : index
    %c0_278 = arith.constant 0 : index
    %604 = vector.load %arg44[%603, %c0_277, %c0_278] : memref<8x8x128xf32, #tpu.memory_space<vmem>>, vector<1x8x128xf32>
    %605 = vector.shape_cast %604 : vector<1x8x128xf32> to vector<8x128xf32>
    %606 = arith.addf %602, %605 : vector<8x128xf32>
    %607 = vector.extract_strided_slice %606 {offsets = [0, 0], sizes = [8, 32], strides = [1, 1]} : vector<8x128xf32> to vector<8x32xf32>
    %608 = arith.negf %607 : vector<8x32xf32>
    %609 = math.exp %608 : vector<8x32xf32>
    %cst_279 = arith.constant 1.000000e+00 : f32
    %610 = vector.broadcast %cst_279 : f32 to vector<8x32xf32>
    %611 = arith.addf %610, %609 : vector<8x32xf32>
    %612 = arith.divf %610, %611 : vector<8x32xf32>
    %613 = vector.extract_strided_slice %606 {offsets = [0, 32], sizes = [8, 32], strides = [1, 1]} : vector<8x128xf32> to vector<8x32xf32>
    %614 = arith.negf %613 : vector<8x32xf32>
    %615 = math.exp %614 : vector<8x32xf32>
    %cst_280 = arith.constant 1.000000e+00 : f32
    %616 = vector.broadcast %cst_280 : f32 to vector<8x32xf32>
    %617 = arith.addf %616, %615 : vector<8x32xf32>
    %618 = arith.divf %616, %617 : vector<8x32xf32>
    %619 = vector.extract_strided_slice %606 {offsets = [0, 64], sizes = [8, 32], strides = [1, 1]} : vector<8x128xf32> to vector<8x32xf32>
    %620 = math.tanh %619 : vector<8x32xf32>
    %621 = vector.extract_strided_slice %606 {offsets = [0, 96], sizes = [8, 32], strides = [1, 1]} : vector<8x128xf32> to vector<8x32xf32>
    %622 = arith.negf %621 : vector<8x32xf32>
    %623 = math.exp %622 : vector<8x32xf32>
    %cst_281 = arith.constant 1.000000e+00 : f32
    %624 = vector.broadcast %cst_281 : f32 to vector<8x32xf32>
    %625 = arith.addf %624, %623 : vector<8x32xf32>
    %626 = arith.divf %624, %625 : vector<8x32xf32>
    %627 = arith.mulf %618, %460 : vector<8x32xf32>
    %628 = arith.mulf %612, %620 : vector<8x32xf32>
    %629 = arith.addf %627, %628 : vector<8x32xf32>
    %630 = math.tanh %629 : vector<8x32xf32>
    %631 = arith.mulf %626, %630 : vector<8x32xf32>
    %632 = arith.addf %464, %515 : vector<8x16xf32>
    %633 = arith.addf %632, %598 : vector<8x16xf32>
    %c3_i32 = arith.constant 3 : i32
    %c7_i32_282 = arith.constant 7 : i32
    %634 = arith.subi %c7_i32_282, %c3_i32 : i32
    %635 = arith.index_cast %c3_i32 : i32 to index
    %c0_283 = arith.constant 0 : index
    %c0_284 = arith.constant 0 : index
    %636 = vector.load %arg1[%635, %c0_283, %c0_284] : memref<8x8x16xf32, #tpu.memory_space<vmem>>, vector<1x8x16xf32>
    %637 = vector.shape_cast %636 : vector<1x8x16xf32> to vector<8x16xf32>
    %638 = arith.index_cast %c3_i32 : i32 to index
    %c0_285 = arith.constant 0 : index
    %c0_286 = arith.constant 0 : index
    %639 = vector.load %arg45[%638, %c0_285, %c0_286] : memref<8x8x16xf32, #tpu.memory_space<vmem>>, vector<1x8x16xf32>
    %640 = vector.shape_cast %639 : vector<1x8x16xf32> to vector<8x16xf32>
    %641 = arith.index_cast %c3_i32 : i32 to index
    %c0_287 = arith.constant 0 : index
    %c0_288 = arith.constant 0 : index
    %642 = vector.load %arg46[%641, %c0_287, %c0_288] : memref<8x8x16xf32, #tpu.memory_space<vmem>>, vector<1x8x16xf32>
    %643 = vector.shape_cast %642 : vector<1x8x16xf32> to vector<8x16xf32>
    %644 = arith.index_cast %c3_i32 : i32 to index
    %c0_289 = arith.constant 0 : index
    %c0_290 = arith.constant 0 : index
    %645 = vector.load %arg47[%644, %c0_289, %c0_290] : memref<8x8x16xf32, #tpu.memory_space<vmem>>, vector<1x8x16xf32>
    %646 = vector.shape_cast %645 : vector<1x8x16xf32> to vector<8x16xf32>
    %647 = arith.index_cast %c3_i32 : i32 to index
    %c0_291 = arith.constant 0 : index
    %c0_292 = arith.constant 0 : index
    %648 = vector.load %arg39[%647, %c0_291, %c0_292] : memref<8x8x32xf32, #tpu.memory_space<vmem>>, vector<1x8x32xf32>
    %649 = vector.shape_cast %648 : vector<1x8x32xf32> to vector<8x32xf32>
    %650 = arith.mulf %548, %649 : vector<8x32xf32>
    %c0_293 = arith.constant 0 : index
    %c0_294 = arith.constant 0 : index
    %651 = vector.load %arg9[%c0_293, %c0_294] : memref<32x144xf32, #tpu.memory_space<vmem>>, vector<32x144xf32>
    %cst_295 = arith.constant dense<0.000000e+00> : vector<8x144xf32>
    %652 = tpu.matmul %650, %651, %cst_295 {dimension_numbers = #tpu.dot_dimension_numbers<[1], [0], [0], [1], [0, 0, 1, 1], [], []>} : vector<8x32xf32>, vector<32x144xf32>, vector<8x144xf32> -> vector<8x144xf32>
    %653 = vector.extract_strided_slice %652 {offsets = [0, 128], sizes = [8, 16], strides = [1, 1]} : vector<8x144xf32> to vector<8x16xf32>
    %654 = arith.addf %653, %115 : vector<8x16xf32>
    %655 = arith.mulf %643, %654 : vector<8x16xf32>
    %656 = arith.addf %640, %655 : vector<8x16xf32>
    %c0_296 = arith.constant 0 : index
    %c0_297 = arith.constant 0 : index
    %657 = vector.load %arg11[%c0_296, %c0_297] : memref<16x16xf32, #tpu.memory_space<vmem>>, vector<16x16xf32>
    %cst_298 = arith.constant dense<0.000000e+00> : vector<8x16xf32>
    %658 = tpu.matmul %656, %657, %cst_298 {dimension_numbers = #tpu.dot_dimension_numbers<[1], [0], [0], [1], [0, 0, 1, 1], [], []>} : vector<8x16xf32>, vector<16x16xf32>, vector<8x16xf32> -> vector<8x16xf32>
    %659 = arith.addf %658, %118 : vector<8x16xf32>
    %660 = arith.index_cast %c3_i32 : i32 to index
    %c0_299 = arith.constant 0 : index
    %c0_300 = arith.constant 0 : index
    %661 = vector.load %arg41[%660, %c0_299, %c0_300] : memref<8x8x16xf32, #tpu.memory_space<vmem>>, vector<1x8x16xf32>
    %662 = vector.shape_cast %661 : vector<1x8x16xf32> to vector<8x16xf32>
    %663 = arith.subf %659, %654 : vector<8x16xf32>
    %664 = arith.mulf %662, %663 : vector<8x16xf32>
    %665 = arith.addf %654, %664 : vector<8x16xf32>
    %666 = arith.mulf %643, %665 : vector<8x16xf32>
    %667 = arith.addf %640, %666 : vector<8x16xf32>
    %668 = arith.index_cast %c3_i32 : i32 to index
    %c0_301 = arith.constant 0 : index
    %c0_302 = arith.constant 0 : index
    %669 = vector.load %arg33[%668, %c0_301, %c0_302] : memref<8x8x16xf32, #tpu.memory_space<vmem>>, vector<1x8x16xf32>
    %670 = vector.shape_cast %669 : vector<1x8x16xf32> to vector<8x16xf32>
    %671 = vector.shape_cast %665 : vector<8x16xf32> to vector<1x8x16xf32>
    tpu.vector_store %arg33[%668, %c0_301, %c0_302], %671 {strides = array<i32>} : memref<8x8x16xf32, #tpu.memory_space<vmem>>, vector<1x8x16xf32>,
    %672 = arith.index_cast %c3_i32 : i32 to index
    %c0_303 = arith.constant 0 : index
    %c0_304 = arith.constant 0 : index
    %673 = vector.load %arg48[%672, %c0_303, %c0_304] : memref<8x8x16xf32, #tpu.memory_space<vmem>>, vector<1x8x16xf32>
    %674 = vector.shape_cast %673 : vector<1x8x16xf32> to vector<8x16xf32>
    %675 = vector.shape_cast %667 : vector<8x16xf32> to vector<1x8x16xf32>
    tpu.vector_store %arg48[%672, %c0_303, %c0_304], %675 {strides = array<i32>} : memref<8x8x16xf32, #tpu.memory_space<vmem>>, vector<1x8x16xf32>,
    %676 = arith.subf %654, %637 : vector<8x16xf32>
    %677 = math.absf %676 : vector<8x16xf32>
    %678 = arith.subf %659, %637 : vector<8x16xf32>
    %679 = math.absf %678 : vector<8x16xf32>
    %680 = arith.addf %677, %679 : vector<8x16xf32>
    %681 = arith.subf %665, %637 : vector<8x16xf32>
    %682 = math.absf %681 : vector<8x16xf32>
    %683 = arith.addf %680, %682 : vector<8x16xf32>
    %684 = arith.mulf %683, %646 : vector<8x16xf32>
    %c0_305 = arith.constant 0 : index
    %c0_306 = arith.constant 0 : index
    %685 = vector.load %arg16[%c0_305, %c0_306] : memref<16x128xf32, #tpu.memory_space<vmem>>, vector<16x128xf32>
    %cst_307 = arith.constant dense<0.000000e+00> : vector<8x128xf32>
    %686 = tpu.matmul %667, %685, %cst_307 {dimension_numbers = #tpu.dot_dimension_numbers<[1], [0], [0], [1], [0, 0, 1, 1], [], []>} : vector<8x16xf32>, vector<16x128xf32>, vector<8x128xf32> -> vector<8x128xf32>
    %687 = vector.extract_strided_slice %652 {offsets = [0, 0], sizes = [8, 128], strides = [1, 1]} : vector<8x144xf32> to vector<8x128xf32>
    %688 = arith.addf %686, %687 : vector<8x128xf32>
    %689 = arith.index_cast %c3_i32 : i32 to index
    %c0_308 = arith.constant 0 : index
    %c0_309 = arith.constant 0 : index
    %690 = vector.load %arg43[%689, %c0_308, %c0_309] : memref<8x8x128xf32, #tpu.memory_space<vmem>>, vector<1x8x128xf32>
    %691 = vector.shape_cast %690 : vector<1x8x128xf32> to vector<8x128xf32>
    %692 = arith.addf %688, %691 : vector<8x128xf32>
    %693 = vector.extract_strided_slice %692 {offsets = [0, 0], sizes = [8, 32], strides = [1, 1]} : vector<8x128xf32> to vector<8x32xf32>
    %694 = arith.negf %693 : vector<8x32xf32>
    %695 = math.exp %694 : vector<8x32xf32>
    %cst_310 = arith.constant 1.000000e+00 : f32
    %696 = vector.broadcast %cst_310 : f32 to vector<8x32xf32>
    %697 = arith.addf %696, %695 : vector<8x32xf32>
    %698 = arith.divf %696, %697 : vector<8x32xf32>
    %699 = vector.extract_strided_slice %692 {offsets = [0, 32], sizes = [8, 32], strides = [1, 1]} : vector<8x128xf32> to vector<8x32xf32>
    %700 = arith.negf %699 : vector<8x32xf32>
    %701 = math.exp %700 : vector<8x32xf32>
    %cst_311 = arith.constant 1.000000e+00 : f32
    %702 = vector.broadcast %cst_311 : f32 to vector<8x32xf32>
    %703 = arith.addf %702, %701 : vector<8x32xf32>
    %704 = arith.divf %702, %703 : vector<8x32xf32>
    %705 = vector.extract_strided_slice %692 {offsets = [0, 64], sizes = [8, 32], strides = [1, 1]} : vector<8x128xf32> to vector<8x32xf32>
    %706 = math.tanh %705 : vector<8x32xf32>
    %707 = vector.extract_strided_slice %692 {offsets = [0, 96], sizes = [8, 32], strides = [1, 1]} : vector<8x128xf32> to vector<8x32xf32>
    %708 = arith.negf %707 : vector<8x32xf32>
    %709 = math.exp %708 : vector<8x32xf32>
    %cst_312 = arith.constant 1.000000e+00 : f32
    %710 = vector.broadcast %cst_312 : f32 to vector<8x32xf32>
    %711 = arith.addf %710, %709 : vector<8x32xf32>
    %712 = arith.divf %710, %711 : vector<8x32xf32>
    %713 = arith.mulf %704, %546 : vector<8x32xf32>
    %714 = arith.mulf %698, %706 : vector<8x32xf32>
    %715 = arith.addf %713, %714 : vector<8x32xf32>
    %716 = math.tanh %715 : vector<8x32xf32>
    %717 = arith.mulf %712, %716 : vector<8x32xf32>
    %718 = arith.index_cast %634 : i32 to index
    %c0_313 = arith.constant 0 : index
    %c0_314 = arith.constant 0 : index
    %719 = vector.load %arg1[%718, %c0_313, %c0_314] : memref<8x8x16xf32, #tpu.memory_space<vmem>>, vector<1x8x16xf32>
    %720 = vector.shape_cast %719 : vector<1x8x16xf32> to vector<8x16xf32>
    %721 = arith.index_cast %634 : i32 to index
    %c0_315 = arith.constant 0 : index
    %c0_316 = arith.constant 0 : index
    %722 = vector.load %arg45[%721, %c0_315, %c0_316] : memref<8x8x16xf32, #tpu.memory_space<vmem>>, vector<1x8x16xf32>
    %723 = vector.shape_cast %722 : vector<1x8x16xf32> to vector<8x16xf32>
    %724 = arith.index_cast %634 : i32 to index
    %c0_317 = arith.constant 0 : index
    %c0_318 = arith.constant 0 : index
    %725 = vector.load %arg46[%724, %c0_317, %c0_318] : memref<8x8x16xf32, #tpu.memory_space<vmem>>, vector<1x8x16xf32>
    %726 = vector.shape_cast %725 : vector<1x8x16xf32> to vector<8x16xf32>
    %727 = arith.index_cast %634 : i32 to index
    %c0_319 = arith.constant 0 : index
    %c0_320 = arith.constant 0 : index
    %728 = vector.load %arg47[%727, %c0_319, %c0_320] : memref<8x8x16xf32, #tpu.memory_space<vmem>>, vector<1x8x16xf32>
    %729 = vector.shape_cast %728 : vector<1x8x16xf32> to vector<8x16xf32>
    %730 = arith.index_cast %634 : i32 to index
    %c0_321 = arith.constant 0 : index
    %c0_322 = arith.constant 0 : index
    %731 = vector.load %arg40[%730, %c0_321, %c0_322] : memref<8x8x32xf32, #tpu.memory_space<vmem>>, vector<1x8x32xf32>
    %732 = vector.shape_cast %731 : vector<1x8x32xf32> to vector<8x32xf32>
    %733 = arith.mulf %631, %732 : vector<8x32xf32>
    %c0_323 = arith.constant 0 : index
    %c0_324 = arith.constant 0 : index
    %734 = vector.load %arg22[%c0_323, %c0_324] : memref<32x144xf32, #tpu.memory_space<vmem>>, vector<32x144xf32>
    %cst_325 = arith.constant dense<0.000000e+00> : vector<8x144xf32>
    %735 = tpu.matmul %733, %734, %cst_325 {dimension_numbers = #tpu.dot_dimension_numbers<[1], [0], [0], [1], [0, 0, 1, 1], [], []>} : vector<8x32xf32>, vector<32x144xf32>, vector<8x144xf32> -> vector<8x144xf32>
    %736 = vector.extract_strided_slice %735 {offsets = [0, 128], sizes = [8, 16], strides = [1, 1]} : vector<8x144xf32> to vector<8x16xf32>
    %737 = arith.addf %736, %121 : vector<8x16xf32>
    %738 = arith.mulf %726, %737 : vector<8x16xf32>
    %739 = arith.addf %723, %738 : vector<8x16xf32>
    %c0_326 = arith.constant 0 : index
    %c0_327 = arith.constant 0 : index
    %740 = vector.load %arg24[%c0_326, %c0_327] : memref<16x16xf32, #tpu.memory_space<vmem>>, vector<16x16xf32>
    %cst_328 = arith.constant dense<0.000000e+00> : vector<8x16xf32>
    %741 = tpu.matmul %739, %740, %cst_328 {dimension_numbers = #tpu.dot_dimension_numbers<[1], [0], [0], [1], [0, 0, 1, 1], [], []>} : vector<8x16xf32>, vector<16x16xf32>, vector<8x16xf32> -> vector<8x16xf32>
    %742 = arith.addf %741, %124 : vector<8x16xf32>
    %743 = arith.index_cast %634 : i32 to index
    %c0_329 = arith.constant 0 : index
    %c0_330 = arith.constant 0 : index
    %744 = vector.load %arg42[%743, %c0_329, %c0_330] : memref<8x8x16xf32, #tpu.memory_space<vmem>>, vector<1x8x16xf32>
    %745 = vector.shape_cast %744 : vector<1x8x16xf32> to vector<8x16xf32>
    %746 = arith.subf %742, %737 : vector<8x16xf32>
    %747 = arith.mulf %745, %746 : vector<8x16xf32>
    %748 = arith.addf %737, %747 : vector<8x16xf32>
    %749 = arith.mulf %726, %748 : vector<8x16xf32>
    %750 = arith.addf %723, %749 : vector<8x16xf32>
    %751 = arith.index_cast %634 : i32 to index
    %c0_331 = arith.constant 0 : index
    %c0_332 = arith.constant 0 : index
    %752 = vector.load %arg34[%751, %c0_331, %c0_332] : memref<8x8x16xf32, #tpu.memory_space<vmem>>, vector<1x8x16xf32>
    %753 = vector.shape_cast %752 : vector<1x8x16xf32> to vector<8x16xf32>
    %754 = vector.shape_cast %748 : vector<8x16xf32> to vector<1x8x16xf32>
    tpu.vector_store %arg34[%751, %c0_331, %c0_332], %754 {strides = array<i32>} : memref<8x8x16xf32, #tpu.memory_space<vmem>>, vector<1x8x16xf32>,
    %755 = arith.index_cast %634 : i32 to index
    %c0_333 = arith.constant 0 : index
    %c0_334 = arith.constant 0 : index
    %756 = vector.load %arg49[%755, %c0_333, %c0_334] : memref<8x8x16xf32, #tpu.memory_space<vmem>>, vector<1x8x16xf32>
    %757 = vector.shape_cast %756 : vector<1x8x16xf32> to vector<8x16xf32>
    %758 = vector.shape_cast %750 : vector<8x16xf32> to vector<1x8x16xf32>
    tpu.vector_store %arg49[%755, %c0_333, %c0_334], %758 {strides = array<i32>} : memref<8x8x16xf32, #tpu.memory_space<vmem>>, vector<1x8x16xf32>,
    %759 = arith.subf %737, %720 : vector<8x16xf32>
    %760 = math.absf %759 : vector<8x16xf32>
    %761 = arith.subf %742, %720 : vector<8x16xf32>
    %762 = math.absf %761 : vector<8x16xf32>
    %763 = arith.addf %760, %762 : vector<8x16xf32>
    %764 = arith.subf %748, %720 : vector<8x16xf32>
    %765 = math.absf %764 : vector<8x16xf32>
    %766 = arith.addf %763, %765 : vector<8x16xf32>
    %767 = arith.mulf %766, %729 : vector<8x16xf32>
    %c0_335 = arith.constant 0 : index
    %c0_336 = arith.constant 0 : index
    %768 = vector.load %arg29[%c0_335, %c0_336] : memref<16x128xf32, #tpu.memory_space<vmem>>, vector<16x128xf32>
    %cst_337 = arith.constant dense<0.000000e+00> : vector<8x128xf32>
    %769 = tpu.matmul %750, %768, %cst_337 {dimension_numbers = #tpu.dot_dimension_numbers<[1], [0], [0], [1], [0, 0, 1, 1], [], []>} : vector<8x16xf32>, vector<16x128xf32>, vector<8x128xf32> -> vector<8x128xf32>
    %770 = vector.extract_strided_slice %735 {offsets = [0, 0], sizes = [8, 128], strides = [1, 1]} : vector<8x144xf32> to vector<8x128xf32>
    %771 = arith.addf %769, %770 : vector<8x128xf32>
    %772 = arith.index_cast %634 : i32 to index
    %c0_338 = arith.constant 0 : index
    %c0_339 = arith.constant 0 : index
    %773 = vector.load %arg44[%772, %c0_338, %c0_339] : memref<8x8x128xf32, #tpu.memory_space<vmem>>, vector<1x8x128xf32>
    %774 = vector.shape_cast %773 : vector<1x8x128xf32> to vector<8x128xf32>
    %775 = arith.addf %771, %774 : vector<8x128xf32>
    %776 = vector.extract_strided_slice %775 {offsets = [0, 0], sizes = [8, 32], strides = [1, 1]} : vector<8x128xf32> to vector<8x32xf32>
    %777 = arith.negf %776 : vector<8x32xf32>
    %778 = math.exp %777 : vector<8x32xf32>
    %cst_340 = arith.constant 1.000000e+00 : f32
    %779 = vector.broadcast %cst_340 : f32 to vector<8x32xf32>
    %780 = arith.addf %779, %778 : vector<8x32xf32>
    %781 = arith.divf %779, %780 : vector<8x32xf32>
    %782 = vector.extract_strided_slice %775 {offsets = [0, 32], sizes = [8, 32], strides = [1, 1]} : vector<8x128xf32> to vector<8x32xf32>
    %783 = arith.negf %782 : vector<8x32xf32>
    %784 = math.exp %783 : vector<8x32xf32>
    %cst_341 = arith.constant 1.000000e+00 : f32
    %785 = vector.broadcast %cst_341 : f32 to vector<8x32xf32>
    %786 = arith.addf %785, %784 : vector<8x32xf32>
    %787 = arith.divf %785, %786 : vector<8x32xf32>
    %788 = vector.extract_strided_slice %775 {offsets = [0, 64], sizes = [8, 32], strides = [1, 1]} : vector<8x128xf32> to vector<8x32xf32>
    %789 = math.tanh %788 : vector<8x32xf32>
    %790 = vector.extract_strided_slice %775 {offsets = [0, 96], sizes = [8, 32], strides = [1, 1]} : vector<8x128xf32> to vector<8x32xf32>
    %791 = arith.negf %790 : vector<8x32xf32>
    %792 = math.exp %791 : vector<8x32xf32>
    %cst_342 = arith.constant 1.000000e+00 : f32
    %793 = vector.broadcast %cst_342 : f32 to vector<8x32xf32>
    %794 = arith.addf %793, %792 : vector<8x32xf32>
    %795 = arith.divf %793, %794 : vector<8x32xf32>
    %796 = arith.mulf %787, %629 : vector<8x32xf32>
    %797 = arith.mulf %781, %789 : vector<8x32xf32>
    %798 = arith.addf %796, %797 : vector<8x32xf32>
    %799 = math.tanh %798 : vector<8x32xf32>
    %800 = arith.mulf %795, %799 : vector<8x32xf32>
    %801 = arith.addf %633, %684 : vector<8x16xf32>
    %802 = arith.addf %801, %767 : vector<8x16xf32>
    %c4_i32 = arith.constant 4 : i32
    %c7_i32_343 = arith.constant 7 : i32
    %803 = arith.subi %c7_i32_343, %c4_i32 : i32
    %804 = arith.index_cast %c4_i32 : i32 to index
    %c0_344 = arith.constant 0 : index
    %c0_345 = arith.constant 0 : index
    %805 = vector.load %arg1[%804, %c0_344, %c0_345] : memref<8x8x16xf32, #tpu.memory_space<vmem>>, vector<1x8x16xf32>
    %806 = vector.shape_cast %805 : vector<1x8x16xf32> to vector<8x16xf32>
    %807 = arith.index_cast %c4_i32 : i32 to index
    %c0_346 = arith.constant 0 : index
    %c0_347 = arith.constant 0 : index
    %808 = vector.load %arg45[%807, %c0_346, %c0_347] : memref<8x8x16xf32, #tpu.memory_space<vmem>>, vector<1x8x16xf32>
    %809 = vector.shape_cast %808 : vector<1x8x16xf32> to vector<8x16xf32>
    %810 = arith.index_cast %c4_i32 : i32 to index
    %c0_348 = arith.constant 0 : index
    %c0_349 = arith.constant 0 : index
    %811 = vector.load %arg46[%810, %c0_348, %c0_349] : memref<8x8x16xf32, #tpu.memory_space<vmem>>, vector<1x8x16xf32>
    %812 = vector.shape_cast %811 : vector<1x8x16xf32> to vector<8x16xf32>
    %813 = arith.index_cast %c4_i32 : i32 to index
    %c0_350 = arith.constant 0 : index
    %c0_351 = arith.constant 0 : index
    %814 = vector.load %arg47[%813, %c0_350, %c0_351] : memref<8x8x16xf32, #tpu.memory_space<vmem>>, vector<1x8x16xf32>
    %815 = vector.shape_cast %814 : vector<1x8x16xf32> to vector<8x16xf32>
    %816 = arith.index_cast %c4_i32 : i32 to index
    %c0_352 = arith.constant 0 : index
    %c0_353 = arith.constant 0 : index
    %817 = vector.load %arg39[%816, %c0_352, %c0_353] : memref<8x8x32xf32, #tpu.memory_space<vmem>>, vector<1x8x32xf32>
    %818 = vector.shape_cast %817 : vector<1x8x32xf32> to vector<8x32xf32>
    %819 = arith.mulf %717, %818 : vector<8x32xf32>
    %c0_354 = arith.constant 0 : index
    %c0_355 = arith.constant 0 : index
    %820 = vector.load %arg9[%c0_354, %c0_355] : memref<32x144xf32, #tpu.memory_space<vmem>>, vector<32x144xf32>
    %cst_356 = arith.constant dense<0.000000e+00> : vector<8x144xf32>
    %821 = tpu.matmul %819, %820, %cst_356 {dimension_numbers = #tpu.dot_dimension_numbers<[1], [0], [0], [1], [0, 0, 1, 1], [], []>} : vector<8x32xf32>, vector<32x144xf32>, vector<8x144xf32> -> vector<8x144xf32>
    %822 = vector.extract_strided_slice %821 {offsets = [0, 128], sizes = [8, 16], strides = [1, 1]} : vector<8x144xf32> to vector<8x16xf32>
    %823 = arith.addf %822, %115 : vector<8x16xf32>
    %824 = arith.mulf %812, %823 : vector<8x16xf32>
    %825 = arith.addf %809, %824 : vector<8x16xf32>
    %c0_357 = arith.constant 0 : index
    %c0_358 = arith.constant 0 : index
    %826 = vector.load %arg11[%c0_357, %c0_358] : memref<16x16xf32, #tpu.memory_space<vmem>>, vector<16x16xf32>
    %cst_359 = arith.constant dense<0.000000e+00> : vector<8x16xf32>
    %827 = tpu.matmul %825, %826, %cst_359 {dimension_numbers = #tpu.dot_dimension_numbers<[1], [0], [0], [1], [0, 0, 1, 1], [], []>} : vector<8x16xf32>, vector<16x16xf32>, vector<8x16xf32> -> vector<8x16xf32>
    %828 = arith.addf %827, %118 : vector<8x16xf32>
    %829 = arith.index_cast %c4_i32 : i32 to index
    %c0_360 = arith.constant 0 : index
    %c0_361 = arith.constant 0 : index
    %830 = vector.load %arg41[%829, %c0_360, %c0_361] : memref<8x8x16xf32, #tpu.memory_space<vmem>>, vector<1x8x16xf32>
    %831 = vector.shape_cast %830 : vector<1x8x16xf32> to vector<8x16xf32>
    %832 = arith.subf %828, %823 : vector<8x16xf32>
    %833 = arith.mulf %831, %832 : vector<8x16xf32>
    %834 = arith.addf %823, %833 : vector<8x16xf32>
    %835 = arith.mulf %812, %834 : vector<8x16xf32>
    %836 = arith.addf %809, %835 : vector<8x16xf32>
    %837 = arith.index_cast %c4_i32 : i32 to index
    %c0_362 = arith.constant 0 : index
    %c0_363 = arith.constant 0 : index
    %838 = vector.load %arg33[%837, %c0_362, %c0_363] : memref<8x8x16xf32, #tpu.memory_space<vmem>>, vector<1x8x16xf32>
    %839 = vector.shape_cast %838 : vector<1x8x16xf32> to vector<8x16xf32>
    %840 = vector.shape_cast %834 : vector<8x16xf32> to vector<1x8x16xf32>
    tpu.vector_store %arg33[%837, %c0_362, %c0_363], %840 {strides = array<i32>} : memref<8x8x16xf32, #tpu.memory_space<vmem>>, vector<1x8x16xf32>,
    %841 = arith.index_cast %c4_i32 : i32 to index
    %c0_364 = arith.constant 0 : index
    %c0_365 = arith.constant 0 : index
    %842 = vector.load %arg48[%841, %c0_364, %c0_365] : memref<8x8x16xf32, #tpu.memory_space<vmem>>, vector<1x8x16xf32>
    %843 = vector.shape_cast %842 : vector<1x8x16xf32> to vector<8x16xf32>
    %844 = vector.shape_cast %836 : vector<8x16xf32> to vector<1x8x16xf32>
    tpu.vector_store %arg48[%841, %c0_364, %c0_365], %844 {strides = array<i32>} : memref<8x8x16xf32, #tpu.memory_space<vmem>>, vector<1x8x16xf32>,
    %845 = arith.subf %823, %806 : vector<8x16xf32>
    %846 = math.absf %845 : vector<8x16xf32>
    %847 = arith.subf %828, %806 : vector<8x16xf32>
    %848 = math.absf %847 : vector<8x16xf32>
    %849 = arith.addf %846, %848 : vector<8x16xf32>
    %850 = arith.subf %834, %806 : vector<8x16xf32>
    %851 = math.absf %850 : vector<8x16xf32>
    %852 = arith.addf %849, %851 : vector<8x16xf32>
    %853 = arith.mulf %852, %815 : vector<8x16xf32>
    %c0_366 = arith.constant 0 : index
    %c0_367 = arith.constant 0 : index
    %854 = vector.load %arg16[%c0_366, %c0_367] : memref<16x128xf32, #tpu.memory_space<vmem>>, vector<16x128xf32>
    %cst_368 = arith.constant dense<0.000000e+00> : vector<8x128xf32>
    %855 = tpu.matmul %836, %854, %cst_368 {dimension_numbers = #tpu.dot_dimension_numbers<[1], [0], [0], [1], [0, 0, 1, 1], [], []>} : vector<8x16xf32>, vector<16x128xf32>, vector<8x128xf32> -> vector<8x128xf32>
    %856 = vector.extract_strided_slice %821 {offsets = [0, 0], sizes = [8, 128], strides = [1, 1]} : vector<8x144xf32> to vector<8x128xf32>
    %857 = arith.addf %855, %856 : vector<8x128xf32>
    %858 = arith.index_cast %c4_i32 : i32 to index
    %c0_369 = arith.constant 0 : index
    %c0_370 = arith.constant 0 : index
    %859 = vector.load %arg43[%858, %c0_369, %c0_370] : memref<8x8x128xf32, #tpu.memory_space<vmem>>, vector<1x8x128xf32>
    %860 = vector.shape_cast %859 : vector<1x8x128xf32> to vector<8x128xf32>
    %861 = arith.addf %857, %860 : vector<8x128xf32>
    %862 = vector.extract_strided_slice %861 {offsets = [0, 0], sizes = [8, 32], strides = [1, 1]} : vector<8x128xf32> to vector<8x32xf32>
    %863 = arith.negf %862 : vector<8x32xf32>
    %864 = math.exp %863 : vector<8x32xf32>
    %cst_371 = arith.constant 1.000000e+00 : f32
    %865 = vector.broadcast %cst_371 : f32 to vector<8x32xf32>
    %866 = arith.addf %865, %864 : vector<8x32xf32>
    %867 = arith.divf %865, %866 : vector<8x32xf32>
    %868 = vector.extract_strided_slice %861 {offsets = [0, 32], sizes = [8, 32], strides = [1, 1]} : vector<8x128xf32> to vector<8x32xf32>
    %869 = arith.negf %868 : vector<8x32xf32>
    %870 = math.exp %869 : vector<8x32xf32>
    %cst_372 = arith.constant 1.000000e+00 : f32
    %871 = vector.broadcast %cst_372 : f32 to vector<8x32xf32>
    %872 = arith.addf %871, %870 : vector<8x32xf32>
    %873 = arith.divf %871, %872 : vector<8x32xf32>
    %874 = vector.extract_strided_slice %861 {offsets = [0, 64], sizes = [8, 32], strides = [1, 1]} : vector<8x128xf32> to vector<8x32xf32>
    %875 = math.tanh %874 : vector<8x32xf32>
    %876 = vector.extract_strided_slice %861 {offsets = [0, 96], sizes = [8, 32], strides = [1, 1]} : vector<8x128xf32> to vector<8x32xf32>
    %877 = arith.negf %876 : vector<8x32xf32>
    %878 = math.exp %877 : vector<8x32xf32>
    %cst_373 = arith.constant 1.000000e+00 : f32
    %879 = vector.broadcast %cst_373 : f32 to vector<8x32xf32>
    %880 = arith.addf %879, %878 : vector<8x32xf32>
    %881 = arith.divf %879, %880 : vector<8x32xf32>
    %882 = arith.mulf %873, %715 : vector<8x32xf32>
    %883 = arith.mulf %867, %875 : vector<8x32xf32>
    %884 = arith.addf %882, %883 : vector<8x32xf32>
    %885 = math.tanh %884 : vector<8x32xf32>
    %886 = arith.mulf %881, %885 : vector<8x32xf32>
    %887 = arith.index_cast %803 : i32 to index
    %c0_374 = arith.constant 0 : index
    %c0_375 = arith.constant 0 : index
    %888 = vector.load %arg1[%887, %c0_374, %c0_375] : memref<8x8x16xf32, #tpu.memory_space<vmem>>, vector<1x8x16xf32>
    %889 = vector.shape_cast %888 : vector<1x8x16xf32> to vector<8x16xf32>
    %890 = arith.index_cast %803 : i32 to index
    %c0_376 = arith.constant 0 : index
    %c0_377 = arith.constant 0 : index
    %891 = vector.load %arg45[%890, %c0_376, %c0_377] : memref<8x8x16xf32, #tpu.memory_space<vmem>>, vector<1x8x16xf32>
    %892 = vector.shape_cast %891 : vector<1x8x16xf32> to vector<8x16xf32>
    %893 = arith.index_cast %803 : i32 to index
    %c0_378 = arith.constant 0 : index
    %c0_379 = arith.constant 0 : index
    %894 = vector.load %arg46[%893, %c0_378, %c0_379] : memref<8x8x16xf32, #tpu.memory_space<vmem>>, vector<1x8x16xf32>
    %895 = vector.shape_cast %894 : vector<1x8x16xf32> to vector<8x16xf32>
    %896 = arith.index_cast %803 : i32 to index
    %c0_380 = arith.constant 0 : index
    %c0_381 = arith.constant 0 : index
    %897 = vector.load %arg47[%896, %c0_380, %c0_381] : memref<8x8x16xf32, #tpu.memory_space<vmem>>, vector<1x8x16xf32>
    %898 = vector.shape_cast %897 : vector<1x8x16xf32> to vector<8x16xf32>
    %899 = arith.index_cast %803 : i32 to index
    %c0_382 = arith.constant 0 : index
    %c0_383 = arith.constant 0 : index
    %900 = vector.load %arg40[%899, %c0_382, %c0_383] : memref<8x8x32xf32, #tpu.memory_space<vmem>>, vector<1x8x32xf32>
    %901 = vector.shape_cast %900 : vector<1x8x32xf32> to vector<8x32xf32>
    %902 = arith.mulf %800, %901 : vector<8x32xf32>
    %c0_384 = arith.constant 0 : index
    %c0_385 = arith.constant 0 : index
    %903 = vector.load %arg22[%c0_384, %c0_385] : memref<32x144xf32, #tpu.memory_space<vmem>>, vector<32x144xf32>
    %cst_386 = arith.constant dense<0.000000e+00> : vector<8x144xf32>
    %904 = tpu.matmul %902, %903, %cst_386 {dimension_numbers = #tpu.dot_dimension_numbers<[1], [0], [0], [1], [0, 0, 1, 1], [], []>} : vector<8x32xf32>, vector<32x144xf32>, vector<8x144xf32> -> vector<8x144xf32>
    %905 = vector.extract_strided_slice %904 {offsets = [0, 128], sizes = [8, 16], strides = [1, 1]} : vector<8x144xf32> to vector<8x16xf32>
    %906 = arith.addf %905, %121 : vector<8x16xf32>
    %907 = arith.mulf %895, %906 : vector<8x16xf32>
    %908 = arith.addf %892, %907 : vector<8x16xf32>
    %c0_387 = arith.constant 0 : index
    %c0_388 = arith.constant 0 : index
    %909 = vector.load %arg24[%c0_387, %c0_388] : memref<16x16xf32, #tpu.memory_space<vmem>>, vector<16x16xf32>
    %cst_389 = arith.constant dense<0.000000e+00> : vector<8x16xf32>
    %910 = tpu.matmul %908, %909, %cst_389 {dimension_numbers = #tpu.dot_dimension_numbers<[1], [0], [0], [1], [0, 0, 1, 1], [], []>} : vector<8x16xf32>, vector<16x16xf32>, vector<8x16xf32> -> vector<8x16xf32>
    %911 = arith.addf %910, %124 : vector<8x16xf32>
    %912 = arith.index_cast %803 : i32 to index
    %c0_390 = arith.constant 0 : index
    %c0_391 = arith.constant 0 : index
    %913 = vector.load %arg42[%912, %c0_390, %c0_391] : memref<8x8x16xf32, #tpu.memory_space<vmem>>, vector<1x8x16xf32>
    %914 = vector.shape_cast %913 : vector<1x8x16xf32> to vector<8x16xf32>
    %915 = arith.subf %911, %906 : vector<8x16xf32>
    %916 = arith.mulf %914, %915 : vector<8x16xf32>
    %917 = arith.addf %906, %916 : vector<8x16xf32>
    %918 = arith.mulf %895, %917 : vector<8x16xf32>
    %919 = arith.addf %892, %918 : vector<8x16xf32>
    %920 = arith.index_cast %803 : i32 to index
    %c0_392 = arith.constant 0 : index
    %c0_393 = arith.constant 0 : index
    %921 = vector.load %arg34[%920, %c0_392, %c0_393] : memref<8x8x16xf32, #tpu.memory_space<vmem>>, vector<1x8x16xf32>
    %922 = vector.shape_cast %921 : vector<1x8x16xf32> to vector<8x16xf32>
    %923 = vector.shape_cast %917 : vector<8x16xf32> to vector<1x8x16xf32>
    tpu.vector_store %arg34[%920, %c0_392, %c0_393], %923 {strides = array<i32>} : memref<8x8x16xf32, #tpu.memory_space<vmem>>, vector<1x8x16xf32>,
    %924 = arith.index_cast %803 : i32 to index
    %c0_394 = arith.constant 0 : index
    %c0_395 = arith.constant 0 : index
    %925 = vector.load %arg49[%924, %c0_394, %c0_395] : memref<8x8x16xf32, #tpu.memory_space<vmem>>, vector<1x8x16xf32>
    %926 = vector.shape_cast %925 : vector<1x8x16xf32> to vector<8x16xf32>
    %927 = vector.shape_cast %919 : vector<8x16xf32> to vector<1x8x16xf32>
    tpu.vector_store %arg49[%924, %c0_394, %c0_395], %927 {strides = array<i32>} : memref<8x8x16xf32, #tpu.memory_space<vmem>>, vector<1x8x16xf32>,
    %928 = arith.subf %906, %889 : vector<8x16xf32>
    %929 = math.absf %928 : vector<8x16xf32>
    %930 = arith.subf %911, %889 : vector<8x16xf32>
    %931 = math.absf %930 : vector<8x16xf32>
    %932 = arith.addf %929, %931 : vector<8x16xf32>
    %933 = arith.subf %917, %889 : vector<8x16xf32>
    %934 = math.absf %933 : vector<8x16xf32>
    %935 = arith.addf %932, %934 : vector<8x16xf32>
    %936 = arith.mulf %935, %898 : vector<8x16xf32>
    %c0_396 = arith.constant 0 : index
    %c0_397 = arith.constant 0 : index
    %937 = vector.load %arg29[%c0_396, %c0_397] : memref<16x128xf32, #tpu.memory_space<vmem>>, vector<16x128xf32>
    %cst_398 = arith.constant dense<0.000000e+00> : vector<8x128xf32>
    %938 = tpu.matmul %919, %937, %cst_398 {dimension_numbers = #tpu.dot_dimension_numbers<[1], [0], [0], [1], [0, 0, 1, 1], [], []>} : vector<8x16xf32>, vector<16x128xf32>, vector<8x128xf32> -> vector<8x128xf32>
    %939 = vector.extract_strided_slice %904 {offsets = [0, 0], sizes = [8, 128], strides = [1, 1]} : vector<8x144xf32> to vector<8x128xf32>
    %940 = arith.addf %938, %939 : vector<8x128xf32>
    %941 = arith.index_cast %803 : i32 to index
    %c0_399 = arith.constant 0 : index
    %c0_400 = arith.constant 0 : index
    %942 = vector.load %arg44[%941, %c0_399, %c0_400] : memref<8x8x128xf32, #tpu.memory_space<vmem>>, vector<1x8x128xf32>
    %943 = vector.shape_cast %942 : vector<1x8x128xf32> to vector<8x128xf32>
    %944 = arith.addf %940, %943 : vector<8x128xf32>
    %945 = vector.extract_strided_slice %944 {offsets = [0, 0], sizes = [8, 32], strides = [1, 1]} : vector<8x128xf32> to vector<8x32xf32>
    %946 = arith.negf %945 : vector<8x32xf32>
    %947 = math.exp %946 : vector<8x32xf32>
    %cst_401 = arith.constant 1.000000e+00 : f32
    %948 = vector.broadcast %cst_401 : f32 to vector<8x32xf32>
    %949 = arith.addf %948, %947 : vector<8x32xf32>
    %950 = arith.divf %948, %949 : vector<8x32xf32>
    %951 = vector.extract_strided_slice %944 {offsets = [0, 32], sizes = [8, 32], strides = [1, 1]} : vector<8x128xf32> to vector<8x32xf32>
    %952 = arith.negf %951 : vector<8x32xf32>
    %953 = math.exp %952 : vector<8x32xf32>
    %cst_402 = arith.constant 1.000000e+00 : f32
    %954 = vector.broadcast %cst_402 : f32 to vector<8x32xf32>
    %955 = arith.addf %954, %953 : vector<8x32xf32>
    %956 = arith.divf %954, %955 : vector<8x32xf32>
    %957 = vector.extract_strided_slice %944 {offsets = [0, 64], sizes = [8, 32], strides = [1, 1]} : vector<8x128xf32> to vector<8x32xf32>
    %958 = math.tanh %957 : vector<8x32xf32>
    %959 = vector.extract_strided_slice %944 {offsets = [0, 96], sizes = [8, 32], strides = [1, 1]} : vector<8x128xf32> to vector<8x32xf32>
    %960 = arith.negf %959 : vector<8x32xf32>
    %961 = math.exp %960 : vector<8x32xf32>
    %cst_403 = arith.constant 1.000000e+00 : f32
    %962 = vector.broadcast %cst_403 : f32 to vector<8x32xf32>
    %963 = arith.addf %962, %961 : vector<8x32xf32>
    %964 = arith.divf %962, %963 : vector<8x32xf32>
    %965 = arith.mulf %956, %798 : vector<8x32xf32>
    %966 = arith.mulf %950, %958 : vector<8x32xf32>
    %967 = arith.addf %965, %966 : vector<8x32xf32>
    %968 = math.tanh %967 : vector<8x32xf32>
    %969 = arith.mulf %964, %968 : vector<8x32xf32>
    %970 = arith.addf %802, %853 : vector<8x16xf32>
    %971 = arith.addf %970, %936 : vector<8x16xf32>
    %c5_i32 = arith.constant 5 : i32
    %c7_i32_404 = arith.constant 7 : i32
    %972 = arith.subi %c7_i32_404, %c5_i32 : i32
    %973 = arith.index_cast %c5_i32 : i32 to index
    %c0_405 = arith.constant 0 : index
    %c0_406 = arith.constant 0 : index
    %974 = vector.load %arg1[%973, %c0_405, %c0_406] : memref<8x8x16xf32, #tpu.memory_space<vmem>>, vector<1x8x16xf32>
    %975 = vector.shape_cast %974 : vector<1x8x16xf32> to vector<8x16xf32>
    %976 = arith.index_cast %c5_i32 : i32 to index
    %c0_407 = arith.constant 0 : index
    %c0_408 = arith.constant 0 : index
    %977 = vector.load %arg45[%976, %c0_407, %c0_408] : memref<8x8x16xf32, #tpu.memory_space<vmem>>, vector<1x8x16xf32>
    %978 = vector.shape_cast %977 : vector<1x8x16xf32> to vector<8x16xf32>
    %979 = arith.index_cast %c5_i32 : i32 to index
    %c0_409 = arith.constant 0 : index
    %c0_410 = arith.constant 0 : index
    %980 = vector.load %arg46[%979, %c0_409, %c0_410] : memref<8x8x16xf32, #tpu.memory_space<vmem>>, vector<1x8x16xf32>
    %981 = vector.shape_cast %980 : vector<1x8x16xf32> to vector<8x16xf32>
    %982 = arith.index_cast %c5_i32 : i32 to index
    %c0_411 = arith.constant 0 : index
    %c0_412 = arith.constant 0 : index
    %983 = vector.load %arg47[%982, %c0_411, %c0_412] : memref<8x8x16xf32, #tpu.memory_space<vmem>>, vector<1x8x16xf32>
    %984 = vector.shape_cast %983 : vector<1x8x16xf32> to vector<8x16xf32>
    %985 = arith.index_cast %c5_i32 : i32 to index
    %c0_413 = arith.constant 0 : index
    %c0_414 = arith.constant 0 : index
    %986 = vector.load %arg39[%985, %c0_413, %c0_414] : memref<8x8x32xf32, #tpu.memory_space<vmem>>, vector<1x8x32xf32>
    %987 = vector.shape_cast %986 : vector<1x8x32xf32> to vector<8x32xf32>
    %988 = arith.mulf %886, %987 : vector<8x32xf32>
    %c0_415 = arith.constant 0 : index
    %c0_416 = arith.constant 0 : index
    %989 = vector.load %arg9[%c0_415, %c0_416] : memref<32x144xf32, #tpu.memory_space<vmem>>, vector<32x144xf32>
    %cst_417 = arith.constant dense<0.000000e+00> : vector<8x144xf32>
    %990 = tpu.matmul %988, %989, %cst_417 {dimension_numbers = #tpu.dot_dimension_numbers<[1], [0], [0], [1], [0, 0, 1, 1], [], []>} : vector<8x32xf32>, vector<32x144xf32>, vector<8x144xf32> -> vector<8x144xf32>
    %991 = vector.extract_strided_slice %990 {offsets = [0, 128], sizes = [8, 16], strides = [1, 1]} : vector<8x144xf32> to vector<8x16xf32>
    %992 = arith.addf %991, %115 : vector<8x16xf32>
    %993 = arith.mulf %981, %992 : vector<8x16xf32>
    %994 = arith.addf %978, %993 : vector<8x16xf32>
    %c0_418 = arith.constant 0 : index
    %c0_419 = arith.constant 0 : index
    %995 = vector.load %arg11[%c0_418, %c0_419] : memref<16x16xf32, #tpu.memory_space<vmem>>, vector<16x16xf32>
    %cst_420 = arith.constant dense<0.000000e+00> : vector<8x16xf32>
    %996 = tpu.matmul %994, %995, %cst_420 {dimension_numbers = #tpu.dot_dimension_numbers<[1], [0], [0], [1], [0, 0, 1, 1], [], []>} : vector<8x16xf32>, vector<16x16xf32>, vector<8x16xf32> -> vector<8x16xf32>
    %997 = arith.addf %996, %118 : vector<8x16xf32>
    %998 = arith.index_cast %c5_i32 : i32 to index
    %c0_421 = arith.constant 0 : index
    %c0_422 = arith.constant 0 : index
    %999 = vector.load %arg41[%998, %c0_421, %c0_422] : memref<8x8x16xf32, #tpu.memory_space<vmem>>, vector<1x8x16xf32>
    %1000 = vector.shape_cast %999 : vector<1x8x16xf32> to vector<8x16xf32>
    %1001 = arith.subf %997, %992 : vector<8x16xf32>
    %1002 = arith.mulf %1000, %1001 : vector<8x16xf32>
    %1003 = arith.addf %992, %1002 : vector<8x16xf32>
    %1004 = arith.mulf %981, %1003 : vector<8x16xf32>
    %1005 = arith.addf %978, %1004 : vector<8x16xf32>
    %1006 = arith.index_cast %c5_i32 : i32 to index
    %c0_423 = arith.constant 0 : index
    %c0_424 = arith.constant 0 : index
    %1007 = vector.load %arg33[%1006, %c0_423, %c0_424] : memref<8x8x16xf32, #tpu.memory_space<vmem>>, vector<1x8x16xf32>
    %1008 = vector.shape_cast %1007 : vector<1x8x16xf32> to vector<8x16xf32>
    %1009 = vector.shape_cast %1003 : vector<8x16xf32> to vector<1x8x16xf32>
    tpu.vector_store %arg33[%1006, %c0_423, %c0_424], %1009 {strides = array<i32>} : memref<8x8x16xf32, #tpu.memory_space<vmem>>, vector<1x8x16xf32>,
    %1010 = arith.index_cast %c5_i32 : i32 to index
    %c0_425 = arith.constant 0 : index
    %c0_426 = arith.constant 0 : index
    %1011 = vector.load %arg48[%1010, %c0_425, %c0_426] : memref<8x8x16xf32, #tpu.memory_space<vmem>>, vector<1x8x16xf32>
    %1012 = vector.shape_cast %1011 : vector<1x8x16xf32> to vector<8x16xf32>
    %1013 = vector.shape_cast %1005 : vector<8x16xf32> to vector<1x8x16xf32>
    tpu.vector_store %arg48[%1010, %c0_425, %c0_426], %1013 {strides = array<i32>} : memref<8x8x16xf32, #tpu.memory_space<vmem>>, vector<1x8x16xf32>,
    %1014 = arith.subf %992, %975 : vector<8x16xf32>
    %1015 = math.absf %1014 : vector<8x16xf32>
    %1016 = arith.subf %997, %975 : vector<8x16xf32>
    %1017 = math.absf %1016 : vector<8x16xf32>
    %1018 = arith.addf %1015, %1017 : vector<8x16xf32>
    %1019 = arith.subf %1003, %975 : vector<8x16xf32>
    %1020 = math.absf %1019 : vector<8x16xf32>
    %1021 = arith.addf %1018, %1020 : vector<8x16xf32>
    %1022 = arith.mulf %1021, %984 : vector<8x16xf32>
    %c0_427 = arith.constant 0 : index
    %c0_428 = arith.constant 0 : index
    %1023 = vector.load %arg16[%c0_427, %c0_428] : memref<16x128xf32, #tpu.memory_space<vmem>>, vector<16x128xf32>
    %cst_429 = arith.constant dense<0.000000e+00> : vector<8x128xf32>
    %1024 = tpu.matmul %1005, %1023, %cst_429 {dimension_numbers = #tpu.dot_dimension_numbers<[1], [0], [0], [1], [0, 0, 1, 1], [], []>} : vector<8x16xf32>, vector<16x128xf32>, vector<8x128xf32> -> vector<8x128xf32>
    %1025 = vector.extract_strided_slice %990 {offsets = [0, 0], sizes = [8, 128], strides = [1, 1]} : vector<8x144xf32> to vector<8x128xf32>
    %1026 = arith.addf %1024, %1025 : vector<8x128xf32>
    %1027 = arith.index_cast %c5_i32 : i32 to index
    %c0_430 = arith.constant 0 : index
    %c0_431 = arith.constant 0 : index
    %1028 = vector.load %arg43[%1027, %c0_430, %c0_431] : memref<8x8x128xf32, #tpu.memory_space<vmem>>, vector<1x8x128xf32>
    %1029 = vector.shape_cast %1028 : vector<1x8x128xf32> to vector<8x128xf32>
    %1030 = arith.addf %1026, %1029 : vector<8x128xf32>
    %1031 = vector.extract_strided_slice %1030 {offsets = [0, 0], sizes = [8, 32], strides = [1, 1]} : vector<8x128xf32> to vector<8x32xf32>
    %1032 = arith.negf %1031 : vector<8x32xf32>
    %1033 = math.exp %1032 : vector<8x32xf32>
    %cst_432 = arith.constant 1.000000e+00 : f32
    %1034 = vector.broadcast %cst_432 : f32 to vector<8x32xf32>
    %1035 = arith.addf %1034, %1033 : vector<8x32xf32>
    %1036 = arith.divf %1034, %1035 : vector<8x32xf32>
    %1037 = vector.extract_strided_slice %1030 {offsets = [0, 32], sizes = [8, 32], strides = [1, 1]} : vector<8x128xf32> to vector<8x32xf32>
    %1038 = arith.negf %1037 : vector<8x32xf32>
    %1039 = math.exp %1038 : vector<8x32xf32>
    %cst_433 = arith.constant 1.000000e+00 : f32
    %1040 = vector.broadcast %cst_433 : f32 to vector<8x32xf32>
    %1041 = arith.addf %1040, %1039 : vector<8x32xf32>
    %1042 = arith.divf %1040, %1041 : vector<8x32xf32>
    %1043 = vector.extract_strided_slice %1030 {offsets = [0, 64], sizes = [8, 32], strides = [1, 1]} : vector<8x128xf32> to vector<8x32xf32>
    %1044 = math.tanh %1043 : vector<8x32xf32>
    %1045 = vector.extract_strided_slice %1030 {offsets = [0, 96], sizes = [8, 32], strides = [1, 1]} : vector<8x128xf32> to vector<8x32xf32>
    %1046 = arith.negf %1045 : vector<8x32xf32>
    %1047 = math.exp %1046 : vector<8x32xf32>
    %cst_434 = arith.constant 1.000000e+00 : f32
    %1048 = vector.broadcast %cst_434 : f32 to vector<8x32xf32>
    %1049 = arith.addf %1048, %1047 : vector<8x32xf32>
    %1050 = arith.divf %1048, %1049 : vector<8x32xf32>
    %1051 = arith.mulf %1042, %884 : vector<8x32xf32>
    %1052 = arith.mulf %1036, %1044 : vector<8x32xf32>
    %1053 = arith.addf %1051, %1052 : vector<8x32xf32>
    %1054 = math.tanh %1053 : vector<8x32xf32>
    %1055 = arith.mulf %1050, %1054 : vector<8x32xf32>
    %1056 = arith.index_cast %972 : i32 to index
    %c0_435 = arith.constant 0 : index
    %c0_436 = arith.constant 0 : index
    %1057 = vector.load %arg1[%1056, %c0_435, %c0_436] : memref<8x8x16xf32, #tpu.memory_space<vmem>>, vector<1x8x16xf32>
    %1058 = vector.shape_cast %1057 : vector<1x8x16xf32> to vector<8x16xf32>
    %1059 = arith.index_cast %972 : i32 to index
    %c0_437 = arith.constant 0 : index
    %c0_438 = arith.constant 0 : index
    %1060 = vector.load %arg45[%1059, %c0_437, %c0_438] : memref<8x8x16xf32, #tpu.memory_space<vmem>>, vector<1x8x16xf32>
    %1061 = vector.shape_cast %1060 : vector<1x8x16xf32> to vector<8x16xf32>
    %1062 = arith.index_cast %972 : i32 to index
    %c0_439 = arith.constant 0 : index
    %c0_440 = arith.constant 0 : index
    %1063 = vector.load %arg46[%1062, %c0_439, %c0_440] : memref<8x8x16xf32, #tpu.memory_space<vmem>>, vector<1x8x16xf32>
    %1064 = vector.shape_cast %1063 : vector<1x8x16xf32> to vector<8x16xf32>
    %1065 = arith.index_cast %972 : i32 to index
    %c0_441 = arith.constant 0 : index
    %c0_442 = arith.constant 0 : index
    %1066 = vector.load %arg47[%1065, %c0_441, %c0_442] : memref<8x8x16xf32, #tpu.memory_space<vmem>>, vector<1x8x16xf32>
    %1067 = vector.shape_cast %1066 : vector<1x8x16xf32> to vector<8x16xf32>
    %1068 = arith.index_cast %972 : i32 to index
    %c0_443 = arith.constant 0 : index
    %c0_444 = arith.constant 0 : index
    %1069 = vector.load %arg40[%1068, %c0_443, %c0_444] : memref<8x8x32xf32, #tpu.memory_space<vmem>>, vector<1x8x32xf32>
    %1070 = vector.shape_cast %1069 : vector<1x8x32xf32> to vector<8x32xf32>
    %1071 = arith.mulf %969, %1070 : vector<8x32xf32>
    %c0_445 = arith.constant 0 : index
    %c0_446 = arith.constant 0 : index
    %1072 = vector.load %arg22[%c0_445, %c0_446] : memref<32x144xf32, #tpu.memory_space<vmem>>, vector<32x144xf32>
    %cst_447 = arith.constant dense<0.000000e+00> : vector<8x144xf32>
    %1073 = tpu.matmul %1071, %1072, %cst_447 {dimension_numbers = #tpu.dot_dimension_numbers<[1], [0], [0], [1], [0, 0, 1, 1], [], []>} : vector<8x32xf32>, vector<32x144xf32>, vector<8x144xf32> -> vector<8x144xf32>
    %1074 = vector.extract_strided_slice %1073 {offsets = [0, 128], sizes = [8, 16], strides = [1, 1]} : vector<8x144xf32> to vector<8x16xf32>
    %1075 = arith.addf %1074, %121 : vector<8x16xf32>
    %1076 = arith.mulf %1064, %1075 : vector<8x16xf32>
    %1077 = arith.addf %1061, %1076 : vector<8x16xf32>
    %c0_448 = arith.constant 0 : index
    %c0_449 = arith.constant 0 : index
    %1078 = vector.load %arg24[%c0_448, %c0_449] : memref<16x16xf32, #tpu.memory_space<vmem>>, vector<16x16xf32>
    %cst_450 = arith.constant dense<0.000000e+00> : vector<8x16xf32>
    %1079 = tpu.matmul %1077, %1078, %cst_450 {dimension_numbers = #tpu.dot_dimension_numbers<[1], [0], [0], [1], [0, 0, 1, 1], [], []>} : vector<8x16xf32>, vector<16x16xf32>, vector<8x16xf32> -> vector<8x16xf32>
    %1080 = arith.addf %1079, %124 : vector<8x16xf32>
    %1081 = arith.index_cast %972 : i32 to index
    %c0_451 = arith.constant 0 : index
    %c0_452 = arith.constant 0 : index
    %1082 = vector.load %arg42[%1081, %c0_451, %c0_452] : memref<8x8x16xf32, #tpu.memory_space<vmem>>, vector<1x8x16xf32>
    %1083 = vector.shape_cast %1082 : vector<1x8x16xf32> to vector<8x16xf32>
    %1084 = arith.subf %1080, %1075 : vector<8x16xf32>
    %1085 = arith.mulf %1083, %1084 : vector<8x16xf32>
    %1086 = arith.addf %1075, %1085 : vector<8x16xf32>
    %1087 = arith.mulf %1064, %1086 : vector<8x16xf32>
    %1088 = arith.addf %1061, %1087 : vector<8x16xf32>
    %1089 = arith.index_cast %972 : i32 to index
    %c0_453 = arith.constant 0 : index
    %c0_454 = arith.constant 0 : index
    %1090 = vector.load %arg34[%1089, %c0_453, %c0_454] : memref<8x8x16xf32, #tpu.memory_space<vmem>>, vector<1x8x16xf32>
    %1091 = vector.shape_cast %1090 : vector<1x8x16xf32> to vector<8x16xf32>
    %1092 = vector.shape_cast %1086 : vector<8x16xf32> to vector<1x8x16xf32>
    tpu.vector_store %arg34[%1089, %c0_453, %c0_454], %1092 {strides = array<i32>} : memref<8x8x16xf32, #tpu.memory_space<vmem>>, vector<1x8x16xf32>,
    %1093 = arith.index_cast %972 : i32 to index
    %c0_455 = arith.constant 0 : index
    %c0_456 = arith.constant 0 : index
    %1094 = vector.load %arg49[%1093, %c0_455, %c0_456] : memref<8x8x16xf32, #tpu.memory_space<vmem>>, vector<1x8x16xf32>
    %1095 = vector.shape_cast %1094 : vector<1x8x16xf32> to vector<8x16xf32>
    %1096 = vector.shape_cast %1088 : vector<8x16xf32> to vector<1x8x16xf32>
    tpu.vector_store %arg49[%1093, %c0_455, %c0_456], %1096 {strides = array<i32>} : memref<8x8x16xf32, #tpu.memory_space<vmem>>, vector<1x8x16xf32>,
    %1097 = arith.subf %1075, %1058 : vector<8x16xf32>
    %1098 = math.absf %1097 : vector<8x16xf32>
    %1099 = arith.subf %1080, %1058 : vector<8x16xf32>
    %1100 = math.absf %1099 : vector<8x16xf32>
    %1101 = arith.addf %1098, %1100 : vector<8x16xf32>
    %1102 = arith.subf %1086, %1058 : vector<8x16xf32>
    %1103 = math.absf %1102 : vector<8x16xf32>
    %1104 = arith.addf %1101, %1103 : vector<8x16xf32>
    %1105 = arith.mulf %1104, %1067 : vector<8x16xf32>
    %c0_457 = arith.constant 0 : index
    %c0_458 = arith.constant 0 : index
    %1106 = vector.load %arg29[%c0_457, %c0_458] : memref<16x128xf32, #tpu.memory_space<vmem>>, vector<16x128xf32>
    %cst_459 = arith.constant dense<0.000000e+00> : vector<8x128xf32>
    %1107 = tpu.matmul %1088, %1106, %cst_459 {dimension_numbers = #tpu.dot_dimension_numbers<[1], [0], [0], [1], [0, 0, 1, 1], [], []>} : vector<8x16xf32>, vector<16x128xf32>, vector<8x128xf32> -> vector<8x128xf32>
    %1108 = vector.extract_strided_slice %1073 {offsets = [0, 0], sizes = [8, 128], strides = [1, 1]} : vector<8x144xf32> to vector<8x128xf32>
    %1109 = arith.addf %1107, %1108 : vector<8x128xf32>
    %1110 = arith.index_cast %972 : i32 to index
    %c0_460 = arith.constant 0 : index
    %c0_461 = arith.constant 0 : index
    %1111 = vector.load %arg44[%1110, %c0_460, %c0_461] : memref<8x8x128xf32, #tpu.memory_space<vmem>>, vector<1x8x128xf32>
    %1112 = vector.shape_cast %1111 : vector<1x8x128xf32> to vector<8x128xf32>
    %1113 = arith.addf %1109, %1112 : vector<8x128xf32>
    %1114 = vector.extract_strided_slice %1113 {offsets = [0, 0], sizes = [8, 32], strides = [1, 1]} : vector<8x128xf32> to vector<8x32xf32>
    %1115 = arith.negf %1114 : vector<8x32xf32>
    %1116 = math.exp %1115 : vector<8x32xf32>
    %cst_462 = arith.constant 1.000000e+00 : f32
    %1117 = vector.broadcast %cst_462 : f32 to vector<8x32xf32>
    %1118 = arith.addf %1117, %1116 : vector<8x32xf32>
    %1119 = arith.divf %1117, %1118 : vector<8x32xf32>
    %1120 = vector.extract_strided_slice %1113 {offsets = [0, 32], sizes = [8, 32], strides = [1, 1]} : vector<8x128xf32> to vector<8x32xf32>
    %1121 = arith.negf %1120 : vector<8x32xf32>
    %1122 = math.exp %1121 : vector<8x32xf32>
    %cst_463 = arith.constant 1.000000e+00 : f32
    %1123 = vector.broadcast %cst_463 : f32 to vector<8x32xf32>
    %1124 = arith.addf %1123, %1122 : vector<8x32xf32>
    %1125 = arith.divf %1123, %1124 : vector<8x32xf32>
    %1126 = vector.extract_strided_slice %1113 {offsets = [0, 64], sizes = [8, 32], strides = [1, 1]} : vector<8x128xf32> to vector<8x32xf32>
    %1127 = math.tanh %1126 : vector<8x32xf32>
    %1128 = vector.extract_strided_slice %1113 {offsets = [0, 96], sizes = [8, 32], strides = [1, 1]} : vector<8x128xf32> to vector<8x32xf32>
    %1129 = arith.negf %1128 : vector<8x32xf32>
    %1130 = math.exp %1129 : vector<8x32xf32>
    %cst_464 = arith.constant 1.000000e+00 : f32
    %1131 = vector.broadcast %cst_464 : f32 to vector<8x32xf32>
    %1132 = arith.addf %1131, %1130 : vector<8x32xf32>
    %1133 = arith.divf %1131, %1132 : vector<8x32xf32>
    %1134 = arith.mulf %1125, %967 : vector<8x32xf32>
    %1135 = arith.mulf %1119, %1127 : vector<8x32xf32>
    %1136 = arith.addf %1134, %1135 : vector<8x32xf32>
    %1137 = math.tanh %1136 : vector<8x32xf32>
    %1138 = arith.mulf %1133, %1137 : vector<8x32xf32>
    %1139 = arith.addf %971, %1022 : vector<8x16xf32>
    %1140 = arith.addf %1139, %1105 : vector<8x16xf32>
    %c6_i32 = arith.constant 6 : i32
    %c7_i32_465 = arith.constant 7 : i32
    %1141 = arith.subi %c7_i32_465, %c6_i32 : i32
    %1142 = arith.index_cast %c6_i32 : i32 to index
    %c0_466 = arith.constant 0 : index
    %c0_467 = arith.constant 0 : index
    %1143 = vector.load %arg1[%1142, %c0_466, %c0_467] : memref<8x8x16xf32, #tpu.memory_space<vmem>>, vector<1x8x16xf32>
    %1144 = vector.shape_cast %1143 : vector<1x8x16xf32> to vector<8x16xf32>
    %1145 = arith.index_cast %c6_i32 : i32 to index
    %c0_468 = arith.constant 0 : index
    %c0_469 = arith.constant 0 : index
    %1146 = vector.load %arg45[%1145, %c0_468, %c0_469] : memref<8x8x16xf32, #tpu.memory_space<vmem>>, vector<1x8x16xf32>
    %1147 = vector.shape_cast %1146 : vector<1x8x16xf32> to vector<8x16xf32>
    %1148 = arith.index_cast %c6_i32 : i32 to index
    %c0_470 = arith.constant 0 : index
    %c0_471 = arith.constant 0 : index
    %1149 = vector.load %arg46[%1148, %c0_470, %c0_471] : memref<8x8x16xf32, #tpu.memory_space<vmem>>, vector<1x8x16xf32>
    %1150 = vector.shape_cast %1149 : vector<1x8x16xf32> to vector<8x16xf32>
    %1151 = arith.index_cast %c6_i32 : i32 to index
    %c0_472 = arith.constant 0 : index
    %c0_473 = arith.constant 0 : index
    %1152 = vector.load %arg47[%1151, %c0_472, %c0_473] : memref<8x8x16xf32, #tpu.memory_space<vmem>>, vector<1x8x16xf32>
    %1153 = vector.shape_cast %1152 : vector<1x8x16xf32> to vector<8x16xf32>
    %1154 = arith.index_cast %c6_i32 : i32 to index
    %c0_474 = arith.constant 0 : index
    %c0_475 = arith.constant 0 : index
    %1155 = vector.load %arg39[%1154, %c0_474, %c0_475] : memref<8x8x32xf32, #tpu.memory_space<vmem>>, vector<1x8x32xf32>
    %1156 = vector.shape_cast %1155 : vector<1x8x32xf32> to vector<8x32xf32>
    %1157 = arith.mulf %1055, %1156 : vector<8x32xf32>
    %c0_476 = arith.constant 0 : index
    %c0_477 = arith.constant 0 : index
    %1158 = vector.load %arg9[%c0_476, %c0_477] : memref<32x144xf32, #tpu.memory_space<vmem>>, vector<32x144xf32>
    %cst_478 = arith.constant dense<0.000000e+00> : vector<8x144xf32>
    %1159 = tpu.matmul %1157, %1158, %cst_478 {dimension_numbers = #tpu.dot_dimension_numbers<[1], [0], [0], [1], [0, 0, 1, 1], [], []>} : vector<8x32xf32>, vector<32x144xf32>, vector<8x144xf32> -> vector<8x144xf32>
    %1160 = vector.extract_strided_slice %1159 {offsets = [0, 128], sizes = [8, 16], strides = [1, 1]} : vector<8x144xf32> to vector<8x16xf32>
    %1161 = arith.addf %1160, %115 : vector<8x16xf32>
    %1162 = arith.mulf %1150, %1161 : vector<8x16xf32>
    %1163 = arith.addf %1147, %1162 : vector<8x16xf32>
    %c0_479 = arith.constant 0 : index
    %c0_480 = arith.constant 0 : index
    %1164 = vector.load %arg11[%c0_479, %c0_480] : memref<16x16xf32, #tpu.memory_space<vmem>>, vector<16x16xf32>
    %cst_481 = arith.constant dense<0.000000e+00> : vector<8x16xf32>
    %1165 = tpu.matmul %1163, %1164, %cst_481 {dimension_numbers = #tpu.dot_dimension_numbers<[1], [0], [0], [1], [0, 0, 1, 1], [], []>} : vector<8x16xf32>, vector<16x16xf32>, vector<8x16xf32> -> vector<8x16xf32>
    %1166 = arith.addf %1165, %118 : vector<8x16xf32>
    %1167 = arith.index_cast %c6_i32 : i32 to index
    %c0_482 = arith.constant 0 : index
    %c0_483 = arith.constant 0 : index
    %1168 = vector.load %arg41[%1167, %c0_482, %c0_483] : memref<8x8x16xf32, #tpu.memory_space<vmem>>, vector<1x8x16xf32>
    %1169 = vector.shape_cast %1168 : vector<1x8x16xf32> to vector<8x16xf32>
    %1170 = arith.subf %1166, %1161 : vector<8x16xf32>
    %1171 = arith.mulf %1169, %1170 : vector<8x16xf32>
    %1172 = arith.addf %1161, %1171 : vector<8x16xf32>
    %1173 = arith.mulf %1150, %1172 : vector<8x16xf32>
    %1174 = arith.addf %1147, %1173 : vector<8x16xf32>
    %1175 = arith.index_cast %c6_i32 : i32 to index
    %c0_484 = arith.constant 0 : index
    %c0_485 = arith.constant 0 : index
    %1176 = vector.load %arg33[%1175, %c0_484, %c0_485] : memref<8x8x16xf32, #tpu.memory_space<vmem>>, vector<1x8x16xf32>
    %1177 = vector.shape_cast %1176 : vector<1x8x16xf32> to vector<8x16xf32>
    %1178 = vector.shape_cast %1172 : vector<8x16xf32> to vector<1x8x16xf32>
    tpu.vector_store %arg33[%1175, %c0_484, %c0_485], %1178 {strides = array<i32>} : memref<8x8x16xf32, #tpu.memory_space<vmem>>, vector<1x8x16xf32>,
    %1179 = arith.index_cast %c6_i32 : i32 to index
    %c0_486 = arith.constant 0 : index
    %c0_487 = arith.constant 0 : index
    %1180 = vector.load %arg48[%1179, %c0_486, %c0_487] : memref<8x8x16xf32, #tpu.memory_space<vmem>>, vector<1x8x16xf32>
    %1181 = vector.shape_cast %1180 : vector<1x8x16xf32> to vector<8x16xf32>
    %1182 = vector.shape_cast %1174 : vector<8x16xf32> to vector<1x8x16xf32>
    tpu.vector_store %arg48[%1179, %c0_486, %c0_487], %1182 {strides = array<i32>} : memref<8x8x16xf32, #tpu.memory_space<vmem>>, vector<1x8x16xf32>,
    %1183 = arith.subf %1161, %1144 : vector<8x16xf32>
    %1184 = math.absf %1183 : vector<8x16xf32>
    %1185 = arith.subf %1166, %1144 : vector<8x16xf32>
    %1186 = math.absf %1185 : vector<8x16xf32>
    %1187 = arith.addf %1184, %1186 : vector<8x16xf32>
    %1188 = arith.subf %1172, %1144 : vector<8x16xf32>
    %1189 = math.absf %1188 : vector<8x16xf32>
    %1190 = arith.addf %1187, %1189 : vector<8x16xf32>
    %1191 = arith.mulf %1190, %1153 : vector<8x16xf32>
    %c0_488 = arith.constant 0 : index
    %c0_489 = arith.constant 0 : index
    %1192 = vector.load %arg16[%c0_488, %c0_489] : memref<16x128xf32, #tpu.memory_space<vmem>>, vector<16x128xf32>
    %cst_490 = arith.constant dense<0.000000e+00> : vector<8x128xf32>
    %1193 = tpu.matmul %1174, %1192, %cst_490 {dimension_numbers = #tpu.dot_dimension_numbers<[1], [0], [0], [1], [0, 0, 1, 1], [], []>} : vector<8x16xf32>, vector<16x128xf32>, vector<8x128xf32> -> vector<8x128xf32>
    %1194 = vector.extract_strided_slice %1159 {offsets = [0, 0], sizes = [8, 128], strides = [1, 1]} : vector<8x144xf32> to vector<8x128xf32>
    %1195 = arith.addf %1193, %1194 : vector<8x128xf32>
    %1196 = arith.index_cast %c6_i32 : i32 to index
    %c0_491 = arith.constant 0 : index
    %c0_492 = arith.constant 0 : index
    %1197 = vector.load %arg43[%1196, %c0_491, %c0_492] : memref<8x8x128xf32, #tpu.memory_space<vmem>>, vector<1x8x128xf32>
    %1198 = vector.shape_cast %1197 : vector<1x8x128xf32> to vector<8x128xf32>
    %1199 = arith.addf %1195, %1198 : vector<8x128xf32>
    %1200 = vector.extract_strided_slice %1199 {offsets = [0, 0], sizes = [8, 32], strides = [1, 1]} : vector<8x128xf32> to vector<8x32xf32>
    %1201 = arith.negf %1200 : vector<8x32xf32>
    %1202 = math.exp %1201 : vector<8x32xf32>
    %cst_493 = arith.constant 1.000000e+00 : f32
    %1203 = vector.broadcast %cst_493 : f32 to vector<8x32xf32>
    %1204 = arith.addf %1203, %1202 : vector<8x32xf32>
    %1205 = arith.divf %1203, %1204 : vector<8x32xf32>
    %1206 = vector.extract_strided_slice %1199 {offsets = [0, 32], sizes = [8, 32], strides = [1, 1]} : vector<8x128xf32> to vector<8x32xf32>
    %1207 = arith.negf %1206 : vector<8x32xf32>
    %1208 = math.exp %1207 : vector<8x32xf32>
    %cst_494 = arith.constant 1.000000e+00 : f32
    %1209 = vector.broadcast %cst_494 : f32 to vector<8x32xf32>
    %1210 = arith.addf %1209, %1208 : vector<8x32xf32>
    %1211 = arith.divf %1209, %1210 : vector<8x32xf32>
    %1212 = vector.extract_strided_slice %1199 {offsets = [0, 64], sizes = [8, 32], strides = [1, 1]} : vector<8x128xf32> to vector<8x32xf32>
    %1213 = math.tanh %1212 : vector<8x32xf32>
    %1214 = vector.extract_strided_slice %1199 {offsets = [0, 96], sizes = [8, 32], strides = [1, 1]} : vector<8x128xf32> to vector<8x32xf32>
    %1215 = arith.negf %1214 : vector<8x32xf32>
    %1216 = math.exp %1215 : vector<8x32xf32>
    %cst_495 = arith.constant 1.000000e+00 : f32
    %1217 = vector.broadcast %cst_495 : f32 to vector<8x32xf32>
    %1218 = arith.addf %1217, %1216 : vector<8x32xf32>
    %1219 = arith.divf %1217, %1218 : vector<8x32xf32>
    %1220 = arith.mulf %1211, %1053 : vector<8x32xf32>
    %1221 = arith.mulf %1205, %1213 : vector<8x32xf32>
    %1222 = arith.addf %1220, %1221 : vector<8x32xf32>
    %1223 = math.tanh %1222 : vector<8x32xf32>
    %1224 = arith.mulf %1219, %1223 : vector<8x32xf32>
    %1225 = arith.index_cast %1141 : i32 to index
    %c0_496 = arith.constant 0 : index
    %c0_497 = arith.constant 0 : index
    %1226 = vector.load %arg1[%1225, %c0_496, %c0_497] : memref<8x8x16xf32, #tpu.memory_space<vmem>>, vector<1x8x16xf32>
    %1227 = vector.shape_cast %1226 : vector<1x8x16xf32> to vector<8x16xf32>
    %1228 = arith.index_cast %1141 : i32 to index
    %c0_498 = arith.constant 0 : index
    %c0_499 = arith.constant 0 : index
    %1229 = vector.load %arg45[%1228, %c0_498, %c0_499] : memref<8x8x16xf32, #tpu.memory_space<vmem>>, vector<1x8x16xf32>
    %1230 = vector.shape_cast %1229 : vector<1x8x16xf32> to vector<8x16xf32>
    %1231 = arith.index_cast %1141 : i32 to index
    %c0_500 = arith.constant 0 : index
    %c0_501 = arith.constant 0 : index
    %1232 = vector.load %arg46[%1231, %c0_500, %c0_501] : memref<8x8x16xf32, #tpu.memory_space<vmem>>, vector<1x8x16xf32>
    %1233 = vector.shape_cast %1232 : vector<1x8x16xf32> to vector<8x16xf32>
    %1234 = arith.index_cast %1141 : i32 to index
    %c0_502 = arith.constant 0 : index
    %c0_503 = arith.constant 0 : index
    %1235 = vector.load %arg47[%1234, %c0_502, %c0_503] : memref<8x8x16xf32, #tpu.memory_space<vmem>>, vector<1x8x16xf32>
    %1236 = vector.shape_cast %1235 : vector<1x8x16xf32> to vector<8x16xf32>
    %1237 = arith.index_cast %1141 : i32 to index
    %c0_504 = arith.constant 0 : index
    %c0_505 = arith.constant 0 : index
    %1238 = vector.load %arg40[%1237, %c0_504, %c0_505] : memref<8x8x32xf32, #tpu.memory_space<vmem>>, vector<1x8x32xf32>
    %1239 = vector.shape_cast %1238 : vector<1x8x32xf32> to vector<8x32xf32>
    %1240 = arith.mulf %1138, %1239 : vector<8x32xf32>
    %c0_506 = arith.constant 0 : index
    %c0_507 = arith.constant 0 : index
    %1241 = vector.load %arg22[%c0_506, %c0_507] : memref<32x144xf32, #tpu.memory_space<vmem>>, vector<32x144xf32>
    %cst_508 = arith.constant dense<0.000000e+00> : vector<8x144xf32>
    %1242 = tpu.matmul %1240, %1241, %cst_508 {dimension_numbers = #tpu.dot_dimension_numbers<[1], [0], [0], [1], [0, 0, 1, 1], [], []>} : vector<8x32xf32>, vector<32x144xf32>, vector<8x144xf32> -> vector<8x144xf32>
    %1243 = vector.extract_strided_slice %1242 {offsets = [0, 128], sizes = [8, 16], strides = [1, 1]} : vector<8x144xf32> to vector<8x16xf32>
    %1244 = arith.addf %1243, %121 : vector<8x16xf32>
    %1245 = arith.mulf %1233, %1244 : vector<8x16xf32>
    %1246 = arith.addf %1230, %1245 : vector<8x16xf32>
    %c0_509 = arith.constant 0 : index
    %c0_510 = arith.constant 0 : index
    %1247 = vector.load %arg24[%c0_509, %c0_510] : memref<16x16xf32, #tpu.memory_space<vmem>>, vector<16x16xf32>
    %cst_511 = arith.constant dense<0.000000e+00> : vector<8x16xf32>
    %1248 = tpu.matmul %1246, %1247, %cst_511 {dimension_numbers = #tpu.dot_dimension_numbers<[1], [0], [0], [1], [0, 0, 1, 1], [], []>} : vector<8x16xf32>, vector<16x16xf32>, vector<8x16xf32> -> vector<8x16xf32>
    %1249 = arith.addf %1248, %124 : vector<8x16xf32>
    %1250 = arith.index_cast %1141 : i32 to index
    %c0_512 = arith.constant 0 : index
    %c0_513 = arith.constant 0 : index
    %1251 = vector.load %arg42[%1250, %c0_512, %c0_513] : memref<8x8x16xf32, #tpu.memory_space<vmem>>, vector<1x8x16xf32>
    %1252 = vector.shape_cast %1251 : vector<1x8x16xf32> to vector<8x16xf32>
    %1253 = arith.subf %1249, %1244 : vector<8x16xf32>
    %1254 = arith.mulf %1252, %1253 : vector<8x16xf32>
    %1255 = arith.addf %1244, %1254 : vector<8x16xf32>
    %1256 = arith.mulf %1233, %1255 : vector<8x16xf32>
    %1257 = arith.addf %1230, %1256 : vector<8x16xf32>
    %1258 = arith.index_cast %1141 : i32 to index
    %c0_514 = arith.constant 0 : index
    %c0_515 = arith.constant 0 : index
    %1259 = vector.load %arg34[%1258, %c0_514, %c0_515] : memref<8x8x16xf32, #tpu.memory_space<vmem>>, vector<1x8x16xf32>
    %1260 = vector.shape_cast %1259 : vector<1x8x16xf32> to vector<8x16xf32>
    %1261 = vector.shape_cast %1255 : vector<8x16xf32> to vector<1x8x16xf32>
    tpu.vector_store %arg34[%1258, %c0_514, %c0_515], %1261 {strides = array<i32>} : memref<8x8x16xf32, #tpu.memory_space<vmem>>, vector<1x8x16xf32>,
    %1262 = arith.index_cast %1141 : i32 to index
    %c0_516 = arith.constant 0 : index
    %c0_517 = arith.constant 0 : index
    %1263 = vector.load %arg49[%1262, %c0_516, %c0_517] : memref<8x8x16xf32, #tpu.memory_space<vmem>>, vector<1x8x16xf32>
    %1264 = vector.shape_cast %1263 : vector<1x8x16xf32> to vector<8x16xf32>
    %1265 = vector.shape_cast %1257 : vector<8x16xf32> to vector<1x8x16xf32>
    tpu.vector_store %arg49[%1262, %c0_516, %c0_517], %1265 {strides = array<i32>} : memref<8x8x16xf32, #tpu.memory_space<vmem>>, vector<1x8x16xf32>,
    %1266 = arith.subf %1244, %1227 : vector<8x16xf32>
    %1267 = math.absf %1266 : vector<8x16xf32>
    %1268 = arith.subf %1249, %1227 : vector<8x16xf32>
    %1269 = math.absf %1268 : vector<8x16xf32>
    %1270 = arith.addf %1267, %1269 : vector<8x16xf32>
    %1271 = arith.subf %1255, %1227 : vector<8x16xf32>
    %1272 = math.absf %1271 : vector<8x16xf32>
    %1273 = arith.addf %1270, %1272 : vector<8x16xf32>
    %1274 = arith.mulf %1273, %1236 : vector<8x16xf32>
    %c0_518 = arith.constant 0 : index
    %c0_519 = arith.constant 0 : index
    %1275 = vector.load %arg29[%c0_518, %c0_519] : memref<16x128xf32, #tpu.memory_space<vmem>>, vector<16x128xf32>
    %cst_520 = arith.constant dense<0.000000e+00> : vector<8x128xf32>
    %1276 = tpu.matmul %1257, %1275, %cst_520 {dimension_numbers = #tpu.dot_dimension_numbers<[1], [0], [0], [1], [0, 0, 1, 1], [], []>} : vector<8x16xf32>, vector<16x128xf32>, vector<8x128xf32> -> vector<8x128xf32>
    %1277 = vector.extract_strided_slice %1242 {offsets = [0, 0], sizes = [8, 128], strides = [1, 1]} : vector<8x144xf32> to vector<8x128xf32>
    %1278 = arith.addf %1276, %1277 : vector<8x128xf32>
    %1279 = arith.index_cast %1141 : i32 to index
    %c0_521 = arith.constant 0 : index
    %c0_522 = arith.constant 0 : index
    %1280 = vector.load %arg44[%1279, %c0_521, %c0_522] : memref<8x8x128xf32, #tpu.memory_space<vmem>>, vector<1x8x128xf32>
    %1281 = vector.shape_cast %1280 : vector<1x8x128xf32> to vector<8x128xf32>
    %1282 = arith.addf %1278, %1281 : vector<8x128xf32>
    %1283 = vector.extract_strided_slice %1282 {offsets = [0, 0], sizes = [8, 32], strides = [1, 1]} : vector<8x128xf32> to vector<8x32xf32>
    %1284 = arith.negf %1283 : vector<8x32xf32>
    %1285 = math.exp %1284 : vector<8x32xf32>
    %cst_523 = arith.constant 1.000000e+00 : f32
    %1286 = vector.broadcast %cst_523 : f32 to vector<8x32xf32>
    %1287 = arith.addf %1286, %1285 : vector<8x32xf32>
    %1288 = arith.divf %1286, %1287 : vector<8x32xf32>
    %1289 = vector.extract_strided_slice %1282 {offsets = [0, 32], sizes = [8, 32], strides = [1, 1]} : vector<8x128xf32> to vector<8x32xf32>
    %1290 = arith.negf %1289 : vector<8x32xf32>
    %1291 = math.exp %1290 : vector<8x32xf32>
    %cst_524 = arith.constant 1.000000e+00 : f32
    %1292 = vector.broadcast %cst_524 : f32 to vector<8x32xf32>
    %1293 = arith.addf %1292, %1291 : vector<8x32xf32>
    %1294 = arith.divf %1292, %1293 : vector<8x32xf32>
    %1295 = vector.extract_strided_slice %1282 {offsets = [0, 64], sizes = [8, 32], strides = [1, 1]} : vector<8x128xf32> to vector<8x32xf32>
    %1296 = math.tanh %1295 : vector<8x32xf32>
    %1297 = vector.extract_strided_slice %1282 {offsets = [0, 96], sizes = [8, 32], strides = [1, 1]} : vector<8x128xf32> to vector<8x32xf32>
    %1298 = arith.negf %1297 : vector<8x32xf32>
    %1299 = math.exp %1298 : vector<8x32xf32>
    %cst_525 = arith.constant 1.000000e+00 : f32
    %1300 = vector.broadcast %cst_525 : f32 to vector<8x32xf32>
    %1301 = arith.addf %1300, %1299 : vector<8x32xf32>
    %1302 = arith.divf %1300, %1301 : vector<8x32xf32>
    %1303 = arith.mulf %1294, %1136 : vector<8x32xf32>
    %1304 = arith.mulf %1288, %1296 : vector<8x32xf32>
    %1305 = arith.addf %1303, %1304 : vector<8x32xf32>
    %1306 = math.tanh %1305 : vector<8x32xf32>
    %1307 = arith.mulf %1302, %1306 : vector<8x32xf32>
    %1308 = arith.addf %1140, %1191 : vector<8x16xf32>
    %1309 = arith.addf %1308, %1274 : vector<8x16xf32>
    %c7_i32_526 = arith.constant 7 : i32
    %c7_i32_527 = arith.constant 7 : i32
    %1310 = arith.subi %c7_i32_527, %c7_i32_526 : i32
    %1311 = arith.index_cast %c7_i32_526 : i32 to index
    %c0_528 = arith.constant 0 : index
    %c0_529 = arith.constant 0 : index
    %1312 = vector.load %arg1[%1311, %c0_528, %c0_529] : memref<8x8x16xf32, #tpu.memory_space<vmem>>, vector<1x8x16xf32>
    %1313 = vector.shape_cast %1312 : vector<1x8x16xf32> to vector<8x16xf32>
    %1314 = arith.index_cast %c7_i32_526 : i32 to index
    %c0_530 = arith.constant 0 : index
    %c0_531 = arith.constant 0 : index
    %1315 = vector.load %arg45[%1314, %c0_530, %c0_531] : memref<8x8x16xf32, #tpu.memory_space<vmem>>, vector<1x8x16xf32>
    %1316 = vector.shape_cast %1315 : vector<1x8x16xf32> to vector<8x16xf32>
    %1317 = arith.index_cast %c7_i32_526 : i32 to index
    %c0_532 = arith.constant 0 : index
    %c0_533 = arith.constant 0 : index
    %1318 = vector.load %arg46[%1317, %c0_532, %c0_533] : memref<8x8x16xf32, #tpu.memory_space<vmem>>, vector<1x8x16xf32>
    %1319 = vector.shape_cast %1318 : vector<1x8x16xf32> to vector<8x16xf32>
    %1320 = arith.index_cast %c7_i32_526 : i32 to index
    %c0_534 = arith.constant 0 : index
    %c0_535 = arith.constant 0 : index
    %1321 = vector.load %arg47[%1320, %c0_534, %c0_535] : memref<8x8x16xf32, #tpu.memory_space<vmem>>, vector<1x8x16xf32>
    %1322 = vector.shape_cast %1321 : vector<1x8x16xf32> to vector<8x16xf32>
    %1323 = arith.index_cast %c7_i32_526 : i32 to index
    %c0_536 = arith.constant 0 : index
    %c0_537 = arith.constant 0 : index
    %1324 = vector.load %arg39[%1323, %c0_536, %c0_537] : memref<8x8x32xf32, #tpu.memory_space<vmem>>, vector<1x8x32xf32>
    %1325 = vector.shape_cast %1324 : vector<1x8x32xf32> to vector<8x32xf32>
    %1326 = arith.mulf %1224, %1325 : vector<8x32xf32>
    %c0_538 = arith.constant 0 : index
    %c0_539 = arith.constant 0 : index
    %1327 = vector.load %arg9[%c0_538, %c0_539] : memref<32x144xf32, #tpu.memory_space<vmem>>, vector<32x144xf32>
    %cst_540 = arith.constant dense<0.000000e+00> : vector<8x144xf32>
    %1328 = tpu.matmul %1326, %1327, %cst_540 {dimension_numbers = #tpu.dot_dimension_numbers<[1], [0], [0], [1], [0, 0, 1, 1], [], []>} : vector<8x32xf32>, vector<32x144xf32>, vector<8x144xf32> -> vector<8x144xf32>
    %1329 = vector.extract_strided_slice %1328 {offsets = [0, 128], sizes = [8, 16], strides = [1, 1]} : vector<8x144xf32> to vector<8x16xf32>
    %1330 = arith.addf %1329, %115 : vector<8x16xf32>
    %1331 = arith.mulf %1319, %1330 : vector<8x16xf32>
    %1332 = arith.addf %1316, %1331 : vector<8x16xf32>
    %c0_541 = arith.constant 0 : index
    %c0_542 = arith.constant 0 : index
    %1333 = vector.load %arg11[%c0_541, %c0_542] : memref<16x16xf32, #tpu.memory_space<vmem>>, vector<16x16xf32>
    %cst_543 = arith.constant dense<0.000000e+00> : vector<8x16xf32>
    %1334 = tpu.matmul %1332, %1333, %cst_543 {dimension_numbers = #tpu.dot_dimension_numbers<[1], [0], [0], [1], [0, 0, 1, 1], [], []>} : vector<8x16xf32>, vector<16x16xf32>, vector<8x16xf32> -> vector<8x16xf32>
    %1335 = arith.addf %1334, %118 : vector<8x16xf32>
    %1336 = arith.index_cast %c7_i32_526 : i32 to index
    %c0_544 = arith.constant 0 : index
    %c0_545 = arith.constant 0 : index
    %1337 = vector.load %arg41[%1336, %c0_544, %c0_545] : memref<8x8x16xf32, #tpu.memory_space<vmem>>, vector<1x8x16xf32>
    %1338 = vector.shape_cast %1337 : vector<1x8x16xf32> to vector<8x16xf32>
    %1339 = arith.subf %1335, %1330 : vector<8x16xf32>
    %1340 = arith.mulf %1338, %1339 : vector<8x16xf32>
    %1341 = arith.addf %1330, %1340 : vector<8x16xf32>
    %1342 = arith.mulf %1319, %1341 : vector<8x16xf32>
    %1343 = arith.addf %1316, %1342 : vector<8x16xf32>
    %1344 = arith.index_cast %c7_i32_526 : i32 to index
    %c0_546 = arith.constant 0 : index
    %c0_547 = arith.constant 0 : index
    %1345 = vector.load %arg33[%1344, %c0_546, %c0_547] : memref<8x8x16xf32, #tpu.memory_space<vmem>>, vector<1x8x16xf32>
    %1346 = vector.shape_cast %1345 : vector<1x8x16xf32> to vector<8x16xf32>
    %1347 = vector.shape_cast %1341 : vector<8x16xf32> to vector<1x8x16xf32>
    tpu.vector_store %arg33[%1344, %c0_546, %c0_547], %1347 {strides = array<i32>} : memref<8x8x16xf32, #tpu.memory_space<vmem>>, vector<1x8x16xf32>,
    %1348 = arith.index_cast %c7_i32_526 : i32 to index
    %c0_548 = arith.constant 0 : index
    %c0_549 = arith.constant 0 : index
    %1349 = vector.load %arg48[%1348, %c0_548, %c0_549] : memref<8x8x16xf32, #tpu.memory_space<vmem>>, vector<1x8x16xf32>
    %1350 = vector.shape_cast %1349 : vector<1x8x16xf32> to vector<8x16xf32>
    %1351 = vector.shape_cast %1343 : vector<8x16xf32> to vector<1x8x16xf32>
    tpu.vector_store %arg48[%1348, %c0_548, %c0_549], %1351 {strides = array<i32>} : memref<8x8x16xf32, #tpu.memory_space<vmem>>, vector<1x8x16xf32>,
    %1352 = arith.subf %1330, %1313 : vector<8x16xf32>
    %1353 = math.absf %1352 : vector<8x16xf32>
    %1354 = arith.subf %1335, %1313 : vector<8x16xf32>
    %1355 = math.absf %1354 : vector<8x16xf32>
    %1356 = arith.addf %1353, %1355 : vector<8x16xf32>
    %1357 = arith.subf %1341, %1313 : vector<8x16xf32>
    %1358 = math.absf %1357 : vector<8x16xf32>
    %1359 = arith.addf %1356, %1358 : vector<8x16xf32>
    %1360 = arith.mulf %1359, %1322 : vector<8x16xf32>
    %c0_550 = arith.constant 0 : index
    %c0_551 = arith.constant 0 : index
    %1361 = vector.load %arg16[%c0_550, %c0_551] : memref<16x128xf32, #tpu.memory_space<vmem>>, vector<16x128xf32>
    %cst_552 = arith.constant dense<0.000000e+00> : vector<8x128xf32>
    %1362 = tpu.matmul %1343, %1361, %cst_552 {dimension_numbers = #tpu.dot_dimension_numbers<[1], [0], [0], [1], [0, 0, 1, 1], [], []>} : vector<8x16xf32>, vector<16x128xf32>, vector<8x128xf32> -> vector<8x128xf32>
    %1363 = vector.extract_strided_slice %1328 {offsets = [0, 0], sizes = [8, 128], strides = [1, 1]} : vector<8x144xf32> to vector<8x128xf32>
    %1364 = arith.addf %1362, %1363 : vector<8x128xf32>
    %1365 = arith.index_cast %c7_i32_526 : i32 to index
    %c0_553 = arith.constant 0 : index
    %c0_554 = arith.constant 0 : index
    %1366 = vector.load %arg43[%1365, %c0_553, %c0_554] : memref<8x8x128xf32, #tpu.memory_space<vmem>>, vector<1x8x128xf32>
    %1367 = vector.shape_cast %1366 : vector<1x8x128xf32> to vector<8x128xf32>
    %1368 = arith.addf %1364, %1367 : vector<8x128xf32>
    %1369 = vector.extract_strided_slice %1368 {offsets = [0, 0], sizes = [8, 32], strides = [1, 1]} : vector<8x128xf32> to vector<8x32xf32>
    %1370 = arith.negf %1369 : vector<8x32xf32>
    %1371 = math.exp %1370 : vector<8x32xf32>
    %cst_555 = arith.constant 1.000000e+00 : f32
    %1372 = vector.broadcast %cst_555 : f32 to vector<8x32xf32>
    %1373 = arith.addf %1372, %1371 : vector<8x32xf32>
    %1374 = arith.divf %1372, %1373 : vector<8x32xf32>
    %1375 = vector.extract_strided_slice %1368 {offsets = [0, 32], sizes = [8, 32], strides = [1, 1]} : vector<8x128xf32> to vector<8x32xf32>
    %1376 = arith.negf %1375 : vector<8x32xf32>
    %1377 = math.exp %1376 : vector<8x32xf32>
    %cst_556 = arith.constant 1.000000e+00 : f32
    %1378 = vector.broadcast %cst_556 : f32 to vector<8x32xf32>
    %1379 = arith.addf %1378, %1377 : vector<8x32xf32>
    %1380 = arith.divf %1378, %1379 : vector<8x32xf32>
    %1381 = vector.extract_strided_slice %1368 {offsets = [0, 64], sizes = [8, 32], strides = [1, 1]} : vector<8x128xf32> to vector<8x32xf32>
    %1382 = math.tanh %1381 : vector<8x32xf32>
    %1383 = vector.extract_strided_slice %1368 {offsets = [0, 96], sizes = [8, 32], strides = [1, 1]} : vector<8x128xf32> to vector<8x32xf32>
    %1384 = arith.negf %1383 : vector<8x32xf32>
    %1385 = math.exp %1384 : vector<8x32xf32>
    %cst_557 = arith.constant 1.000000e+00 : f32
    %1386 = vector.broadcast %cst_557 : f32 to vector<8x32xf32>
    %1387 = arith.addf %1386, %1385 : vector<8x32xf32>
    %1388 = arith.divf %1386, %1387 : vector<8x32xf32>
    %1389 = arith.mulf %1380, %1222 : vector<8x32xf32>
    %1390 = arith.mulf %1374, %1382 : vector<8x32xf32>
    %1391 = arith.addf %1389, %1390 : vector<8x32xf32>
    %1392 = math.tanh %1391 : vector<8x32xf32>
    %1393 = arith.mulf %1388, %1392 : vector<8x32xf32>
    %1394 = arith.index_cast %1310 : i32 to index
    %c0_558 = arith.constant 0 : index
    %c0_559 = arith.constant 0 : index
    %1395 = vector.load %arg1[%1394, %c0_558, %c0_559] : memref<8x8x16xf32, #tpu.memory_space<vmem>>, vector<1x8x16xf32>
    %1396 = vector.shape_cast %1395 : vector<1x8x16xf32> to vector<8x16xf32>
    %1397 = arith.index_cast %1310 : i32 to index
    %c0_560 = arith.constant 0 : index
    %c0_561 = arith.constant 0 : index
    %1398 = vector.load %arg45[%1397, %c0_560, %c0_561] : memref<8x8x16xf32, #tpu.memory_space<vmem>>, vector<1x8x16xf32>
    %1399 = vector.shape_cast %1398 : vector<1x8x16xf32> to vector<8x16xf32>
    %1400 = arith.index_cast %1310 : i32 to index
    %c0_562 = arith.constant 0 : index
    %c0_563 = arith.constant 0 : index
    %1401 = vector.load %arg46[%1400, %c0_562, %c0_563] : memref<8x8x16xf32, #tpu.memory_space<vmem>>, vector<1x8x16xf32>
    %1402 = vector.shape_cast %1401 : vector<1x8x16xf32> to vector<8x16xf32>
    %1403 = arith.index_cast %1310 : i32 to index
    %c0_564 = arith.constant 0 : index
    %c0_565 = arith.constant 0 : index
    %1404 = vector.load %arg47[%1403, %c0_564, %c0_565] : memref<8x8x16xf32, #tpu.memory_space<vmem>>, vector<1x8x16xf32>
    %1405 = vector.shape_cast %1404 : vector<1x8x16xf32> to vector<8x16xf32>
    %1406 = arith.index_cast %1310 : i32 to index
    %c0_566 = arith.constant 0 : index
    %c0_567 = arith.constant 0 : index
    %1407 = vector.load %arg40[%1406, %c0_566, %c0_567] : memref<8x8x32xf32, #tpu.memory_space<vmem>>, vector<1x8x32xf32>
    %1408 = vector.shape_cast %1407 : vector<1x8x32xf32> to vector<8x32xf32>
    %1409 = arith.mulf %1307, %1408 : vector<8x32xf32>
    %c0_568 = arith.constant 0 : index
    %c0_569 = arith.constant 0 : index
    %1410 = vector.load %arg22[%c0_568, %c0_569] : memref<32x144xf32, #tpu.memory_space<vmem>>, vector<32x144xf32>
    %cst_570 = arith.constant dense<0.000000e+00> : vector<8x144xf32>
    %1411 = tpu.matmul %1409, %1410, %cst_570 {dimension_numbers = #tpu.dot_dimension_numbers<[1], [0], [0], [1], [0, 0, 1, 1], [], []>} : vector<8x32xf32>, vector<32x144xf32>, vector<8x144xf32> -> vector<8x144xf32>
    %1412 = vector.extract_strided_slice %1411 {offsets = [0, 128], sizes = [8, 16], strides = [1, 1]} : vector<8x144xf32> to vector<8x16xf32>
    %1413 = arith.addf %1412, %121 : vector<8x16xf32>
    %1414 = arith.mulf %1402, %1413 : vector<8x16xf32>
    %1415 = arith.addf %1399, %1414 : vector<8x16xf32>
    %c0_571 = arith.constant 0 : index
    %c0_572 = arith.constant 0 : index
    %1416 = vector.load %arg24[%c0_571, %c0_572] : memref<16x16xf32, #tpu.memory_space<vmem>>, vector<16x16xf32>
    %cst_573 = arith.constant dense<0.000000e+00> : vector<8x16xf32>
    %1417 = tpu.matmul %1415, %1416, %cst_573 {dimension_numbers = #tpu.dot_dimension_numbers<[1], [0], [0], [1], [0, 0, 1, 1], [], []>} : vector<8x16xf32>, vector<16x16xf32>, vector<8x16xf32> -> vector<8x16xf32>
    %1418 = arith.addf %1417, %124 : vector<8x16xf32>
    %1419 = arith.index_cast %1310 : i32 to index
    %c0_574 = arith.constant 0 : index
    %c0_575 = arith.constant 0 : index
    %1420 = vector.load %arg42[%1419, %c0_574, %c0_575] : memref<8x8x16xf32, #tpu.memory_space<vmem>>, vector<1x8x16xf32>
    %1421 = vector.shape_cast %1420 : vector<1x8x16xf32> to vector<8x16xf32>
    %1422 = arith.subf %1418, %1413 : vector<8x16xf32>
    %1423 = arith.mulf %1421, %1422 : vector<8x16xf32>
    %1424 = arith.addf %1413, %1423 : vector<8x16xf32>
    %1425 = arith.mulf %1402, %1424 : vector<8x16xf32>
    %1426 = arith.addf %1399, %1425 : vector<8x16xf32>
    %1427 = arith.index_cast %1310 : i32 to index
    %c0_576 = arith.constant 0 : index
    %c0_577 = arith.constant 0 : index
    %1428 = vector.load %arg34[%1427, %c0_576, %c0_577] : memref<8x8x16xf32, #tpu.memory_space<vmem>>, vector<1x8x16xf32>
    %1429 = vector.shape_cast %1428 : vector<1x8x16xf32> to vector<8x16xf32>
    %1430 = vector.shape_cast %1424 : vector<8x16xf32> to vector<1x8x16xf32>
    tpu.vector_store %arg34[%1427, %c0_576, %c0_577], %1430 {strides = array<i32>} : memref<8x8x16xf32, #tpu.memory_space<vmem>>, vector<1x8x16xf32>,
    %1431 = arith.index_cast %1310 : i32 to index
    %c0_578 = arith.constant 0 : index
    %c0_579 = arith.constant 0 : index
    %1432 = vector.load %arg49[%1431, %c0_578, %c0_579] : memref<8x8x16xf32, #tpu.memory_space<vmem>>, vector<1x8x16xf32>
    %1433 = vector.shape_cast %1432 : vector<1x8x16xf32> to vector<8x16xf32>
    %1434 = vector.shape_cast %1426 : vector<8x16xf32> to vector<1x8x16xf32>
    tpu.vector_store %arg49[%1431, %c0_578, %c0_579], %1434 {strides = array<i32>} : memref<8x8x16xf32, #tpu.memory_space<vmem>>, vector<1x8x16xf32>,
    %1435 = arith.subf %1413, %1396 : vector<8x16xf32>
    %1436 = math.absf %1435 : vector<8x16xf32>
    %1437 = arith.subf %1418, %1396 : vector<8x16xf32>
    %1438 = math.absf %1437 : vector<8x16xf32>
    %1439 = arith.addf %1436, %1438 : vector<8x16xf32>
    %1440 = arith.subf %1424, %1396 : vector<8x16xf32>
    %1441 = math.absf %1440 : vector<8x16xf32>
    %1442 = arith.addf %1439, %1441 : vector<8x16xf32>
    %1443 = arith.mulf %1442, %1405 : vector<8x16xf32>
    %c0_580 = arith.constant 0 : index
    %c0_581 = arith.constant 0 : index
    %1444 = vector.load %arg29[%c0_580, %c0_581] : memref<16x128xf32, #tpu.memory_space<vmem>>, vector<16x128xf32>
    %cst_582 = arith.constant dense<0.000000e+00> : vector<8x128xf32>
    %1445 = tpu.matmul %1426, %1444, %cst_582 {dimension_numbers = #tpu.dot_dimension_numbers<[1], [0], [0], [1], [0, 0, 1, 1], [], []>} : vector<8x16xf32>, vector<16x128xf32>, vector<8x128xf32> -> vector<8x128xf32>
    %1446 = vector.extract_strided_slice %1411 {offsets = [0, 0], sizes = [8, 128], strides = [1, 1]} : vector<8x144xf32> to vector<8x128xf32>
    %1447 = arith.addf %1445, %1446 : vector<8x128xf32>
    %1448 = arith.index_cast %1310 : i32 to index
    %c0_583 = arith.constant 0 : index
    %c0_584 = arith.constant 0 : index
    %1449 = vector.load %arg44[%1448, %c0_583, %c0_584] : memref<8x8x128xf32, #tpu.memory_space<vmem>>, vector<1x8x128xf32>
    %1450 = vector.shape_cast %1449 : vector<1x8x128xf32> to vector<8x128xf32>
    %1451 = arith.addf %1447, %1450 : vector<8x128xf32>
    %1452 = vector.extract_strided_slice %1451 {offsets = [0, 0], sizes = [8, 32], strides = [1, 1]} : vector<8x128xf32> to vector<8x32xf32>
    %1453 = arith.negf %1452 : vector<8x32xf32>
    %1454 = math.exp %1453 : vector<8x32xf32>
    %cst_585 = arith.constant 1.000000e+00 : f32
    %1455 = vector.broadcast %cst_585 : f32 to vector<8x32xf32>
    %1456 = arith.addf %1455, %1454 : vector<8x32xf32>
    %1457 = arith.divf %1455, %1456 : vector<8x32xf32>
    %1458 = vector.extract_strided_slice %1451 {offsets = [0, 32], sizes = [8, 32], strides = [1, 1]} : vector<8x128xf32> to vector<8x32xf32>
    %1459 = arith.negf %1458 : vector<8x32xf32>
    %1460 = math.exp %1459 : vector<8x32xf32>
    %cst_586 = arith.constant 1.000000e+00 : f32
    %1461 = vector.broadcast %cst_586 : f32 to vector<8x32xf32>
    %1462 = arith.addf %1461, %1460 : vector<8x32xf32>
    %1463 = arith.divf %1461, %1462 : vector<8x32xf32>
    %1464 = vector.extract_strided_slice %1451 {offsets = [0, 64], sizes = [8, 32], strides = [1, 1]} : vector<8x128xf32> to vector<8x32xf32>
    %1465 = math.tanh %1464 : vector<8x32xf32>
    %1466 = vector.extract_strided_slice %1451 {offsets = [0, 96], sizes = [8, 32], strides = [1, 1]} : vector<8x128xf32> to vector<8x32xf32>
    %1467 = arith.negf %1466 : vector<8x32xf32>
    %1468 = math.exp %1467 : vector<8x32xf32>
    %cst_587 = arith.constant 1.000000e+00 : f32
    %1469 = vector.broadcast %cst_587 : f32 to vector<8x32xf32>
    %1470 = arith.addf %1469, %1468 : vector<8x32xf32>
    %1471 = arith.divf %1469, %1470 : vector<8x32xf32>
    %1472 = arith.mulf %1463, %1305 : vector<8x32xf32>
    %1473 = arith.mulf %1457, %1465 : vector<8x32xf32>
    %1474 = arith.addf %1472, %1473 : vector<8x32xf32>
    %1475 = math.tanh %1474 : vector<8x32xf32>
    %1476 = arith.mulf %1471, %1475 : vector<8x32xf32>
    %1477 = arith.addf %1309, %1360 : vector<8x16xf32>
    %1478 = arith.addf %1477, %1443 : vector<8x16xf32>
    %c8_i32 = arith.constant 8 : i32
    %c0_588 = arith.constant 0 : index
    %c0_589 = arith.constant 0 : index
    %1479 = vector.load %arg35[%c0_588, %c0_589] : memref<8x32xf32, #tpu.memory_space<vmem>>, vector<8x32xf32>
    tpu.vector_store %arg35[%c0_588, %c0_589], %1393 {strides = array<i32>} : memref<8x32xf32, #tpu.memory_space<vmem>>, vector<8x32xf32>,
    %c0_590 = arith.constant 0 : index
    %c0_591 = arith.constant 0 : index
    %1480 = vector.load %arg36[%c0_590, %c0_591] : memref<8x32xf32, #tpu.memory_space<vmem>>, vector<8x32xf32>
    tpu.vector_store %arg36[%c0_590, %c0_591], %1476 {strides = array<i32>} : memref<8x32xf32, #tpu.memory_space<vmem>>, vector<8x32xf32>,
    %1481 = vector.shape_cast %1478 : vector<8x16xf32> to vector<1x8x16xf32>
    %cst_592 = arith.constant dense<0.000000e+00> : vector<1xf32>
    %1482 = vector.multi_reduction <add>, %1481, %cst_592 [1, 2] : vector<1x8x16xf32> to vector<1xf32>
    %1483 = vector.shape_cast %1482 : vector<1xf32> to vector<1x1x1xf32>
    %1484 = vector.extract %1483[0, 0, 0] : f32 from vector<1x1x1xf32>
    %1485 = vector.broadcast %1484 : f32 to vector<1x1xf32>
    %cst_593 = arith.constant 2.400000e+01 : f32
    %1486 = vector.broadcast %cst_593 : f32 to vector<1x1xf32>
    %1487 = arith.divf %1485, %1486 : vector<1x1xf32>
    %c0_594 = arith.constant 0 : index
    %c0_595 = arith.constant 0 : index
    %1488 = vector.load %arg38[%c0_594, %c0_595] : memref<1x1xf32, #tpu.memory_space<vmem>>, vector<1x1xf32>
    tpu.vector_store %arg38[%c0_594, %c0_595], %1487 {strides = array<i32>} : memref<1x1xf32, #tpu.memory_space<vmem>>, vector<1x1xf32>,
    %c0_596 = arith.constant 0 : index
    %c0_597 = arith.constant 0 : index
    %c0_598 = arith.constant 0 : index
    %1489 = vector.load %arg48[%c0_596, %c0_597, %c0_598] : memref<8x8x16xf32, #tpu.memory_space<vmem>>, vector<8x8x16xf32>
    %c0_599 = arith.constant 0 : index
    %c0_600 = arith.constant 0 : index
    %c0_601 = arith.constant 0 : index
    %1490 = vector.load %arg49[%c0_599, %c0_600, %c0_601] : memref<8x8x16xf32, #tpu.memory_space<vmem>>, vector<8x8x16xf32>
    %1491 = arith.addf %1489, %1490 : vector<8x8x16xf32>
    %cst_602 = arith.constant 5.000000e-01 : f32
    %1492 = vector.broadcast %cst_602 : f32 to vector<8x8x16xf32>
    %1493 = arith.mulf %1491, %1492 : vector<8x8x16xf32>
    %c0_603 = arith.constant 0 : index
    %c0_604 = arith.constant 0 : index
    %c0_605 = arith.constant 0 : index
    %1494 = vector.load %arg31[%c0_603, %c0_604, %c0_605] : memref<8x8x16xf32, #tpu.memory_space<vmem>>, vector<8x8x16xf32>
    tpu.vector_store %arg31[%c0_603, %c0_604, %c0_605], %1493 {strides = array<i32>} : memref<8x8x16xf32, #tpu.memory_space<vmem>>, vector<8x8x16xf32>,
    %c0_606 = arith.constant 0 : index
    %c0_607 = arith.constant 0 : index
    %c0_608 = arith.constant 0 : index
    %1495 = vector.load %arg33[%c0_606, %c0_607, %c0_608] : memref<8x8x16xf32, #tpu.memory_space<vmem>>, vector<8x8x16xf32>
    %c0_609 = arith.constant 0 : index
    %c0_610 = arith.constant 0 : index
    %c0_611 = arith.constant 0 : index
    %1496 = vector.load %arg34[%c0_609, %c0_610, %c0_611] : memref<8x8x16xf32, #tpu.memory_space<vmem>>, vector<8x8x16xf32>
    %1497 = arith.addf %1495, %1496 : vector<8x8x16xf32>
    %cst_612 = arith.constant 5.000000e-01 : f32
    %1498 = vector.broadcast %cst_612 : f32 to vector<8x8x16xf32>
    %1499 = arith.mulf %1497, %1498 : vector<8x8x16xf32>
    %c0_613 = arith.constant 0 : index
    %c0_614 = arith.constant 0 : index
    %c0_615 = arith.constant 0 : index
    %1500 = vector.load %arg32[%c0_613, %c0_614, %c0_615] : memref<8x8x16xf32, #tpu.memory_space<vmem>>, vector<8x8x16xf32>
    tpu.vector_store %arg32[%c0_613, %c0_614, %c0_615], %1499 {strides = array<i32>} : memref<8x8x16xf32, #tpu.memory_space<vmem>>, vector<8x8x16xf32>,
    %1501 = arith.subf %1489, %1490 : vector<8x8x16xf32>
    %1502 = math.absf %1501 : vector<8x8x16xf32>
    %cst_616 = arith.constant dense<0.000000e+00> : vector<8x16xf32>
    %1503 = vector.multi_reduction <add>, %1502, %cst_616 [0] : vector<8x8x16xf32> to vector<8x16xf32>
    %1504 = vector.shape_cast %1503 : vector<8x16xf32> to vector<1x8x16xf32>
    %cst_617 = arith.constant dense<0.000000e+00> : vector<1xf32>
    %1505 = vector.multi_reduction <add>, %1504, %cst_617 [1, 2] : vector<1x8x16xf32> to vector<1xf32>
    %1506 = vector.shape_cast %1505 : vector<1xf32> to vector<1x1x1xf32>
    %1507 = vector.extract %1506[0, 0, 0] : f32 from vector<1x1x1xf32>
    %1508 = vector.broadcast %1507 : f32 to vector<1x1xf32>
    %cst_618 = arith.constant 1.024000e+03 : f32
    %1509 = vector.broadcast %cst_618 : f32 to vector<1x1xf32>
    %1510 = arith.divf %1508, %1509 : vector<1x1xf32>
    %cst_619 = arith.constant 1.000000e-01 : f32
    %1511 = vector.broadcast %cst_619 : f32 to vector<1x1xf32>
    %1512 = arith.mulf %1510, %1511 : vector<1x1xf32>
    %c0_620 = arith.constant 0 : index
    %c0_621 = arith.constant 0 : index
    %1513 = vector.load %arg37[%c0_620, %c0_621] : memref<1x1xf32, #tpu.memory_space<vmem>>, vector<1x1xf32>
    tpu.vector_store %arg37[%c0_620, %c0_621], %1512 {strides = array<i32>} : memref<1x1xf32, #tpu.memory_space<vmem>>, vector<1x1xf32>,
    return
  }
  func.func @transform_0(%arg0: i32) -> (i32, i32, i32) {
    %c0_i32 = arith.constant 0 : i32
    %c0_i32_0 = arith.constant 0 : i32
    %c0_i32_1 = arith.constant 0 : i32
    %c0_i32_2 = arith.constant 0 : i32
    return %c0_i32, %c0_i32_0, %c0_i32_1 : i32, i32, i32
  }
  func.func @transform_1(%arg0: i32) -> (i32, i32, i32) {
    %c0_i32 = arith.constant 0 : i32
    %c0_i32_0 = arith.constant 0 : i32
    %c0_i32_1 = arith.constant 0 : i32
    %c0_i32_2 = arith.constant 0 : i32
    return %c0_i32, %c0_i32_0, %c0_i32_1 : i32, i32, i32
  }
  func.func @transform_2(%arg0: i32) -> (i32, i32, i32) {
    %c0_i32 = arith.constant 0 : i32
    %c0_i32_0 = arith.constant 0 : i32
    %c0_i32_1 = arith.constant 0 : i32
    %c0_i32_2 = arith.constant 0 : i32
    return %c0_i32, %c0_i32_0, %c0_i32_1 : i32, i32, i32
  }
  func.func @transform_3(%arg0: i32) -> (i32, i32, i32) {
    %c0_i32 = arith.constant 0 : i32
    %c0_i32_0 = arith.constant 0 : i32
    %c0_i32_1 = arith.constant 0 : i32
    %c0_i32_2 = arith.constant 0 : i32
    return %c0_i32, %c0_i32_0, %c0_i32_1 : i32, i32, i32
  }
  func.func @transform_4(%arg0: i32) -> (i32, i32) {
    %c0_i32 = arith.constant 0 : i32
    %c0_i32_0 = arith.constant 0 : i32
    %c0_i32_1 = arith.constant 0 : i32
    return %c0_i32, %c0_i32_0 : i32, i32
  }
  func.func @transform_5(%arg0: i32) -> (i32, i32) {
    %c0_i32 = arith.constant 0 : i32
    %c0_i32_0 = arith.constant 0 : i32
    %c0_i32_1 = arith.constant 0 : i32
    return %c0_i32, %c0_i32_0 : i32, i32
  }
  func.func @transform_6(%arg0: i32) -> (i32, i32) {
    %c0_i32 = arith.constant 0 : i32
    %c0_i32_0 = arith.constant 0 : i32
    %c0_i32_1 = arith.constant 0 : i32
    return %c0_i32, %c0_i32_0 : i32, i32
  }
  func.func @transform_7(%arg0: i32) -> (i32, i32) {
    %c0_i32 = arith.constant 0 : i32
    %c0_i32_0 = arith.constant 0 : i32
    %c0_i32_1 = arith.constant 0 : i32
    return %c0_i32, %c0_i32_0 : i32, i32
  }
  func.func @transform_8(%arg0: i32) -> (i32, i32) {
    %c0_i32 = arith.constant 0 : i32
    %c0_i32_0 = arith.constant 0 : i32
    %c0_i32_1 = arith.constant 0 : i32
    return %c0_i32, %c0_i32_0 : i32, i32
  }
  func.func @transform_9(%arg0: i32) -> (i32, i32) {
    %c0_i32 = arith.constant 0 : i32
    %c0_i32_0 = arith.constant 0 : i32
    %c0_i32_1 = arith.constant 0 : i32
    return %c0_i32, %c0_i32_0 : i32, i32
  }
  func.func @transform_10(%arg0: i32) -> (i32, i32) {
    %c0_i32 = arith.constant 0 : i32
    %c0_i32_0 = arith.constant 0 : i32
    %c0_i32_1 = arith.constant 0 : i32
    return %c0_i32, %c0_i32_0 : i32, i32
  }
  func.func @transform_11(%arg0: i32) -> (i32, i32) {
    %c0_i32 = arith.constant 0 : i32
    %c0_i32_0 = arith.constant 0 : i32
    %c0_i32_1 = arith.constant 0 : i32
    return %c0_i32, %c0_i32_0 : i32, i32
  }
  func.func @transform_12(%arg0: i32) -> (i32, i32) {
    %c0_i32 = arith.constant 0 : i32
    %c0_i32_0 = arith.constant 0 : i32
    %c0_i32_1 = arith.constant 0 : i32
    return %c0_i32, %c0_i32_0 : i32, i32
  }
  func.func @transform_13(%arg0: i32) -> (i32, i32) {
    %c0_i32 = arith.constant 0 : i32
    %c0_i32_0 = arith.constant 0 : i32
    %c0_i32_1 = arith.constant 0 : i32
    return %c0_i32, %c0_i32_0 : i32, i32
  }
  func.func @transform_14(%arg0: i32) -> (i32, i32) {
    %c0_i32 = arith.constant 0 : i32
    %c0_i32_0 = arith.constant 0 : i32
    %c0_i32_1 = arith.constant 0 : i32
    return %c0_i32, %c0_i32_0 : i32, i32
  }
  func.func @transform_15(%arg0: i32) -> (i32, i32) {
    %c0_i32 = arith.constant 0 : i32
    %c0_i32_0 = arith.constant 0 : i32
    %c0_i32_1 = arith.constant 0 : i32
    return %c0_i32, %c0_i32_0 : i32, i32
  }
  func.func @transform_16(%arg0: i32) -> (i32, i32) {
    %c0_i32 = arith.constant 0 : i32
    %c0_i32_0 = arith.constant 0 : i32
    %c0_i32_1 = arith.constant 0 : i32
    return %c0_i32, %c0_i32_0 : i32, i32
  }
  func.func @transform_17(%arg0: i32) -> (i32, i32) {
    %c0_i32 = arith.constant 0 : i32
    %c0_i32_0 = arith.constant 0 : i32
    %c0_i32_1 = arith.constant 0 : i32
    return %c0_i32, %c0_i32_0 : i32, i32
  }
  func.func @transform_18(%arg0: i32) -> (i32, i32) {
    %c0_i32 = arith.constant 0 : i32
    %c0_i32_0 = arith.constant 0 : i32
    %c0_i32_1 = arith.constant 0 : i32
    return %c0_i32, %c0_i32_0 : i32, i32
  }
  func.func @transform_19(%arg0: i32) -> (i32, i32) {
    %c0_i32 = arith.constant 0 : i32
    %c0_i32_0 = arith.constant 0 : i32
    %c0_i32_1 = arith.constant 0 : i32
    return %c0_i32, %c0_i32_0 : i32, i32
  }
  func.func @transform_20(%arg0: i32) -> (i32, i32) {
    %c0_i32 = arith.constant 0 : i32
    %c0_i32_0 = arith.constant 0 : i32
    %c0_i32_1 = arith.constant 0 : i32
    return %c0_i32, %c0_i32_0 : i32, i32
  }
  func.func @transform_21(%arg0: i32) -> (i32, i32) {
    %c0_i32 = arith.constant 0 : i32
    %c0_i32_0 = arith.constant 0 : i32
    %c0_i32_1 = arith.constant 0 : i32
    return %c0_i32, %c0_i32_0 : i32, i32
  }
  func.func @transform_22(%arg0: i32) -> (i32, i32) {
    %c0_i32 = arith.constant 0 : i32
    %c0_i32_0 = arith.constant 0 : i32
    %c0_i32_1 = arith.constant 0 : i32
    return %c0_i32, %c0_i32_0 : i32, i32
  }
  func.func @transform_23(%arg0: i32) -> (i32, i32) {
    %c0_i32 = arith.constant 0 : i32
    %c0_i32_0 = arith.constant 0 : i32
    %c0_i32_1 = arith.constant 0 : i32
    return %c0_i32, %c0_i32_0 : i32, i32
  }
  func.func @transform_24(%arg0: i32) -> (i32, i32) {
    %c0_i32 = arith.constant 0 : i32
    %c0_i32_0 = arith.constant 0 : i32
    %c0_i32_1 = arith.constant 0 : i32
    return %c0_i32, %c0_i32_0 : i32, i32
  }
  func.func @transform_25(%arg0: i32) -> (i32, i32) {
    %c0_i32 = arith.constant 0 : i32
    %c0_i32_0 = arith.constant 0 : i32
    %c0_i32_1 = arith.constant 0 : i32
    return %c0_i32, %c0_i32_0 : i32, i32
  }
  func.func @transform_26(%arg0: i32) -> (i32, i32) {
    %c0_i32 = arith.constant 0 : i32
    %c0_i32_0 = arith.constant 0 : i32
    %c0_i32_1 = arith.constant 0 : i32
    return %c0_i32, %c0_i32_0 : i32, i32
  }
  func.func @transform_27(%arg0: i32) -> (i32, i32) {
    %c0_i32 = arith.constant 0 : i32
    %c0_i32_0 = arith.constant 0 : i32
    %c0_i32_1 = arith.constant 0 : i32
    return %c0_i32, %c0_i32_0 : i32, i32
  }
  func.func @transform_28(%arg0: i32) -> (i32, i32) {
    %c0_i32 = arith.constant 0 : i32
    %c0_i32_0 = arith.constant 0 : i32
    %c0_i32_1 = arith.constant 0 : i32
    return %c0_i32, %c0_i32_0 : i32, i32
  }
  func.func @transform_29(%arg0: i32) -> (i32, i32) {
    %c0_i32 = arith.constant 0 : i32
    %c0_i32_0 = arith.constant 0 : i32
    %c0_i32_1 = arith.constant 0 : i32
    return %c0_i32, %c0_i32_0 : i32, i32
  }
  func.func @transform_30(%arg0: i32) -> (i32, i32, i32) {
    %c0_i32 = arith.constant 0 : i32
    %c0_i32_0 = arith.constant 0 : i32
    %c0_i32_1 = arith.constant 0 : i32
    %c0_i32_2 = arith.constant 0 : i32
    return %c0_i32, %c0_i32_0, %c0_i32_1 : i32, i32, i32
  }
  func.func @transform_31(%arg0: i32) -> (i32, i32, i32) {
    %c0_i32 = arith.constant 0 : i32
    %c0_i32_0 = arith.constant 0 : i32
    %c0_i32_1 = arith.constant 0 : i32
    %c0_i32_2 = arith.constant 0 : i32
    return %c0_i32, %c0_i32_0, %c0_i32_1 : i32, i32, i32
  }
  func.func @transform_32(%arg0: i32) -> (i32, i32, i32) {
    %c0_i32 = arith.constant 0 : i32
    %c0_i32_0 = arith.constant 0 : i32
    %c0_i32_1 = arith.constant 0 : i32
    %c0_i32_2 = arith.constant 0 : i32
    return %c0_i32, %c0_i32_0, %c0_i32_1 : i32, i32, i32
  }
  func.func @transform_33(%arg0: i32) -> (i32, i32, i32) {
    %c0_i32 = arith.constant 0 : i32
    %c0_i32_0 = arith.constant 0 : i32
    %c0_i32_1 = arith.constant 0 : i32
    %c0_i32_2 = arith.constant 0 : i32
    return %c0_i32, %c0_i32_0, %c0_i32_1 : i32, i32, i32
  }
  func.func @transform_34(%arg0: i32) -> (i32, i32) {
    %c0_i32 = arith.constant 0 : i32
    %c0_i32_0 = arith.constant 0 : i32
    %c0_i32_1 = arith.constant 0 : i32
    return %c0_i32, %c0_i32_0 : i32, i32
  }
  func.func @transform_35(%arg0: i32) -> (i32, i32) {
    %c0_i32 = arith.constant 0 : i32
    %c0_i32_0 = arith.constant 0 : i32
    %c0_i32_1 = arith.constant 0 : i32
    return %c0_i32, %c0_i32_0 : i32, i32
  }
  func.func @transform_36(%arg0: i32) -> (i32, i32) {
    %c0_i32 = arith.constant 0 : i32
    %c0_i32_0 = arith.constant 0 : i32
    %c0_i32_1 = arith.constant 0 : i32
    return %c0_i32, %c0_i32_0 : i32, i32
  }
  func.func @transform_37(%arg0: i32) -> (i32, i32) {
    %c0_i32 = arith.constant 0 : i32
    %c0_i32_0 = arith.constant 0 : i32
    %c0_i32_1 = arith.constant 0 : i32
    return %c0_i32, %c0_i32_0 : i32, i32
  }
}

</mosaic_0001>

<bundles_post_ra>
// kernel: run_brits.1
= control target key start
LH: loop header
LB: loop body
LE: loop exit
PB: predicated region body
PF: predicated region fallthrough
CT: control target
= control target key end

     0   :  { %s7525_s6 = smov 1   ;;  %s7526_s10 = smov 2   ;;  %s9317_s0 = inlined_call_operand.smem [shape: u32[38], index: -1, kind: input, shape index: {}] }
   0x1   :  { %s7578_s5 = sld [smem:[%s9317_s0]]   ;;  %s7527_s14 = smov 3  }
   0x2   :  { %s7583_s9 = sld [smem:[%s9317_s0 + %s7525_s6]]   ;;  %s7528_s18 = smov 4  }
   0x3   :  { %s7588_s13 = sld [smem:[%s9317_s0 + %s7526_s10]]   ;;  %s7529_s22 = smov 5  }
   0x4   :  { %s7593_s17 = sld [smem:[%s9317_s0 + %s7527_s14]]   ;;  %s7530_s26 = smov 6  }
   0x5   :  { %s7598_s21 = sld [smem:[%s9317_s0 + %s7528_s18]]   ;;  %s7531_s30 = smov 7  }
   0x6   :  { %s7603_s25 = sld [smem:[%s9317_s0 + %s7529_s22]]   ;;  %s7532_s4 = smov 8  }
   0x7   :  { %s7608_s29 = sld [smem:[%s9317_s0 + %s7530_s26]]   ;;  %s7533_s10 = smov 9  }
   0x8   :  { %s7613_s3 = sld [smem:[%s9317_s0 + %s7531_s30]]   ;;  %s7534_s15 = smov 10  }
   0x9   :  { %s7618_s8 = sld [smem:[%s9317_s0 + %s7532_s4]]   ;;  %s7535_s20 = smov 11  }
   0xa   :  { %s7623_s14 = sld [smem:[%s9317_s0 + %s7533_s10]]   ;;  %s7536_s26 = smov 12  }
   0xb   :  { %s7628_s19 = sld [smem:[%s9317_s0 + %s7534_s15]]   ;;  %s7537_s1 = smov 13  }
   0xc   :  { %9339 = sst [smem:[#allocation20_spill]] %s7603_s25  ;;  %s7538_s7 = smov 14  }
   0xd   :  { %s7633_s24 = sld [smem:[%s9317_s0 + %s7535_s20]]   ;;  %s7539_s15 = smov 15  }
   0xe   :  { %s7638_s30 = sld [smem:[%s9317_s0 + %s7536_s26]]   ;;  %s7540_s22 = smov 16  }
   0xf   :  { %9340 = sst [smem:[#allocation21_spill]] %s7618_s8  ;;  %s7541_s28 = smov 17  }
  0x10   :  { %9341 = sst [smem:[#allocation22_spill]] %s7623_s14 }
  0x11   :  { %9342 = sst [smem:[#allocation23_spill]] %s7628_s19 }
  0x12   :  { %s7643_s6 = sld [smem:[%s9317_s0 + %s7537_s1]]  }
  0x13   :  { %9343 = sst [smem:[#allocation24_spill]] %s7633_s24 }
  0x14   :  { %s7648_s12 = sld [smem:[%s9317_s0 + %s7538_s7]]   ;;  %s7542_s7 = smov 18  }
  0x15   :  { %s7653_s20 = sld [smem:[%s9317_s0 + %s7539_s15]]   ;;  %s7543_s15 = smov 19  }
  0x16   :  { %s7658_s27 = sld [smem:[%s9317_s0 + %s7540_s22]]   ;;  %s7544_s22 = smov 20  }
  0x17   :  { %s7663_s4 = sld [smem:[%s9317_s0 + %s7541_s28]]   ;;  %s7545_s28 = smov 21  }
  0x18   :  { %s7668_s24 = sld [smem:[%s9317_s0 + %s7542_s7]]   ;;  %s7546_s7 = smov 22  }
  0x19   :  { %s7678_s14 = sld [smem:[%s9317_s0 + %s7544_s22]]   ;;  %s7548_s22 = smov 24  }
  0x1a   :  { %9344 = sst [smem:[#allocation25_spill]] %s7648_s12 }
  0x1b   :  { %9345 = sst [smem:[#allocation26_spill]] %s7653_s20 }
  0x1c   :  { %9346 = sst [smem:[#allocation27_spill]] %s7658_s27 }
  0x1d   :  { %s7673_s20 = sld [smem:[%s9317_s0 + %s7543_s15]]   ;;  %s7547_s15 = smov 23  }
  0x1e   :  { %9347 = sst [smem:[#allocation28_spill]] %s7668_s24 }
  0x1f   :  { %s7683_s12 = sld [smem:[%s9317_s0 + %s7545_s28]]   ;;  %s7549_s28 = smov 25  }
  0x20   :  { %s7688_s24 = sld [smem:[%s9317_s0 + %s7546_s7]]   ;;  %s7550_s7 = smov 26  }
  0x21   :  { %s7693_s27 = sld [smem:[%s9317_s0 + %s7547_s15]]   ;;  %s7551_s15 = smov 27  }
  0x22   :  { %s7698_s25 = sld [smem:[%s9317_s0 + %s7548_s22]]   ;;  %s7552_s22 = smov 28  }
  0x25   :  { %9348 = sst [smem:[#allocation29_spill]] %s7683_s12 }
  0x26   :  { %9349 = sst [smem:[#allocation30_spill]] %s7688_s24 }
  0x27   :  { %9350 = sst [smem:[#allocation31_spill]] %s7693_s27 }
  0x28   :  { %9351 = sst [smem:[#allocation32_spill]] %s7698_s25 }
  0x29   :  { %s7703_s12 = sld [smem:[%s9317_s0 + %s7549_s28]]   ;;  %s7553_s28 = smov 29  }
  0x2a   :  { %s7708_s24 = sld [smem:[%s9317_s0 + %s7550_s7]]   ;;  %s7554_s7 = smov 30  }
  0x2b   :  { %s7713_s27 = sld [smem:[%s9317_s0 + %s7551_s15]]   ;;  %s7555_s15 = smov 31  }
  0x2c   :  { %s7718_s25 = sld [smem:[%s9317_s0 + %s7552_s22]]   ;;  %s7556_s22 = smov 32  }
  0x2d   :  { %s7723_s19 = sld [smem:[%s9317_s0 + %s7553_s28]]   ;;  %s7557_s28 = smov 33  }
  0x2e   :  { %s7728_s8 = sld [smem:[%s9317_s0 + %s7554_s7]]   ;;  %s7558_s7 = smov 34  }
  0x31   :  { %9352 = sst [smem:[#allocation33_spill]] %s7713_s27 }
  0x32   :  { %9353 = sst [smem:[#allocation34_spill]] %s7718_s25 }
  0x33   :  { %9354 = sst [smem:[#allocation35_spill]] %s7723_s19 }
  0x34   :  { %9355 = sst [smem:[#allocation36_spill]] %s7728_s8 }
  0x35   :  { %s7733_s27 = sld [smem:[%s9317_s0 + %s7555_s15]]   ;;  %s7559_s15 = smov 35  }
  0x36   :  { %s7738_s25 = sld [smem:[%s9317_s0 + %s7556_s22]]   ;;  %s7560_s22 = smov 36  }
  0x37   :  { %s7743_s19 = sld [smem:[%s9317_s0 + %s7557_s28]]   ;;  %s7561_s28 = smov 37  }
  0x38   :  { %s7748_s8 = sld [smem:[%s9317_s0 + %s7558_s7]]  }
  0x3b   :  { %9356 = sst [smem:[#allocation37_spill]] %s7733_s27 }
  0x3c   :  { %9357 = sst [smem:[#allocation38_spill]] %s7738_s25 }
  0x3d   :  { %9358 = sst [smem:[#allocation39_spill]] %s7743_s19 }
  0x3e   :  { %s7753_s27 = sld [smem:[%s9317_s0 + %s7559_s15]]  }
  0x3f   :  { %s7758_s25 = sld [smem:[%s9317_s0 + %s7560_s22]]  }
  0x40   :  { %s7763_s19 = sld [smem:[%s9317_s0 + %s7561_s28]]  }
  0x41   :  { %81 = vsyncpa [#allocation14], 0  ;;  %v176_v0 = vld [vmem:[%s7598_s21 + $0x8] sm:$0xff]  ;;  %v175_v1 = vld [vmem:[%s7598_s21] sm:$0xff]  ;;  %vm184_vm0 = vcmask 130048   ;;  %v9332_v11 = vmov 0.0  }
  0x42   :  { %v159_v2 = vld [vmem:[%s7588_s13] sm:$0xff]  ;;  %6834 = vmatprep.subr.mxu0 %v176_v0  ;;  %v160_v5 = vld [vmem:[%s7588_s13 + $0x8] sm:$0xff]  ;;  %v420_v8 = vld [vmem:[%s7643_s6 + $0x18] sm:$0xff]  ;;  %509 = vmatprep.mubr.f32.mxu1 %v9332_v11 }
  0x43   :  { %6838 = vmatprep.mubr.msk.f32.mxu0 %vm184_vm0, %v159_v2  ;;  %v7770_v3 = vld [vmem:[%s7608_s29] ss:$0 sm:$0xff]  ;;  %6835 = vmatpush3.msra.mxu0 %v176_v0  ;;  %v419_v9 = vld [vmem:[%s7643_s6 + $0x10] sm:$0xff]  ;;  %v418_v10 = vld [vmem:[%s7643_s6 + $0x8] sm:$0xff] }
  0x44   :  { %v7773_v4 = vld [vmem:[%s7613_s3] ss:$0 sm:$0xff]  ;;  %v362_v6 = vmul.f32 %v7770_v3, %v159_v2  ;;  %v363_v7 = vmul.f32 %v7770_v3, %v160_v5  ;;  %6836 = vmatprep.subr.mxu0 %v175_v1  ;;  %473 = vmatprep.subr.mxu1 %v420_v8  ;;  %v582_v19 = vld [vmem:[%s7638_s30 + $0x8] sm:$0xff]  ;;  %v161_v20 = vld [vmem:[%s7588_s13 + $0x10] sm:$0xff] }
  0x45   :  { %v417_v12 = vld [vmem:[%s7643_s6] sm:$0xff]  ;;  %6837 = vmatpush3.msra.mxu0 %v175_v1  ;;  %474 = vmatpush1.msra.mxu1 %v419_v9  ;;  %v162_v21 = vld [vmem:[%s7588_s13 + $0x18] sm:$0xff]  ;;  %v364_v22 = vmul.f32 %v7770_v3, %v161_v20  ;;  %v144_v24 = vld [vmem:[%s7578_s5 + $0x8] sm:$0xff] }
  0x46   :  { %v143_v13 = vld [vmem:[%s7578_s5] sm:$0xff]  ;;  %v377_v15 = vadd.f32 %v7773_v4, %v362_v6  ;;  %v378_v16 = vadd.f32 %v7773_v4, %v363_v7  ;;  %6839 = vmatmul.mubr.msk.f32.vlgmr.msra.gmra.mxu0 %vm184_vm0, %v160_v5  ;;  %475 = vmatprep.subr.mxu1 %v418_v10  ;;  %v365_v23 = vmul.f32 %v7770_v3, %v162_v21  ;;  %v7799_v25 = vld [vmem:[%s7583_s9 + $0x8] sm:$0xff]  ;;  %v145_v32 = vld [vmem:[%s7578_s5 + $0x10] sm:$0xff] }
  0x47   :  { %v7785_v14 = vld [vmem:[%s7583_s9] sm:$0xff]  ;;  %476 = vmatpush1.msra.mxu1 %v417_v12  ;;  %6850 = vmatprep.subr.mxu0 %v582_v19  ;;  %v1366_v29 = vmul.f32 %v7799_v25, %v144_v24  ;;  %v1382_v30 = vsub.f32 1.0, %v7799_v25  ;;  %v164_v31 = vld [vmem:[%s7588_s13 + $0x28] sm:$0xff]  ;;  %v7809_v33 = vld [vmem:[%s7583_s9 + $0x10] sm:$0xff]  ;;  %v379_v34 = vadd.f32 %v7773_v4, %v364_v22 }
  0x48   :  { %v1365_v17 = vmul.f32 %v7785_v14, %v143_v13  ;;  %v1381_v18 = vsub.f32 1.0, %v7785_v14  ;;  %v163_v26 = vld [vmem:[%s7588_s13 + $0x20] sm:$0xff]  ;;  %v385_v27 = vmax.f32 %v377_v15, 0.0  ;;  %v386_v28 = vmax.f32 %v378_v16, 0.0  ;;  %6539 = vmatmul.mubr.msk.f32.vlgmr.msra.gmra.mxu1 %vm184_vm0, %v7785_v14  ;;  %6851 = vmatpush3.msra.mxu0 %v582_v19  ;;  %v165_v39 = vld [vmem:[%s7588_s13 + $0x30] sm:$0xff]  ;;  %v7820_v40 = vld [vmem:[%s7588_s13 + $0x38] sm:$0xff] }
  0x49   :  { %v380_v35 = vadd.f32 %v7773_v4, %v365_v23  ;;  %v366_v36 = vmul.f32 %v7770_v3, %v163_v26  ;;  %v1383_v37 = vsub.f32 1.0, %v7809_v33  ;;  %v581_v38 = vld [vmem:[%s7638_s30] sm:$0xff]  ;;  %6841 = vmatprep.mubr.msk.f32.mxu0 %vm184_vm0, %v161_v20  ;;  %515 = vmatprep.mubr.f32.mxu1 %v9332_v11  ;;  %1374 = vst.msk [vmem:[#allocation8 + $0x8] sm:$0xff] %vm184_vm0, %v1366_v29  ;;  %1390 = vst.msk [vmem:[#allocation9 + $0x8] sm:$0xff] %vm184_vm0, %v1382_v30  ;;  %v146_v49 = vld [vmem:[%s7578_s5 + $0x18] sm:$0xff] }
  0x4a   :  { %1373 = vst.msk [vmem:[#allocation8] sm:$0xff] %vm184_vm0, %v1365_v17  ;;  %1389 = vst.msk [vmem:[#allocation9] sm:$0xff] %vm184_vm0, %v1381_v18  ;;  %v393_v41 = vsub.f32 0.0, %v385_v27  ;;  %v394_v42 = vsub.f32 0.0, %v386_v28  ;;  %v367_v43 = vmul.f32 %v7770_v3, %v164_v31  ;;  %v1367_v44 = vmul.f32 %v7809_v33, %v145_v32  ;;  %6842 = vmatmul.mubr.msk.f32.gmra.mxu0 %vm184_vm0, %v162_v21  ;;  %v7834_v50 = vld [vmem:[%s7663_s4 + $0x8] sm:$0xff]  ;;  %v7845_v59 = vld [vmem:[%s7583_s9 + $0x18] sm:$0xff] }
  0x4b   :  { %v387_v45 = vmax.f32 %v379_v34, 0.0  ;;  %v388_v46 = vmax.f32 %v380_v35, 0.0  ;;  %v381_v47 = vadd.f32 %v7773_v4, %v366_v36  ;;  %1391 = vst.msk [vmem:[#allocation9 + $0x10] sm:$0xff] %vm184_vm0, %v1383_v37  ;;  %6852 = vmatprep.subr.mxu0 %v581_v38  ;;  %v368_v48 = vmul.f32 %v7770_v3, %v165_v39  ;;  %6844 = vmatprep.mubr.msk.f32.mxu0 %vm184_vm0, %v163_v26  ;;  %v147_v60 = vld [vmem:[%s7578_s5 + $0x20] sm:$0xff]  ;;  %v148_v1 = vld [vmem:[%s7578_s5 + $0x28] sm:$0xff]  ;;  %v149_v2 = vld [vmem:[%s7578_s5 + $0x30] sm:$0xff] }
  0x4c   :  { %v401_v51 = vmul.f32 1.442695, %v393_v41  ;;  %v403_v52 = vmul.f32 1.442695, %v394_v42  ;;  %v382_v53 = vadd.f32 %v7773_v4, %v367_v43  ;;  %1375 = vst.msk [vmem:[#allocation8 + $0x10] sm:$0xff] %vm184_vm0, %v1367_v44  ;;  %6853 = vmatpush3.msra.mxu0 %v581_v38  ;;  %v369_v54 = vmul.f32 %v7770_v3, %v7820_v40  ;;  %6540 = vmatmul.mubr.msk.f32.gmra.mxu1 %vm184_vm0, %v7799_v25  ;;  %v7853_v0 = vld [vmem:[%s7583_s9 + $0x20] sm:$0xff] }
  0x4d   :  { %v395_v55 = vsub.f32 0.0, %v387_v45  ;;  %v396_v56 = vsub.f32 0.0, %v388_v46  ;;  %v389_v57 = vmax.f32 %v381_v47, 0.0  ;;  %v383_v58 = vadd.f32 %v7773_v4, %v368_v48  ;;  %6866 = vmatprep.subr.mxu0 %v7834_v50  ;;  %521 = vmatprep.mubr.f32.mxu1 %v9332_v11  ;;  %v1026_v3 = vld [vmem:[%s7708_s24 + $0x18] sm:$0xff]  ;;  %v1025_v5 = vld [vmem:[%s7708_s24 + $0x10] sm:$0xff]  ;;  %v1024_v9 = vld [vmem:[%s7708_s24 + $0x8] sm:$0xff] }
  0x4e   :  { %7171 = vpow2.f32 %v401_v51  ;;  %v390_v61 = vmax.f32 %v382_v53, 0.0  ;;  %v384_v62 = vadd.f32 %v7773_v4, %v369_v54  ;;  %v1368_v63 = vmul.f32 %v7845_v59, %v146_v49  ;;  %6845 = vmatmul.mubr.msk.f32.gmra.mxu0 %vm184_vm0, %v164_v31  ;;  %1055 = vmatprep.subr.mxu1 %v1026_v3 }
  0x4f   :  { %7173 = vpow2.f32 %v403_v52  ;;  %v405_v6 = vmul.f32 1.442695, %v395_v55  ;;  %v407_v7 = vmul.f32 1.442695, %v396_v56  ;;  %v397_v8 = vsub.f32 0.0, %v389_v57  ;;  %6847 = vmatprep.mubr.msk.f32.mxu0 %vm184_vm0, %v165_v39  ;;  %1056 = vmatpush1.msra.mxu1 %v1025_v5 }
  0x50   :  { %v398_v10 = vsub.f32 0.0, %v390_v61  ;;  %v391_v4 = vmax.f32 %v383_v58, 0.0  ;;  %v392_v12 = vmax.f32 %v384_v62, 0.0  ;;  %1376 = vst.msk [vmem:[#allocation8 + $0x18] sm:$0xff] %vm184_vm0, %v1368_v63  ;;  %v1384_v13 = vsub.f32 1.0, %v7845_v59 }
  0x51   :  { %82 = vsyncpa [#allocation16], 0  ;;  %7175 = vpow2.f32 %v405_v6  ;;  %v409_v15 = vmul.f32 1.442695, %v397_v8  ;;  %6541 = vmatmul.mubr.msk.f32.gmra.mxu1 %vm184_vm0, %v7809_v33  ;;  %v1369_v16 = vmul.f32 %v7853_v0, %v147_v60  ;;  %v1385_v17 = vsub.f32 1.0, %v7853_v0  ;;  %v7869_v18 = vld [vmem:[%s7583_s9 + $0x28] sm:$0xff]  ;;  %1057 = vmatprep.subr.mxu1 %v1024_v9 }
  0x52   :  { %7177 = vpow2.f32 %v407_v7  ;;  %v411_v19 = vmul.f32 1.442695, %v398_v10  ;;  %v399_v20 = vsub.f32 0.0, %v391_v4  ;;  %527 = vmatprep.mubr.f32.mxu1 %v9332_v11  ;;  %v400_v21 = vsub.f32 0.0, %v392_v12  ;;  %1392 = vst.msk [vmem:[#allocation9 + $0x18] sm:$0xff] %vm184_vm0, %v1384_v13  ;;  %v7874_v22 = vld [vmem:[%s7583_s9 + $0x30] sm:$0xff]  ;;  %6848 = vmatmul.mubr.msk.f32.gmra.mxu0 %vm184_vm0, %v7820_v40 }
  0x53   :  { %v150_v23 = vld [vmem:[%s7578_s5 + $0x38] sm:$0xff]  ;;  %7179 = vpow2.f32 %v409_v15  ;;  %1377 = vst.msk [vmem:[#allocation8 + $0x20] sm:$0xff] %vm184_vm0, %v1369_v16  ;;  %1393 = vst.msk [vmem:[#allocation9 + $0x20] sm:$0xff] %vm184_vm0, %v1385_v17  ;;  %v1370_v24 = vmul.f32 %v7869_v18, %v148_v1  ;;  %v1386_v26 = vsub.f32 1.0, %v7869_v18  ;;  %v1371_v27 = vmul.f32 %v7874_v22, %v149_v2  ;;  %v783_v37 = vld [vmem:[%s7663_s4] sm:$0xff]  ;;  %s9359_s0 = sld [smem:[#allocation21_spill]] }
  0x54   :  { %v413_v28 = vmul.f32 1.442695, %v399_v20  ;;  %v1387_v29 = vsub.f32 1.0, %v7874_v22  ;;  %v7886_v30 = vld [vmem:[%s7583_s9 + $0x38] sm:$0xff]  ;;  %7181 = vpow2.f32 %v411_v19  ;;  %v415_v31 = vmul.f32 1.442695, %v400_v21 }
  0x55   :  { %6542 = vmatmul.mubr.msk.f32.gmra.mxu1 %vm184_vm0, %v7845_v59  ;;  %1378 = vst.msk [vmem:[#allocation8 + $0x28] sm:$0xff] %vm184_vm0, %v1370_v24  ;;  %1394 = vst.msk [vmem:[#allocation9 + $0x28] sm:$0xff] %vm184_vm0, %v1386_v26  ;;  %v1372_v32 = vmul.f32 %v7886_v30, %v150_v23  ;;  %v1388_v34 = vsub.f32 1.0, %v7886_v30  ;;  %v167_v44 = vld [vmem:[%s7593_s17] sm:$0xff]  ;;  %v168_v47 = vld [vmem:[%s7593_s17 + $0x8] sm:$0xff]  ;;  %s9360_s13 = sld [smem:[#allocation23_spill]] }
  0x56   :  { %1379 = vst.msk [vmem:[#allocation8 + $0x30] sm:$0xff] %vm184_vm0, %v1371_v27  ;;  %7183 = vpow2.f32 %v413_v28  ;;  %533 = vmatprep.mubr.f32.mxu1 %v9332_v11  ;;  %1395 = vst.msk [vmem:[#allocation9 + $0x30] sm:$0xff] %vm184_vm0, %v1387_v29  ;;  %v6574_v45 = vld [vmem:[%s7673_s20] ss:$0 sm:$0xff]  ;;  %v169_v52 = vld [vmem:[%s7593_s17 + $0x10] sm:$0xff]  ;;  %s9362_s21 = sld [smem:[#allocation27_spill]] }
  0x57   :  { %1380 = vst.msk [vmem:[#allocation8 + $0x38] sm:$0xff] %vm184_vm0, %v1372_v32  ;;  %1396 = vst.msk [vmem:[#allocation9 + $0x38] sm:$0xff] %vm184_vm0, %v1388_v34  ;;  %7185 = vpow2.f32 %v415_v31  ;;  %v968_v46 = vmul.f32 %v6574_v45, %v167_v44  ;;  %v6575_v48 = vld [vmem:[%s7678_s14] ss:$0 sm:$0xff]  ;;  %v969_v49 = vmul.f32 %v6574_v45, %v168_v47  ;;  %v970_v54 = vmul.f32 %v6574_v45, %v169_v52  ;;  %v170_v55 = vld [vmem:[%s7593_s17 + $0x18] sm:$0xff]  ;;  %s9363_s29 = sld [smem:[#allocation25_spill]] }
  0x58   :  { %v971_v57 = vmul.f32 %v6574_v45, %v170_v55  ;;  %v1023_v61 = vld [vmem:[%s7708_s24] sm:$0xff]  ;;  %v172_v6 = vld [vmem:[%s7593_s17 + $0x28] sm:$0xff]  ;;  %v173_v15 = vld [vmem:[%s7593_s17 + $0x30] sm:$0xff]  ;;  %vm346_vm1 = vcmask 261120   ;;  %s9364_s3 = sld [smem:[#allocation28_spill]]  ;;  %vm7563_vm2 = vmmov 0  }
  0x59   :  { %6543 = vmatmul.mubr.msk.f32.gmra.mxu1 %vm184_vm0, %v7853_v0  ;;  %v984_v51 = vadd.f32 %v6575_v48, %v969_v49  ;;  %v985_v60 = vadd.f32 %v6575_v48, %v970_v54  ;;  %v171_v1 = vld [vmem:[%s7593_s17 + $0x20] sm:$0xff]  ;;  %v973_v9 = vmul.f32 %v6574_v45, %v172_v6  ;;  %v174_v19 = vld [vmem:[%s7593_s17 + $0x38] sm:$0xff]  ;;  %v7989_v49 = vld [vmem:[%s9359_s0 + $0x10] sm:$0xff]  ;;  %s9361_s17 = sld [smem:[#allocation20_spill]]  ;;  %s7564_s18 = smov 64   ;;  %vm6302_vm3 = vcmask 0  }
  0x5a   :  { %539 = vmatprep.mubr.f32.mxu1 %v9332_v11  ;;  %v986_v63 = vadd.f32 %v6575_v48, %v971_v57  ;;  %1058 = vmatpush1.msra.mxu1 %v1023_v61  ;;  %v972_v5 = vmul.f32 %v6574_v45, %v171_v1  ;;  %v975_v23 = vmul.f32 %v6574_v45, %v174_v19  ;;  %s9365_s14 = sld [smem:[#allocation35_spill]]  ;;  %s7565_s22 = smov 32  }
  0x5b   :  { %v7172_v35 = vpop.eup %7171  ;;  %v992_v56 = vmax.f32 %v984_v51, 0.0  ;;  %v993_v3 = vmax.f32 %v985_v60, 0.0  ;;  %6898 = vmatprep.subr.mxu1 %v9332_v11  ;;  %v988_v13 = vadd.f32 %v6575_v48, %v973_v9  ;;  %v8009_v51 = vld [vmem:[%s9360_s13 + $0x8] sm:$0xff]  ;;  %s9367_s24 = sld [smem:[#allocation33_spill]]  ;;  %s7566_s23 = smov 96  }
  0x5c   :  { %v7174_v36 = vpop.eup %7173  ;;  %6854 = vmatprep.mubr.msk.f32.mxu0 %vm184_vm0, %v7172_v35  ;;  %v994_v8 = vmax.f32 %v986_v63, 0.0  ;;  %v987_v4 = vadd.f32 %v6575_v48, %v972_v5  ;;  %v990_v28 = vadd.f32 %v6575_v48, %v975_v23  ;;  %s9368_s30 = sld [smem:[#allocation29_spill]]  ;;  %s7568_s2 = smov [#allocation13]  }
  0x5d   :  { %6855 = vmatmul.mubr.msk.f32.vlgmr.msra.gmra.mxu0 %vm184_vm0, %v7174_v36  ;;  %6544 = vmatmul.mubr.msk.f32.gmra.mxu1 %vm184_vm0, %v7869_v18  ;;  %v1000_v62 = vsub.f32 0.0, %v992_v56  ;;  %v1001_v10 = vsub.f32 0.0, %v993_v3  ;;  %v996_v21 = vmax.f32 %v988_v13, 0.0  ;;  %v1164_v36 = vld [vmem:[%s7703_s12 + $0x8] sm:$0xff]  ;;  %s9369_s6 = sld [smem:[#allocation22_spill]] }
  0x5e   :  { %v7176_v38 = vpop.eup %7175  ;;  %6867 = vmatpush3.msra.mxu0 %v7834_v50  ;;  %545 = vmatprep.mubr.f32.mxu1 %v9332_v11  ;;  %v983_v50 = vadd.f32 %v6575_v48, %v968_v46  ;;  %v1002_v12 = vsub.f32 0.0, %v994_v8  ;;  %v995_v17 = vmax.f32 %v987_v4, 0.0  ;;  %s9371_s20 = sld [smem:[#allocation24_spill]] }
  0x5f   :  { %v7178_v39 = vpop.eup %7177  ;;  %6857 = vmatprep.mubr.msk.f32.mxu0 %vm184_vm0, %v7176_v38  ;;  %6868 = vmatprep.subr.mxu0 %v783_v37  ;;  %v1009_v7 = vmul.f32 1.442695, %v1000_v62  ;;  %v1011_v16 = vmul.f32 1.442695, %v1001_v10  ;;  %v1004_v27 = vsub.f32 0.0, %v996_v21  ;;  %s9372_s4 = sld [smem:[#allocation30_spill]] }
  0x60   :  { %v7180_v40 = vpop.eup %7179  ;;  %6869 = vmatpush3.msra.mxu0 %v783_v37  ;;  %v991_v53 = vmax.f32 %v983_v50, 0.0  ;;  %v1013_v20 = vmul.f32 1.442695, %v1002_v12  ;;  %v1003_v24 = vsub.f32 0.0, %v995_v17  ;;  %v8001_v50 = vld [vmem:[%s9359_s0] sm:$0xff]  ;;  %s9373_s7 = sld [smem:[#allocation38_spill]] }
  0x61   :  { %6858 = vmatmul.mubr.msk.f32.gmra.mxu0 %vm184_vm0, %v7178_v39  ;;  %6545 = vmatmul.mubr.msk.f32.gmra.mxu1 %vm184_vm0, %v7874_v22  ;;  %v7182_v41 = vpop.eup %7181  ;;  %v1017_v32 = vmul.f32 1.442695, %v1004_v27  ;;  %v1163_v39 = vld [vmem:[%s7703_s12] sm:$0xff]  ;;  %s9370_s12 = sld [smem:[#allocation26_spill]] }
  0x62   :  { %6860 = vmatprep.mubr.msk.f32.mxu0 %vm184_vm0, %v7180_v40  ;;  %551 = vmatprep.mubr.f32.mxu1 %v9332_v11  ;;  %v999_v58 = vsub.f32 0.0, %v991_v53  ;;  %v1015_v29 = vmul.f32 1.442695, %v1003_v24  ;;  %v8015_v53 = vld [vmem:[%s9360_s13] sm:$0xff]  ;;  %s9374_s10 = sld [smem:[#allocation31_spill]] }
  0x63   :  { %v7184_v42 = vpop.eup %7183  ;;  %6882 = vmatprep.subr.mxu0 %v1164_v36  ;;  %s9375_s11 = sld [smem:[#allocation34_spill]] }
  0x64   :  { %v7186_v43 = vpop.eup %7185  ;;  %v1007_v2 = vmul.f32 1.442695, %v999_v58  ;;  %s9376_s15 = sld [smem:[#allocation32_spill]] }
  0x65   :  { %6861 = vmatmul.mubr.msk.f32.gmra.mxu0 %vm184_vm0, %v7182_v41  ;;  %6546 = vmatmul.mubr.msk.f32.gmra.mxu1 %vm184_vm0, %v7886_v30  ;;  %s9377_s16 = sld [smem:[#allocation39_spill]] }
  0x66   :  { %6863 = vmatprep.mubr.msk.f32.mxu0 %vm184_vm0, %v7184_v42  ;;  %1091 = vmatprep.mubr.f32.mxu1 %v9332_v11  ;;  %7187 = vpow2.f32 %v1007_v2  ;;  %v8023_v2 = vld [vmem:[%s9362_s21] ss:$0 sm:$0xff]  ;;  %s9378_s26 = sld [smem:[#allocation37_spill]] }
  0x67   :  { %7189 = vpow2.f32 %v1009_v7  ;;  %s9379_s28 = sld [smem:[#allocation36_spill]] }
  0x68   :  { %7191 = vpow2.f32 %v1011_v16 }
  0x69   :  { %6864 = vmatmul.mubr.msk.f32.gmra.mxu0 %vm184_vm0, %v7186_v43  ;;  %6576 = vmatmul.mubr.msk.f32.vlgmr.msra.gmra.mxu1 %vm184_vm0, %v7785_v14  ;;  %v974_v14 = vmul.f32 %v6574_v45, %v173_v15  ;;  %7193 = vpow2.f32 %v1013_v20  ;;  %v7967_v43 = vld [vmem:[%s9359_s0 + $0x38] sm:$0xff]  ;;  %v7973_v45 = vld [vmem:[%s9359_s0 + $0x28] sm:$0xff] }
  0x6a   :  { %6870 = vmatprep.mubr.msk.f32.mxu0 %vm184_vm0, %v167_v44  ;;  %1097 = vmatprep.mubr.f32.mxu1 %v9332_v11  ;;  %7195 = vpow2.f32 %v1015_v29  ;;  %v7970_v44 = vld [vmem:[%s9359_s0 + $0x30] sm:$0xff] }
  0x6b   :  { %v989_v26 = vadd.f32 %v6575_v48, %v974_v14  ;;  %7197 = vpow2.f32 %v1017_v32  ;;  %6899 = vmatpush3.msra.mxu1 %v8009_v51 }
  0x6c   :  { %6900 = vmatprep.subr.mxu1 %v9332_v11 }
  0x6d   :  { %6871 = vmatmul.mubr.msk.f32.vlgmr.msra.gmra.mxu0 %vm184_vm0, %v168_v47  ;;  %6577 = vmatmul.mubr.msk.f32.gmra.mxu1 %vm184_vm0, %v7799_v25  ;;  %v997_v31 = vmax.f32 %v989_v26, 0.0  ;;  %v998_v25 = vmax.f32 %v990_v28, 0.0  ;;  %v7985_v47 = vld [vmem:[%s9359_s0 + $0x18] sm:$0xff] }
  0x6e   :  { %6873 = vmatprep.mubr.msk.f32.mxu0 %vm184_vm0, %v169_v52  ;;  %1103 = vmatprep.mubr.f32.mxu1 %v9332_v11 }
  0x6f   :  { %v1005_v34 = vsub.f32 0.0, %v997_v31  ;;  %v1006_v35 = vsub.f32 0.0, %v998_v25  ;;  %6883 = vmatpush3.msra.mxu0 %v1164_v36  ;;  %6901 = vmatpush3.msra.mxu1 %v8015_v53 }
  0x70   :  { %6884 = vmatprep.subr.mxu0 %v1163_v39 }
  0x71   :  { %6874 = vmatmul.mubr.msk.f32.gmra.mxu0 %vm184_vm0, %v170_v55  ;;  %6578 = vmatmul.mubr.msk.f32.gmra.mxu1 %vm184_vm0, %v7809_v33  ;;  %v1019_v37 = vmul.f32 1.442695, %v1005_v34  ;;  %v1021_v38 = vmul.f32 1.442695, %v1006_v35 }
  0x72   :  { %6876 = vmatprep.mubr.msk.f32.mxu0 %vm184_vm0, %v171_v1  ;;  %1109 = vmatprep.mubr.f32.mxu1 %v9332_v11 }
  0x73   :  { %7199 = vpow2.f32 %v1019_v37  ;;  %v7188_v33 = vpop.eup %7187  ;;  %6885 = vmatpush3.msra.mxu0 %v1163_v39 }
  0x74   :  { %7201 = vpow2.f32 %v1021_v38  ;;  %v7190_v40 = vpop.eup %7189  ;;  %1578 = vmatprep.subr.mxu0 %v7967_v43 }
  0x75   :  { %6877 = vmatmul.mubr.msk.f32.gmra.mxu0 %vm184_vm0, %v172_v6  ;;  %6579 = vmatmul.mubr.msk.f32.gmra.mxu1 %vm184_vm0, %v7845_v59  ;;  %v7192_v59 = vpop.eup %7191 }
  0x76   :  { %6879 = vmatprep.mubr.msk.f32.mxu0 %vm184_vm0, %v173_v15  ;;  %1115 = vmatprep.mubr.f32.mxu1 %v9332_v11  ;;  %v7194_v41 = vpop.eup %7193 }
  0x77   :  { %v7196_v42 = vpop.eup %7195 }
  0x79   :  { %6880 = vmatmul.mubr.msk.f32.gmra.mxu0 %vm184_vm0, %v174_v19  ;;  %6580 = vmatmul.mubr.msk.f32.gmra.mxu1 %vm184_vm0, %v7853_v0  ;;  %v7198_v0 = vpop.eup %7197 }
  0x7a   :  { %6886 = vmatprep.mubr.msk.f32.mxu0 %vm184_vm0, %v7188_v33  ;;  %1121 = vmatprep.mubr.f32.mxu1 %v9332_v11 }
  0x7d   :  { %6887 = vmatmul.mubr.msk.f32.vlgmr.msra.gmra.mxu0 %vm184_vm0, %v7190_v40  ;;  %6581 = vmatmul.mubr.msk.f32.gmra.mxu1 %vm184_vm0, %v7869_v18  ;;  %v7980_v18 = vld [vmem:[%s9359_s0 + $0x20] sm:$0xff] }
  0x7e   :  { %6889 = vmatprep.mubr.msk.f32.mxu0 %vm184_vm0, %v7192_v59  ;;  %1127 = vmatprep.mubr.f32.mxu1 %v9332_v11 }
  0x7f   :  { %1579 = vmatpush1.msra.mxu0 %v7970_v44 }
  0x80   :  { %v7200_v46 = vpop.eup %7199  ;;  %1580 = vmatprep.subr.mxu0 %v7973_v45 }
  0x81   :  { %6890 = vmatmul.mubr.msk.f32.gmra.mxu0 %vm184_vm0, %v7194_v41  ;;  %6582 = vmatmul.mubr.msk.f32.gmra.mxu1 %vm184_vm0, %v7874_v22  ;;  %v7202_v48 = vpop.eup %7201  ;;  %v7996_v22 = vld [vmem:[%s9359_s0 + $0x8] sm:$0xff] }
  0x82   :  { %6892 = vmatprep.mubr.msk.f32.mxu0 %vm184_vm0, %v7196_v42  ;;  %1133 = vmatprep.mubr.f32.mxu1 %v9332_v11 }
  0x83   :  { %1581 = vmatpush1.msra.mxu0 %v7980_v18 }
  0x84   :  { %1582 = vmatprep.subr.mxu0 %v7985_v47 }
  0x85   :  { %6893 = vmatmul.mubr.msk.f32.gmra.mxu0 %vm184_vm0, %v7198_v0  ;;  %6583 = vmatmul.mubr.msk.f32.gmra.mxu1 %vm184_vm0, %v7886_v30  ;;  %v6528_v30 = vld [vmem:[%s9361_s17] ss:$0 sm:$0xff] }
  0x86   :  { %6895 = vmatprep.mubr.msk.f32.mxu0 %vm184_vm0, %v7200_v46  ;;  %1583 = vmatpush1.msra.mxu0 %v7989_v49 }
  0x87   :  { %1584 = vmatprep.subr.mxu0 %v7996_v22  ;;  %6902 = vmatprep.mubr.msk.f32.mxu1 %vm7563_vm2, %v9332_v11 }
  0x88   :  { %1585 = vmatpush1.msra.mxu0 %v8001_v50 }
  0x89   :  { %6896 = vmatmul.mubr.msk.f32.gmra.mxu0 %vm184_vm0, %v7202_v48  ;;  %6905 = vmatprep.subr.mxu0 %v9332_v11 }
  0x8a   :  { %1618 = vmatprep.mubr.f32.mxu0 %v9332_v11 }
 0x106   :  { %v6840_v52 = vpop.f32.mrf.mxu0 }
 0x107   :  { %v281_v54 = vadd.f32 %v6840_v52, %v6528_v30 }
 0x108   :  { %v275_v55 = vpop.f32.mrf.mxu0  ;;  %v8018_v56 = vpop.f32.mrf.mxu1 }
 0x109   :  { %v315_v57 = vmax.f32 %v281_v54, 0.0  ;;  %v276_v58 = vadd.f32 %v6528_v30, %v275_v55 }
 0x10a   :  { %v8020_v60 = vpop.f32.mrf.mxu1  ;;  %v6843_v61 = vpop.f32.mrf.mxu0 }
 0x10b   :  { %v323_v62 = vsub.f32 0.0, %v315_v57  ;;  %v314_v63 = vmax.f32 %v276_v58, 0.0  ;;  %v291_v1 = vadd.f32 %v6843_v61, %v6528_v30  ;;  %v8038_v58 = vld [vmem:[%s9363_s29] ss:$0 sm:$0xff] }
 0x10c   :  { %v517_v3 = vpop.f32.mrf.mxu1  ;;  %v285_v5 = vpop.f32.mrf.mxu0 }
 0x10d   :  { %v332_v6 = vmul.f32 1.442695, %v323_v62  ;;  %v322_v7 = vsub.f32 0.0, %v314_v63  ;;  %v317_v8 = vmax.f32 %v291_v1, 0.0  ;;  %v8026_v9 = vadd.f32 %v8023_v2, %v517_v3 }
 0x10e   :  { %v286_v10 = vadd.f32 %v6528_v30, %v285_v5  ;;  %v519_v4 = vpop.f32.mrf.mxu1  ;;  %v6846_v12 = vpop.f32.mrf.mxu0 }
 0x10f   :  { %7203 = vpow2.f32 %v332_v6  ;;  %v330_v13 = vmul.f32 1.442695, %v322_v7  ;;  %v325_v15 = vsub.f32 0.0, %v317_v8  ;;  %v301_v16 = vadd.f32 %v6846_v12, %v6528_v30 }
 0x110   :  { %v316_v17 = vmax.f32 %v286_v10, 0.0  ;;  %v295_v19 = vpop.f32.mrf.mxu0 }
 0x111   :  { %v523_v14 = vpop.f32.mrf.mxu1  ;;  %7205 = vpow2.f32 %v330_v13  ;;  %v336_v20 = vmul.f32 1.442695, %v325_v15  ;;  %v319_v21 = vmax.f32 %v301_v16, 0.0  ;;  %v296_v26 = vadd.f32 %v6528_v30, %v295_v19 }
 0x112   :  { %v8029_v23 = vadd.f32 %v8023_v2, %v523_v14  ;;  %v324_v24 = vsub.f32 0.0, %v316_v17  ;;  %v6849_v28 = vpop.f32.mrf.mxu0 }
 0x113   :  { %v525_v27 = vpop.f32.mrf.mxu1  ;;  %7207 = vpow2.f32 %v336_v20  ;;  %v327_v29 = vsub.f32 0.0, %v319_v21  ;;  %v311_v31 = vadd.f32 %v6849_v28, %v6528_v30  ;;  %v318_v25 = vmax.f32 %v296_v26, 0.0 }
 0x114   :  { %v334_v32 = vmul.f32 1.442695, %v324_v24  ;;  %v305_v35 = vpop.f32.mrf.mxu0 }
 0x115   :  { %v529_v34 = vpop.f32.mrf.mxu1  ;;  %v340_v36 = vmul.f32 1.442695, %v327_v29  ;;  %v321_v37 = vmax.f32 %v311_v31, 0.0  ;;  %v306_v39 = vadd.f32 %v6528_v30, %v305_v35  ;;  %v326_v33 = vsub.f32 0.0, %v318_v25 }
 0x116   :  { %v8032_v38 = vadd.f32 %v8023_v2, %v529_v34  ;;  %7209 = vpow2.f32 %v334_v32 }
 0x117   :  { %v531_v40 = vpop.f32.mrf.mxu1  ;;  %7211 = vpow2.f32 %v340_v36  ;;  %v329_v59 = vsub.f32 0.0, %v321_v37  ;;  %v320_v41 = vmax.f32 %v306_v39, 0.0  ;;  %v338_v42 = vmul.f32 1.442695, %v326_v33 }
 0x119   :  { %v535_v0 = vpop.f32.mrf.mxu1  ;;  %v344_v46 = vmul.f32 1.442695, %v329_v59  ;;  %v328_v48 = vsub.f32 0.0, %v320_v41  ;;  %7213 = vpow2.f32 %v338_v42 }
 0x11a   :  { %v8035_v52 = vadd.f32 %v8023_v2, %v535_v0 }
 0x11b   :  { %v537_v54 = vpop.f32.mrf.mxu1  ;;  %7215 = vpow2.f32 %v344_v46  ;;  %v342_v55 = vmul.f32 1.442695, %v328_v48 }
 0x11c   :  { %v7204_v30 = vpop.eup %7203 }
 0x11d   :  { %v6856_v57 = vpop.f32.mrf.mxu0  ;;  %v541_v61 = vpop.f32.mrf.mxu1  ;;  %348 = vst.msk [vmem:[#allocation2 + $0x8] sm:$0xff] %vm346_vm1, %v7204_v30  ;;  %7217 = vpow2.f32 %v342_v55 }
 0x11e   :  { %v679_v62 = vadd.f32 %v6856_v57, %v519_v4  ;;  %v8042_v63 = vadd.f32 %v8023_v2, %v541_v61  ;;  %v7206_v1 = vpop.eup %7205 }
 0x11f   :  { %v673_v3 = vpop.f32.mrf.mxu0  ;;  %v543_v5 = vpop.f32.mrf.mxu1  ;;  %347 = vst.msk [vmem:[#allocation2] sm:$0xff] %vm346_vm1, %v7206_v1 }
 0x120   :  { %v720_v6 = vadd.f32 %v8038_v58, %v679_v62  ;;  %v674_v7 = vadd.f32 %v673_v3, %v8020_v60  ;;  %v7208_v8 = vpop.eup %7207 }
 0x121   :  { %v6859_v10 = vpop.f32.mrf.mxu0  ;;  %v547_v12 = vpop.f32.mrf.mxu1  ;;  %350 = vst.msk [vmem:[#allocation2 + $0x18] sm:$0xff] %vm346_vm1, %v7208_v8 }
 0x122   :  { %v6558_v13 = vmul.f32 -1.442695, %v720_v6  ;;  %v719_v4 = vadd.f32 %v8038_v58, %v674_v7  ;;  %v689_v15 = vadd.f32 %v6859_v10, %v531_v40  ;;  %v8050_v16 = vadd.f32 %v8023_v2, %v547_v12 }
 0x123   :  { %v683_v17 = vpop.f32.mrf.mxu0  ;;  %v549_v14 = vpop.f32.mrf.mxu1 }
 0x124   :  { %v7210_v19 = vpop.eup %7209  ;;  %7219 = vpow2.f32 %v6558_v13  ;;  %v6557_v20 = vmul.f32 -1.442695, %v719_v4  ;;  %v722_v21 = vadd.f32 %v8038_v58, %v689_v15  ;;  %v684_v60 = vadd.f32 %v683_v17, %v525_v27 }
 0x125   :  { %v7212_v24 = vpop.eup %7211  ;;  %349 = vst.msk [vmem:[#allocation2 + $0x10] sm:$0xff] %vm346_vm1, %v7210_v19  ;;  %v6862_v26 = vpop.f32.mrf.mxu0 }
 0x126   :  { %v553_v28 = vpop.f32.mrf.mxu1  ;;  %352 = vst.msk [vmem:[#allocation2 + $0x28] sm:$0xff] %vm346_vm1, %v7212_v24  ;;  %7221 = vpow2.f32 %v6557_v20  ;;  %v6560_v29 = vmul.f32 -1.442695, %v722_v21  ;;  %v721_v31 = vadd.f32 %v8038_v58, %v684_v60  ;;  %v699_v32 = vadd.f32 %v6862_v26, %v543_v5  ;;  %v1541_v25 = vld [vmem:[#allocation2] sm:$0xff]  ;;  %v7214_v37 = vpop.eup %7213 }
 0x127   :  { %v693_v34 = vpop.f32.mrf.mxu0  ;;  %v8057_v35 = vadd.f32 %v8023_v2, %v553_v28  ;;  %v1542_v27 = vmul.f32 0.0, %v1541_v25  ;;  %351 = vst.msk [vmem:[#allocation2 + $0x20] sm:$0xff] %vm346_vm1, %v7214_v37  ;;  %v8068_v20 = vld [vmem:[%s9364_s3] ss:$0 sm:$0xff] }
 0x128   :  { %v555_v36 = vpop.f32.mrf.mxu1  ;;  %7223 = vpow2.f32 %v6560_v29  ;;  %v6559_v39 = vmul.f32 -1.442695, %v721_v31  ;;  %v724_v33 = vadd.f32 %v8038_v58, %v699_v32  ;;  %v7216_v40 = vpop.eup %7215  ;;  %v694_v59 = vadd.f32 %v693_v34, %v537_v54 }
 0x129   :  { %v6865_v41 = vpop.f32.mrf.mxu0  ;;  %6606 = vmatmul.mubr.msk.f32.vlgmr.msra.gmra.mxu0 %vm346_vm1, %v1542_v27  ;;  %354 = vst.msk [vmem:[#allocation2 + $0x38] sm:$0xff] %vm346_vm1, %v7216_v40 }
 0x12a   :  { %7225 = vpow2.f32 %v6559_v39  ;;  %v6562_v42 = vmul.f32 -1.442695, %v724_v33  ;;  %v709_v0 = vadd.f32 %v6865_v41, %v555_v36  ;;  %v7218_v46 = vpop.eup %7217  ;;  %v723_v48 = vadd.f32 %v8038_v58, %v694_v59  ;;  %v8077_v33 = vld [vmem:[%s9365_s14] ss:$0 sm:$0xff]  ;;  %6909 = vmatprep.mubr.msk.f32.mxu0 %vm7563_vm2, %v9332_v11 }
 0x12b   :  { %v703_v55 = vpop.f32.mrf.mxu0  ;;  %353 = vst.msk [vmem:[#allocation2 + $0x30] sm:$0xff] %vm346_vm1, %v7218_v46 }
 0x12c   :  { %7227 = vpow2.f32 %v6562_v42  ;;  %v726_v30 = vadd.f32 %v8038_v58, %v709_v0  ;;  %v704_v57 = vadd.f32 %v703_v55, %v549_v14  ;;  %v6561_v61 = vmul.f32 -1.442695, %v723_v48  ;;  %v1093_v48 = vpop.f32.mrf.mxu1 }
 0x12d   :  { %v6872_v24 = vpop.f32.mrf.mxu0 }
 0x12e   :  { %v6564_v54 = vmul.f32 -1.442695, %v726_v30  ;;  %v725_v62 = vadd.f32 %v8038_v58, %v704_v57  ;;  %7229 = vpow2.f32 %v6561_v61  ;;  %v888_v28 = vadd.f32 %v6872_v24, %v8068_v20 }
 0x12f   :  { %v882_v29 = vpop.f32.mrf.mxu0  ;;  %v8082_v57 = vadd.f32 %v8077_v33, %v1093_v48 }
 0x130   :  { %7231 = vpow2.f32 %v6564_v54  ;;  %v6563_v1 = vmul.f32 -1.442695, %v725_v62  ;;  %v922_v32 = vmax.f32 %v888_v28, 0.0  ;;  %v883_v25 = vadd.f32 %v8068_v20, %v882_v29  ;;  %v1095_v62 = vpop.f32.mrf.mxu1 }
 0x131   :  { %v7220_v3 = vpop.eup %7219  ;;  %v6875_v34 = vpop.f32.mrf.mxu0  ;;  %9366 = vst [vmem:[#allocation40_spill] sm:$0xff] %v8082_v57 }
 0x132   :  { %v752_v5 = vadd.f32 1.0, %v7220_v3  ;;  %7233 = vpow2.f32 %v6563_v1  ;;  %v930_v37 = vsub.f32 0.0, %v922_v32  ;;  %v921_v27 = vmax.f32 %v883_v25, 0.0 }
 0x133   :  { %v7222_v6 = vpop.eup %7221  ;;  %v898_v39 = vadd.f32 %v6875_v34, %v8068_v20  ;;  %v892_v40 = vpop.f32.mrf.mxu0 }
 0x134   :  { %7235 = vrcp.f32 %v752_v5  ;;  %v751_v7 = vadd.f32 1.0, %v7222_v6  ;;  %v939_v41 = vmul.f32 1.442695, %v930_v37  ;;  %v929_v42 = vsub.f32 0.0, %v921_v27 }
 0x135   :  { %v7224_v8 = vpop.eup %7223  ;;  %v924_v0 = vmax.f32 %v898_v39, 0.0  ;;  %v893_v46 = vadd.f32 %v8068_v20, %v892_v40  ;;  %v6878_v55 = vpop.f32.mrf.mxu0 }
 0x136   :  { %7237 = vrcp.f32 %v751_v7  ;;  %v754_v10 = vadd.f32 1.0, %v7224_v8  ;;  %v937_v61 = vmul.f32 1.442695, %v929_v42  ;;  %v908_v3 = vadd.f32 %v6878_v55, %v8068_v20 }
 0x137   :  { %v7226_v12 = vpop.eup %7225  ;;  %v932_v54 = vsub.f32 0.0, %v924_v0  ;;  %v923_v1 = vmax.f32 %v893_v46, 0.0  ;;  %v902_v5 = vpop.f32.mrf.mxu0 }
 0x138   :  { %7239 = vrcp.f32 %v754_v10  ;;  %v753_v13 = vadd.f32 1.0, %v7226_v12  ;;  %v903_v7 = vadd.f32 %v8068_v20, %v902_v5  ;;  %v1099_v10 = vpop.f32.mrf.mxu1 }
 0x139   :  { %v7228_v4 = vpop.eup %7227  ;;  %v943_v6 = vmul.f32 1.442695, %v932_v54  ;;  %v931_v12 = vsub.f32 0.0, %v923_v1 }
 0x13a   :  { %7241 = vrcp.f32 %v753_v13  ;;  %v756_v15 = vadd.f32 1.0, %v7228_v4  ;;  %v926_v13 = vmax.f32 %v908_v3, 0.0  ;;  %v6881_v4 = vpop.f32.mrf.mxu0 }
 0x13b   :  { %v7230_v58 = vpop.eup %7229 }
 0x13c   :  { %7243 = vrcp.f32 %v756_v15  ;;  %v755_v14 = vadd.f32 1.0, %v7230_v58  ;;  %v8089_v58 = vadd.f32 %v8077_v33, %v1099_v10  ;;  %v912_v24 = vpop.f32.mrf.mxu0 }
 0x13d   :  { %v7232_v17 = vpop.eup %7231 }
 0x13e   :  { %v758_v19 = vadd.f32 1.0, %v7232_v17  ;;  %7245 = vrcp.f32 %v755_v14  ;;  %v925_v17 = vmax.f32 %v903_v7, 0.0  ;;  %v918_v14 = vadd.f32 %v6881_v4, %v8068_v20 }
 0x13f   :  { %v7234_v21 = vpop.eup %7233 }
 0x140   :  { %7247 = vrcp.f32 %v758_v19  ;;  %v757_v60 = vadd.f32 1.0, %v7234_v21  ;;  %v941_v19 = vmul.f32 1.442695, %v931_v12  ;;  %v1101_v21 = vpop.f32.mrf.mxu1  ;;  %v933_v28 = vsub.f32 0.0, %v925_v17 }
 0x141   :  { %v7236_v26 = vpop.eup %7235  ;;  %v928_v29 = vmax.f32 %v918_v14, 0.0 }
 0x142   :  { %776 = vst.msk [vmem:[#allocation4 + $0x8] sm:$0xff] %vm184_vm0, %v7236_v26  ;;  %7249 = vrcp.f32 %v757_v60  ;;  %v934_v60 = vsub.f32 0.0, %v926_v13  ;;  %v1105_v25 = vpop.f32.mrf.mxu1 }
 0x143   :  { %v7238_v31 = vpop.eup %7237  ;;  %7251 = vpow2.f32 %v939_v41  ;;  %v8096_v34 = vadd.f32 %v8077_v33, %v1105_v25  ;;  %v936_v37 = vsub.f32 0.0, %v928_v29 }
 0x144   :  { %775 = vst.msk [vmem:[#allocation4] sm:$0xff] %vm184_vm0, %v7238_v31  ;;  %7253 = vpow2.f32 %v937_v61  ;;  %v913_v31 = vadd.f32 %v8068_v20, %v912_v24  ;;  %v947_v32 = vmul.f32 1.442695, %v934_v60  ;;  %v1107_v39 = vpop.f32.mrf.mxu1  ;;  %v6593_v61 = vld [vmem:[%s9367_s24] ss:$0 sm:$0xff] }
 0x145   :  { %v7240_v36 = vpop.eup %7239  ;;  %7255 = vpow2.f32 %v943_v6  ;;  %v951_v40 = vmul.f32 1.442695, %v936_v37 }
 0x146   :  { %778 = vst.msk [vmem:[#allocation4 + $0x18] sm:$0xff] %vm184_vm0, %v7240_v36  ;;  %7257 = vpow2.f32 %v941_v19  ;;  %v945_v36 = vmul.f32 1.442695, %v933_v28  ;;  %v927_v27 = vmax.f32 %v913_v31, 0.0  ;;  %v1111_v41 = vpop.f32.mrf.mxu1 }
 0x147   :  { %v7242_v59 = vpop.eup %7241  ;;  %7259 = vpow2.f32 %v947_v32  ;;  %v8099_v20 = vadd.f32 %v8077_v33, %v1111_v41 }
 0x148   :  { %777 = vst.msk [vmem:[#allocation4 + $0x10] sm:$0xff] %vm184_vm0, %v7242_v59  ;;  %7261 = vpow2.f32 %v945_v36  ;;  %v935_v59 = vsub.f32 0.0, %v927_v27  ;;  %v1113_v46 = vpop.f32.mrf.mxu1 }
 0x149   :  { %v7244_v30 = vpop.eup %7243  ;;  %7263 = vpow2.f32 %v951_v40 }
 0x14a   :  { %780 = vst.msk [vmem:[#allocation4 + $0x28] sm:$0xff] %vm184_vm0, %v7244_v30  ;;  %v949_v42 = vmul.f32 1.442695, %v935_v59  ;;  %v1117_v55 = vpop.f32.mrf.mxu1  ;;  %v6888_v30 = vpop.f32.mrf.mxu0 }
 0x14b   :  { %v7246_v8 = vpop.eup %7245  ;;  %v8105_v54 = vadd.f32 %v8077_v33, %v1117_v55  ;;  %v1261_v1 = vadd.f32 %v6888_v30, %v1101_v21 }
 0x14c   :  { %779 = vst.msk [vmem:[#allocation4 + $0x20] sm:$0xff] %vm184_vm0, %v7246_v8  ;;  %7265 = vpow2.f32 %v949_v42  ;;  %v1119_v5 = vpop.f32.mrf.mxu1  ;;  %v1255_v6 = vpop.f32.mrf.mxu0 }
 0x14d   :  { %v7248_v15 = vpop.eup %7247  ;;  %v1302_v7 = vadd.f32 %v6593_v61, %v1261_v1  ;;  %v1256_v8 = vadd.f32 %v1255_v6, %v1095_v62 }
 0x14e   :  { %782 = vst.msk [vmem:[#allocation4 + $0x38] sm:$0xff] %vm184_vm0, %v7248_v15  ;;  %v1123_v10 = vpop.f32.mrf.mxu1  ;;  %v6891_v12 = vpop.f32.mrf.mxu0 }
 0x14f   :  { %v7250_v26 = vpop.eup %7249  ;;  %v6595_v4 = vmul.f32 -1.442695, %v1302_v7  ;;  %v1301_v15 = vadd.f32 %v6593_v61, %v1256_v8  ;;  %v8109_v17 = vadd.f32 %v8077_v33, %v1123_v10  ;;  %v1271_v14 = vadd.f32 %v6891_v12, %v1113_v46 }
 0x150   :  { %781 = vst.msk [vmem:[#allocation4 + $0x30] sm:$0xff] %vm184_vm0, %v7250_v26  ;;  %v7252_v0 = vpop.eup %7251  ;;  %v1125_v19 = vpop.f32.mrf.mxu1 }
 0x151   :  { %954 = vst.msk [vmem:[#allocation3 + $0x8] sm:$0xff] %vm346_vm1, %v7252_v0  ;;  %v7254_v48 = vpop.eup %7253  ;;  %v1265_v21 = vpop.f32.mrf.mxu0  ;;  %7267 = vpow2.f32 %v6595_v4  ;;  %v6594_v24 = vmul.f32 -1.442695, %v1301_v15  ;;  %v1304_v26 = vadd.f32 %v6593_v61, %v1271_v14 }
 0x152   :  { %953 = vst.msk [vmem:[#allocation3] sm:$0xff] %vm346_vm1, %v7254_v48  ;;  %v7256_v3 = vpop.eup %7255  ;;  %v1266_v28 = vadd.f32 %v1265_v21, %v1107_v39  ;;  %v1129_v62 = vpop.f32.mrf.mxu1 }
 0x153   :  { %956 = vst.msk [vmem:[#allocation3 + $0x18] sm:$0xff] %vm346_vm1, %v7256_v3  ;;  %v7258_v13 = vpop.eup %7257  ;;  %v6894_v31 = vpop.f32.mrf.mxu0  ;;  %7269 = vpow2.f32 %v6594_v24  ;;  %v6597_v32 = vmul.f32 -1.442695, %v1304_v26  ;;  %v8115_v36 = vadd.f32 %v8077_v33, %v1129_v62  ;;  %v8122_v24 = vld [vmem:[%s9368_s30 + $0x38] sm:$0xff] }
 0x154   :  { %955 = vst.msk [vmem:[#allocation3 + $0x10] sm:$0xff] %vm346_vm1, %v7258_v13  ;;  %v7260_v60 = vpop.eup %7259  ;;  %v1303_v25 = vadd.f32 %v6593_v61, %v1266_v28  ;;  %v1281_v27 = vadd.f32 %v6894_v31, %v1125_v19  ;;  %v1131_v40 = vpop.f32.mrf.mxu1  ;;  %1867 = vmatprep.subr.mxu1 %v8122_v24 }
 0x155   :  { %v7262_v29 = vpop.eup %7261  ;;  %958 = vst.msk [vmem:[#allocation3 + $0x28] sm:$0xff] %vm346_vm1, %v7260_v60  ;;  %v1275_v59 = vpop.f32.mrf.mxu0  ;;  %7271 = vpow2.f32 %v6597_v32 }
 0x156   :  { %957 = vst.msk [vmem:[#allocation3 + $0x20] sm:$0xff] %vm346_vm1, %v7262_v29  ;;  %v7264_v37 = vpop.eup %7263  ;;  %v6596_v39 = vmul.f32 -1.442695, %v1303_v25  ;;  %v1276_v41 = vadd.f32 %v1275_v59, %v1119_v5  ;;  %v1306_v0 = vadd.f32 %v6593_v61, %v1281_v27  ;;  %v8118_v46 = vpop.f32.mrf.mxu1 }
 0x157   :  { %960 = vst.msk [vmem:[#allocation3 + $0x38] sm:$0xff] %vm346_vm1, %v7264_v37  ;;  %v6897_v55 = vpop.f32.mrf.mxu0 }
 0x158   :  { %7273 = vpow2.f32 %v6596_v39  ;;  %v1305_v48 = vadd.f32 %v6593_v61, %v1276_v41  ;;  %v6599_v30 = vmul.f32 -1.442695, %v1306_v0  ;;  %v1137_v1 = vpop.f32.mrf.mxu1 }
 0x159   :  { %v7266_v42 = vpop.eup %7265  ;;  %v1291_v6 = vadd.f32 %v6897_v55, %v1137_v1  ;;  %v1285_v7 = vpop.f32.mrf.mxu0  ;;  %v8140_v1 = vld [vmem:[%s9369_s6] ss:$0 sm:$0xff] }
 0x15a   :  { %959 = vst.msk [vmem:[#allocation3 + $0x30] sm:$0xff] %vm346_vm1, %v7266_v42  ;;  %v6598_v3 = vmul.f32 -1.442695, %v1305_v48  ;;  %7275 = vpow2.f32 %v6599_v30  ;;  %v1286_v8 = vadd.f32 %v1285_v7, %v1131_v40 }
 0x15b   :  { %v1308_v10 = vadd.f32 %v6593_v61, %v1291_v6 }
 0x15c   :  { %7277 = vpow2.f32 %v6598_v3  ;;  %v1307_v5 = vadd.f32 %v6593_v61, %v1286_v8  ;;  %v1539_v3 = vld [vmem:[#allocation9] sm:$0xff] }
 0x15d   :  { %v6601_v12 = vmul.f32 -1.442695, %v1308_v10  ;;  %v1538_v8 = vld [vmem:[#allocation8] sm:$0xff] }
 0x15e   :  { %v7268_v13 = vpop.eup %7267  ;;  %v6600_v4 = vmul.f32 -1.442695, %v1307_v5 }
 0x15f   :  { %v1334_v15 = vadd.f32 1.0, %v7268_v13  ;;  %7279 = vpow2.f32 %v6601_v12  ;;  %v8144_v12 = vld [vmem:[%s9368_s30 + $0x30] sm:$0xff]  ;;  %v8147_v13 = vld [vmem:[%s9368_s30 + $0x28] sm:$0xff] }
 0x160   :  { %v7270_v14 = vpop.eup %7269  ;;  %7281 = vpow2.f32 %v6600_v4  ;;  %v8151_v4 = vld [vmem:[%s9368_s30 + $0x20] sm:$0xff] }
 0x161   :  { %7283 = vrcp.f32 %v1334_v15  ;;  %v1333_v19 = vadd.f32 1.0, %v7270_v14  ;;  %v8155_v15 = vld [vmem:[%s9368_s30 + $0x18] sm:$0xff]  ;;  %v8160_v14 = vld [vmem:[%s9368_s30 + $0x10] sm:$0xff] }
 0x162   :  { %v7272_v21 = vpop.eup %7271 }
 0x163   :  { %7285 = vrcp.f32 %v1333_v19  ;;  %v1336_v60 = vadd.f32 1.0, %v7272_v21  ;;  %v8164_v19 = vld [vmem:[%s9368_s30 + $0x8] sm:$0xff]  ;;  %v1830_v21 = vld [vmem:[#allocation3 + $0x38] sm:$0xff] }
 0x165   :  { %v7274_v26 = vpop.eup %7273  ;;  %7287 = vrcp.f32 %v1336_v60  ;;  %v8168_v60 = vld [vmem:[%s9368_s30] sm:$0xff] }
 0x166   :  { %v1335_v61 = vadd.f32 1.0, %v7274_v26  ;;  %v1831_v26 = vmul.f32 0.0, %v1830_v21  ;;  %v8227_v21 = vld [vmem:[%s9375_s11 + $0x8] sm:$0xff] }
 0x167   :  { %v7276_v28 = vpop.eup %7275 }
 0x168   :  { %7289 = vrcp.f32 %v1335_v61  ;;  %v1338_v62 = vadd.f32 1.0, %v7276_v28  ;;  %v1703_v28 = vld [vmem:[#allocation4] sm:$0xff] }
 0x169   :  { %v7278_v29 = vpop.eup %7277 }
 0x16a   :  { %v1337_v31 = vadd.f32 1.0, %v7278_v29  ;;  %7291 = vrcp.f32 %v1338_v62 }
 0x16c   :  { %7293 = vrcp.f32 %v1337_v31  ;;  %v7280_v32 = vpop.eup %7279 }
 0x16d   :  { %v7282_v25 = vpop.eup %7281  ;;  %v1340_v37 = vadd.f32 1.0, %v7280_v32 }
 0x16e   :  { %v7284_v27 = vpop.eup %7283  ;;  %v1339_v40 = vadd.f32 1.0, %v7282_v25 }
 0x16f   :  { %1358 = vst.msk [vmem:[#allocation5 + $0x8] sm:$0xff] %vm184_vm0, %v7284_v27  ;;  %7295 = vrcp.f32 %v1340_v37  ;;  %v8202_v37 = vld [vmem:[%s9372_s4] ss:$0 sm:$0xff] }
 0x170   :  { %v7286_v59 = vpop.eup %7285  ;;  %7297 = vrcp.f32 %v1339_v40 }
 0x171   :  { %1357 = vst.msk [vmem:[#allocation5] sm:$0xff] %vm184_vm0, %v7286_v59 }
 0x172   :  { %v7288_v39 = vpop.eup %7287 }
 0x173   :  { %1360 = vst.msk [vmem:[#allocation5 + $0x18] sm:$0xff] %vm184_vm0, %v7288_v39  ;;  %v1826_v39 = vld [vmem:[#allocation9 + $0x38] sm:$0xff] }
 0x175   :  { %v7290_v41 = vpop.eup %7289 }
 0x176   :  { %1359 = vst.msk [vmem:[#allocation5 + $0x10] sm:$0xff] %vm184_vm0, %v7290_v41  ;;  %v5569_v57 = vld [vmem:[#allocation5 + $0x8] sm:$0xff] }
 0x177   :  { %v7292_v42 = vpop.eup %7291 }
 0x178   :  { %1362 = vst.msk [vmem:[#allocation5 + $0x28] sm:$0xff] %vm184_vm0, %v7292_v42 }
 0x179   :  { %v7294_v0 = vpop.eup %7293 }
 0x17a   :  { %1361 = vst.msk [vmem:[#allocation5 + $0x20] sm:$0xff] %vm184_vm0, %v7294_v0 }
 0x17c   :  { %v7296_v48 = vpop.eup %7295 }
 0x17d   :  { %v7298_v55 = vpop.eup %7297  ;;  %1364 = vst.msk [vmem:[#allocation5 + $0x38] sm:$0xff] %vm184_vm0, %v7296_v48 }
 0x17e   :  { %1363 = vst.msk [vmem:[#allocation5 + $0x30] sm:$0xff] %vm184_vm0, %v7298_v55 }
 0x1e9   :  { %v8137_v30 = vpop.f32.mrf.mxu0 }
 0x1eb   :  { %v1622_v6 = vpop.f32.mrf.mxu0 }
 0x1ec   :  { %v1625_v7 = vadd.f32 %v8140_v1, %v1622_v6  ;;  %v8208_v6 = vld [vmem:[%s9374_s10 + $0x8] sm:$0xff] }
 0x1ee   :  { %v1626_v10 = vmul.f32 %v1625_v7, %v1539_v3 }
 0x1f0   :  { %v1627_v5 = vadd.f32 %v1626_v10, %v1538_v8 }
 0x1f2   :  { %6903 = vmatmul.mubr.msk.f32.vlgmr.msra.gmra.mxu1 %vm184_vm0, %v1627_v5  ;;  %v8215_v5 = vld [vmem:[%s9374_s10] sm:$0xff] }
 0x1f3   :  { %1868 = vmatpush1.msra.mxu1 %v8144_v12  ;;  %1907 = vmatprep.mubr.f32.mxu1 %v9332_v11 }
 0x1f4   :  { %1869 = vmatprep.subr.mxu1 %v8147_v13 }
 0x1f5   :  { %1870 = vmatpush1.msra.mxu1 %v8151_v4 }
 0x1f6   :  { %1871 = vmatprep.subr.mxu1 %v8155_v15 }
 0x1f7   :  { %1872 = vmatpush1.msra.mxu1 %v8160_v14 }
 0x1f8   :  { %1873 = vmatprep.subr.mxu1 %v8164_v19 }
 0x1f9   :  { %1874 = vmatpush1.msra.mxu1 %v8168_v60 }
 0x1fa   :  { %6611 = vmatmul.mubr.msk.f32.vlgmr.msra.gmra.mxu1 %vm346_vm1, %v1831_v26  ;;  %2168 = vmatprep.subr.mxu1 %v7967_v43  ;;  %v8185_v43 = vld [vmem:[%s9370_s12 + $0x8] sm:$0xff]  ;;  %v8232_v26 = vld [vmem:[%s9375_s11] sm:$0xff] }
 0x1fb   :  { %2169 = vmatpush1.msra.mxu1 %v7970_v44  ;;  %2208 = vmatprep.mubr.f32.mxu1 %v9332_v11  ;;  %v8190_v44 = vld [vmem:[%s9370_s12] sm:$0xff] }
 0x1fc   :  { %2170 = vmatprep.subr.mxu1 %v7973_v45  ;;  %6906 = vmatpush3.msra.mxu0 %v8185_v43  ;;  %v8195_v45 = vld [vmem:[%s9371_s20] ss:$0 sm:$0xff] }
 0x1fd   :  { %2171 = vmatpush1.msra.mxu1 %v7980_v18  ;;  %6907 = vmatprep.subr.mxu0 %v9332_v11 }
 0x1fe   :  { %2172 = vmatprep.subr.mxu1 %v7985_v47  ;;  %6908 = vmatpush3.msra.mxu0 %v8190_v44 }
 0x1ff   :  { %2173 = vmatpush1.msra.mxu1 %v7989_v49  ;;  %6912 = vmatprep.subr.mxu0 %v9332_v11  ;;  %v1537_v49 = vld [vmem:[%s7578_s5] sm:$0xff] }
 0x200   :  { %2174 = vmatprep.subr.mxu1 %v7996_v22  ;;  %v1711_v62 = vsub.f32 %v1625_v7, %v1537_v49 }
 0x201   :  { %2175 = vmatpush1.msra.mxu1 %v8001_v50 }
 0x202   :  { %2467 = vmatprep.subr.mxu1 %v8122_v24  ;;  %v1712_v40 = vand.u32 2147483647, %v1711_v62  ;;  %v6610_v62 = vld [vmem:[%s7578_s5 + $0x38] sm:$0xff] }
 0x2b2   :  { %v1699_v18 = vpop.f32.mrf.mxu1 }
 0x2b3   :  { %v1700_v47 = vadd.f32 %v8195_v45, %v1699_v18 }
 0x2b4   :  { %v6904_v22 = vpop.f32.mrf.mxu1 }
 0x2b5   :  { %v1704_v50 = vsub.f32 %v1700_v47, %v1625_v7  ;;  %v1713_v61 = vsub.f32 %v1700_v47, %v1537_v49  ;;  %v565_v47 = vadd.f32 %v8023_v2, %v8018_v56 }
 0x2b7   :  { %v1705_v29 = vmul.f32 %v1704_v50, %v1703_v28  ;;  %v1714_v32 = vand.u32 2147483647, %v1713_v61  ;;  %v8240_v50 = vld [vmem:[%s9376_s15] ss:$0 sm:$0xff] }
 0x2b9   :  { %v1706_v31 = vadd.f32 %v1705_v29, %v1625_v7  ;;  %v1715_v42 = vadd.f32 %v1714_v32, %v1712_v40  ;;  %v1824_v7 = vld [vmem:[#allocation8 + $0x38] sm:$0xff] }
 0x2ba   :  { %v8199_v25 = vpop.f32.mrf.mxu1  ;;  %v1993_v40 = vld [vmem:[#allocation5 + $0x38] sm:$0xff] }
 0x2bb   :  { %v1707_v27 = vmul.f32 %v1706_v31, %v1539_v3  ;;  %1709 = vst.msk [vmem:[%s9373_s7] sm:$0xff] %vm184_vm0, %v1706_v31  ;;  %v1716_v59 = vsub.f32 %v1706_v31, %v1537_v49 }
 0x2bc   :  { %v1911_v41 = vpop.f32.mrf.mxu1 }
 0x2bd   :  { %v1717_v0 = vand.u32 2147483647, %v1716_v59  ;;  %v1914_v48 = vadd.f32 %v8202_v37, %v1911_v41  ;;  %v1708_v55 = vadd.f32 %v1707_v27, %v1538_v8 }
 0x2bf   :  { %v8210_v10 = vadd.f32 %v1717_v0, %v1715_v42  ;;  %v1915_v3 = vmul.f32 %v1914_v48, %v1826_v39  ;;  %1710 = vst.msk [vmem:[#allocation11] sm:$0xff] %vm184_vm0, %v1708_v55  ;;  %6910 = vmatmul.mubr.msk.f32.vlgmr.msra.gmra.mxu0 %vm184_vm0, %v1708_v55  ;;  %v2003_v41 = vsub.f32 %v1914_v48, %v6610_v62 }
 0x2c0   :  { %6913 = vmatpush3.msra.mxu0 %v8208_v6  ;;  %6916 = vmatprep.mubr.msk.f32.mxu0 %vm7563_vm2, %v9332_v11 }
 0x2c1   :  { %v1916_v8 = vadd.f32 %v1915_v3, %v1824_v7  ;;  %6914 = vmatprep.subr.mxu0 %v9332_v11 }
 0x2c2   :  { %6915 = vmatpush3.msra.mxu0 %v8215_v5 }
 0x2c3   :  { %6917 = vmatmul.mubr.msk.f32.vlgmr.msra.gmra.mxu0 %vm184_vm0, %v1916_v8  ;;  %6919 = vmatprep.subr.mxu0 %v9332_v11 }
 0x2c4   :  { %6923 = vmatprep.mubr.msk.f32.mxu0 %vm7563_vm2, %v9332_v11  ;;  %6920 = vmatpush3.msra.mxu0 %v8227_v21 }
 0x2c5   :  { %6921 = vmatprep.subr.mxu0 %v9332_v11 }
 0x2c6   :  { %6922 = vmatpush3.msra.mxu0 %v8232_v26 }
 0x2c7   :  { %6926 = vmatprep.subr.mxu0 %v9332_v11 }
 0x37f   :  { %v1791_v18 = vpop.f32.mrf.mxu0 }
 0x380   :  { %v1792_v49 = vadd.f32 %v1791_v18, %v8137_v30  ;;  %v2004_v30 = vand.u32 2147483647, %v2003_v41 }
 0x381   :  { %v6911_v22 = vpop.f32.mrf.mxu0 }
 0x382   :  { %v1796_v61 = vadd.f32 %v1792_v49, %v565_v47 }
 0x383   :  { %v1988_v28 = vpop.f32.mrf.mxu0 }
 0x384   :  { %7299 = vtanh.f32 %v1796_v61  ;;  %v1989_v29 = vadd.f32 %v8240_v50, %v1988_v28 }
 0x385   :  { %v6918_v31 = vpop.f32.mrf.mxu0 }
 0x386   :  { %v1994_v32 = vsub.f32 %v1989_v29, %v1914_v48  ;;  %v2005_v27 = vsub.f32 %v1989_v29, %v6610_v62 }
 0x388   :  { %v1995_v59 = vmul.f32 %v1994_v32, %v1993_v40  ;;  %v2006_v56 = vand.u32 2147483647, %v2005_v27 }
 0x38a   :  { %v1996_v42 = vadd.f32 %v1995_v59, %v1914_v48  ;;  %v2007_v55 = vadd.f32 %v2006_v56, %v2004_v30  ;;  %v2125_v59 = vld [vmem:[#allocation2 + $0x8] sm:$0xff] }
 0x38c   :  { %v1997_v2 = vmul.f32 %v1996_v42, %v1826_v39  ;;  %6613 = vst.msk [vmem:[%s9377_s16 + $0x38] sm:$0xff] %vm184_vm0, %v1996_v42  ;;  %v2008_v0 = vsub.f32 %v1996_v42, %v6610_v62  ;;  %v6609_v39 = vmul.f32 -1.442695, %v1796_v61  ;;  %v1154_v61 = vadd.f32 %v8077_v33, %v8118_v46 }
 0x38e   :  { %v2009_v3 = vand.u32 2147483647, %v2008_v0  ;;  %v1998_v8 = vadd.f32 %v1997_v2, %v1824_v7  ;;  %7301 = vpow2.f32 %v6609_v39 }
 0x390   :  { %v8246_v18 = vadd.f32 %v2009_v3, %v2007_v55  ;;  %2002 = vst.msk [vmem:[#allocation12 + $0x38] sm:$0xff] %vm184_vm0, %v1998_v8  ;;  %6924 = vmatmul.mubr.msk.f32.vlgmr.msra.gmra.mxu0 %vm184_vm0, %v1998_v8  ;;  %v2424_v8 = vld [vmem:[#allocation3 + $0x30] sm:$0xff] }
 0x391   :  { %v7300_v47 = vpop.eup %7299  ;;  %6927 = vmatpush3.msra.mxu0 %v8009_v51  ;;  %6930 = vmatprep.mubr.msk.f32.mxu0 %vm7563_vm2, %v9332_v11 }
 0x392   :  { %1806 = vrot.lane.b32.xlu0 %v7300_v47, %s7564_s18  ;;  %6928 = vmatprep.subr.mxu0 %v9332_v11 }
 0x393   :  { %6929 = vmatpush3.msra.mxu0 %v8015_v53 }
 0x394   :  { %6933 = vmatprep.subr.mxu0 %v9332_v11 }
 0x39b   :  { %v7302_v48 = vpop.eup %7301 }
 0x39c   :  { %v1800_v7 = vadd.f32 1.0, %v7302_v48 }
 0x39e   :  { %7303 = vrcp.f32 %v1800_v7 }
 0x3ab   :  { %v7304_v49 = vpop.eup %7303 }
 0x3ac   :  { %v1804_v62 = vmul.f32 0.0, %v7304_v49 }
 0x404   :  { %v1807_v22 = vpop.permute.xlu0 %1806 }
 0x405   :  { %v1809_v51 = vmul.f32 %v7304_v49, %v1807_v22 }
 0x407   :  { %1811 = vrot.lane.b32.xlu0 %v1809_v51, %s7565_s22 }
 0x450   :  { %v2083_v28 = vpop.f32.mrf.mxu0 }
 0x451   :  { %v2084_v53 = vadd.f32 %v2083_v28, %v8199_v25 }
 0x452   :  { %v6925_v29 = vpop.f32.mrf.mxu0 }
 0x453   :  { %v2089_v27 = vadd.f32 %v2084_v53, %v1154_v61 }
 0x455   :  { %v6615_v42 = vmul.f32 -1.442695, %v2089_v27 }
 0x479   :  { %v1812_v31 = vpop.permute.xlu0 %1811 }
 0x47a   :  { %v8258_v32 = vadd.f32 %v1812_v31, %v1804_v62  ;;  %v2121_v31 = vld [vmem:[#allocation9 + $0x8] sm:$0xff] }
 0x47c   :  { %7305 = vtanh.f32 %v8258_v32 }
 0x47d   :  { %7307 = vtanh.f32 %v2089_v27  ;;  %v2119_v27 = vld [vmem:[#allocation8 + $0x8] sm:$0xff] }
 0x47e   :  { %7309 = vpow2.f32 %v6615_v42 }
 0x489   :  { %v7306_v40 = vpop.eup %7305 }
 0x48a   :  { %1817 = vrot.lane.b32.xlu1 %v7306_v40, %s7564_s18  ;;  %v7308_v41 = vpop.eup %7307 }
 0x48b   :  { %v7310_v25 = vpop.eup %7309 }
 0x48c   :  { %v2093_v56 = vadd.f32 1.0, %v7310_v25 }
 0x48e   :  { %2127 = vrot.lane.b32.xlu1 %v2125_v59, %s7566_s23  ;;  %7311 = vrcp.f32 %v2093_v56  ;;  %v6616_v56 = vld [vmem:[%s7578_s5 + $0x8] sm:$0xff] }
 0x492   :  { %2099 = vrot.lane.b32.xlu1 %v7308_v41, %s7564_s18 }
 0x49b   :  { %v7312_v0 = vpop.eup %7311 }
 0x49c   :  { %v2097_v39 = vmul.f32 0.0, %v7312_v0 }
 0x4fc   :  { %v1818_v2 = vpop.permute.xlu1 %1817 }
 0x4fd   :  { %v1820_v30 = vmul.f32 %v7304_v49, %v1818_v2 }
 0x500   :  { %v2128_v33 = vpop.permute.xlu1 %2127 }
 0x501   :  { %v2130_v46 = vmul.f32 %v2128_v33, %v1820_v30 }
 0x503   :  { %2140 = vrot.lane.b32.xlu0 %v2130_v46, %s7565_s22  ;;  %v2294_v46 = vld [vmem:[#allocation4 + $0x8] sm:$0xff] }
 0x504   :  { %v2100_v55 = vpop.permute.xlu1 %2099 }
 0x505   :  { %v2102_v3 = vmul.f32 %v7312_v0, %v2100_v55 }
 0x507   :  { %2104 = vrot.lane.b32.xlu0 %v2102_v3, %s7565_s22 }
 0x50b   :  { %2426 = vrot.lane.b32.xlu0 %v2424_v8, %s7566_s23 }
 0x575   :  { %v2141_v47 = vpop.permute.xlu0 %2140 }
 0x576   :  { %6617 = vmatmul.mubr.msk.f32.vlgmr.msra.gmra.mxu1 %vm346_vm1, %v2141_v47 }
 0x577   :  { %2468 = vmatpush1.msra.mxu1 %v8144_v12  ;;  %2507 = vmatprep.mubr.f32.mxu1 %v9332_v11 }
 0x578   :  { %2469 = vmatprep.subr.mxu1 %v8147_v13 }
 0x579   :  { %v2105_v48 = vpop.permute.xlu0 %2104  ;;  %2470 = vmatpush1.msra.mxu1 %v8151_v4 }
 0x57a   :  { %v8275_v7 = vadd.f32 %v2105_v48, %v2097_v39  ;;  %2471 = vmatprep.subr.mxu1 %v8155_v15 }
 0x57b   :  { %2472 = vmatpush1.msra.mxu1 %v8160_v14 }
 0x57c   :  { %7313 = vtanh.f32 %v8275_v7  ;;  %2473 = vmatprep.subr.mxu1 %v8164_v19 }
 0x57d   :  { %2474 = vmatpush1.msra.mxu1 %v8168_v60  ;;  %v2427_v28 = vpop.permute.xlu0 %2426 }
 0x589   :  { %v7314_v49 = vpop.eup %7313 }
 0x58a   :  { %2110 = vrot.lane.b32.xlu1 %v7314_v49, %s7564_s18 }
 0x5fc   :  { %v2111_v22 = vpop.permute.xlu1 %2110 }
 0x5fd   :  { %v2113_v51 = vmul.f32 %v7312_v0, %v2111_v22 }
 0x5ff   :  { %v2429_v29 = vmul.f32 %v2427_v28, %v2113_v51 }
 0x601   :  { %2439 = vrot.lane.b32.xlu1 %v2429_v29, %s7565_s22 }
 0x636   :  { %v2210_v62 = vpop.f32.mrf.mxu1 }
 0x638   :  { %v2212_v53 = vpop.f32.mrf.mxu1 }
 0x639   :  { %v2215_v61 = vadd.f32 %v8140_v1, %v2212_v53 }
 0x63b   :  { %v2216_v40 = vmul.f32 %v2215_v61, %v2121_v31  ;;  %v2304_v55 = vsub.f32 %v2215_v61, %v6616_v56 }
 0x63d   :  { %v2217_v59 = vadd.f32 %v2216_v40, %v2119_v27  ;;  %v2305_v39 = vand.u32 2147483647, %v2304_v55 }
 0x63f   :  { %6931 = vmatmul.mubr.msk.f32.vlgmr.msra.gmra.mxu0 %vm184_vm0, %v2217_v59 }
 0x640   :  { %6934 = vmatpush3.msra.mxu0 %v8185_v43  ;;  %6937 = vmatprep.mubr.msk.f32.mxu0 %vm7563_vm2, %v9332_v11 }
 0x641   :  { %6935 = vmatprep.subr.mxu0 %v9332_v11 }
 0x642   :  { %6936 = vmatpush3.msra.mxu0 %v8190_v44 }
 0x643   :  { %6940 = vmatprep.subr.mxu0 %v9332_v11 }
 0x673   :  { %v2440_v41 = vpop.permute.xlu1 %2439 }
 0x674   :  { %6623 = vmatmul.mubr.msk.f32.vlgmr.msra.gmra.mxu1 %vm346_vm1, %v2440_v41 }
 0x675   :  { %2808 = vmatprep.mubr.f32.mxu1 %v9332_v11 }
 0x6ff   :  { %v2289_v42 = vpop.f32.mrf.mxu0 }
 0x700   :  { %v2290_v25 = vadd.f32 %v8195_v45, %v2289_v42 }
 0x701   :  { %v6932_v2 = vpop.f32.mrf.mxu0 }
 0x702   :  { %v2295_v30 = vsub.f32 %v2290_v25, %v2215_v61  ;;  %v2306_v33 = vsub.f32 %v2290_v25, %v6616_v56 }
 0x704   :  { %v2296_v0 = vmul.f32 %v2295_v30, %v2294_v46  ;;  %v2307_v8 = vand.u32 2147483647, %v2306_v33  ;;  %v6622_v46 = vld [vmem:[%s7578_s5 + $0x30] sm:$0xff] }
 0x706   :  { %v2297_v3 = vadd.f32 %v2296_v0, %v2215_v61  ;;  %v2308_v49 = vadd.f32 %v2307_v8, %v2305_v39  ;;  %v2593_v8 = vld [vmem:[#allocation5 + $0x30] sm:$0xff] }
 0x708   :  { %v2298_v47 = vmul.f32 %v2297_v3, %v2121_v31  ;;  %6619 = vst.msk [vmem:[%s9373_s7 + $0x8] sm:$0xff] %vm184_vm0, %v2297_v3  ;;  %v2309_v48 = vsub.f32 %v2297_v3, %v6616_v56  ;;  %v2420_v31 = vld [vmem:[#allocation9 + $0x30] sm:$0xff] }
 0x70a   :  { %v2310_v22 = vand.u32 2147483647, %v2309_v48  ;;  %v2299_v51 = vadd.f32 %v2298_v47, %v2119_v27  ;;  %v2418_v27 = vld [vmem:[#allocation8 + $0x30] sm:$0xff] }
 0x70c   :  { %v8298_v28 = vadd.f32 %v2310_v22, %v2308_v49  ;;  %2303 = vst.msk [vmem:[#allocation11 + $0x8] sm:$0xff] %vm184_vm0, %v2299_v51  ;;  %6938 = vmatmul.mubr.msk.f32.vlgmr.msra.gmra.mxu0 %vm184_vm0, %v2299_v51 }
 0x70d   :  { %6941 = vmatpush3.msra.mxu0 %v8208_v6  ;;  %6944 = vmatprep.mubr.msk.f32.mxu0 %vm7563_vm2, %v9332_v11 }
 0x70e   :  { %6942 = vmatprep.subr.mxu0 %v9332_v11 }
 0x70f   :  { %6943 = vmatpush3.msra.mxu0 %v8215_v5 }
 0x710   :  { %6947 = vmatprep.subr.mxu0 %v9332_v11 }
 0x734   :  { %v8308_v29 = vpop.f32.mrf.mxu1 }
 0x736   :  { %v2511_v53 = vpop.f32.mrf.mxu1 }
 0x737   :  { %v2514_v61 = vadd.f32 %v8202_v37, %v2511_v53 }
 0x739   :  { %v2515_v40 = vmul.f32 %v2514_v61, %v2420_v31  ;;  %v2603_v39 = vsub.f32 %v2514_v61, %v6622_v46 }
 0x73b   :  { %v2516_v59 = vadd.f32 %v2515_v40, %v2418_v27  ;;  %v2604_v49 = vand.u32 2147483647, %v2603_v39 }
 0x73d   :  { %6945 = vmatmul.mubr.msk.f32.vlgmr.msra.gmra.mxu0 %vm184_vm0, %v2516_v59 }
 0x73e   :  { %6948 = vmatpush3.msra.mxu0 %v8227_v21  ;;  %6951 = vmatprep.mubr.msk.f32.mxu0 %vm7563_vm2, %v9332_v11 }
 0x73f   :  { %6949 = vmatprep.subr.mxu0 %v9332_v11 }
 0x740   :  { %6950 = vmatpush3.msra.mxu0 %v8232_v26 }
 0x741   :  { %6954 = vmatprep.subr.mxu0 %v9332_v11 }
 0x7cc   :  { %v2384_v41 = vpop.f32.mrf.mxu0 }
 0x7cd   :  { %v2385_v42 = vadd.f32 %v2384_v41, %v2210_v62  ;;  %v7443_v41 = vld [vmem:[%s9360_s13 + $0x8] sm:$0xff] }
 0x7ce   :  { %v6939_v25 = vpop.f32.mrf.mxu0 }
 0x7cf   :  { %v2390_v56 = vadd.f32 %v2385_v42, %v8026_v9 }
 0x7d1   :  { %7315 = vtanh.f32 %v2390_v56 }
 0x7de   :  { %v7316_v2 = vpop.eup %7315 }
 0x7df   :  { %2400 = vrot.lane.b32.xlu0 %v7316_v2, %s7564_s18 }
 0x7fd   :  { %v2588_v30 = vpop.f32.mrf.mxu0 }
 0x7fe   :  { %v2589_v33 = vadd.f32 %v8240_v50, %v2588_v30 }
 0x7ff   :  { %v6946_v0 = vpop.f32.mrf.mxu0 }
 0x800   :  { %v2594_v55 = vsub.f32 %v2589_v33, %v2514_v61  ;;  %v2605_v3 = vsub.f32 %v2589_v33, %v6622_v46  ;;  %v2725_v33 = vld [vmem:[#allocation2 + $0x10] sm:$0xff] }
 0x802   :  { %v2595_v47 = vmul.f32 %v2594_v55, %v2593_v8  ;;  %v2606_v48 = vand.u32 2147483647, %v2605_v3 }
 0x804   :  { %v2596_v62 = vadd.f32 %v2595_v47, %v2514_v61  ;;  %v2607_v51 = vadd.f32 %v2606_v48, %v2604_v49  ;;  %v6621_v61 = vmul.f32 -1.442695, %v2390_v56  ;;  %v8349_v48 = vld [vmem:[%s9359_s0 + $0x28] sm:$0xff] }
 0x805   :  { %v8366_v49 = vld [vmem:[%s9359_s0 + $0x8] sm:$0xff] }
 0x806   :  { %v2597_v9 = vmul.f32 %v2596_v62, %v2420_v31  ;;  %6625 = vst.msk [vmem:[%s9377_s16 + $0x30] sm:$0xff] %vm184_vm0, %v2596_v62  ;;  %v2608_v22 = vsub.f32 %v2596_v62, %v6622_v46  ;;  %v7444_v31 = vld [vmem:[%s9360_s13] sm:$0xff]  ;;  %7317 = vpow2.f32 %v6621_v61  ;;  %v8343_v62 = vld [vmem:[%s9359_s0 + $0x38] sm:$0xff] }
 0x807   :  { %2768 = vmatprep.subr.mxu1 %v8343_v62 }
 0x808   :  { %v2609_v53 = vand.u32 2147483647, %v2608_v22  ;;  %v2598_v40 = vadd.f32 %v2597_v9, %v2418_v27  ;;  %v8354_v9 = vld [vmem:[%s9359_s0 + $0x20] sm:$0xff] }
 0x809   :  { %v8370_v22 = vld [vmem:[%s9359_s0] sm:$0xff] }
 0x80a   :  { %v8324_v59 = vadd.f32 %v2609_v53, %v2607_v51  ;;  %2602 = vst.msk [vmem:[#allocation12 + $0x30] sm:$0xff] %vm184_vm0, %v2598_v40  ;;  %6952 = vmatmul.mubr.msk.f32.vlgmr.msra.gmra.mxu0 %vm184_vm0, %v2598_v40 }
 0x80b   :  { %6955 = vmatpush3.msra.mxu0 %v7443_v41  ;;  %6958 = vmatprep.mubr.msk.f32.mxu0 %vm7563_vm2, %v9332_v11 }
 0x80c   :  { %6956 = vmatprep.subr.mxu0 %v9332_v11 }
 0x80d   :  { %6957 = vmatpush3.msra.mxu0 %v7444_v31 }
 0x80e   :  { %6961 = vmatprep.subr.mxu0 %v9332_v11 }
 0x813   :  { %v7318_v27 = vpop.eup %7317 }
 0x814   :  { %v2394_v42 = vadd.f32 1.0, %v7318_v27 }
 0x816   :  { %7319 = vrcp.f32 %v2394_v42 }
 0x823   :  { %v7320_v25 = vpop.eup %7319 }
 0x824   :  { %v2398_v46 = vmul.f32 %v7320_v25, %v8258_v32  ;;  %v8346_v32 = vld [vmem:[%s9359_s0 + $0x30] sm:$0xff] }
 0x825   :  { %2769 = vmatpush1.msra.mxu1 %v8346_v32 }
 0x826   :  { %2770 = vmatprep.subr.mxu1 %v8349_v48 }
 0x827   :  { %2771 = vmatpush1.msra.mxu1 %v8354_v9 }
 0x851   :  { %v2401_v2 = vpop.permute.xlu0 %2400 }
 0x852   :  { %v2403_v30 = vmul.f32 %v7320_v25, %v2401_v2 }
 0x854   :  { %2405 = vrot.lane.b32.xlu1 %v2403_v30, %s7565_s22 }
 0x858   :  { %2727 = vrot.lane.b32.xlu1 %v2725_v33, %s7566_s23 }
 0x8c6   :  { %v2406_v0 = vpop.permute.xlu1 %2405 }
 0x8c7   :  { %v8337_v56 = vadd.f32 %v2406_v0, %v2398_v46  ;;  %v3024_v46 = vld [vmem:[#allocation3 + $0x28] sm:$0xff] }
 0x8c9   :  { %7321 = vtanh.f32 %v8337_v56 }
 0x8ca   :  { %v2683_v55 = vpop.f32.mrf.mxu0  ;;  %v2728_v27 = vpop.permute.xlu1 %2727 }
 0x8cb   :  { %v2684_v3 = vadd.f32 %v2683_v55, %v8308_v29  ;;  %v8358_v29 = vld [vmem:[%s9359_s0 + $0x18] sm:$0xff] }
 0x8cc   :  { %v6953_v8 = vpop.f32.mrf.mxu0  ;;  %2772 = vmatprep.subr.mxu1 %v8358_v29 }
 0x8cd   :  { %v2689_v47 = vadd.f32 %v2684_v3, %v8115_v36  ;;  %v8362_v36 = vld [vmem:[%s9359_s0 + $0x10] sm:$0xff] }
 0x8ce   :  { %2773 = vmatpush1.msra.mxu1 %v8362_v36 }
 0x8cf   :  { %7323 = vtanh.f32 %v2689_v47  ;;  %2774 = vmatprep.subr.mxu1 %v8366_v49  ;;  %v6627_v53 = vmul.f32 -1.442695, %v2689_v47 }
 0x8d0   :  { %2775 = vmatpush1.msra.mxu1 %v8370_v22 }
 0x8d1   :  { %3067 = vmatprep.subr.mxu1 %v8122_v24  ;;  %7325 = vpow2.f32 %v6627_v53 }
 0x8d6   :  { %v7322_v39 = vpop.eup %7321 }
 0x8d7   :  { %2411 = vrot.lane.b32.xlu0 %v7322_v39, %s7564_s18 }
 0x8dc   :  { %v7324_v51 = vpop.eup %7323 }
 0x8dd   :  { %2699 = vrot.lane.b32.xlu1 %v7324_v51, %s7564_s18 }
 0x8de   :  { %v7326_v40 = vpop.eup %7325 }
 0x8df   :  { %v2693_v41 = vadd.f32 1.0, %v7326_v40 }
 0x8e1   :  { %7327 = vrcp.f32 %v2693_v41 }
 0x8ee   :  { %v7328_v2 = vpop.eup %7327 }
 0x949   :  { %v2412_v31 = vpop.permute.xlu0 %2411 }
 0x94a   :  { %v2414_v61 = vmul.f32 %v7320_v25, %v2412_v31  ;;  %v2697_v25 = vmul.f32 %v7328_v2, %v8275_v7  ;;  %v2894_v31 = vld [vmem:[#allocation4 + $0x10] sm:$0xff] }
 0x94c   :  { %v2730_v42 = vmul.f32 %v2728_v27, %v2414_v61 }
 0x94e   :  { %2740 = vrot.lane.b32.xlu0 %v2730_v42, %s7565_s22 }
 0x94f   :  { %v2700_v30 = vpop.permute.xlu1 %2699 }
 0x950   :  { %v2702_v33 = vmul.f32 %v7328_v2, %v2700_v30 }
 0x952   :  { %2704 = vrot.lane.b32.xlu0 %v2702_v33, %s7565_s22 }
 0x956   :  { %3026 = vrot.lane.b32.xlu0 %v3024_v46, %s7566_s23 }
 0x9c0   :  { %v2741_v24 = vpop.permute.xlu0 %2740 }
 0x9c1   :  { %6629 = vmatmul.mubr.msk.f32.vlgmr.msra.gmra.mxu1 %vm346_vm1, %v2741_v24 }
 0x9c2   :  { %3068 = vmatpush1.msra.mxu1 %v8144_v12  ;;  %3107 = vmatprep.mubr.f32.mxu1 %v9332_v11 }
 0x9c3   :  { %3069 = vmatprep.subr.mxu1 %v8147_v13 }
 0x9c4   :  { %v2705_v0 = vpop.permute.xlu0 %2704  ;;  %3070 = vmatpush1.msra.mxu1 %v8151_v4 }
 0x9c5   :  { %v8386_v55 = vadd.f32 %v2705_v0, %v2697_v25  ;;  %3071 = vmatprep.subr.mxu1 %v8155_v15 }
 0x9c6   :  { %3072 = vmatpush1.msra.mxu1 %v8160_v14  ;;  %v2721_v14 = vld [vmem:[#allocation9 + $0x10] sm:$0xff] }
 0x9c7   :  { %7329 = vtanh.f32 %v8386_v55  ;;  %3073 = vmatprep.subr.mxu1 %v8164_v19  ;;  %v2719_v19 = vld [vmem:[#allocation8 + $0x10] sm:$0xff] }
 0x9c8   :  { %3074 = vmatpush1.msra.mxu1 %v8168_v60  ;;  %v3027_v4 = vpop.permute.xlu0 %3026 }
 0x9c9   :  { %3368 = vmatprep.subr.mxu1 %v8343_v62 }
 0x9d4   :  { %v7330_v12 = vpop.eup %7329 }
 0x9d5   :  { %2710 = vrot.lane.b32.xlu1 %v7330_v12, %s7564_s18 }
 0xa47   :  { %v2711_v13 = vpop.permute.xlu1 %2710 }
 0xa48   :  { %v2713_v7 = vmul.f32 %v7328_v2, %v2711_v13 }
 0xa4a   :  { %v3029_v3 = vmul.f32 %v3027_v4, %v2713_v7  ;;  %v8429_v7 = vld [vmem:[#allocation9 + $0x28] sm:$0xff] }
 0xa4c   :  { %3039 = vrot.lane.b32.xlu1 %v3029_v3, %s7565_s22 }
 0xa81   :  { %v8396_v15 = vpop.f32.mrf.mxu1 }
 0xa83   :  { %v2812_v8 = vpop.f32.mrf.mxu1 }
 0xa84   :  { %v2815_v47 = vadd.f32 %v8140_v1, %v2812_v8 }
 0xa86   :  { %v2816_v39 = vmul.f32 %v2815_v47, %v2721_v14 }
 0xa88   :  { %v2817_v60 = vadd.f32 %v2816_v39, %v2719_v19 }
 0xa8a   :  { %6959 = vmatmul.mubr.msk.f32.vlgmr.msra.gmra.mxu0 %vm184_vm0, %v2817_v60 }
 0xa8b   :  { %6962 = vmatpush3.msra.mxu0 %v8185_v43  ;;  %6965 = vmatprep.mubr.msk.f32.mxu0 %vm7563_vm2, %v9332_v11 }
 0xa8c   :  { %6963 = vmatprep.subr.mxu0 %v9332_v11 }
 0xa8d   :  { %6964 = vmatpush3.msra.mxu0 %v8190_v44  ;;  %v6628_v44 = vld [vmem:[%s7578_s5 + $0x10] sm:$0xff] }
 0xa8e   :  { %6968 = vmatprep.subr.mxu0 %v9332_v11  ;;  %v2904_v27 = vsub.f32 %v2815_v47, %v6628_v44 }
 0xa90   :  { %v2905_v33 = vand.u32 2147483647, %v2904_v27 }
 0xabe   :  { %v3040_v51 = vpop.permute.xlu1 %3039 }
 0xabf   :  { %6635 = vmatmul.mubr.msk.f32.vlgmr.msra.gmra.mxu1 %vm346_vm1, %v3040_v51  ;;  %v8448_v51 = vld [vmem:[%s7578_s5 + $0x28] sm:$0xff] }
 0xac0   :  { %3369 = vmatpush1.msra.mxu1 %v8346_v32  ;;  %3408 = vmatprep.mubr.f32.mxu1 %v9332_v11 }
 0xac1   :  { %3370 = vmatprep.subr.mxu1 %v8349_v48 }
 0xac2   :  { %3371 = vmatpush1.msra.mxu1 %v8354_v9 }
 0xac3   :  { %3372 = vmatprep.subr.mxu1 %v8358_v29 }
 0xac4   :  { %3373 = vmatpush1.msra.mxu1 %v8362_v36 }
 0xac5   :  { %3374 = vmatprep.subr.mxu1 %v8366_v49 }
 0xac6   :  { %3375 = vmatpush1.msra.mxu1 %v8370_v22 }
 0xb4a   :  { %v2889_v1 = vpop.f32.mrf.mxu0 }
 0xb4b   :  { %v2890_v43 = vadd.f32 %v8195_v45, %v2889_v1 }
 0xb4c   :  { %v6960_v53 = vpop.f32.mrf.mxu0 }
 0xb4d   :  { %v2895_v40 = vsub.f32 %v2890_v43, %v2815_v47  ;;  %v2906_v41 = vsub.f32 %v2890_v43, %v6628_v44 }
 0xb4f   :  { %v2896_v61 = vmul.f32 %v2895_v40, %v2894_v31  ;;  %v2907_v2 = vand.u32 2147483647, %v2906_v41 }
 0xb51   :  { %v2897_v42 = vadd.f32 %v2896_v61, %v2815_v47  ;;  %v2908_v24 = vadd.f32 %v2907_v2, %v2905_v33 }
 0xb53   :  { %v2898_v30 = vmul.f32 %v2897_v42, %v2721_v14  ;;  %6631 = vst.msk [vmem:[%s9373_s7 + $0x10] sm:$0xff] %vm184_vm0, %v2897_v42  ;;  %v2909_v46 = vsub.f32 %v2897_v42, %v6628_v44  ;;  %v8432_v14 = vld [vmem:[#allocation8 + $0x28] sm:$0xff] }
 0xb54   :  { %v3193_v44 = vld [vmem:[#allocation5 + $0x28] sm:$0xff] }
 0xb55   :  { %v2910_v25 = vand.u32 2147483647, %v2909_v46  ;;  %v2899_v0 = vadd.f32 %v2898_v30, %v2719_v19 }
 0xb57   :  { %v8419_v12 = vadd.f32 %v2910_v25, %v2908_v24  ;;  %2903 = vst.msk [vmem:[#allocation11 + $0x10] sm:$0xff] %vm184_vm0, %v2899_v0  ;;  %6966 = vmatmul.mubr.msk.f32.vlgmr.msra.gmra.mxu0 %vm184_vm0, %v2899_v0 }
 0xb58   :  { %6969 = vmatpush3.msra.mxu0 %v8208_v6  ;;  %6972 = vmatprep.mubr.msk.f32.mxu0 %vm7563_vm2, %v9332_v11 }
 0xb59   :  { %6970 = vmatprep.subr.mxu0 %v9332_v11 }
 0xb5a   :  { %6971 = vmatpush3.msra.mxu0 %v8215_v5 }
 0xb5b   :  { %6975 = vmatprep.subr.mxu0 %v9332_v11 }
 0xb7f   :  { %v3109_v13 = vpop.f32.mrf.mxu1 }
 0xb81   :  { %v3111_v4 = vpop.f32.mrf.mxu1 }
 0xb82   :  { %v3114_v3 = vadd.f32 %v8202_v37, %v3111_v4 }
 0xb84   :  { %v3115_v8 = vmul.f32 %v3114_v3, %v8429_v7 }
 0xb86   :  { %v3116_v6 = vadd.f32 %v3115_v8, %v8432_v14 }
 0xb88   :  { %6973 = vmatmul.mubr.msk.f32.vlgmr.msra.gmra.mxu0 %vm184_vm0, %v3116_v6 }
 0xb89   :  { %6976 = vmatpush3.msra.mxu0 %v8227_v21  ;;  %6979 = vmatprep.mubr.msk.f32.mxu0 %vm7563_vm2, %v9332_v11 }
 0xb8a   :  { %6977 = vmatprep.subr.mxu0 %v9332_v11 }
 0xb8b   :  { %6978 = vmatpush3.msra.mxu0 %v8232_v26 }
 0xb8c   :  { %6982 = vmatprep.subr.mxu0 %v9332_v11 }
 0xc17   :  { %v2984_v37 = vpop.f32.mrf.mxu0 }
 0xc18   :  { %v2985_v5 = vadd.f32 %v2984_v37, %v8396_v15  ;;  %v3203_v15 = vsub.f32 %v3114_v3, %v8448_v51 }
 0xc19   :  { %v6967_v47 = vpop.f32.mrf.mxu0 }
 0xc1a   :  { %v2990_v19 = vadd.f32 %v2985_v5, %v8029_v23  ;;  %v3204_v31 = vand.u32 2147483647, %v3203_v15 }
 0xc1c   :  { %7331 = vtanh.f32 %v2990_v19  ;;  %v6633_v33 = vmul.f32 -1.442695, %v2990_v19 }
 0xc1e   :  { %7333 = vpow2.f32 %v6633_v33  ;;  %v8487_v33 = vld [vmem:[%s9360_s13] sm:$0xff] }
 0xc29   :  { %v7332_v39 = vpop.eup %7331 }
 0xc2a   :  { %3000 = vrot.lane.b32.xlu0 %v7332_v39, %s7564_s18 }
 0xc2b   :  { %v7334_v46 = vpop.eup %7333 }
 0xc2c   :  { %v2994_v24 = vadd.f32 1.0, %v7334_v46  ;;  %v8495_v46 = vld [vmem:[%s9368_s30 + $0x30] sm:$0xff] }
 0xc2e   :  { %7335 = vrcp.f32 %v2994_v24  ;;  %v8498_v24 = vld [vmem:[%s9368_s30 + $0x28] sm:$0xff] }
 0xc3b   :  { %v7336_v25 = vpop.eup %7335 }
 0xc3c   :  { %v2998_v8 = vmul.f32 %v7336_v25, %v8337_v56 }
 0xc48   :  { %v3188_v21 = vpop.f32.mrf.mxu0 }
 0xc49   :  { %v3189_v60 = vadd.f32 %v8240_v50, %v3188_v21 }
 0xc4a   :  { %v6974_v1 = vpop.f32.mrf.mxu0 }
 0xc4b   :  { %v3194_v26 = vsub.f32 %v3189_v60, %v3114_v3  ;;  %v3205_v43 = vsub.f32 %v3189_v60, %v8448_v51 }
 0xc4d   :  { %v3195_v53 = vmul.f32 %v3194_v26, %v3193_v44  ;;  %v3206_v23 = vand.u32 2147483647, %v3205_v43 }
 0xc4f   :  { %v3196_v40 = vadd.f32 %v3195_v53, %v3114_v3  ;;  %v3207_v27 = vadd.f32 %v3206_v23, %v3204_v31  ;;  %v3325_v3 = vld [vmem:[#allocation2 + $0x18] sm:$0xff]  ;;  %v3624_v23 = vld [vmem:[#allocation3 + $0x20] sm:$0xff] }
 0xc51   :  { %v3197_v41 = vmul.f32 %v3196_v40, %v8429_v7  ;;  %6637 = vst.msk [vmem:[%s9377_s16 + $0x28] sm:$0xff] %vm184_vm0, %v3196_v40  ;;  %v3208_v61 = vsub.f32 %v3196_v40, %v8448_v51 }
 0xc53   :  { %v3209_v42 = vand.u32 2147483647, %v3208_v61  ;;  %v3198_v2 = vadd.f32 %v3197_v41, %v8432_v14 }
 0xc55   :  { %v8457_v30 = vadd.f32 %v3209_v42, %v3207_v27  ;;  %3202 = vst.msk [vmem:[#allocation12 + $0x28] sm:$0xff] %vm184_vm0, %v3198_v2  ;;  %6980 = vmatmul.mubr.msk.f32.vlgmr.msra.gmra.mxu0 %vm184_vm0, %v3198_v2  ;;  %v8483_v2 = vld [vmem:[%s9360_s13 + $0x8] sm:$0xff] }
 0xc56   :  { %6986 = vmatprep.mubr.msk.f32.mxu0 %vm7563_vm2, %v9332_v11  ;;  %6983 = vmatpush3.msra.mxu0 %v8483_v2 }
 0xc57   :  { %6984 = vmatprep.subr.mxu0 %v9332_v11 }
 0xc58   :  { %6985 = vmatpush3.msra.mxu0 %v8487_v33 }
 0xc59   :  { %6989 = vmatprep.subr.mxu0 %v9332_v11 }
 0xc9c   :  { %v3001_v0 = vpop.permute.xlu0 %3000 }
 0xc9d   :  { %v3003_v4 = vmul.f32 %v7336_v25, %v3001_v0  ;;  %v8507_v0 = vld [vmem:[%s9368_s30 + $0x18] sm:$0xff] }
 0xc9f   :  { %3005 = vrot.lane.b32.xlu1 %v3003_v4, %s7565_s22  ;;  %v8511_v4 = vld [vmem:[%s9368_s30 + $0x10] sm:$0xff] }
 0xca3   :  { %3327 = vrot.lane.b32.xlu1 %v3325_v3, %s7566_s23  ;;  %v8515_v3 = vld [vmem:[%s9368_s30 + $0x8] sm:$0xff] }
 0xd11   :  { %v3006_v6 = vpop.permute.xlu1 %3005 }
 0xd12   :  { %v8466_v37 = vadd.f32 %v3006_v6, %v2998_v8  ;;  %v8519_v8 = vld [vmem:[%s9368_s30] sm:$0xff] }
 0xd14   :  { %7337 = vtanh.f32 %v8466_v37 }
 0xd15   :  { %v3283_v5 = vpop.f32.mrf.mxu0  ;;  %v3328_v53 = vpop.permute.xlu1 %3327 }
 0xd16   :  { %v3284_v47 = vadd.f32 %v3283_v5, %v3109_v13 }
 0xd17   :  { %v6981_v19 = vpop.f32.mrf.mxu0 }
 0xd18   :  { %v3289_v39 = vadd.f32 %v3284_v47, %v8109_v17 }
 0xd1a   :  { %7339 = vtanh.f32 %v3289_v39  ;;  %v6639_v1 = vmul.f32 -1.442695, %v3289_v39 }
 0xd1c   :  { %7341 = vpow2.f32 %v6639_v1  ;;  %v8531_v1 = vld [vmem:[%s9369_s6] ss:$0 sm:$0xff] }
 0xd21   :  { %v7338_v21 = vpop.eup %7337 }
 0xd22   :  { %3011 = vrot.lane.b32.xlu0 %v7338_v21, %s7564_s18  ;;  %v8528_v21 = vld [vmem:[#allocation9 + $0x18] sm:$0xff] }
 0xd27   :  { %v7340_v60 = vpop.eup %7339 }
 0xd28   :  { %3299 = vrot.lane.b32.xlu1 %v7340_v60, %s7564_s18 }
 0xd29   :  { %v7342_v56 = vpop.eup %7341 }
 0xd2a   :  { %v3293_v26 = vadd.f32 1.0, %v7342_v56 }
 0xd2c   :  { %7343 = vrcp.f32 %v3293_v26  ;;  %v8534_v26 = vld [vmem:[#allocation8 + $0x18] sm:$0xff] }
 0xd39   :  { %v7344_v17 = vpop.eup %7343 }
 0xd3a   :  { %v3297_v31 = vmul.f32 %v7344_v17, %v8386_v55  ;;  %v8492_v55 = vld [vmem:[%s9368_s30 + $0x38] sm:$0xff] }
 0xd3b   :  { %3667 = vmatprep.subr.mxu1 %v8492_v55 }
 0xd94   :  { %v3012_v43 = vpop.permute.xlu0 %3011 }
 0xd95   :  { %v3014_v44 = vmul.f32 %v7336_v25, %v3012_v43  ;;  %v8502_v25 = vld [vmem:[%s9368_s30 + $0x20] sm:$0xff] }
 0xd97   :  { %v3330_v15 = vmul.f32 %v3328_v53, %v3014_v44  ;;  %v8552_v53 = vld [vmem:[%s9370_s12 + $0x8] sm:$0xff] }
 0xd99   :  { %3340 = vrot.lane.b32.xlu0 %v3330_v15, %s7565_s22  ;;  %v3494_v15 = vld [vmem:[#allocation4 + $0x18] sm:$0xff] }
 0xd9a   :  { %v3300_v13 = vpop.permute.xlu1 %3299 }
 0xd9b   :  { %v3302_v40 = vmul.f32 %v7344_v17, %v3300_v13 }
 0xd9d   :  { %3304 = vrot.lane.b32.xlu0 %v3302_v40, %s7565_s22 }
 0xda1   :  { %3626 = vrot.lane.b32.xlu0 %v3624_v23, %s7566_s23 }
 0xe0b   :  { %v3341_v41 = vpop.permute.xlu0 %3340 }
 0xe0c   :  { %6641 = vmatmul.mubr.msk.f32.vlgmr.msra.gmra.mxu1 %vm346_vm1, %v3341_v41 }
 0xe0d   :  { %3707 = vmatprep.mubr.f32.mxu1 %v9332_v11  ;;  %3668 = vmatpush1.msra.mxu1 %v8495_v46 }
 0xe0e   :  { %3669 = vmatprep.subr.mxu1 %v8498_v24 }
 0xe0f   :  { %v3305_v61 = vpop.permute.xlu0 %3304  ;;  %3670 = vmatpush1.msra.mxu1 %v8502_v25 }
 0xe10   :  { %v8478_v27 = vadd.f32 %v3305_v61, %v3297_v31  ;;  %3671 = vmatprep.subr.mxu1 %v8507_v0 }
 0xe11   :  { %3672 = vmatpush1.msra.mxu1 %v8511_v4 }
 0xe12   :  { %7345 = vtanh.f32 %v8478_v27  ;;  %3673 = vmatprep.subr.mxu1 %v8515_v3 }
 0xe13   :  { %3674 = vmatpush1.msra.mxu1 %v8519_v8  ;;  %v3627_v47 = vpop.permute.xlu0 %3626 }
 0xe14   :  { %3964 = vmatprep.subr.mxu1 %v8343_v62 }
 0xe1f   :  { %v7346_v42 = vpop.eup %7345 }
 0xe20   :  { %3310 = vrot.lane.b32.xlu1 %v7346_v42, %s7564_s18 }
 0xe92   :  { %v3311_v6 = vpop.permute.xlu1 %3310 }
 0xe93   :  { %v3313_v5 = vmul.f32 %v7344_v17, %v3311_v6 }
 0xe95   :  { %v3629_v19 = vmul.f32 %v3627_v47, %v3313_v5  ;;  %v8573_v5 = vld [vmem:[%s9374_s10 + $0x8] sm:$0xff] }
 0xe97   :  { %3639 = vrot.lane.b32.xlu1 %v3629_v19, %s7565_s22  ;;  %v8580_v19 = vld [vmem:[%s9374_s10] sm:$0xff] }
 0xecc   :  { %v8526_v39 = vpop.f32.mrf.mxu1 }
 0xece   :  { %v3412_v60 = vpop.f32.mrf.mxu1 }
 0xecf   :  { %v3415_v56 = vadd.f32 %v8531_v1, %v3412_v60 }
 0xed1   :  { %v3416_v62 = vmul.f32 %v3415_v56, %v8528_v21 }
 0xed3   :  { %v3417_v43 = vadd.f32 %v3416_v62, %v8534_v26 }
 0xed5   :  { %6987 = vmatmul.mubr.msk.f32.vlgmr.msra.gmra.mxu0 %vm184_vm0, %v3417_v43  ;;  %v8593_v43 = vld [vmem:[%s9372_s4] ss:$0 sm:$0xff] }
 0xed6   :  { %6993 = vmatprep.mubr.msk.f32.mxu0 %vm7563_vm2, %v9332_v11  ;;  %6990 = vmatpush3.msra.mxu0 %v8552_v53 }
 0xed7   :  { %6991 = vmatprep.subr.mxu0 %v9332_v11 }
 0xf09   :  { %v3640_v44 = vpop.permute.xlu1 %3639 }
 0xf0a   :  { %6647 = vmatmul.mubr.msk.f32.vlgmr.msra.gmra.mxu1 %vm346_vm1, %v3640_v44 }
 0xf0b   :  { %3965 = vmatpush1.msra.mxu1 %v8346_v32  ;;  %4004 = vmatprep.mubr.f32.mxu1 %v9332_v11  ;;  %v8557_v32 = vld [vmem:[%s9370_s12] sm:$0xff] }
 0xf0c   :  { %3966 = vmatprep.subr.mxu1 %v8349_v48  ;;  %6992 = vmatpush3.msra.mxu0 %v8557_v32 }
 0xf0d   :  { %3967 = vmatpush1.msra.mxu1 %v8354_v9  ;;  %6996 = vmatprep.subr.mxu0 %v9332_v11 }
 0xf0e   :  { %3968 = vmatprep.subr.mxu1 %v8358_v29  ;;  %v8563_v29 = vld [vmem:[%s7578_s5 + $0x18] sm:$0xff] }
 0xf0f   :  { %3969 = vmatpush1.msra.mxu1 %v8362_v36  ;;  %v3504_v13 = vsub.f32 %v3415_v56, %v8563_v29 }
 0xf10   :  { %3970 = vmatprep.subr.mxu1 %v8366_v49 }
 0xf11   :  { %3971 = vmatpush1.msra.mxu1 %v8370_v22  ;;  %v3505_v31 = vand.u32 2147483647, %v3504_v13 }
 0xf12   :  { %4259 = vmatprep.subr.mxu1 %v8492_v55 }
 0xf95   :  { %v3489_v48 = vpop.f32.mrf.mxu0 }
 0xf96   :  { %v3490_v9 = vadd.f32 %v8195_v45, %v3489_v48  ;;  %v8596_v48 = vld [vmem:[#allocation8 + $0x20] sm:$0xff] }
 0xf97   :  { %v6988_v36 = vpop.f32.mrf.mxu0 }
 0xf98   :  { %v3495_v49 = vsub.f32 %v3490_v9, %v3415_v56  ;;  %v3506_v22 = vsub.f32 %v3490_v9, %v8563_v29 }
 0xf9a   :  { %v3496_v17 = vmul.f32 %v3495_v49, %v3494_v15  ;;  %v3507_v23 = vand.u32 2147483647, %v3506_v22  ;;  %v8604_v49 = vld [vmem:[%s9375_s11 + $0x8] sm:$0xff]  ;;  %v8609_v22 = vld [vmem:[%s9375_s11] sm:$0xff] }
 0xf9c   :  { %v3497_v40 = vadd.f32 %v3496_v17, %v3415_v56  ;;  %v3508_v61 = vadd.f32 %v3507_v23, %v3505_v31  ;;  %v8590_v56 = vld [vmem:[#allocation9 + $0x20] sm:$0xff] }
 0xf9e   :  { %v3498_v41 = vmul.f32 %v3497_v40, %v8528_v21  ;;  %6643 = vst.msk [vmem:[%s9373_s7 + $0x18] sm:$0xff] %vm184_vm0, %v3497_v40  ;;  %v3509_v45 = vsub.f32 %v3497_v40, %v8563_v29 }
 0xfa0   :  { %v3510_v42 = vand.u32 2147483647, %v3509_v45  ;;  %v3499_v6 = vadd.f32 %v3498_v41, %v8534_v26  ;;  %v8618_v45 = vld [vmem:[%s7578_s5 + $0x20] sm:$0xff] }
 0xfa2   :  { %v8575_v47 = vadd.f32 %v3510_v42, %v3508_v61  ;;  %3503 = vst.msk [vmem:[#allocation11 + $0x18] sm:$0xff] %vm184_vm0, %v3499_v6  ;;  %6994 = vmatmul.mubr.msk.f32.vlgmr.msra.gmra.mxu0 %vm184_vm0, %v3499_v6 }
 0xfa3   :  { %6997 = vmatpush3.msra.mxu0 %v8573_v5  ;;  %7000 = vmatprep.mubr.msk.f32.mxu0 %vm7563_vm2, %v9332_v11 }
 0xfa4   :  { %6998 = vmatprep.subr.mxu0 %v9332_v11 }
 0xfa5   :  { %6999 = vmatpush3.msra.mxu0 %v8580_v19 }
 0xfa6   :  { %7003 = vmatprep.subr.mxu0 %v9332_v11 }
 0xfca   :  { %v8588_v60 = vpop.f32.mrf.mxu1 }
 0xfcc   :  { %v3711_v62 = vpop.f32.mrf.mxu1 }
 0xfcd   :  { %v3714_v44 = vadd.f32 %v8593_v43, %v3711_v62  ;;  %v3793_v62 = vld [vmem:[#allocation5 + $0x20] sm:$0xff] }
 0xfcf   :  { %v3715_v9 = vmul.f32 %v3714_v44, %v8590_v56 }
 0xfd1   :  { %v3716_v36 = vadd.f32 %v3715_v9, %v8596_v48 }
 0xfd3   :  { %7001 = vmatmul.mubr.msk.f32.vlgmr.msra.gmra.mxu0 %vm184_vm0, %v3716_v36 }
 0xfd4   :  { %7007 = vmatprep.mubr.msk.f32.mxu0 %vm7563_vm2, %v9332_v11  ;;  %7004 = vmatpush3.msra.mxu0 %v8604_v49 }
 0xfd5   :  { %7005 = vmatprep.subr.mxu0 %v9332_v11 }
 0xfd6   :  { %7006 = vmatpush3.msra.mxu0 %v8609_v22 }
 0xfd7   :  { %7010 = vmatprep.subr.mxu0 %v9332_v11 }
0x1062   :  { %v3584_v15 = vpop.f32.mrf.mxu0 }
0x1063   :  { %v3585_v17 = vadd.f32 %v3584_v15, %v8526_v39  ;;  %v3803_v39 = vsub.f32 %v3714_v44, %v8618_v45 }
0x1064   :  { %v6995_v13 = vpop.f32.mrf.mxu0 }
0x1065   :  { %v3590_v40 = vadd.f32 %v3585_v17, %v8032_v38  ;;  %v3804_v17 = vand.u32 2147483647, %v3803_v39  ;;  %v3921_v39 = vld [vmem:[#allocation2 + $0x20] sm:$0xff] }
0x1067   :  { %7347 = vtanh.f32 %v3590_v40 }
0x1074   :  { %v7348_v23 = vpop.eup %7347 }
0x1075   :  { %3600 = vrot.lane.b32.xlu0 %v7348_v23, %s7564_s18 }
0x1093   :  { %v3788_v41 = vpop.f32.mrf.mxu0 }
0x1094   :  { %v3789_v31 = vadd.f32 %v8240_v50, %v3788_v41 }
0x1095   :  { %v7002_v61 = vpop.f32.mrf.mxu0 }
0x1096   :  { %v3794_v42 = vsub.f32 %v3789_v31, %v3714_v44  ;;  %v3805_v6 = vsub.f32 %v3789_v31, %v8618_v45 }
0x1098   :  { %v3795_v9 = vmul.f32 %v3794_v42, %v3793_v62  ;;  %v3806_v38 = vand.u32 2147483647, %v3805_v6 }
0x109a   :  { %v3796_v36 = vadd.f32 %v3795_v9, %v3714_v44  ;;  %v3807_v50 = vadd.f32 %v3806_v38, %v3804_v17  ;;  %v6645_v44 = vmul.f32 -1.442695, %v3590_v40 }
0x109c   :  { %v3797_v15 = vmul.f32 %v3796_v36, %v8590_v56  ;;  %6649 = vst.msk [vmem:[%s9377_s16 + $0x20] sm:$0xff] %vm184_vm0, %v3796_v36  ;;  %v3808_v13 = vsub.f32 %v3796_v36, %v8618_v45  ;;  %7349 = vpow2.f32 %v6645_v44 }
0x109e   :  { %v3809_v23 = vand.u32 2147483647, %v3808_v13  ;;  %v3798_v41 = vadd.f32 %v3797_v15, %v8596_v48 }
0x10a0   :  { %v8627_v61 = vadd.f32 %v3809_v23, %v3807_v50  ;;  %3802 = vst.msk [vmem:[#allocation12 + $0x20] sm:$0xff] %vm184_vm0, %v3798_v41  ;;  %7008 = vmatmul.mubr.msk.f32.vlgmr.msra.gmra.mxu0 %vm184_vm0, %v3798_v41 }
0x10a1   :  { %7011 = vmatpush3.msra.mxu0 %v8483_v2  ;;  %7014 = vmatprep.mubr.msk.f32.mxu0 %vm7563_vm2, %v9332_v11 }
0x10a2   :  { %7012 = vmatprep.subr.mxu0 %v9332_v11 }
0x10a3   :  { %7013 = vmatpush3.msra.mxu0 %v8487_v33 }
0x10a4   :  { %7017 = vmatprep.subr.mxu0 %v9332_v11 }
0x10a9   :  { %v7350_v31 = vpop.eup %7349 }
0x10aa   :  { %v3594_v42 = vadd.f32 1.0, %v7350_v31 }
0x10ac   :  { %7351 = vrcp.f32 %v3594_v42 }
0x10b9   :  { %v7352_v6 = vpop.eup %7351 }
0x10ba   :  { %v3598_v36 = vmul.f32 %v7352_v6, %v8466_v37 }
0x10e7   :  { %v3601_v62 = vpop.permute.xlu0 %3600 }
0x10e8   :  { %v3603_v9 = vmul.f32 %v7352_v6, %v3601_v62 }
0x10ea   :  { %3605 = vrot.lane.b32.xlu1 %v3603_v9, %s7565_s22 }
0x10ee   :  { %3923 = vrot.lane.b32.xlu1 %v3921_v39, %s7566_s23 }
0x115c   :  { %v3606_v38 = vpop.permute.xlu1 %3605 }
0x115d   :  { %v8640_v15 = vadd.f32 %v3606_v38, %v3598_v36  ;;  %v4216_v38 = vld [vmem:[#allocation3 + $0x18] sm:$0xff] }
0x115f   :  { %7353 = vtanh.f32 %v8640_v15 }
0x1160   :  { %v3883_v40 = vpop.f32.mrf.mxu0  ;;  %v3924_v9 = vpop.permute.xlu1 %3923 }
0x1161   :  { %v3884_v17 = vadd.f32 %v3883_v40, %v8588_v60 }
0x1162   :  { %v7009_v13 = vpop.f32.mrf.mxu0 }
0x1163   :  { %v3889_v50 = vadd.f32 %v3884_v17, %v8105_v54 }
0x1165   :  { %7355 = vtanh.f32 %v3889_v50  ;;  %v6651_v44 = vmul.f32 -1.442695, %v3889_v50 }
0x1167   :  { %7357 = vpow2.f32 %v6651_v44 }
0x116c   :  { %v7354_v23 = vpop.eup %7353 }
0x116d   :  { %3611 = vrot.lane.b32.xlu0 %v7354_v23, %s7564_s18 }
0x1172   :  { %v7356_v41 = vpop.eup %7355 }
0x1173   :  { %3899 = vrot.lane.b32.xlu1 %v7356_v41, %s7564_s18 }
0x1174   :  { %v7358_v37 = vpop.eup %7357 }
0x1175   :  { %v3893_v31 = vadd.f32 1.0, %v7358_v37 }
0x1177   :  { %7359 = vrcp.f32 %v3893_v31 }
0x1184   :  { %v7360_v60 = vpop.eup %7359 }
0x11df   :  { %v3612_v42 = vpop.permute.xlu0 %3611 }
0x11e0   :  { %v3614_v62 = vmul.f32 %v7352_v6, %v3612_v42  ;;  %v3897_v6 = vmul.f32 %v7360_v60, %v8478_v27 }
0x11e2   :  { %v3926_v39 = vmul.f32 %v3924_v9, %v3614_v62 }
0x11e4   :  { %3936 = vrot.lane.b32.xlu0 %v3926_v39, %s7565_s22 }
0x11e5   :  { %v3900_v54 = vpop.permute.xlu1 %3899 }
0x11e6   :  { %v3902_v36 = vmul.f32 %v7360_v60, %v3900_v54  ;;  %v8680_v54 = vld [vmem:[%s9371_s20] ss:$0 sm:$0xff] }
0x11e8   :  { %3904 = vrot.lane.b32.xlu0 %v3902_v36, %s7565_s22 }
0x11ec   :  { %4218 = vrot.lane.b32.xlu0 %v4216_v38, %s7566_s23 }
0x1256   :  { %v3937_v40 = vpop.permute.xlu0 %3936 }
0x1257   :  { %6653 = vmatmul.mubr.msk.f32.vlgmr.msra.gmra.mxu1 %vm346_vm1, %v3937_v40 }
0x1258   :  { %4260 = vmatpush1.msra.mxu1 %v8495_v46  ;;  %4299 = vmatprep.mubr.f32.mxu1 %v9332_v11 }
0x1259   :  { %4261 = vmatprep.subr.mxu1 %v8498_v24 }
0x125a   :  { %v3905_v17 = vpop.permute.xlu0 %3904  ;;  %4262 = vmatpush1.msra.mxu1 %v8502_v25 }
0x125b   :  { %v8656_v13 = vadd.f32 %v3905_v17, %v3897_v6  ;;  %4263 = vmatprep.subr.mxu1 %v8507_v0  ;;  %v4090_v17 = vld [vmem:[#allocation4 + $0x20] sm:$0xff] }
0x125c   :  { %4264 = vmatpush1.msra.mxu1 %v8511_v4 }
0x125d   :  { %7361 = vtanh.f32 %v8656_v13  ;;  %4265 = vmatprep.subr.mxu1 %v8515_v3 }
0x125e   :  { %4266 = vmatpush1.msra.mxu1 %v8519_v8  ;;  %v4219_v41 = vpop.permute.xlu0 %4218 }
0x126a   :  { %v7362_v50 = vpop.eup %7361 }
0x126b   :  { %3910 = vrot.lane.b32.xlu1 %v7362_v50, %s7564_s18 }
0x12dd   :  { %v3911_v27 = vpop.permute.xlu1 %3910 }
0x12de   :  { %v3913_v23 = vmul.f32 %v7360_v60, %v3911_v27 }
0x12e0   :  { %v4221_v44 = vmul.f32 %v4219_v41, %v3913_v23 }
0x12e2   :  { %4231 = vrot.lane.b32.xlu1 %v4221_v44, %s7565_s22 }
0x1317   :  { %v8665_v37 = vpop.f32.mrf.mxu1 }
0x1319   :  { %v4008_v31 = vpop.f32.mrf.mxu1 }
0x131a   :  { %v4011_v42 = vadd.f32 %v8531_v1, %v4008_v31 }
0x131c   :  { %v4012_v62 = vmul.f32 %v4011_v42, %v8590_v56  ;;  %v4100_v27 = vsub.f32 %v4011_v42, %v8618_v45 }
0x131e   :  { %v4013_v9 = vadd.f32 %v4012_v62, %v8596_v48  ;;  %v4101_v31 = vand.u32 2147483647, %v4100_v27 }
0x1320   :  { %7015 = vmatmul.mubr.msk.f32.vlgmr.msra.gmra.mxu0 %vm184_vm0, %v4013_v9 }
0x1321   :  { %7018 = vmatpush3.msra.mxu0 %v8552_v53  ;;  %7021 = vmatprep.mubr.msk.f32.mxu0 %vm7563_vm2, %v9332_v11 }
0x1322   :  { %7019 = vmatprep.subr.mxu0 %v9332_v11 }
0x1323   :  { %7020 = vmatpush3.msra.mxu0 %v8557_v32 }
0x1324   :  { %7024 = vmatprep.subr.mxu0 %v9332_v11 }
0x1354   :  { %v4232_v39 = vpop.permute.xlu1 %4231 }
0x1355   :  { %6659 = vmatmul.mubr.msk.f32.vlgmr.msra.gmra.mxu1 %vm346_vm1, %v4232_v39 }
0x1356   :  { %4596 = vmatprep.mubr.f32.mxu1 %v9332_v11 }
0x13e0   :  { %v4085_v60 = vpop.f32.mrf.mxu0 }
0x13e1   :  { %v4086_v36 = vadd.f32 %v8680_v54, %v4085_v60 }
0x13e2   :  { %v7016_v38 = vpop.f32.mrf.mxu0 }
0x13e3   :  { %v4091_v40 = vsub.f32 %v4086_v36, %v4011_v42  ;;  %v4102_v6 = vsub.f32 %v4086_v36, %v8618_v45 }
0x13e5   :  { %v4092_v50 = vmul.f32 %v4091_v40, %v4090_v17  ;;  %v4103_v41 = vand.u32 2147483647, %v4102_v6  ;;  %v8704_v40 = vld [vmem:[#allocation12 + $0x20] sm:$0xff] }
0x13e7   :  { %v4093_v23 = vadd.f32 %v4092_v50, %v4011_v42  ;;  %v4104_v9 = vadd.f32 %v4103_v41, %v4101_v31 }
0x13e9   :  { %v4094_v44 = vmul.f32 %v4093_v23, %v8590_v56  ;;  %6655 = vst.msk [vmem:[%s9373_s7 + $0x20] sm:$0xff] %vm184_vm0, %v4093_v23  ;;  %v4105_v62 = vsub.f32 %v4093_v23, %v8618_v45  ;;  %v6356_v56 = vld [vmem:[%s9377_s16 + $0x20] sm:$0xff] }
0x13eb   :  { %v4106_v39 = vand.u32 2147483647, %v4105_v62  ;;  %v4095_v60 = vadd.f32 %v4094_v44, %v8596_v48 }
0x13ed   :  { %v8690_v36 = vadd.f32 %v4106_v39, %v4104_v9  ;;  %4099 = vst.msk [vmem:[#allocation11 + $0x20] sm:$0xff] %vm184_vm0, %v4095_v60  ;;  %7022 = vmatmul.mubr.msk.f32.vlgmr.msra.gmra.mxu0 %vm184_vm0, %v4095_v60 }
0x13ee   :  { %7025 = vmatpush3.msra.mxu0 %v8573_v5  ;;  %7028 = vmatprep.mubr.msk.f32.mxu0 %vm7563_vm2, %v9332_v11 }
0x13ef   :  { %7026 = vmatprep.subr.mxu0 %v9332_v11 }
0x13f0   :  { %v6348_v45 = vld [vmem:[%s9373_s7 + $0x20] sm:$0xff]  ;;  %7027 = vmatpush3.msra.mxu0 %v8580_v19 }
0x13f1   :  { %v6364_v42 = vadd.f32 %v6356_v56, %v6348_v45  ;;  %7031 = vmatprep.subr.mxu0 %v9332_v11 }
0x13f3   :  { %v6372_v48 = vmul.f32 0.5, %v6364_v42  ;;  %v8730_v42 = vld [vmem:[%s9376_s15] ss:$0 sm:$0xff] }
0x13f4   :  { %v8702_v38 = vld [vmem:[#allocation11 + $0x20] sm:$0xff] }
0x13f5   :  { %6380 = vst.msk [vmem:[%s9378_s26 + $0x20] sm:$0xff] %vm184_vm0, %v6372_v48  ;;  %v6324_v6 = vadd.f32 %v8704_v40, %v8702_v38 }
0x13f7   :  { %v6332_v50 = vmul.f32 0.5, %v6324_v6 }
0x13f9   :  { %6340 = vst.msk [vmem:[%s9379_s28 + $0x20] sm:$0xff] %vm184_vm0, %v6332_v50 }
0x1415   :  { %v8714_v27 = vpop.f32.mrf.mxu1 }
0x1417   :  { %v4303_v23 = vpop.f32.mrf.mxu1 }
0x1418   :  { %v4306_v41 = vadd.f32 %v8593_v43, %v4303_v23 }
0x141a   :  { %v4307_v44 = vmul.f32 %v4306_v41, %v8528_v21 }
0x141c   :  { %v4308_v31 = vadd.f32 %v4307_v44, %v8534_v26  ;;  %v4385_v44 = vld [vmem:[#allocation5 + $0x18] sm:$0xff] }
0x141e   :  { %7029 = vmatmul.mubr.msk.f32.vlgmr.msra.gmra.mxu0 %vm184_vm0, %v4308_v31 }
0x141f   :  { %7032 = vmatpush3.msra.mxu0 %v8604_v49  ;;  %7035 = vmatprep.mubr.msk.f32.mxu0 %vm7563_vm2, %v9332_v11 }
0x1420   :  { %7033 = vmatprep.subr.mxu0 %v9332_v11 }
0x1421   :  { %7034 = vmatpush3.msra.mxu0 %v8609_v22 }
0x1422   :  { %7038 = vmatprep.subr.mxu0 %v9332_v11 }
0x14ad   :  { %v4180_v62 = vpop.f32.mrf.mxu0 }
0x14ae   :  { %v4181_v9 = vadd.f32 %v4180_v62, %v8665_v37  ;;  %v4395_v37 = vsub.f32 %v4306_v41, %v8563_v29 }
0x14af   :  { %v7023_v39 = vpop.f32.mrf.mxu0 }
0x14b0   :  { %v4186_v60 = vadd.f32 %v4181_v9, %v8035_v52  ;;  %v4396_v39 = vand.u32 2147483647, %v4395_v37 }
0x14b2   :  { %7363 = vtanh.f32 %v4186_v60 }
0x14bf   :  { %v7364_v56 = vpop.eup %7363 }
0x14c0   :  { %4196 = vrot.lane.b32.xlu0 %v7364_v56, %s7564_s18 }
0x14de   :  { %v4380_v45 = vpop.f32.mrf.mxu0 }
0x14df   :  { %v4381_v48 = vadd.f32 %v8730_v42, %v4380_v45 }
0x14e0   :  { %v7030_v6 = vpop.f32.mrf.mxu0 }
0x14e1   :  { %v4386_v50 = vsub.f32 %v4381_v48, %v4306_v41  ;;  %v4397_v23 = vsub.f32 %v4381_v48, %v8563_v29 }
0x14e3   :  { %v4387_v31 = vmul.f32 %v4386_v50, %v4385_v44  ;;  %v4398_v62 = vand.u32 2147483647, %v4397_v23  ;;  %v8752_v50 = vld [vmem:[#allocation11 + $0x18] sm:$0xff] }
0x14e5   :  { %v4388_v52 = vadd.f32 %v4387_v31, %v4306_v41  ;;  %v4399_v45 = vadd.f32 %v4398_v62, %v4396_v39 }
0x14e7   :  { %v4389_v9 = vmul.f32 %v4388_v52, %v8528_v21  ;;  %6661 = vst.msk [vmem:[%s9377_s16 + $0x18] sm:$0xff] %vm184_vm0, %v4388_v52  ;;  %v4400_v56 = vsub.f32 %v4388_v52, %v8563_v29  ;;  %v6347_v21 = vld [vmem:[%s9373_s7 + $0x18] sm:$0xff] }
0x14e9   :  { %v4401_v6 = vand.u32 2147483647, %v4400_v56  ;;  %v4390_v48 = vadd.f32 %v4389_v9, %v8534_v26  ;;  %v4513_v56 = vld [vmem:[#allocation2 + $0x28] sm:$0xff] }
0x14eb   :  { %v8740_v17 = vadd.f32 %v4401_v6, %v4399_v45  ;;  %4394 = vst.msk [vmem:[#allocation12 + $0x18] sm:$0xff] %vm184_vm0, %v4390_v48  ;;  %7036 = vmatmul.mubr.msk.f32.vlgmr.msra.gmra.mxu0 %vm184_vm0, %v4390_v48 }
0x14ec   :  { %7039 = vmatpush3.msra.mxu0 %v8483_v2  ;;  %7042 = vmatprep.mubr.msk.f32.mxu0 %vm7563_vm2, %v9332_v11 }
0x14ed   :  { %7040 = vmatprep.subr.mxu0 %v9332_v11 }
0x14ee   :  { %v6355_v29 = vld [vmem:[%s9377_s16 + $0x18] sm:$0xff]  ;;  %7041 = vmatpush3.msra.mxu0 %v8487_v33  ;;  %v6657_v33 = vmul.f32 -1.442695, %v4186_v60 }
0x14ef   :  { %v6363_v41 = vadd.f32 %v6355_v29, %v6347_v21  ;;  %7045 = vmatprep.subr.mxu0 %v9332_v11  ;;  %v4808_v11 = vld [vmem:[#allocation3 + $0x10] sm:$0xff] }
0x14f0   :  { %7365 = vpow2.f32 %v6657_v33  ;;  %v8784_v33 = vld [vmem:[%s9359_s0 + $0x20] sm:$0xff] }
0x14f1   :  { %v6371_v26 = vmul.f32 0.5, %v6363_v41 }
0x14f2   :  { %v8754_v23 = vld [vmem:[#allocation12 + $0x18] sm:$0xff] }
0x14f3   :  { %6379 = vst.msk [vmem:[%s9378_s26 + $0x18] sm:$0xff] %vm184_vm0, %v6371_v26  ;;  %v6323_v2 = vadd.f32 %v8754_v23, %v8752_v50 }
0x14f5   :  { %v6331_v31 = vmul.f32 0.5, %v6323_v2  ;;  %v8773_v2 = vld [vmem:[%s9359_s0 + $0x38] sm:$0xff] }
0x14f6   :  { %4556 = vmatprep.subr.mxu1 %v8773_v2 }
0x14f7   :  { %6339 = vst.msk [vmem:[%s9379_s28 + $0x18] sm:$0xff] %vm184_vm0, %v6331_v31  ;;  %v8779_v31 = vld [vmem:[%s9359_s0 + $0x28] sm:$0xff] }
0x14fd   :  { %v7366_v37 = vpop.eup %7365 }
0x14fe   :  { %v4190_v52 = vadd.f32 1.0, %v7366_v37  ;;  %v8796_v37 = vld [vmem:[%s9359_s0 + $0x8] sm:$0xff] }
0x1500   :  { %7367 = vrcp.f32 %v4190_v52  ;;  %v8800_v52 = vld [vmem:[%s9359_s0] sm:$0xff] }
0x150d   :  { %v7368_v62 = vpop.eup %7367 }
0x150e   :  { %v4194_v45 = vmul.f32 %v7368_v62, %v8640_v15  ;;  %v8776_v15 = vld [vmem:[%s9359_s0 + $0x30] sm:$0xff] }
0x150f   :  { %4557 = vmatpush1.msra.mxu1 %v8776_v15 }
0x1510   :  { %4558 = vmatprep.subr.mxu1 %v8779_v31 }
0x1511   :  { %4559 = vmatpush1.msra.mxu1 %v8784_v33 }
0x1532   :  { %v4197_v9 = vpop.permute.xlu0 %4196 }
0x1533   :  { %v4199_v39 = vmul.f32 %v7368_v62, %v4197_v9 }
0x1535   :  { %4201 = vrot.lane.b32.xlu1 %v4199_v39, %s7565_s22 }
0x1539   :  { %4515 = vrot.lane.b32.xlu1 %v4513_v56, %s7566_s23 }
0x15a7   :  { %v4202_v6 = vpop.permute.xlu1 %4201 }
0x15a8   :  { %v8767_v60 = vadd.f32 %v4202_v6, %v4194_v45 }
0x15aa   :  { %7369 = vtanh.f32 %v8767_v60 }
0x15ab   :  { %v4475_v48 = vpop.f32.mrf.mxu0 }
0x15ac   :  { %v4476_v21 = vadd.f32 %v4475_v48, %v8714_v27  ;;  %v8788_v27 = vld [vmem:[%s9359_s0 + $0x18] sm:$0xff] }
0x15ad   :  { %v7037_v29 = vpop.f32.mrf.mxu0  ;;  %4560 = vmatprep.subr.mxu1 %v8788_v27 }
0x15ae   :  { %v4481_v41 = vadd.f32 %v4476_v21, %v8099_v20  ;;  %v8792_v20 = vld [vmem:[%s9359_s0 + $0x10] sm:$0xff]  ;;  %v4516_v21 = vpop.permute.xlu1 %4515  ;;  %s6444_s0 = sshll.u32 %s7568_s2, 4  ;;  %s6445_s0 = int_to_ptr.vmem [resolvable:$true] %s6444_s0 }
0x15af   :  { %4561 = vmatpush1.msra.mxu1 %v8792_v20  ;;  %s7461_s17 = scalar_lea.vmem %s6445_s0, 128  ;;  %p7466_p1 = scmp.lt.s32.totalorder %s6445_s0, %s6445_s0 }
0x15b0   :  { %7371 = vtanh.f32 %v4481_v41  ;;  %4562 = vmatprep.subr.mxu1 %v8796_v37  ;;  %v6663_v39 = vmul.f32 -1.442695, %v4481_v41  ;;  %v9380_v41 = vmov 0.0   ;;  %p7462_p0 = scmp.ne.s32.totalorder %s6445_s0, %s7461_s17  ;;  %p7467_p2 = scmp.lt.s32.totalorder %s7461_s17, %s7461_s17 }
0x15b1   :  { %4563 = vmatpush1.msra.mxu1 %v8800_v52 }
0x15b2   :  { %4851 = vmatprep.subr.mxu1 %v8492_v55  ;;  %7373 = vpow2.f32 %v6663_v39  ;;  %p7468_p3 = por %p7467_p2, %p7466_p1 }
0x15b4   :  { %p7469_p4 = pnand %p7468_p3, %p7462_p0 }
0x15b7   :  { %v7370_v26 = vpop.eup %7369 }
0x15b8   :  { %4207 = vrot.lane.b32.xlu0 %v7370_v26, %s7564_s18 }
0x15bd   :  { %v7372_v9 = vpop.eup %7371 }
0x15be   :  { %4491 = vrot.lane.b32.xlu1 %v7372_v9, %s7564_s18 }
0x15bf   :  { %v7374_v56 = vpop.eup %7373 }
0x15c0   :  { %v4485_v45 = vadd.f32 1.0, %v7374_v56 }
0x15c2   :  { %7375 = vrcp.f32 %v4485_v45 }
0x15cf   :  { %v7376_v26 = vpop.eup %7375 }
0x162a   :  { %v4208_v6 = vpop.permute.xlu0 %4207 }
0x162b   :  { %v4210_v48 = vmul.f32 %v7368_v62, %v4208_v6  ;;  %v4489_v62 = vmul.f32 %v7376_v26, %v8656_v13 }
0x162d   :  { %v4518_v29 = vmul.f32 %v4516_v21, %v4210_v48  ;;  %v4682_v21 = vld [vmem:[#allocation4 + $0x28] sm:$0xff] }
0x162f   :  { %4528 = vrot.lane.b32.xlu0 %v4518_v29, %s7565_s22 }
0x1630   :  { %v4492_v44 = vpop.permute.xlu1 %4491 }
0x1631   :  { %v4494_v9 = vmul.f32 %v7376_v26, %v4492_v44 }
0x1633   :  { %4496 = vrot.lane.b32.xlu0 %v4494_v9, %s7565_s22 }
0x1637   :  { %4810 = vrot.lane.b32.xlu0 %v4808_v11, %s7566_s23 }
0x16a1   :  { %v4529_v55 = vpop.permute.xlu0 %4528 }
0x16a2   :  { %6665 = vmatmul.mubr.msk.f32.vlgmr.msra.gmra.mxu1 %vm346_vm1, %v4529_v55 }
0x16a3   :  { %4852 = vmatpush1.msra.mxu1 %v8495_v46  ;;  %4891 = vmatprep.mubr.f32.mxu1 %v9380_v41 }
0x16a4   :  { %4853 = vmatprep.subr.mxu1 %v8498_v24 }
0x16a5   :  { %v4497_v39 = vpop.permute.xlu0 %4496  ;;  %4854 = vmatpush1.msra.mxu1 %v8502_v25 }
0x16a6   :  { %v8816_v44 = vadd.f32 %v4497_v39, %v4489_v62  ;;  %4855 = vmatprep.subr.mxu1 %v8507_v0 }
0x16a7   :  { %4856 = vmatpush1.msra.mxu1 %v8511_v4 }
0x16a8   :  { %7377 = vtanh.f32 %v8816_v44  ;;  %4857 = vmatprep.subr.mxu1 %v8515_v3 }
0x16a9   :  { %4858 = vmatpush1.msra.mxu1 %v8519_v8  ;;  %v4811_v25 = vpop.permute.xlu0 %4810 }
0x16aa   :  { %5148 = vmatprep.subr.mxu1 %v8773_v2 }
0x16b5   :  { %v7378_v11 = vpop.eup %7377 }
0x16b6   :  { %4502 = vrot.lane.b32.xlu1 %v7378_v11, %s7564_s18 }
0x1728   :  { %v4503_v46 = vpop.permute.xlu1 %4502 }
0x1729   :  { %v4505_v24 = vmul.f32 %v7376_v26, %v4503_v46 }
0x172b   :  { %v4813_v13 = vmul.f32 %v4811_v25, %v4505_v24 }
0x172d   :  { %4823 = vrot.lane.b32.xlu1 %v4813_v13, %s7565_s22 }
0x1762   :  { %v8826_v0 = vpop.f32.mrf.mxu1 }
0x1764   :  { %v4600_v4 = vpop.f32.mrf.mxu1 }
0x1765   :  { %v4603_v56 = vadd.f32 %v8531_v1, %v4600_v4 }
0x1767   :  { %v4604_v3 = vmul.f32 %v4603_v56, %v8429_v7  ;;  %v4692_v26 = vsub.f32 %v4603_v56, %v8448_v51 }
0x1769   :  { %v4605_v8 = vadd.f32 %v4604_v3, %v8432_v14  ;;  %v4693_v39 = vand.u32 2147483647, %v4692_v26  ;;  %v8869_v3 = vld [vmem:[#allocation12 + $0x28] sm:$0xff] }
0x176a   :  { %9381 = vst [vmem:[#allocation41_spill] sm:$0xff] %v8869_v3 }
0x176b   :  { %7043 = vmatmul.mubr.msk.f32.vlgmr.msra.gmra.mxu0 %vm184_vm0, %v4605_v8 }
0x176c   :  { %7046 = vmatpush3.msra.mxu0 %v8552_v53  ;;  %7049 = vmatprep.mubr.msk.f32.mxu0 %vm7563_vm2, %v9380_v41 }
0x176d   :  { %7047 = vmatprep.subr.mxu0 %v9380_v41 }
0x176e   :  { %7048 = vmatpush3.msra.mxu0 %v8557_v32 }
0x176f   :  { %7052 = vmatprep.subr.mxu0 %v9380_v41 }
0x179f   :  { %v4824_v45 = vpop.permute.xlu1 %4823 }
0x17a0   :  { %6671 = vmatmul.mubr.msk.f32.vlgmr.msra.gmra.mxu1 %vm346_vm1, %v4824_v45 }
0x17a1   :  { %5149 = vmatpush1.msra.mxu1 %v8776_v15  ;;  %5188 = vmatprep.mubr.f32.mxu1 %v9380_v41 }
0x17a2   :  { %5150 = vmatprep.subr.mxu1 %v8779_v31 }
0x17a3   :  { %5151 = vmatpush1.msra.mxu1 %v8784_v33 }
0x17a4   :  { %5152 = vmatprep.subr.mxu1 %v8788_v27 }
0x17a5   :  { %5153 = vmatpush1.msra.mxu1 %v8792_v20 }
0x17a6   :  { %5154 = vmatprep.subr.mxu1 %v8796_v37 }
0x17a7   :  { %5155 = vmatpush1.msra.mxu1 %v8800_v52 }
0x182b   :  { %v4677_v1 = vpop.f32.mrf.mxu0 }
0x182c   :  { %v4678_v53 = vadd.f32 %v8680_v54, %v4677_v1  ;;  %v4805_v1 = vld [vmem:[#allocation9 + $0x10] sm:$0xff] }
0x182d   :  { %v7044_v32 = vpop.f32.mrf.mxu0 }
0x182e   :  { %v4683_v6 = vsub.f32 %v4678_v53, %v4603_v56  ;;  %v4694_v48 = vsub.f32 %v4678_v53, %v8448_v51 }
0x1830   :  { %v4684_v29 = vmul.f32 %v4683_v6, %v4682_v21  ;;  %v4695_v55 = vand.u32 2147483647, %v4694_v48  ;;  %v4804_v6 = vld [vmem:[#allocation8 + $0x10] sm:$0xff] }
0x1832   :  { %v4685_v9 = vadd.f32 %v4684_v29, %v4603_v56  ;;  %v4696_v46 = vadd.f32 %v4695_v55, %v4693_v39  ;;  %v6670_v39 = vld [vmem:[%s7578_s5 + $0x10] sm:$0xff] }
0x1834   :  { %v4686_v62 = vmul.f32 %v4685_v9, %v8429_v7  ;;  %6667 = vst.msk [vmem:[%s9373_s7 + $0x28] sm:$0xff] %vm184_vm0, %v4685_v9  ;;  %v4697_v11 = vsub.f32 %v4685_v9, %v8448_v51  ;;  %v6357_v7 = vld [vmem:[%s9377_s16 + $0x28] sm:$0xff] }
0x1836   :  { %v4698_v24 = vand.u32 2147483647, %v4697_v11  ;;  %v4687_v25 = vadd.f32 %v4686_v62, %v8432_v14 }
0x1838   :  { %v8855_v13 = vadd.f32 %v4698_v24, %v4696_v46  ;;  %4691 = vst.msk [vmem:[#allocation11 + $0x28] sm:$0xff] %vm184_vm0, %v4687_v25  ;;  %7050 = vmatmul.mubr.msk.f32.vlgmr.msra.gmra.mxu0 %vm184_vm0, %v4687_v25  ;;  %v4977_v24 = vld [vmem:[#allocation5 + $0x10] sm:$0xff] }
0x1839   :  { %7053 = vmatpush3.msra.mxu0 %v8573_v5  ;;  %7056 = vmatprep.mubr.msk.f32.mxu0 %vm7563_vm2, %v9380_v41 }
0x183a   :  { %7054 = vmatprep.subr.mxu0 %v9380_v41 }
0x183b   :  { %v6349_v51 = vld [vmem:[%s9373_s7 + $0x28] sm:$0xff]  ;;  %7055 = vmatpush3.msra.mxu0 %v8580_v19 }
0x183c   :  { %v6365_v4 = vadd.f32 %v6357_v7, %v6349_v51  ;;  %7059 = vmatprep.subr.mxu0 %v9380_v41 }
0x183e   :  { %v6373_v14 = vmul.f32 0.5, %v6365_v4 }
0x183f   :  { %v8867_v56 = vld [vmem:[#allocation11 + $0x28] sm:$0xff] }
0x1840   :  { %6381 = vst.msk [vmem:[%s9378_s26 + $0x28] sm:$0xff] %vm184_vm0, %v6373_v14  ;;  %v6325_v5 = vadd.f32 %v8869_v3, %v8867_v56 }
0x1842   :  { %v6333_v45 = vmul.f32 0.5, %v6325_v5 }
0x1844   :  { %6341 = vst.msk [vmem:[%s9379_s28 + $0x28] sm:$0xff] %vm184_vm0, %v6333_v45 }
0x1860   :  { %v8879_v19 = vpop.f32.mrf.mxu1 }
0x1862   :  { %v4895_v53 = vpop.f32.mrf.mxu1 }
0x1863   :  { %v4898_v32 = vadd.f32 %v8593_v43, %v4895_v53 }
0x1865   :  { %v4899_v48 = vmul.f32 %v4898_v32, %v4805_v1 }
0x1867   :  { %v4900_v21 = vadd.f32 %v4899_v48, %v4804_v6 }
0x1869   :  { %7057 = vmatmul.mubr.msk.f32.vlgmr.msra.gmra.mxu0 %vm184_vm0, %v4900_v21 }
0x186a   :  { %7060 = vmatpush3.msra.mxu0 %v8604_v49  ;;  %7063 = vmatprep.mubr.msk.f32.mxu0 %vm7563_vm2, %v9380_v41 }
0x186b   :  { %7061 = vmatprep.subr.mxu0 %v9380_v41 }
0x186c   :  { %7062 = vmatpush3.msra.mxu0 %v8609_v22 }
0x186d   :  { %7066 = vmatprep.subr.mxu0 %v9380_v41 }
0x18f8   :  { %v4772_v29 = vpop.f32.mrf.mxu0 }
0x18f9   :  { %v4773_v43 = vadd.f32 %v4772_v29, %v8826_v0  ;;  %v4987_v0 = vsub.f32 %v4898_v32, %v6670_v39 }
0x18fa   :  { %v7051_v26 = vpop.f32.mrf.mxu0 }
0x18fb   :  { %v4778_v9 = vadd.f32 %v4773_v43, %v8042_v63  ;;  %v4988_v4 = vand.u32 2147483647, %v4987_v0  ;;  %v8904_v43 = vld [vmem:[#allocation11 + $0x10] sm:$0xff] }
0x18fd   :  { %7379 = vtanh.f32 %v4778_v9 }
0x190a   :  { %v7380_v55 = vpop.eup %7379 }
0x190b   :  { %4788 = vrot.lane.b32.xlu0 %v7380_v55, %s7564_s18 }
0x1929   :  { %v4972_v49 = vpop.f32.mrf.mxu0 }
0x192a   :  { %v4973_v62 = vadd.f32 %v8730_v42, %v4972_v49 }
0x192b   :  { %v7058_v11 = vpop.f32.mrf.mxu0 }
0x192c   :  { %v4978_v46 = vsub.f32 %v4973_v62, %v4898_v32  ;;  %v4989_v22 = vsub.f32 %v4973_v62, %v6670_v39  ;;  %v6669_v62 = vmul.f32 -1.442695, %v4778_v9 }
0x192e   :  { %v4979_v25 = vmul.f32 %v4978_v46, %v4977_v24  ;;  %v4990_v51 = vand.u32 2147483647, %v4989_v22  ;;  %7381 = vpow2.f32 %v6669_v62  ;;  %v5400_v62 = vld [vmem:[#allocation3 + $0x8] sm:$0xff] }
0x1930   :  { %v4980_v7 = vadd.f32 %v4979_v25, %v4898_v32  ;;  %v4991_v5 = vadd.f32 %v4990_v51, %v4988_v4  ;;  %v6346_v32 = vld [vmem:[%s9373_s7 + $0x10] sm:$0xff] }
0x1931   :  { %v5105_v25 = vld [vmem:[#allocation2 + $0x30] sm:$0xff] }
0x1932   :  { %v4981_v63 = vmul.f32 %v4980_v7, %v4805_v1  ;;  %6673 = vst.msk [vmem:[%s9377_s16 + $0x10] sm:$0xff] %vm184_vm0, %v4980_v7  ;;  %v4992_v14 = vsub.f32 %v4980_v7, %v6670_v39 }
0x1934   :  { %v4993_v45 = vand.u32 2147483647, %v4992_v14  ;;  %v4982_v53 = vadd.f32 %v4981_v63, %v4804_v6 }
0x1936   :  { %v8896_v48 = vadd.f32 %v4993_v45, %v4991_v5  ;;  %4986 = vst.msk [vmem:[#allocation12 + $0x10] sm:$0xff] %vm184_vm0, %v4982_v53  ;;  %7064 = vmatmul.mubr.msk.f32.vlgmr.msra.gmra.mxu0 %vm184_vm0, %v4982_v53 }
0x1937   :  { %7070 = vmatprep.mubr.msk.f32.mxu0 %vm7563_vm2, %v9380_v41 }
0x1939   :  { %v6354_v1 = vld [vmem:[%s9377_s16 + $0x10] sm:$0xff] }
0x193a   :  { %v6362_v21 = vadd.f32 %v6354_v1, %v6346_v32 }
0x193b   :  { %v7382_v39 = vpop.eup %7381 }
0x193c   :  { %v6370_v29 = vmul.f32 0.5, %v6362_v21  ;;  %v4782_v11 = vadd.f32 1.0, %v7382_v39 }
0x193d   :  { %v8906_v26 = vld [vmem:[#allocation12 + $0x10] sm:$0xff] }
0x193e   :  { %6378 = vst.msk [vmem:[%s9378_s26 + $0x10] sm:$0xff] %vm184_vm0, %v6370_v29  ;;  %v6322_v6 = vadd.f32 %v8906_v26, %v8904_v43  ;;  %7383 = vrcp.f32 %v4782_v11 }
0x1940   :  { %v6330_v49 = vmul.f32 0.5, %v6322_v6 }
0x1942   :  { %6338 = vst.msk [vmem:[%s9379_s28 + $0x10] sm:$0xff] %vm184_vm0, %v6330_v49 }
0x194b   :  { %v7384_v46 = vpop.eup %7383 }
0x194c   :  { %v4786_v0 = vmul.f32 %v7384_v46, %v8767_v60 }
0x197d   :  { %v4789_v22 = vpop.permute.xlu0 %4788 }
0x197e   :  { %v4791_v24 = vmul.f32 %v7384_v46, %v4789_v22 }
0x1980   :  { %4793 = vrot.lane.b32.xlu1 %v4791_v24, %s7565_s22 }
0x1984   :  { %5107 = vrot.lane.b32.xlu1 %v5105_v25, %s7566_s23  ;;  %v8937_v25 = vld [vmem:[%s9360_s13 + $0x8] sm:$0xff] }
0x1985   :  { %7067 = vmatpush3.msra.mxu0 %v8937_v25 }
0x1986   :  { %7068 = vmatprep.subr.mxu0 %v9380_v41 }
0x19f2   :  { %v4794_v7 = vpop.permute.xlu1 %4793 }
0x19f3   :  { %v8919_v51 = vadd.f32 %v4794_v7, %v4786_v0  ;;  %v8941_v0 = vld [vmem:[%s9360_s13] sm:$0xff]  ;;  %v8947_v7 = vld [vmem:[%s9368_s30 + $0x30] sm:$0xff] }
0x19f4   :  { %7069 = vmatpush3.msra.mxu0 %v8941_v0 }
0x19f5   :  { %7385 = vtanh.f32 %v8919_v51  ;;  %7073 = vmatprep.subr.mxu0 %v9380_v41 }
0x19f6   :  { %v5067_v9 = vpop.f32.mrf.mxu0  ;;  %v5108_v29 = vpop.permute.xlu1 %5107 }
0x19f7   :  { %v5068_v63 = vadd.f32 %v5067_v9, %v8879_v19  ;;  %v8950_v9 = vld [vmem:[%s9368_s30 + $0x28] sm:$0xff] }
0x19f8   :  { %v7065_v4 = vpop.f32.mrf.mxu0 }
0x19f9   :  { %v5073_v14 = vadd.f32 %v5068_v63, %v8096_v34  ;;  %v8953_v63 = vld [vmem:[%s9368_s30 + $0x20] sm:$0xff]  ;;  %v8958_v4 = vld [vmem:[%s9368_s30 + $0x18] sm:$0xff] }
0x19fb   :  { %7387 = vtanh.f32 %v5073_v14  ;;  %v6675_v53 = vmul.f32 -1.442695, %v5073_v14  ;;  %v8962_v14 = vld [vmem:[%s9368_s30 + $0x10] sm:$0xff] }
0x19fd   :  { %7389 = vpow2.f32 %v6675_v53 }
0x1a02   :  { %v7386_v5 = vpop.eup %7385 }
0x1a03   :  { %4799 = vrot.lane.b32.xlu0 %v7386_v5, %s7564_s18  ;;  %v8966_v5 = vld [vmem:[%s9368_s30 + $0x8] sm:$0xff] }
0x1a08   :  { %v7388_v45 = vpop.eup %7387 }
0x1a09   :  { %5083 = vrot.lane.b32.xlu1 %v7388_v45, %s7564_s18  ;;  %v8970_v45 = vld [vmem:[%s9368_s30] sm:$0xff] }
0x1a0a   :  { %v7390_v60 = vpop.eup %7389 }
0x1a0b   :  { %v5077_v32 = vadd.f32 1.0, %v7390_v60 }
0x1a0d   :  { %7391 = vrcp.f32 %v5077_v32 }
0x1a1a   :  { %v7392_v34 = vpop.eup %7391 }
0x1a1b   :  { %v5081_v11 = vmul.f32 %v7392_v34, %v8816_v44  ;;  %v5413_v44 = vld [vmem:[%s9368_s30 + $0x38] sm:$0xff] }
0x1a1c   :  { %5443 = vmatprep.subr.mxu1 %v5413_v44 }
0x1a75   :  { %v4800_v1 = vpop.permute.xlu0 %4799 }
0x1a76   :  { %v4802_v21 = vmul.f32 %v7384_v46, %v4800_v1 }
0x1a78   :  { %v5110_v6 = vmul.f32 %v5108_v29, %v4802_v21  ;;  %v5102_v29 = vld [vmem:[#allocation9 + $0x30] sm:$0xff] }
0x1a7a   :  { %5120 = vrot.lane.b32.xlu0 %v5110_v6, %s7565_s22 }
0x1a7b   :  { %v5084_v19 = vpop.permute.xlu1 %5083 }
0x1a7c   :  { %v5086_v49 = vmul.f32 %v7392_v34, %v5084_v19  ;;  %v8980_v19 = vld [vmem:[%s9369_s6] ss:$0 sm:$0xff] }
0x1a7e   :  { %5088 = vrot.lane.b32.xlu0 %v5086_v49, %s7565_s22 }
0x1a82   :  { %5402 = vrot.lane.b32.xlu0 %v5400_v62, %s7566_s23  ;;  %v5101_v62 = vld [vmem:[#allocation8 + $0x30] sm:$0xff] }
0x1aec   :  { %v5121_v39 = vpop.permute.xlu0 %5120 }
0x1aed   :  { %6677 = vmatmul.mubr.msk.f32.vlgmr.msra.gmra.mxu1 %vm346_vm1, %v5121_v39 }
0x1aee   :  { %5483 = vmatprep.mubr.f32.mxu1 %v9380_v41  ;;  %5444 = vmatpush1.msra.mxu1 %v8947_v7 }
0x1aef   :  { %5445 = vmatprep.subr.mxu1 %v8950_v9 }
0x1af0   :  { %v5089_v46 = vpop.permute.xlu0 %5088  ;;  %5446 = vmatpush1.msra.mxu1 %v8953_v63 }
0x1af1   :  { %v8932_v22 = vadd.f32 %v5089_v46, %v5081_v11  ;;  %5447 = vmatprep.subr.mxu1 %v8958_v4  ;;  %v5274_v46 = vld [vmem:[#allocation4 + $0x30] sm:$0xff] }
0x1af2   :  { %5448 = vmatpush1.msra.mxu1 %v8962_v14 }
0x1af3   :  { %7393 = vtanh.f32 %v8932_v22  ;;  %5449 = vmatprep.subr.mxu1 %v8966_v5 }
0x1af4   :  { %5450 = vmatpush1.msra.mxu1 %v8970_v45  ;;  %v5403_v32 = vpop.permute.xlu0 %5402 }
0x1af5   :  { %5740 = vmatprep.subr.mxu1 %v8773_v2 }
0x1b00   :  { %v7394_v24 = vpop.eup %7393 }
0x1b01   :  { %5094 = vrot.lane.b32.xlu1 %v7394_v24, %s7564_s18 }
0x1b73   :  { %v5095_v53 = vpop.permute.xlu1 %5094 }
0x1b74   :  { %v5097_v60 = vmul.f32 %v7392_v34, %v5095_v53  ;;  %v8996_v34 = vld [vmem:[%s9370_s12 + $0x8] sm:$0xff] }
0x1b76   :  { %v5405_v1 = vmul.f32 %v5403_v32, %v5097_v60 }
0x1b78   :  { %5415 = vrot.lane.b32.xlu1 %v5405_v1, %s7565_s22 }
0x1bad   :  { %v8977_v21 = vpop.f32.mrf.mxu1 }
0x1baf   :  { %v5192_v6 = vpop.f32.mrf.mxu1 }
0x1bb0   :  { %v5195_v49 = vadd.f32 %v8980_v19, %v5192_v6 }
0x1bb2   :  { %v5196_v39 = vmul.f32 %v5195_v49, %v5102_v29 }
0x1bb4   :  { %v5197_v11 = vadd.f32 %v5196_v39, %v5101_v62 }
0x1bb6   :  { %7071 = vmatmul.mubr.msk.f32.vlgmr.msra.gmra.mxu0 %vm184_vm0, %v5197_v11 }
0x1bb7   :  { %7077 = vmatprep.mubr.msk.f32.mxu0 %vm7563_vm2, %v9380_v41  ;;  %7074 = vmatpush3.msra.mxu0 %v8996_v34 }
0x1bb8   :  { %7075 = vmatprep.subr.mxu0 %v9380_v41 }
0x1bea   :  { %v5416_v2 = vpop.permute.xlu1 %5415 }
0x1beb   :  { %6683 = vmatmul.mubr.msk.f32.vlgmr.msra.gmra.mxu1 %vm346_vm1, %v5416_v2  ;;  %v9010_v2 = vld [vmem:[%s9374_s10 + $0x8] sm:$0xff] }
0x1bec   :  { %5741 = vmatpush1.msra.mxu1 %v8776_v15  ;;  %5780 = vmatprep.mubr.f32.mxu1 %v9380_v41  ;;  %v9001_v15 = vld [vmem:[%s9370_s12] sm:$0xff] }
0x1bed   :  { %5742 = vmatprep.subr.mxu1 %v8779_v31  ;;  %7076 = vmatpush3.msra.mxu0 %v9001_v15 }
0x1bee   :  { %5743 = vmatpush1.msra.mxu1 %v8784_v33  ;;  %7080 = vmatprep.subr.mxu0 %v9380_v41 }
0x1bef   :  { %5744 = vmatprep.subr.mxu1 %v8788_v27  ;;  %v6676_v27 = vld [vmem:[%s7578_s5 + $0x30] sm:$0xff] }
0x1bf0   :  { %5745 = vmatpush1.msra.mxu1 %v8792_v20 }
0x1bf1   :  { %5746 = vmatprep.subr.mxu1 %v8796_v37 }
0x1bf2   :  { %5747 = vmatpush1.msra.mxu1 %v8800_v52 }
0x1bf3   :  { %6034 = vmatprep.subr.mxu1 %v5413_v44  ;;  %v5284_v44 = vsub.f32 %v5195_v49, %v6676_v27 }
0x1bf5   :  { %v5285_v1 = vand.u32 2147483647, %v5284_v44 }
0x1c76   :  { %v5269_v31 = vpop.f32.mrf.mxu0 }
0x1c77   :  { %v5270_v33 = vadd.f32 %v8680_v54, %v5269_v31 }
0x1c78   :  { %v7072_v20 = vpop.f32.mrf.mxu0 }
0x1c79   :  { %v5275_v37 = vsub.f32 %v5270_v33, %v5195_v49  ;;  %v5286_v52 = vsub.f32 %v5270_v33, %v6676_v27 }
0x1c7b   :  { %v5276_v24 = vmul.f32 %v5275_v37, %v5274_v46  ;;  %v5287_v60 = vand.u32 2147483647, %v5286_v52  ;;  %v9029_v37 = vld [vmem:[#allocation12 + $0x30] sm:$0xff] }
0x1c7c   :  { %9383 = vst [vmem:[#allocation43_spill] sm:$0xff] %v9029_v37 }
0x1c7d   :  { %v5277_v53 = vadd.f32 %v5276_v24, %v5195_v49  ;;  %v5288_v39 = vadd.f32 %v5287_v60, %v5285_v1  ;;  %v9017_v49 = vld [vmem:[%s9374_s10] sm:$0xff] }
0x1c7f   :  { %v5278_v32 = vmul.f32 %v5277_v53, %v5102_v29  ;;  %6679 = vst.msk [vmem:[%s9373_s7 + $0x30] sm:$0xff] %vm184_vm0, %v5277_v53  ;;  %v5289_v6 = vsub.f32 %v5277_v53, %v6676_v27  ;;  %v6358_v29 = vld [vmem:[%s9377_s16 + $0x30] sm:$0xff]  ;;  %v5397_v53 = vld [vmem:[#allocation9 + $0x8] sm:$0xff] }
0x1c81   :  { %v5290_v54 = vand.u32 2147483647, %v5289_v6  ;;  %v5279_v11 = vadd.f32 %v5278_v32, %v5101_v62  ;;  %v9042_v32 = vld [vmem:[%s9372_s4] ss:$0 sm:$0xff]  ;;  %v5396_v6 = vld [vmem:[#allocation8 + $0x8] sm:$0xff] }
0x1c83   :  { %v9012_v31 = vadd.f32 %v5290_v54, %v5288_v39  ;;  %5283 = vst.msk [vmem:[#allocation11 + $0x30] sm:$0xff] %vm184_vm0, %v5279_v11  ;;  %7078 = vmatmul.mubr.msk.f32.vlgmr.msra.gmra.mxu0 %vm184_vm0, %v5279_v11  ;;  %v9049_v11 = vld [vmem:[%s9375_s11 + $0x8] sm:$0xff] }
0x1c84   :  { %7081 = vmatpush3.msra.mxu0 %v9010_v2  ;;  %7084 = vmatprep.mubr.msk.f32.mxu0 %vm7563_vm2, %v9380_v41 }
0x1c85   :  { %7082 = vmatprep.subr.mxu0 %v9380_v41 }
0x1c86   :  { %v6350_v62 = vld [vmem:[%s9373_s7 + $0x30] sm:$0xff]  ;;  %7083 = vmatpush3.msra.mxu0 %v9017_v49 }
0x1c87   :  { %v6366_v33 = vadd.f32 %v6358_v29, %v6350_v62  ;;  %7087 = vmatprep.subr.mxu0 %v9380_v41  ;;  %v9054_v29 = vld [vmem:[%s9375_s11] sm:$0xff] }
0x1c89   :  { %v6374_v27 = vmul.f32 0.5, %v6366_v33 }
0x1c8a   :  { %v9027_v20 = vld [vmem:[#allocation11 + $0x30] sm:$0xff] }
0x1c8b   :  { %9382 = vst [vmem:[#allocation42_spill] sm:$0xff] %v9027_v20  ;;  %6382 = vst.msk [vmem:[%s9378_s26 + $0x30] sm:$0xff] %vm184_vm0, %v6374_v27  ;;  %v6326_v52 = vadd.f32 %v9029_v37, %v9027_v20 }
0x1c8d   :  { %v6334_v24 = vmul.f32 0.5, %v6326_v52 }
0x1c8f   :  { %6342 = vst.msk [vmem:[%s9379_s28 + $0x30] sm:$0xff] %vm184_vm0, %v6334_v24 }
0x1cab   :  { %v9039_v44 = vpop.f32.mrf.mxu1 }
0x1cad   :  { %v5487_v60 = vpop.f32.mrf.mxu1 }
0x1cae   :  { %v5490_v1 = vadd.f32 %v9042_v32, %v5487_v60 }
0x1cb0   :  { %v5491_v39 = vmul.f32 %v5490_v1, %v5397_v53 }
0x1cb2   :  { %v5492_v54 = vadd.f32 %v5491_v39, %v5396_v6 }
0x1cb4   :  { %7085 = vmatmul.mubr.msk.f32.vlgmr.msra.gmra.mxu0 %vm184_vm0, %v5492_v54  ;;  %v6682_v54 = vld [vmem:[%s7578_s5 + $0x8] sm:$0xff] }
0x1cb5   :  { %7091 = vmatprep.mubr.msk.f32.mxu0 %vm7563_vm2, %v9380_v41  ;;  %7088 = vmatpush3.msra.mxu0 %v9049_v11  ;;  %v5579_v20 = vsub.f32 %v5490_v1, %v6682_v54 }
0x1cb6   :  { %7089 = vmatprep.subr.mxu0 %v9380_v41 }
0x1cb7   :  { %7090 = vmatpush3.msra.mxu0 %v9054_v29 }
0x1cb8   :  { %7094 = vmatprep.subr.mxu0 %v9380_v41 }
0x1d43   :  { %v5364_v62 = vpop.f32.mrf.mxu0 }
0x1d44   :  { %v5365_v33 = vadd.f32 %v5364_v62, %v8977_v21 }
0x1d45   :  { %v7079_v27 = vpop.f32.mrf.mxu0 }
0x1d46   :  { %v5370_v52 = vadd.f32 %v5365_v33, %v8050_v16  ;;  %v5580_v33 = vand.u32 2147483647, %v5579_v20  ;;  %v9077_v20 = vld [vmem:[#allocation11 + $0x8] sm:$0xff] }
0x1d48   :  { %7395 = vtanh.f32 %v5370_v52 }
0x1d55   :  { %v7396_v24 = vpop.eup %7395 }
0x1d56   :  { %5380 = vrot.lane.b32.xlu0 %v7396_v24, %s7564_s18 }
0x1d74   :  { %v5564_v60 = vpop.f32.mrf.mxu0 }
0x1d75   :  { %v5565_v39 = vadd.f32 %v8730_v42, %v5564_v60 }
0x1d76   :  { %v7086_v46 = vpop.f32.mrf.mxu0 }
0x1d77   :  { %v5570_v8 = vsub.f32 %v5565_v39, %v5490_v1  ;;  %v5581_v55 = vsub.f32 %v5565_v39, %v6682_v54 }
0x1d79   :  { %v5571_v37 = vmul.f32 %v5570_v8, %v5569_v57  ;;  %v5582_v62 = vand.u32 2147483647, %v5581_v55  ;;  %v6345_v57 = vld [vmem:[%s9373_s7 + $0x8] sm:$0xff] }
0x1d7b   :  { %v5572_v21 = vadd.f32 %v5571_v37, %v5490_v1  ;;  %v5583_v24 = vadd.f32 %v5582_v62, %v5580_v33  ;;  %v5697_v62 = vld [vmem:[#allocation2 + $0x38] sm:$0xff] }
0x1d7d   :  { %v5573_v16 = vmul.f32 %v5572_v21, %v5397_v53  ;;  %6685 = vst.msk [vmem:[%s9377_s16 + $0x8] sm:$0xff] %vm184_vm0, %v5572_v21  ;;  %v5584_v27 = vsub.f32 %v5572_v21, %v6682_v54 }
0x1d7f   :  { %v5585_v3 = vand.u32 2147483647, %v5584_v27  ;;  %v5574_v42 = vadd.f32 %v5573_v16, %v5396_v6 }
0x1d81   :  { %v9065_v60 = vadd.f32 %v5585_v3, %v5583_v24  ;;  %5578 = vst.msk [vmem:[#allocation12 + $0x8] sm:$0xff] %vm184_vm0, %v5574_v42  ;;  %7092 = vmatmul.mubr.msk.f32.vlgmr.msra.gmra.mxu0 %vm184_vm0, %v5574_v42 }
0x1d82   :  { %7095 = vmatpush3.msra.mxu0 %v8937_v25  ;;  %7098 = vmatprep.mubr.msk.f32.mxu0 %vm7563_vm2, %v9380_v41 }
0x1d83   :  { %7096 = vmatprep.subr.mxu0 %v9380_v41 }
0x1d84   :  { %v6353_v8 = vld [vmem:[%s9377_s16 + $0x8] sm:$0xff]  ;;  %7097 = vmatpush3.msra.mxu0 %v8941_v0  ;;  %v6681_v0 = vmul.f32 -1.442695, %v5370_v52 }
0x1d85   :  { %v6361_v55 = vadd.f32 %v6353_v8, %v6345_v57  ;;  %7101 = vmatprep.subr.mxu0 %v9380_v41 }
0x1d86   :  { %7397 = vpow2.f32 %v6681_v0 }
0x1d87   :  { %v6369_v3 = vmul.f32 0.5, %v6361_v55 }
0x1d88   :  { %v9079_v37 = vld [vmem:[#allocation12 + $0x8] sm:$0xff] }
0x1d89   :  { %6377 = vst.msk [vmem:[%s9378_s26 + $0x8] sm:$0xff] %vm184_vm0, %v6369_v3  ;;  %v6321_v25 = vadd.f32 %v9079_v37, %v9077_v20 }
0x1d8b   :  { %v6329_v53 = vmul.f32 0.5, %v6321_v25 }
0x1d8d   :  { %6337 = vst.msk [vmem:[%s9379_s28 + $0x8] sm:$0xff] %vm184_vm0, %v6329_v53 }
0x1d93   :  { %v7398_v1 = vpop.eup %7397 }
0x1d94   :  { %v5374_v6 = vadd.f32 1.0, %v7398_v1 }
0x1d96   :  { %7399 = vrcp.f32 %v5374_v6 }
0x1da3   :  { %v7400_v39 = vpop.eup %7399 }
0x1da4   :  { %v5378_v16 = vmul.f32 %v7400_v39, %v8919_v51 }
0x1dc8   :  { %v5381_v54 = vpop.permute.xlu0 %5380 }
0x1dc9   :  { %v5383_v21 = vmul.f32 %v7400_v39, %v5381_v54 }
0x1dcb   :  { %5385 = vrot.lane.b32.xlu1 %v5383_v21, %s7565_s22  ;;  %v5991_v21 = vld [vmem:[#allocation3] sm:$0xff] }
0x1dcf   :  { %5699 = vrot.lane.b32.xlu1 %v5697_v62, %s7566_s23  ;;  %v9106_v62 = vld [vmem:[%s7583_s9] sm:$0xff] }
0x1e3d   :  { %v5386_v33 = vpop.permute.xlu1 %5385 }
0x1e3e   :  { %v9092_v27 = vadd.f32 %v5386_v33, %v5378_v16  ;;  %v9111_v16 = vld [vmem:[%s7583_s9 + $0x8] sm:$0xff] }
0x1e3f   :  { %v1400_v33 = vsel %vm184_vm0, %v9111_v16, 0.0 }
0x1e40   :  { %9384 = vst [vmem:[#allocation44_spill] sm:$0xff] %v9092_v27  ;;  %7401 = vtanh.f32 %v9092_v27 }
0x1e41   :  { %v5659_v52 = vpop.f32.mrf.mxu0 }
0x1e42   :  { %v5660_v24 = vadd.f32 %v5659_v52, %v9039_v44  ;;  %v5700_v44 = vpop.permute.xlu1 %5699  ;;  %v9116_v52 = vld [vmem:[%s7583_s9 + $0x30] sm:$0xff] }
0x1e43   :  { %v7093_v42 = vpop.f32.mrf.mxu0 }
0x1e44   :  { %v5665_v57 = vadd.f32 %v5660_v24, %v8089_v58  ;;  %v1415_v24 = vsel %vm184_vm0, %v9116_v52, 0.0  ;;  %v9121_v42 = vld [vmem:[%s7583_s9 + $0x28] sm:$0xff] }
0x1e46   :  { %7403 = vtanh.f32 %v5665_v57  ;;  %v6687_v3 = vmul.f32 -1.442695, %v5665_v57  ;;  %v1412_v57 = vsel %vm184_vm0, %v9121_v42, 0.0 }
0x1e48   :  { %7405 = vpow2.f32 %v6687_v3 }
0x1e4d   :  { %v7402_v8 = vpop.eup %7401 }
0x1e4e   :  { %5391 = vrot.lane.b32.xlu0 %v7402_v8, %s7564_s18  ;;  %v9126_v8 = vld [vmem:[%s7583_s9 + $0x20] sm:$0xff] }
0x1e53   :  { %v7404_v55 = vpop.eup %7403 }
0x1e54   :  { %5675 = vrot.lane.b32.xlu1 %v7404_v55, %s7564_s18  ;;  %v1409_v55 = vsel %vm184_vm0, %v9126_v8, 0.0 }
0x1e55   :  { %v7406_v51 = vpop.eup %7405 }
0x1e56   :  { %v5669_v25 = vadd.f32 1.0, %v7406_v51 }
0x1e58   :  { %7407 = vrcp.f32 %v5669_v25 }
0x1e65   :  { %v9100_v58 = vpop.eup %7407 }
0x1e66   :  { %v5673_v51 = vmul.f32 %v9100_v58, %v8932_v22 }
0x1ec0   :  { %v5392_v53 = vpop.permute.xlu0 %5391 }
0x1ec1   :  { %v5394_v0 = vmul.f32 %v7400_v39, %v5392_v53  ;;  %v1397_v39 = vsel %vm184_vm0, %v9106_v62, 0.0 }
0x1ec3   :  { %v5702_v1 = vmul.f32 %v5700_v44, %v5394_v0 }
0x1ec5   :  { %5712 = vrot.lane.b32.xlu0 %v5702_v1, %s7565_s22 }
0x1ec6   :  { %v5676_v6 = vpop.permute.xlu1 %5675 }
0x1ec7   :  { %v5678_v54 = vmul.f32 %v9100_v58, %v5676_v6 }
0x1ec9   :  { %5680 = vrot.lane.b32.xlu0 %v5678_v54, %s7565_s22 }
0x1ecd   :  { %5993 = vrot.lane.b32.xlu0 %v5991_v21, %s7566_s23 }
0x1eec   :  { %1398 = vadd.xlane.f32.xlu0 %v1397_v39 }
0x1ef0   :  { %1401 = vadd.xlane.f32.xlu0 %v1400_v33 }
0x1ef4   :  { %1416 = vadd.xlane.f32.xlu0 %v1415_v24 }
0x1ef8   :  { %1413 = vadd.xlane.f32.xlu0 %v1412_v57 }
0x1efc   :  { %1410 = vadd.xlane.f32.xlu0 %v1409_v55 }
0x1f37   :  { %v5713_v3 = vpop.permute.xlu0 %5712 }
0x1f38   :  { %6689 = vmatmul.mubr.msk.f32.vlgmr.msra.gmra.mxu1 %vm346_vm1, %v5713_v3 }
0x1f39   :  { %6035 = vmatpush1.msra.mxu1 %v8947_v7  ;;  %6074 = vmatprep.mubr.f32.mxu1 %v9380_v41 }
0x1f3a   :  { %6036 = vmatprep.subr.mxu1 %v8950_v9 }
0x1f3b   :  { %v5681_v25 = vpop.permute.xlu0 %5680  ;;  %6037 = vmatpush1.msra.mxu1 %v8953_v63 }
0x1f3c   :  { %v9137_v53 = vadd.f32 %v5681_v25, %v5673_v51  ;;  %6038 = vmatprep.subr.mxu1 %v8958_v4 }
0x1f3d   :  { %6039 = vmatpush1.msra.mxu1 %v8962_v14 }
0x1f3e   :  { %9385 = vst [vmem:[#allocation45_spill] sm:$0xff] %v9137_v53  ;;  %7409 = vtanh.f32 %v9137_v53  ;;  %6040 = vmatprep.subr.mxu1 %v8966_v5 }
0x1f3f   :  { %6041 = vmatpush1.msra.mxu1 %v8970_v45  ;;  %v9145_v22 = vpop.permute.xlu0 %5993 }
0x1f4b   :  { %v7410_v7 = vpop.eup %7409 }
0x1f4c   :  { %5686 = vrot.lane.b32.xlu1 %v7410_v7, %s7564_s18 }
0x1f75   :  { %v1399_v9 = vpop.xlane.xlu0 %1398 }
0x1f76   :  { %v1421_v0 = vrot.slane %v1399_v9, 4 }
0x1f78   :  { %v1422_v63 = vadd.f32 %v1421_v0, %v1399_v9 }
0x1f79   :  { %v1402_v44 = vpop.xlane.xlu0 %1401 }
0x1f7a   :  { %v1423_v1 = vrot.slane %v1422_v63, 2  ;;  %v1427_v6 = vrot.slane %v1402_v44, 4 }
0x1f7c   :  { %v1424_v4 = vadd.f32 %v1423_v1, %v1422_v63  ;;  %v1428_v54 = vadd.f32 %v1427_v6, %v1402_v44 }
0x1f7d   :  { %v1417_v14 = vpop.xlane.xlu0 %1416 }
0x1f7e   :  { %v1425_v21 = vrot.slane %v1424_v4, 1  ;;  %v1429_v39 = vrot.slane %v1428_v54, 2  ;;  %v1457_v33 = vrot.slane %v1417_v14, 4 }
0x1f80   :  { %v1426_v5 = vadd.f32 %v1425_v21, %v1424_v4  ;;  %v1430_v24 = vadd.f32 %v1429_v39, %v1428_v54  ;;  %v1458_v45 = vadd.f32 %v1457_v33, %v1417_v14 }
0x1f81   :  { %v1414_v57 = vpop.xlane.xlu0 %1413 }
0x1f82   :  { %v1469_v55 = vadd.f32 1e-12, %v1426_v5  ;;  %v1431_v3 = vrot.slane %v1430_v24, 1  ;;  %v1459_v51 = vrot.slane %v1458_v45, 2  ;;  %v1451_v25 = vrot.slane %v1414_v57, 4 }
0x1f84   :  { %7411 = vrcp.f32 %v1469_v55  ;;  %v1432_v7 = vadd.f32 %v1431_v3, %v1430_v24  ;;  %v1460_v9 = vadd.f32 %v1459_v51, %v1458_v45  ;;  %v1452_v0 = vadd.f32 %v1451_v25, %v1414_v57 }
0x1f85   :  { %v1411_v46 = vpop.xlane.xlu0 %1410 }
0x1f86   :  { %v1470_v53 = vadd.f32 1e-12, %v1432_v7  ;;  %v1461_v63 = vrot.slane %v1460_v9, 1  ;;  %v1453_v44 = vrot.slane %v1452_v0, 2  ;;  %v1445_v1 = vrot.slane %v1411_v46, 4 }
0x1f88   :  { %7413 = vrcp.f32 %v1470_v53  ;;  %v1462_v6 = vadd.f32 %v1461_v63, %v1460_v9  ;;  %v1454_v27 = vadd.f32 %v1453_v44, %v1452_v0  ;;  %v1446_v4 = vadd.f32 %v1445_v1, %v1411_v46  ;;  %v7457_v1 = vld [vmem:[%s7583_s9 + $0x10] sm:$0xff] }
0x1f8a   :  { %v1475_v54 = vadd.f32 1e-12, %v1462_v6  ;;  %v1455_v14 = vrot.slane %v1454_v27, 1  ;;  %v1447_v21 = vrot.slane %v1446_v4, 2  ;;  %v7458_v6 = vld [vmem:[%s7583_s9 + $0x18] sm:$0xff] }
0x1f8c   :  { %7415 = vrcp.f32 %v1475_v54  ;;  %v1456_v39 = vadd.f32 %v1455_v14, %v1454_v27  ;;  %v1448_v33 = vadd.f32 %v1447_v21, %v1446_v4  ;;  %v9168_v54 = vld [vmem:[#allocation9 + $0x38] sm:$0xff] }
0x1f8d   :  { %v9173_v14 = vld [vmem:[#allocation8 + $0x38] sm:$0xff] }
0x1f8e   :  { %v1474_v5 = vadd.f32 1e-12, %v1456_v39  ;;  %v1449_v55 = vrot.slane %v1448_v33, 1 }
0x1f90   :  { %7417 = vrcp.f32 %v1474_v5  ;;  %v1450_v24 = vadd.f32 %v1449_v55, %v1448_v33 }
0x1f91   :  { %v7412_v45 = vpop.eup %7411 }
0x1f92   :  { %v1493_v57 = vmul.f32 %v9106_v62, %v7412_v45  ;;  %v1473_v3 = vadd.f32 1e-12, %v1450_v24 }
0x1f94   :  { %1501 = vst.msk [vmem:[#allocation10] sm:$0xff] %vm184_vm0, %v1493_v57  ;;  %7419 = vrcp.f32 %v1473_v3 }
0x1f95   :  { %v7414_v53 = vpop.eup %7413 }
0x1f96   :  { %v1494_v46 = vmul.f32 %v9111_v16, %v7414_v53 }
0x1f98   :  { %1502 = vst.msk [vmem:[#allocation10 + $0x8] sm:$0xff] %vm184_vm0, %v1494_v46 }
0x1f99   :  { %v7416_v51 = vpop.eup %7415 }
0x1f9a   :  { %v1499_v27 = vmul.f32 %v9116_v52, %v7416_v51  ;;  %v7456_v52 = vld [vmem:[%s7583_s9 + $0x38] sm:$0xff]  ;;  %s7567_s9 = smov [#allocation15]  }
0x1f9b   :  { %v1418_v44 = vsel %vm184_vm0, %v7456_v52, 0.0  ;;  %s6456_s1 = sshll.u32 %s7567_s9, 4  ;;  %s6457_s1 = int_to_ptr.vmem [resolvable:$true] %s6456_s1 }
0x1f9c   :  { %1507 = vst.msk [vmem:[#allocation10 + $0x30] sm:$0xff] %vm184_vm0, %v1499_v27 }
0x1f9d   :  { %v7418_v25 = vpop.eup %7417 }
0x1f9e   :  { %v1498_v62 = vmul.f32 %v9121_v42, %v7418_v25  ;;  %v1403_v42 = vsel %vm184_vm0, %v7457_v1, 0.0 }
0x1fa0   :  { %1506 = vst.msk [vmem:[#allocation10 + $0x28] sm:$0xff] %vm184_vm0, %v1498_v62 }
0x1fa1   :  { %v7420_v7 = vpop.eup %7419 }
0x1fa2   :  { %v1497_v9 = vmul.f32 %v9126_v8, %v7420_v7  ;;  %v1406_v8 = vsel %vm184_vm0, %v7458_v6, 0.0 }
0x1fa4   :  { %1505 = vst.msk [vmem:[#allocation10 + $0x20] sm:$0xff] %vm184_vm0, %v1497_v9 }
0x1fbe   :  { %v5687_v16 = vpop.permute.xlu1 %5686 }
0x1fbf   :  { %v5689_v0 = vmul.f32 %v9100_v58, %v5687_v16 }
0x1fc1   :  { %v5996_v63 = vmul.f32 %v9145_v22, %v5689_v0 }
0x1fc3   :  { %6006 = vrot.lane.b32.xlu1 %v5996_v63, %s7565_s22 }
0x1fe7   :  { %1419 = vadd.xlane.f32.xlu1 %v1418_v44 }
0x1feb   :  { %1404 = vadd.xlane.f32.xlu1 %v1403_v42 }
0x1fef   :  { %1407 = vadd.xlane.f32.xlu1 %v1406_v8 }
0x1ff8   :  { %v9166_v4 = vpop.f32.mrf.mxu1 }
0x1ffa   :  { %v5784_v58 = vpop.f32.mrf.mxu1 }
0x1ffb   :  { %v9171_v22 = vadd.f32 %v8980_v19, %v5784_v58 }
0x1ffd   :  { %v5788_v21 = vmul.f32 %v9171_v22, %v9168_v54 }
0x1fff   :  { %v5789_v39 = vadd.f32 %v5788_v21, %v9173_v14 }
0x2001   :  { %7099 = vmatmul.mubr.msk.f32.vlgmr.msra.gmra.mxu0 %vm184_vm0, %v5789_v39 }
0x2002   :  { %7102 = vmatpush3.msra.mxu0 %v8996_v34  ;;  %7105 = vmatprep.mubr.msk.f32.mxu0 %vm7563_vm2, %v9380_v41 }
0x2003   :  { %7103 = vmatprep.subr.mxu0 %v9380_v41 }
0x2004   :  { %7104 = vmatpush3.msra.mxu0 %v9001_v15 }
0x2005   :  { %7108 = vmatprep.subr.mxu0 %v9380_v41 }
0x2035   :  { %v6007_v19 = vpop.permute.xlu1 %6006 }
0x2036   :  { %6694 = vmatmul.mubr.msk.f32.vlgmr.msra.gmra.mxu1 %vm346_vm1, %v6007_v19 }
0x2070   :  { %v1420_v33 = vpop.xlane.xlu1 %1419 }
0x2071   :  { %v1463_v5 = vrot.slane %v1420_v33, 4 }
0x2073   :  { %v1464_v55 = vadd.f32 %v1463_v5, %v1420_v33 }
0x2074   :  { %v1405_v24 = vpop.xlane.xlu1 %1404 }
0x2075   :  { %v1465_v45 = vrot.slane %v1464_v55, 2  ;;  %v1433_v57 = vrot.slane %v1405_v24, 4 }
0x2077   :  { %v1466_v3 = vadd.f32 %v1465_v45, %v1464_v55  ;;  %v1434_v34 = vadd.f32 %v1433_v57, %v1405_v24  ;;  %v9188_v55 = vld [vmem:[#allocation10] sm:$0xff]  ;;  %v2123_v57 = vld [vmem:[#allocation10 + $0x8] sm:$0xff] }
0x2078   :  { %v1408_v53 = vpop.xlane.xlu1 %1407 }
0x2079   :  { %v1467_v46 = vrot.slane %v1466_v3, 1  ;;  %v1435_v51 = vrot.slane %v1434_v34, 2  ;;  %v1439_v27 = vrot.slane %v1408_v53, 4 }
0x207b   :  { %v1468_v25 = vadd.f32 %v1467_v46, %v1466_v3  ;;  %v1436_v62 = vadd.f32 %v1435_v51, %v1434_v34  ;;  %v1440_v15 = vadd.f32 %v1439_v27, %v1408_v53  ;;  %v1719_v3 = vmul.f32 %v8210_v10, %v9188_v55 }
0x207c   :  { %v2312_v46 = vmul.f32 %v8298_v28, %v2123_v57 }
0x207d   :  { %v1476_v7 = vadd.f32 1e-12, %v1468_v25  ;;  %v1437_v9 = vrot.slane %v1436_v62, 1  ;;  %v1441_v16 = vrot.slane %v1440_v15, 2  ;;  %v3022_v25 = vld [vmem:[#allocation10 + $0x28] sm:$0xff] }
0x207f   :  { %7421 = vrcp.f32 %v1476_v7  ;;  %v1438_v0 = vadd.f32 %v1437_v9, %v1436_v62  ;;  %v1442_v63 = vadd.f32 %v1441_v16, %v1440_v15  ;;  %v3211_v7 = vmul.f32 %v8457_v30, %v3022_v25  ;;  %v3622_v16 = vld [vmem:[#allocation10 + $0x20] sm:$0xff] }
0x2081   :  { %v1471_v44 = vadd.f32 1e-12, %v1438_v0  ;;  %v1443_v42 = vrot.slane %v1442_v63, 1  ;;  %v3811_v0 = vmul.f32 %v8627_v61, %v3622_v16  ;;  %v5587_v61 = vmul.f32 %v9065_v60, %v2123_v57 }
0x2083   :  { %7423 = vrcp.f32 %v1471_v44  ;;  %v1444_v8 = vadd.f32 %v1443_v42, %v1442_v63 }
0x2085   :  { %v1472_v58 = vadd.f32 1e-12, %v1444_v8  ;;  %v4700_v8 = vmul.f32 %v8855_v13, %v3022_v25  ;;  %v5866_v13 = vld [vmem:[#allocation4 + $0x38] sm:$0xff] }
0x2087   :  { %7425 = vrcp.f32 %v1472_v58 }
0x208c   :  { %v7422_v21 = vpop.eup %7421 }
0x208d   :  { %v1500_v39 = vmul.f32 %v7456_v52, %v7422_v21  ;;  %v2422_v52 = vld [vmem:[#allocation10 + $0x30] sm:$0xff] }
0x208e   :  { %v2611_v51 = vmul.f32 %v8324_v59, %v2422_v52  ;;  %v4108_v59 = vmul.f32 %v8690_v36, %v3622_v16 }
0x208f   :  { %1508 = vst.msk [vmem:[#allocation10 + $0x38] sm:$0xff] %vm184_vm0, %v1500_v39 }
0x2090   :  { %v7424_v19 = vpop.eup %7423 }
0x2091   :  { %v1495_v33 = vmul.f32 %v7457_v1, %v7424_v19 }
0x2093   :  { %1503 = vst.msk [vmem:[#allocation10 + $0x10] sm:$0xff] %vm184_vm0, %v1495_v33 }
0x2094   :  { %v7426_v5 = vpop.eup %7425 }
0x2095   :  { %v1496_v24 = vmul.f32 %v7458_v6, %v7426_v5  ;;  %v7459_v5 = vld [vmem:[%s9371_s20] ss:$0 sm:$0xff] }
0x2096   :  { %v1828_v45 = vld [vmem:[#allocation10 + $0x38] sm:$0xff] }
0x2097   :  { %1504 = vst.msk [vmem:[#allocation10 + $0x18] sm:$0xff] %vm184_vm0, %v1496_v24  ;;  %v2011_v34 = vmul.f32 %v8246_v18, %v1828_v45  ;;  %v6688_v24 = vld [vmem:[%s7578_s5 + $0x38] sm:$0xff] }
0x2099   :  { %v2115_v53 = vadd.f32 %v2011_v34, %v1719_v3 }
0x209a   :  { %v2723_v1 = vld [vmem:[#allocation10 + $0x10] sm:$0xff] }
0x209b   :  { %v2714_v27 = vadd.f32 %v2312_v46, %v2115_v53  ;;  %v2912_v6 = vmul.f32 %v8419_v12, %v2723_v1  ;;  %v4995_v30 = vmul.f32 %v8896_v48, %v2723_v1  ;;  %v5876_v48 = vsub.f32 %v9171_v22, %v6688_v24 }
0x209d   :  { %v2715_v62 = vadd.f32 %v2714_v27, %v2611_v51  ;;  %v5877_v57 = vand.u32 2147483647, %v5876_v48 }
0x209e   :  { %v3323_v15 = vld [vmem:[#allocation10 + $0x18] sm:$0xff] }
0x209f   :  { %v3314_v9 = vadd.f32 %v2912_v6, %v2715_v62  ;;  %v3512_v18 = vmul.f32 %v8575_v47, %v3323_v15  ;;  %v4403_v44 = vmul.f32 %v8740_v17, %v3323_v15  ;;  %v5292_v47 = vmul.f32 %v9012_v31, %v2422_v52 }
0x20a1   :  { %v3315_v10 = vadd.f32 %v3314_v9, %v3211_v7  ;;  %v9227_v9 = vld [vmem:[#allocation12 + $0x38] sm:$0xff] }
0x20a3   :  { %v3914_v28 = vadd.f32 %v3512_v18, %v3315_v10  ;;  %v5989_v10 = vld [vmem:[#allocation9] sm:$0xff] }
0x20a5   :  { %v3915_v63 = vadd.f32 %v3914_v28, %v3811_v0  ;;  %v5988_v28 = vld [vmem:[#allocation8] sm:$0xff] }
0x20a7   :  { %v4506_v42 = vadd.f32 %v4108_v59, %v3915_v63 }
0x20a9   :  { %v4507_v12 = vadd.f32 %v4506_v42, %v4403_v44 }
0x20ab   :  { %v5098_v58 = vadd.f32 %v4700_v8, %v4507_v12 }
0x20ad   :  { %v5099_v21 = vadd.f32 %v5098_v58, %v4995_v30 }
0x20af   :  { %v5690_v39 = vadd.f32 %v5292_v47, %v5099_v21  ;;  %v5987_v21 = vld [vmem:[%s7578_s5] sm:$0xff] }
0x20b1   :  { %v5691_v19 = vadd.f32 %v5690_v39, %v5587_v61  ;;  %v6159_v39 = vld [vmem:[#allocation5] sm:$0xff] }
0x20c1   :  { %v5861_v33 = vpop.f32.mrf.mxu0 }
0x20c2   :  { %v5862_v36 = vadd.f32 %v7459_v5, %v5861_v33 }
0x20c3   :  { %v7100_v17 = vpop.f32.mrf.mxu0 }
0x20c4   :  { %v5867_v3 = vsub.f32 %v5862_v36, %v9171_v22  ;;  %v5878_v34 = vsub.f32 %v5862_v36, %v6688_v24 }
0x20c6   :  { %v5868_v53 = vmul.f32 %v5867_v3, %v5866_v13  ;;  %v5879_v31 = vand.u32 2147483647, %v5878_v34 }
0x20c8   :  { %v5869_v46 = vadd.f32 %v5868_v53, %v9171_v22  ;;  %v5880_v1 = vadd.f32 %v5879_v31, %v5877_v57  ;;  %v6359_v22 = vld [vmem:[%s9377_s16 + $0x38] sm:$0xff]  ;;  %v6344_v53 = vld [vmem:[%s9373_s7] sm:$0xff] }
0x20c9   :  { %v6304_v57 = vld [vmem:[#allocation11] sm:$0xff] }
0x20ca   :  { %v5870_v60 = vmul.f32 %v5869_v46, %v9168_v54  ;;  %6691 = vst.msk [vmem:[%s9373_s7 + $0x38] sm:$0xff] %vm184_vm0, %v5869_v46  ;;  %v5881_v52 = vsub.f32 %v5869_v46, %v6688_v24 }
0x20cc   :  { %v5882_v51 = vand.u32 2147483647, %v5881_v52  ;;  %v5871_v27 = vadd.f32 %v5870_v60, %v9173_v14 }
0x20ce   :  { %v5883_v25 = vadd.f32 %v5882_v51, %v5880_v1  ;;  %5875 = vst.msk [vmem:[#allocation11 + $0x38] sm:$0xff] %vm184_vm0, %v5871_v27  ;;  %7106 = vmatmul.mubr.msk.f32.vlgmr.msra.gmra.mxu0 %vm184_vm0, %v5871_v27  ;;  %v9386_v27 = vsub.f32 %v9077_v20, %v9079_v37  ;;  %v9389_v20 = vsub.f32 %v8702_v38, %v8704_v40 }
0x20cf   :  { %7109 = vmatpush3.msra.mxu0 %v9010_v2  ;;  %7112 = vmatprep.mubr.msk.f32.mxu0 %vm7563_vm2, %v9380_v41 }
0x20d0   :  { %7110 = vmatprep.subr.mxu0 %v9380_v41  ;;  %v5884_v54 = vmul.f32 %v5883_v25, %v1828_v45  ;;  %v6393_v25 = vand.u32 2147483647, %v9386_v27  ;;  %v6396_v37 = vand.u32 2147483647, %v9389_v20 }
0x20d1   :  { %v6351_v62 = vld [vmem:[%s9373_s7 + $0x38] sm:$0xff]  ;;  %7111 = vmatpush3.msra.mxu0 %v9017_v49 }
0x20d2   :  { %v6367_v14 = vadd.f32 %v6359_v22, %v6351_v62  ;;  %7115 = vmatprep.subr.mxu0 %v9380_v41  ;;  %v6277_v6 = vadd.f32 %v5884_v54, %v5691_v19 }
0x20d4   :  { %v6375_v15 = vmul.f32 0.5, %v6367_v14  ;;  %v9388_v14 = vsub.f32 %v8752_v50, %v8754_v23  ;;  %v9392_v23 = vld [vmem:[#allocation42_spill] sm:$0xff] }
0x20d5   :  { %v9225_v7 = vld [vmem:[#allocation11 + $0x38] sm:$0xff] }
0x20d6   :  { %6383 = vst.msk [vmem:[%s9378_s26 + $0x38] sm:$0xff] %vm184_vm0, %v6375_v15  ;;  %v6327_v2 = vadd.f32 %v9227_v9, %v9225_v7  ;;  %v6391_v45 = vsub.f32 %v9225_v7, %v9227_v9 }
0x20d8   :  { %v6335_v16 = vmul.f32 0.5, %v6327_v2  ;;  %v6401_v2 = vsel %vm184_vm0, %v6393_v25, 0.0  ;;  %v6399_v38 = vand.u32 2147483647, %v6391_v45 }
0x20da   :  { %6343 = vst.msk [vmem:[%s9379_s28 + $0x38] sm:$0xff] %vm184_vm0, %v6335_v16 }
0x20f6   :  { %v9237_v49 = vpop.f32.mrf.mxu1 }
0x20f8   :  { %v6078_v18 = vpop.f32.mrf.mxu1 }
0x20f9   :  { %v6081_v0 = vadd.f32 %v9042_v32, %v6078_v18 }
0x20fb   :  { %v6082_v63 = vmul.f32 %v6081_v0, %v5989_v10 }
0x20fd   :  { %v6083_v59 = vadd.f32 %v6082_v63, %v5988_v28  ;;  %v9393_v63 = vld [vmem:[#allocation43_spill] sm:$0xff] }
0x20ff   :  { %7113 = vmatmul.mubr.msk.f32.vlgmr.msra.gmra.mxu0 %vm184_vm0, %v6083_v59  ;;  %v9394_v59 = vsub.f32 %v9392_v23, %v9393_v63 }
0x2100   :  { %7116 = vmatpush3.msra.mxu0 %v9049_v11  ;;  %7119 = vmatprep.mubr.msk.f32.mxu0 %vm7563_vm2, %v9380_v41  ;;  %v7460_v11 = vld [vmem:[%s9376_s15] ss:$0 sm:$0xff] }
0x2101   :  { %7117 = vmatprep.subr.mxu0 %v9380_v41 }
0x2102   :  { %7118 = vmatpush3.msra.mxu0 %v9054_v29 }
0x218e   :  { %v5956_v44 = vpop.f32.mrf.mxu0 }
0x218f   :  { %v5957_v42 = vadd.f32 %v5956_v44, %v9166_v4  ;;  %v6167_v4 = vsub.f32 %v6081_v0, %v5987_v21  ;;  %v6398_v44 = vand.u32 2147483647, %v9394_v59 }
0x2190   :  { %v7107_v32 = vpop.f32.mrf.mxu0 }
0x2191   :  { %v5962_v12 = vadd.f32 %v5957_v42, %v8057_v35  ;;  %v6168_v5 = vand.u32 2147483647, %v6167_v4  ;;  %v6407_v42 = vsel %vm184_vm0, %v6396_v37, 0.0  ;;  %v9395_v4 = vld [vmem:[#allocation40_spill] sm:$0xff] }
0x2193   :  { %7427 = vtanh.f32 %v5962_v12 }
0x21a0   :  { %v7428_v8 = vpop.eup %7427 }
0x21a1   :  { %5972 = vrot.lane.b32.xlu1 %v7428_v8, %s7564_s18 }
0x21bf   :  { %v6155_v30 = vpop.f32.mrf.mxu0 }
0x21c0   :  { %v6156_v58 = vadd.f32 %v7460_v11, %v6155_v30  ;;  %v6413_v11 = vsel %vm184_vm0, %v6399_v38, 0.0 }
0x21c1   :  { %v7114_v47 = vpop.f32.mrf.mxu0 }
0x21c2   :  { %v6160_v61 = vsub.f32 %v6156_v58, %v6081_v0  ;;  %v6169_v41 = vsub.f32 %v6156_v58, %v5987_v21 }
0x21c4   :  { %v6161_v29 = vmul.f32 %v6160_v61, %v6159_v39  ;;  %v6170_v33 = vand.u32 2147483647, %v6169_v41 }
0x21c6   :  { %v6162_v19 = vadd.f32 %v6161_v29, %v6081_v0  ;;  %v6171_v24 = vadd.f32 %v6170_v33, %v6168_v5  ;;  %v9396_v5 = vld [vmem:[#allocation44_spill] sm:$0xff] }
0x21c8   :  { %v6163_v35 = vmul.f32 %v6162_v19, %v5989_v10  ;;  %6165 = vst.msk [vmem:[%s9377_s16] sm:$0xff] %vm184_vm0, %v6162_v19  ;;  %v6172_v36 = vsub.f32 %v6162_v19, %v5987_v21  ;;  %v6693_v21 = vmul.f32 -1.442695, %v5962_v12 }
0x21ca   :  { %v6173_v17 = vand.u32 2147483647, %v6172_v36  ;;  %v6164_v3 = vadd.f32 %v6163_v35, %v5988_v28  ;;  %7429 = vpow2.f32 %v6693_v21 }
0x21cc   :  { %6166 = vst.msk [vmem:[#allocation12] sm:$0xff] %vm184_vm0, %v6164_v3  ;;  %7120 = vmatmul.mubr.msk.f32.vlgmr.msra.gmra.mxu0 %vm184_vm0, %v6164_v3  ;;  %v6174_v34 = vadd.f32 %v6173_v17, %v6171_v24 }
0x21ce   :  { %v6175_v13 = vmul.f32 %v6174_v34, %v9188_v55  ;;  %v9387_v55 = vsub.f32 %v8904_v43, %v8906_v26  ;;  %v9390_v43 = vld [vmem:[#allocation41_spill] sm:$0xff] }
0x21cf   :  { %v6352_v48 = vld [vmem:[%s9377_s16] sm:$0xff]  ;;  %v9391_v26 = vsub.f32 %v8867_v56, %v9390_v43  ;;  %v6411_v56 = vsel %vm184_vm0, %v6398_v44, 0.0 }
0x21d0   :  { %v6360_v46 = vadd.f32 %v6352_v48, %v6344_v53  ;;  %v6278_v31 = vadd.f32 %v6277_v6, %v6175_v13  ;;  %v6394_v62 = vand.u32 2147483647, %v9387_v55  ;;  %v6395_v6 = vand.u32 2147483647, %v9388_v14 }
0x21d1   :  { %v6397_v0 = vand.u32 2147483647, %v9391_v26 }
0x21d2   :  { %v6368_v60 = vmul.f32 0.5, %v6360_v46  ;;  %v6403_v10 = vsel %vm184_vm0, %v6394_v62, 0.0  ;;  %v6405_v28 = vsel %vm184_vm0, %v6395_v6, 0.0  ;;  %v6289_v12 = vsel %vm184_vm0, %v6278_v31, 0.0 }
0x21d3   :  { %v6312_v52 = vld [vmem:[#allocation12] sm:$0xff]  ;;  %v6409_v40 = vsel %vm184_vm0, %v6397_v0, 0.0 }
0x21d4   :  { %6376 = vst.msk [vmem:[%s9378_s26] sm:$0xff] %vm184_vm0, %v6368_v60  ;;  %v6320_v1 = vadd.f32 %v6312_v52, %v6304_v57  ;;  %v6384_v51 = vsub.f32 %v6304_v57, %v6312_v52 }
0x21d6   :  { %v6328_v54 = vmul.f32 0.5, %v6320_v1  ;;  %v6392_v22 = vand.u32 2147483647, %v6384_v51 }
0x21d7   :  { %v7430_v47 = vpop.eup %7429 }
0x21d8   :  { %6336 = vst.msk [vmem:[%s9379_s28] sm:$0xff] %vm184_vm0, %v6328_v54  ;;  %v6400_v15 = vsel %vm184_vm0, %v6392_v22, 0.0  ;;  %v5966_v61 = vadd.f32 1.0, %v7430_v47  ;;  %v9397_v22 = vld [vmem:[#allocation45_spill] sm:$0xff] }
0x21d9   :  { %v6402_v16 = vadd.f32 %v6401_v2, %v6400_v15 }
0x21da   :  { %7431 = vrcp.f32 %v5966_v61 }
0x21db   :  { %v6404_v18 = vadd.f32 %v6403_v10, %v6402_v16 }
0x21dd   :  { %v6406_v50 = vadd.f32 %v6405_v28, %v6404_v18 }
0x21df   :  { %v6408_v32 = vadd.f32 %v6407_v42, %v6406_v50 }
0x21e1   :  { %v6410_v8 = vadd.f32 %v6409_v40, %v6408_v32 }
0x21e3   :  { %v6412_v30 = vadd.f32 %v6411_v56, %v6410_v8 }
0x21e5   :  { %v6414_v58 = vadd.f32 %v6413_v11, %v6412_v30 }
0x21e7   :  { %v7432_v41 = vpop.eup %7431  ;;  %v6415_v46 = vsel %vm184_vm0, %v6414_v58, 0.0 }
0x21e8   :  { %v5970_v36 = vmul.f32 %v7432_v41, %v9396_v5 }
0x2213   :  { %v5973_v39 = vpop.permute.xlu1 %5972 }
0x2214   :  { %v5975_v29 = vmul.f32 %v7432_v41, %v5973_v39 }
0x2216   :  { %5977 = vrot.lane.b32.xlu1 %v5975_v29, %s7565_s22 }
0x2288   :  { %v5978_v35 = vpop.permute.xlu1 %5977 }
0x2289   :  { %v5980_v24 = vadd.f32 %v5978_v35, %v5970_v36 }
0x228c   :  { %v6247_v7 = vpop.f32.mrf.mxu0 }
0x228d   :  { %v6248_v9 = vadd.f32 %v6247_v7, %v9237_v49 }
0x228e   :  { %v7121_v45 = vpop.f32.mrf.mxu0 }
0x228f   :  { %v6252_v19 = vadd.f32 %v6248_v9, %v9395_v4 }
0x2291   :  { %7433 = vtanh.f32 %v6252_v19  ;;  %v6697_v3 = vmul.f32 -1.442695, %v6252_v19 }
0x2292   :  { %7435 = vtanh.f32 %v5980_v24 }
0x2293   :  { %7437 = vpow2.f32 %v6697_v3 }
0x229e   :  { %v7434_v33 = vpop.eup %7433 }
0x229f   :  { %6262 = vrot.lane.b32.xlu0 %v7434_v33, %s7564_s18  ;;  %v7436_v17 = vpop.eup %7435 }
0x22a0   :  { %v7438_v49 = vpop.eup %7437 }
0x22a1   :  { %v6256_v34 = vadd.f32 1.0, %v7438_v49 }
0x22a3   :  { %7439 = vrcp.f32 %v6256_v34 }
0x22b0   :  { %v9298_v13 = vpop.eup %7439 }
0x22b1   :  { %v6260_v55 = vmul.f32 %v9298_v13, %v9397_v22 }
0x22be   :  { %6290 = vadd.xlane.f32.xlu0 %v6289_v12 }
0x22d4   :  { %5983 = vrot.lane.b32.xlu0 %v7436_v17, %s7564_s18 }
0x2311   :  { %v6263_v53 = vpop.permute.xlu0 %6262 }
0x2312   :  { %v6265_v48 = vmul.f32 %v9298_v13, %v6263_v53 }
0x2314   :  { %6267 = vrot.lane.b32.xlu1 %v6265_v48, %s7565_s22 }
0x2338   :  { %6416 = vadd.xlane.f32.xlu1 %v6415_v46 }
0x2347   :  { %v6291_v31 = vpop.xlane.xlu0 %6290 }
0x2348   :  { %v6292_v60 = vrot.slane %v6291_v31, 4 }
0x234a   :  { %v6293_v57 = vadd.f32 %v6292_v60, %v6291_v31 }
0x234b   :  { %v5984_v52 = vpop.permute.xlu0 %5983 }
0x234c   :  { %v6294_v1 = vrot.slane %v6293_v57, 2  ;;  %v5986_v51 = vmul.f32 %v7432_v41, %v5984_v52 }
0x234e   :  { %6280 = vrot.lane.b32.xlu0 %v5986_v51, %s7565_s22  ;;  %v6295_v27 = vadd.f32 %v6294_v1, %v6293_v57 }
0x2350   :  { %v6296_v25 = vrot.slane %v6295_v27, 1 }
0x2352   :  { %v6297_v54 = vadd.f32 %v6296_v25, %v6295_v27 }
0x2354   :  { %7122 = vpush %v6297_v54 }
0x2385   :  { %s7123_s5 = spop %7122 }
0x2386   :  { %v6299_v62 = vstv %s7123_s5  ;;  %v6268_v14 = vpop.permute.xlu1 %6267 }
0x2387   :  { %v6301_v6 = vmul.f32 0.041666668, %v6299_v62  ;;  %v6270_v15 = vadd.f32 %v6268_v14, %v6260_v55 }
0x2389   :  { %7441 = vtanh.f32 %v6270_v15  ;;  %6303 = vst.msk [vmem:[#allocation17] sm:$0x1] %vm6302_vm3, %v6301_v6 }
0x2396   :  { %v7442_v2 = vpop.eup %7441 }
0x2397   :  { %6273 = vrot.lane.b32.xlu1 %v7442_v2, %s7564_s18 }
0x23c0   :  { %v6281_v16 = vpop.permute.xlu0 %6280 }
0x23c1   :  { %6283 = vst.msk [vmem:[#allocation13] sm:$0xff] %vm346_vm1, %v6281_v16  ;;  %v6417_v20 = vpop.xlane.xlu1 %6416 }
0x23c2   :  { %v6418_v37 = vrot.slane %v6417_v20, 4 }
0x23c4   :  { %v6419_v10 = vadd.f32 %v6418_v37, %v6417_v20 }
0x23c6   :  { %v6420_v18 = vrot.slane %v6419_v10, 2 }
0x23c8   :  { %v6421_v43 = vadd.f32 %v6420_v18, %v6419_v10 }
0x23ca   :  { %v6422_v26 = vrot.slane %v6421_v43, 1 }
0x23cc   :  { %v6423_v0 = vadd.f32 %v6422_v26, %v6421_v43 }
0x23ce   :  { %7124 = vpush %v6423_v0 }
0x23ff   :  { %s7125_s13 = spop %7124 }
0x2400   :  { %v6425_v28 = vstv %s7125_s13 }
0x2401   :  { %7472 = shalt.err (!%p7469_p4)
}
0x2402   :  { %6447 = dma.vmem_to_hbm [thread:$0]  %s6445_s0, 128, %s7748_s8, [#allocation14]   ;;  %v6427_v50 = vmul.f32 0.0009765625, %v6425_v28 }
0x2403   :  { %s7569_s21 = smov [#allocation17]   ;;  %s7481_s3 = scalar_lea.vmem %s6457_s1, 16 }
0x2404   :  { %s6466_s29 = sshll.u32 %s7569_s21, 4  ;;  %v6428_v23 = vmul.f32 0.1, %v6427_v50  ;;  %p7482_p5 = scmp.ne.s32.totalorder %s6457_s1, %s7481_s3  ;;  %s6467_s29 = int_to_ptr.vmem [resolvable:$true] %s6466_s29 }
0x2405   :  { %s7485_s14 = scalar_lea.vmem %s6457_s1, 32  ;;  %p7486_p6 = scmp.lt.s32.totalorder %s6457_s1, %s6457_s1 }
0x2406   :  { %6429 = vst.msk [vmem:[#allocation15] sm:$0x1] %vm6302_vm3, %v6428_v23  ;;  %p7487_p7 = scmp.lt.s32.totalorder %s7485_s14, %s7481_s3 }
0x2408   :  { %p7488_p8 = por %p7487_p7, %p7486_p6 }
0x240a   :  { %p7489_p9 = pnand %p7488_p8, %p7482_p5 }
0x240c   :  { %7492 = shalt.err (!%p7489_p9)
}
0x240d   :  { %6459 = dma.vmem_to_hbm [thread:$0]  %s6457_s1, 16, %s7758_s25, [#allocation16]  }
0x240e   :  { %s7501_s24 = scalar_lea.vmem %s6467_s29, 16  ;;  %s7505_s8 = scalar_lea.vmem %s6467_s29, 32 }
0x240f   :  { %p7502_p10 = scmp.ne.s32.totalorder %s6467_s29, %s7501_s24  ;;  %p7506_p11 = scmp.lt.s32.totalorder %s6467_s29, %s6467_s29 }
0x2410   :  { %p7507_p12 = scmp.lt.s32.totalorder %s7505_s8, %s7501_s24 }
0x2412   :  { %p7508_p13 = por %p7507_p12, %p7506_p11 }
0x2414   :  { %p7509_p0 = pnand %p7508_p13, %p7502_p10 }
0x2416   :  { %7512 = shalt.err (!%p7509_p0)
}
0x2417   :  { %6469 = dma.vmem_to_hbm [thread:$0]  %s6467_s29, 16, %s7763_s19, [#allocation16]   ;;  %v6274_v63 = vpop.permute.xlu1 %6273 }
0x2418   :  { %v6276_v59 = vmul.f32 %v9298_v13, %v6274_v63 }
0x241a   :  { %6285 = vrot.lane.b32.xlu1 %v6276_v59, %s7565_s22 }
0x248c   :  { %v6286_v44 = vpop.permute.xlu1 %6285 }
0x248d   :  { %6288 = vst.msk [vmem:[%s7753_s27] sm:$0xff] %vm346_vm1, %v6286_v44 }
0x248e   :  { %7521 = dma.done.wait [#allocation14], 128  }
0x248f   :  { %7522 = vsyncadd [#allocation14], 4294967168 }
0x2490   :  { %7523 = dma.done.wait [#allocation16], 32  }
0x2491   :  { %7524 = vsyncadd [#allocation16], 4294967264 }
0x2492   :  { %6489 = vsyncpa [#allocation14], 1 }
0x2493   :  { %6490 = vsyncpa [#allocation16], 1 }

</bundles_post_ra>
